<compile_context>
chip_gen: v7x
topology: tpu7x:2x2x1
jax: 0.10.0
libtpu: 0.0.40
codegen_flags: <defaults>
</compile_context>

<pallas_src>
import functools

import jax
import jax.numpy as jnp
from jax.experimental import pallas as pl
from jax.experimental.pallas import tpu as pltpu

LANE = 128
LATENT = 50
NUM_CLASSES = 10
LATENT_PAD = 128              # latent dim padded to one lane group
OH_PAD = 128                  # one-hot padded to a full lane group (aligned concat, K=256)
FC1_OUT = 64 * 7 * 7          # 3136
FC1_OUT_PAD = 3200            # 25 * 128 -> lane-dense fc1 / decoder-feature width


def _round_up(x, m):
    return (x + m - 1) // m * m


# ----------------------------------------------------------------------------
# Pallas kernels
# ----------------------------------------------------------------------------
def _gemm_bias_act_kernel(x_ref, w_ref, b_ref, o_ref, *, act):
    acc = jnp.dot(x_ref[...], w_ref[...], preferred_element_type=jnp.float32)
    acc = acc + b_ref[...]                       # (1, Npad) broadcasts over rows
    if act == "relu":
        acc = jnp.maximum(acc, 0.0)
    elif act == "sigmoid":
        acc = jax.nn.sigmoid(acc)
    o_ref[...] = acc.astype(o_ref.dtype)


def _choose_m_tiling(M, tm_max=512, split_threshold=256):
    """(TM, Mpad, steps): 16-row (packed bf16) tiles, bounded row padding, and
    >=2 parallel grid steps when M is big enough to be worth splitting over
    v7x's two TensorCores."""
    steps = max(1, -(-M // tm_max))
    if steps == 1 and M >= split_threshold:
        steps = 2
    tm = _round_up(-(-M // steps), 16)
    return tm, tm * steps, steps


def gemm_bias_act(x, w, b, act, out_dtype):
    """act(x @ w + b).  x:(M,K) bf16, w:(K,Npad) bf16 (Npad%128==0), b:(1,Npad) f32.

    Returns (Mpad, Npad); caller slices off M/N padding.  M-tiled grid marked
    "parallel" -> software pipelining + megacore split on v7x.
    """
    M, K = x.shape
    Npad = w.shape[1]
    TM, Mpad, steps = _choose_m_tiling(M)
    if Mpad != M:
        x = jnp.pad(x, ((0, Mpad - M), (0, 0)))

    flops = 2 * Mpad * K * Npad
    bytes_accessed = (Mpad * K * x.dtype.itemsize
                      + K * Npad * w.dtype.itemsize
                      + Npad * 4
                      + Mpad * Npad * jnp.dtype(out_dtype).itemsize)
    cost = pl.CostEstimate(
        flops=flops,
        transcendentals=Mpad * Npad if act == "sigmoid" else 0,
        bytes_accessed=bytes_accessed)

    return pl.pallas_call(
        functools.partial(_gemm_bias_act_kernel, act=act),
        out_shape=jax.ShapeDtypeStruct((Mpad, Npad), out_dtype),
        grid=(steps,),
        in_specs=[
            pl.BlockSpec((TM, K), lambda i: (i, 0)),      # activation tiles stream
            pl.BlockSpec((K, Npad), lambda i: (0, 0)),    # weight resident
            pl.BlockSpec((1, Npad), lambda i: (0, 0)),    # bias resident
        ],
        out_specs=pl.BlockSpec((TM, Npad), lambda i: (i, 0)),
        compiler_params=pltpu.CompilerParams(
            dimension_semantics=("parallel",)),
        cost_estimate=cost,
    )(x, w, b)


def _zhead_fc1_kernel(hf_ref, wzz_ref, bzz_ref, eps_ref, oh_ref,
                      wfc_ref, bfc_ref,
                      zz_ref, zv_ref, d_ref):
    lp = LATENT_PAD
    # fused z_mean | z_log GEMM (lane-dense 256-wide output)
    zz = jnp.dot(hf_ref[...], wzz_ref[...],
                 preferred_element_type=jnp.float32) + bzz_ref[...]
    zm = zz[:, :lp]                       # lane-aligned 128-wide splits
    zl = zz[:, lp:]
    # NOTE: eps and the zz weight/bias padding are all exactly zero in the
    # padded latent lanes, so z_val's padded columns stay exactly 0 (they are
    # sliced off by the caller; do not change the eps zero-padding).
    zv = zm + jnp.exp(zl * 0.5) * eps_ref[...]
    zz_ref[...] = zz
    zv_ref[...] = zv
    # decoder fc1:  relu([z_val | onehot] @ Wfc + b)  as ONE K=256 dot.
    zin = jnp.concatenate([zv.astype(jnp.bfloat16), oh_ref[...]], axis=1)
    d = jnp.dot(zin, wfc_ref[...], preferred_element_type=jnp.float32)
    d = d + bfc_ref[...]
    d_ref[...] = jnp.maximum(d, 0.0).astype(d_ref.dtype)


def zhead_fc1(hf, wzz, bzz, eps, oh, wfc, bfc):
    Bp = hf.shape[0]

    def _fs(shape):
        return pl.BlockSpec(shape, lambda *_: (0,) * len(shape))

    out_shape = (
        jax.ShapeDtypeStruct((Bp, 2 * LATENT_PAD), jnp.float32),   # [z_mean | z_log]
        jax.ShapeDtypeStruct((Bp, LATENT_PAD), jnp.float32),       # z_val
        jax.ShapeDtypeStruct((Bp, FC1_OUT_PAD), jnp.bfloat16),     # fc1 output (NHWC order)
    )
    return pl.pallas_call(
        _zhead_fc1_kernel,
        out_shape=out_shape,
        grid=(1,),
        in_specs=[_fs(hf.shape), _fs(wzz.shape), _fs(bzz.shape),
                  _fs(eps.shape), _fs(oh.shape), _fs(wfc.shape), _fs(bfc.shape)],
        out_specs=(_fs((Bp, 2 * LATENT_PAD)), _fs((Bp, LATENT_PAD)),
                   _fs((Bp, FC1_OUT_PAD))),
        compiler_params=pltpu.CompilerParams(
            dimension_semantics=("arbitrary",)),
    )(hf, wzz, bzz, eps, oh, wfc, bfc)


# ----------------------------------------------------------------------------
# Conv glue (NHWC im2col in XLA; all GEMMs run in the Pallas kernel)
# ----------------------------------------------------------------------------
def _im2col_nhwc(x, K, stride, pad_tl, pad_br):
    if pad_tl or pad_br:
        x = jnp.pad(x, ((0, 0), (pad_tl, pad_br), (pad_tl, pad_br), (0, 0)))
    N, H, W, C = x.shape
    Ho = (H - K) // stride + 1
    Wo = (W - K) // stride + 1
    cols = [x[:, ky:ky + (Ho - 1) * stride + 1:stride,
               kx:kx + (Wo - 1) * stride + 1:stride, :]
            for ky in range(K) for kx in range(K)]
    patches = jnp.concatenate(cols, axis=-1)          # (N,Ho,Wo,K*K*C), (ky,kx,c)
    return patches.reshape(N * Ho * Wo, K * K * C), Ho, Wo


def conv2d_nhwc(x, w_gemm, b, K, cout, stride, pad, act, out_dtype):
    N = x.shape[0]
    patches, Ho, Wo = _im2col_nhwc(x, K, stride, pad, pad)
    out = gemm_bias_act(patches, w_gemm, b, act, out_dtype)
    out = out[:N * Ho * Wo, :cout]
    return out.reshape(N, Ho, Wo, cout)


def conv_transpose2d_s2_nhwc(x, w_gemm, b, cout, pad, out_hw, act, out_dtype):
    """ConvTranspose2d(K=3, stride=2, padding=pad in {0,1}) via sub-pixel
    decomposition: a stride-1 2x2 conv over the NON-dilated input producing
    4*cout space-to-depth channels, then depth-to-space + crop in XLA.
    No dilation zeros, no zero patch rows, K = 4*Cin = 256."""
    N = x.shape[0]
    pad_tl = 1 if pad == 0 else 0
    patches, Ho, Wo = _im2col_nhwc(x, 2, 1, pad_tl, 1)
    out = gemm_bias_act(patches, w_gemm, b, act, out_dtype)
    out = out[:N * Ho * Wo, :4 * cout].reshape(N, Ho, Wo, 2, 2, cout)
    out = out.transpose(0, 1, 3, 2, 4, 5).reshape(N, 2 * Ho, 2 * Wo, cout)
    return out[:, :out_hw, :out_hw, :]


# ----------------------------------------------------------------------------
# Parameters (torch layout) + one-time GEMM-ready preparation (outside jit)
# ----------------------------------------------------------------------------
def _uniform(key, shape, fan_in):
    bound = 1.0 / jnp.sqrt(jnp.float32(fan_in))
    return jax.random.uniform(key, shape, jnp.float32, -bound, bound)


def init_params(key):
    ks = jax.random.split(key, 20)
    p = {}
    p["e_conv1_w"] = _uniform(ks[0], (32, 11, 3, 3), 11 * 9)
    p["e_conv1_b"] = _uniform(ks[1], (32,), 11 * 9)
    p["e_conv2_w"] = _uniform(ks[2], (64, 32, 3, 3), 32 * 9)
    p["e_conv2_b"] = _uniform(ks[3], (64,), 32 * 9)
    p["e_conv3_w"] = _uniform(ks[4], (64, 64, 3, 3), 64 * 9)
    p["e_conv3_b"] = _uniform(ks[5], (64,), 64 * 9)
    p["zm_w"] = _uniform(ks[6], (50, 3136), 3136)
    p["zm_b"] = _uniform(ks[7], (50,), 3136)
    p["zl_w"] = _uniform(ks[8], (50, 3136), 3136)
    p["zl_b"] = _uniform(ks[9], (50,), 3136)
    p["fc1_w"] = _uniform(ks[10], (3136, 60), 60)
    p["fc1_b"] = _uniform(ks[11], (3136,), 60)
    p["d_conv1_w"] = _uniform(ks[12], (64, 64, 3, 3), 64 * 9)   # ConvTranspose (Cin,Cout,K,K)
    p["d_conv1_b"] = _uniform(ks[13], (64,), 64 * 9)
    p["d_conv2_w"] = _uniform(ks[14], (64, 32, 3, 3), 32 * 9)
    p["d_conv2_b"] = _uniform(ks[15], (32,), 32 * 9)
    p["d_conv3_w"] = _uniform(ks[16], (32, 1, 2, 2), 1 * 4)
    p["d_conv3_b"] = _uniform(ks[17], (1,), 1 * 4)
    return p


def _prep_conv_w(w):
    """torch Conv2d weight (Cout,Cin,Ky,Kx) -> GEMM (Ky*Kx*Cin, Npad) bf16."""
    cout = w.shape[0]
    wg = w.transpose(2, 3, 1, 0).reshape(-1, cout)           # (ky,kx,cin) rows
    npad = _round_up(cout, LANE)
    return jnp.pad(wg, ((0, 0), (0, npad - cout))).astype(jnp.bfloat16)


def _prep_convT_stride1_w(w):
    """torch ConvTranspose2d (Cin,Cout,Ky,Kx), stride 1 -> equivalent conv GEMM."""
    w_conv = jnp.flip(w, (2, 3)).transpose(1, 0, 2, 3)        # (Cout,Cin,Ky,Kx)
    return _prep_conv_w(w_conv)


def _prep_convT_subpixel(w, b, pad):
    """torch ConvTranspose2d (Cin,Cout,3,3), stride 2, padding `pad` in {0,1}
    -> stride-1 2x2 conv GEMM with 4*Cout (ry,rx,co) space-to-depth outputs."""
    cin, cout = w.shape[0], w.shape[1]
    t0 = -1 if pad == 0 else 0
    weff = jnp.zeros((2, 2, cin, 2, 2, cout), jnp.float32)    # (t,u,ci, ry,rx,co)
    for t in range(2):
        for u in range(2):
            for r in range(2):
                for s in range(2):
                    ky = r + pad - 2 * (t + t0)
                    kx = s + pad - 2 * (u + t0)
                    if 0 <= ky < 3 and 0 <= kx < 3:
                        weff = weff.at[t, u, :, r, s, :].set(w[:, :, ky, kx])
    wg = weff.reshape(4 * cin, 4 * cout)
    npad = _round_up(4 * cout, LANE)
    wg = jnp.pad(wg, ((0, 0), (0, npad - 4 * cout))).astype(jnp.bfloat16)
    bg = jnp.tile(b, 4)                                        # bias per (ry,rx,co)
    bg = jnp.pad(bg, (0, npad - 4 * cout)).reshape(1, npad).astype(jnp.float32)
    return wg, bg


def _prep_bias(b):
    npad = _round_up(b.shape[0], LANE)
    return jnp.pad(b, (0, npad - b.shape[0])).reshape(1, npad).astype(jnp.float32)


def prepare_params(p):
    """One-time weight repack: GEMM-ready, lane-padded, bf16, NHWC reordering."""
    g = {}
    g["e1_w"], g["e1_b"] = _prep_conv_w(p["e_conv1_w"]), _prep_bias(p["e_conv1_b"])
    g["e2_w"], g["e2_b"] = _prep_conv_w(p["e_conv2_w"]), _prep_bias(p["e_conv2_b"])
    g["e3_w"], g["e3_b"] = _prep_conv_w(p["e_conv3_w"]), _prep_bias(p["e_conv3_b"])

    # z heads: reorder input columns NCHW-flatten (c,y,x) -> NHWC-flatten (y,x,c),
    # pad each to 128 lanes, fuse z_mean|z_log into one (3136, 256) weight.
    def _reorder_in(wz):
        return wz.reshape(LATENT, 64, 7, 7).transpose(0, 2, 3, 1).reshape(LATENT, FC1_OUT)
    zm = jnp.pad(_reorder_in(p["zm_w"]).T, ((0, 0), (0, LATENT_PAD - LATENT)))
    zl = jnp.pad(_reorder_in(p["zl_w"]).T, ((0, 0), (0, LATENT_PAD - LATENT)))
    g["zz_w"] = jnp.concatenate([zm, zl], axis=1).astype(jnp.bfloat16)
    bzm = jnp.pad(p["zm_b"], (0, LATENT_PAD - LATENT))
    bzl = jnp.pad(p["zl_b"], (0, LATENT_PAD - LATENT))
    g["zz_b"] = jnp.concatenate([bzm, bzl]).reshape(1, 2 * LATENT_PAD).astype(jnp.float32)

    # fc1: reorder OUTPUT rows (c,y,x) -> (y,x,c) so the GEMM result is directly
    # NHWC-flattened; stack the z / onehot input rows into ONE (256, 3200) weight.
    fc1 = p["fc1_w"].reshape(64, 7, 7, LATENT + NUM_CLASSES).transpose(1, 2, 0, 3)
    fc1 = fc1.reshape(FC1_OUT, LATENT + NUM_CLASSES).T                 # (60, 3136)
    wz = jnp.pad(fc1[:LATENT], ((0, LATENT_PAD - LATENT), (0, 0)))
    woh = jnp.pad(fc1[LATENT:], ((0, OH_PAD - NUM_CLASSES), (0, 0)))
    wfc = jnp.concatenate([wz, woh], axis=0)                           # (256, 3136)
    g["fc1_w"] = jnp.pad(wfc, ((0, 0), (0, FC1_OUT_PAD - FC1_OUT))).astype(jnp.bfloat16)
    bfc = p["fc1_b"].reshape(64, 7, 7).transpose(1, 2, 0).reshape(FC1_OUT)
    g["fc1_b"] = jnp.pad(bfc, (0, FC1_OUT_PAD - FC1_OUT)).reshape(1, FC1_OUT_PAD).astype(jnp.float32)

    # decoder conv-transposes: sub-pixel 2x2-conv weights for the stride-2
    # layers, plain flipped-kernel conv for the stride-1 final layer.
    g["d1_w"], g["d1_b"] = _prep_convT_subpixel(p["d_conv1_w"], p["d_conv1_b"], pad=0)
    g["d2_w"], g["d2_b"] = _prep_convT_subpixel(p["d_conv2_w"], p["d_conv2_b"], pad=1)
    g["d3_w"], g["d3_b"] = _prep_convT_stride1_w(p["d_conv3_w"]), _prep_bias(p["d_conv3_b"])
    return g


# ----------------------------------------------------------------------------
# Full forward pass (== VAEAutoEncoder.forward)
# ----------------------------------------------------------------------------
@jax.jit
def cond_vae_forward(gp, x, labels, eps):
    B = x.shape[0]
    onehot = jax.nn.one_hot(labels, NUM_CLASSES, dtype=jnp.float32)       # (B,10)

    # ---------------- Encoder (NHWC, bf16 activations) ----------------
    x_nhwc = x.transpose(0, 2, 3, 1).astype(jnp.bfloat16)                 # (B,28,28,1)
    oh_maps = jnp.broadcast_to(onehot[:, None, None, :].astype(jnp.bfloat16),
                               (B, x.shape[2], x.shape[3], NUM_CLASSES))
    h = jnp.concatenate([x_nhwc, oh_maps], axis=-1)                       # (B,28,28,11)
    h = conv2d_nhwc(h, gp["e1_w"], gp["e1_b"], 3, 32, 2, 1, "relu", jnp.bfloat16)  # (B,14,14,32)
    h = conv2d_nhwc(h, gp["e2_w"], gp["e2_b"], 3, 64, 2, 1, "relu", jnp.bfloat16)  # (B,7,7,64)
    h = conv2d_nhwc(h, gp["e3_w"], gp["e3_b"], 3, 64, 1, 1, "relu", jnp.bfloat16)  # (B,7,7,64)

    # ------- Fused z_mean / z_log / reparameterize / decoder fc1 -------
    Bp = _round_up(B, 16)
    hf = jnp.pad(h.reshape(B, FC1_OUT), ((0, Bp - B), (0, 0)))            # (Bp,3136) bf16
    eps_p = jnp.pad(eps.astype(jnp.float32),
                    ((0, Bp - B), (0, LATENT_PAD - LATENT)))              # zero pad is load-bearing
    oh_p = jnp.pad(onehot, ((0, Bp - B), (0, OH_PAD - NUM_CLASSES))).astype(jnp.bfloat16)
    zz, zv_p, d = zhead_fc1(hf, gp["zz_w"], gp["zz_b"], eps_p, oh_p,
                            gp["fc1_w"], gp["fc1_b"])
    z_mean = zz[:B, :LATENT]
    z_log = zz[:B, LATENT_PAD:LATENT_PAD + LATENT]
    z_val = zv_p[:B, :LATENT]

    # ---------------- Decoder (sub-pixel conv-transposes) ----------------
    dmap = d[:B, :FC1_OUT].reshape(B, 7, 7, 64)                           # NHWC order already
    dmap = conv_transpose2d_s2_nhwc(dmap, gp["d1_w"], gp["d1_b"], 64, 0, 15,
                                    "relu", jnp.bfloat16)                 # (B,15,15,64)
    dmap = conv_transpose2d_s2_nhwc(dmap, gp["d2_w"], gp["d2_b"], 32, 1, 29,
                                    "relu", jnp.bfloat16)                 # (B,29,29,32)
    dec = conv2d_nhwc(dmap, gp["d3_w"], gp["d3_b"], 2, 1, 1, 0,
                      "sigmoid", jnp.float32)                             # (B,28,28,1)
    decoded = dec.transpose(0, 3, 1, 2)                                   # (B,1,28,28)
    return decoded, z_mean, z_log, z_val


if __name__ == "__main__":
    key = jax.random.PRNGKey(0)
    k_param, k_x, k_lab, k_eps = jax.random.split(key, 4)

    B = 2
    x = jax.random.normal(k_x, (B, 1, 28, 28), jnp.float32)   # MNIST-sized NCHW input
    labels = jax.random.randint(k_lab, (B,), 0, 10)
    eps = jax.random.normal(k_eps, (B, LATENT), jnp.float32)  # reparameterization noise

    params = init_params(k_param)
    gemm_params = prepare_params(params)                      # one-time repack (outside jit)

    decoded, z_mean, z_log, z_val = cond_vae_forward(gemm_params, x, labels, eps)
    jax.block_until_ready((decoded, z_mean, z_log, z_val))

    assert decoded.shape == (B, 1, 28, 28)
    assert z_mean.shape == (B, LATENT) and z_log.shape == (B, LATENT) and z_val.shape == (B, LATENT)
    assert bool(jnp.all(jnp.isfinite(decoded))) and bool(jnp.all(jnp.isfinite(z_val)))
    assert bool(jnp.all(decoded >= 0.0)) and bool(jnp.all(decoded <= 1.0))
    print("KERNEL_OK")
</pallas_src>

<mosaic_0001>
module attributes {stable_mosaic.version = 11 : i64} {
  func.func @_gemm_bias_act_kernel(%arg0: i32, %arg1: memref<208x99xbf16, #tpu.memory_space<vmem>>, %arg2: memref<99x128xbf16, #tpu.memory_space<vmem>>, %arg3: memref<1x128xf32, #tpu.memory_space<vmem>>, %arg4: memref<208x128xbf16, #tpu.memory_space<vmem>>) attributes {dimension_semantics = [#tpu.dimension_semantics<parallel>], iteration_bounds = array<i64: 2>, scalar_prefetch = 0 : i64, scratch_operands = 0 : i64, tpu.core_type = #tpu.core_type<tc>, window_params = [{transform_indices = @transform_0, window_bounds = array<i64: 208, 99>}, {pipeline_mode = #tpu.pipeline_mode<synchronous>, transform_indices = @transform_1, window_bounds = array<i64: 99, 128>}, {pipeline_mode = #tpu.pipeline_mode<synchronous>, transform_indices = @transform_2, window_bounds = array<i64: 1, 128>}, {transform_indices = @transform_3, window_bounds = array<i64: 208, 128>}]} {
    %c0 = arith.constant 0 : index
    %c0_0 = arith.constant 0 : index
    %0 = vector.load %arg1[%c0, %c0_0] : memref<208x99xbf16, #tpu.memory_space<vmem>>, vector<208x99xbf16>
    %c0_1 = arith.constant 0 : index
    %c0_2 = arith.constant 0 : index
    %1 = vector.load %arg2[%c0_1, %c0_2] : memref<99x128xbf16, #tpu.memory_space<vmem>>, vector<99x128xbf16>
    %cst = arith.constant dense<0.000000e+00> : vector<208x128xf32>
    %2 = tpu.matmul %0, %1, %cst {dimension_numbers = #tpu.dot_dimension_numbers<[1], [0], [0], [1], [0, 0, 1, 1], [], []>} : vector<208x99xbf16>, vector<99x128xbf16>, vector<208x128xf32> -> vector<208x128xf32>
    %c0_3 = arith.constant 0 : index
    %c0_4 = arith.constant 0 : index
    %3 = vector.load %arg3[%c0_3, %c0_4] : memref<1x128xf32, #tpu.memory_space<vmem>>, vector<1x128xf32>
    %4 = vector.broadcast %3 : vector<1x128xf32> to vector<208x128xf32>
    %5 = arith.addf %2, %4 : vector<208x128xf32>
    %cst_5 = arith.constant 0.000000e+00 : f32
    %6 = vector.broadcast %cst_5 : f32 to vector<208x128xf32>
    %7 = arith.maximumf %5, %6 : vector<208x128xf32>
    %8 = arith.truncf %7 : vector<208x128xf32> to vector<208x128xbf16>
    %c0_6 = arith.constant 0 : index
    %c0_7 = arith.constant 0 : index
    %9 = vector.load %arg4[%c0_6, %c0_7] : memref<208x128xbf16, #tpu.memory_space<vmem>>, vector<208x128xbf16>
    tpu.vector_store %arg4[%c0_6, %c0_7], %8 {strides = array<i32>} : memref<208x128xbf16, #tpu.memory_space<vmem>>, vector<208x128xbf16>,
    return
  }
  func.func @transform_0(%arg0: i32) -> (i32, i32) {
    %c0_i32 = arith.constant 0 : i32
    %c0_i32_0 = arith.constant 0 : i32
    return %arg0, %c0_i32 : i32, i32
  }
  func.func @transform_1(%arg0: i32) -> (i32, i32) {
    %c0_i32 = arith.constant 0 : i32
    %c0_i32_0 = arith.constant 0 : i32
    %c0_i32_1 = arith.constant 0 : i32
    return %c0_i32, %c0_i32_0 : i32, i32
  }
  func.func @transform_2(%arg0: i32) -> (i32, i32) {
    %c0_i32 = arith.constant 0 : i32
    %c0_i32_0 = arith.constant 0 : i32
    %c0_i32_1 = arith.constant 0 : i32
    return %c0_i32, %c0_i32_0 : i32, i32
  }
  func.func @transform_3(%arg0: i32) -> (i32, i32) {
    %c0_i32 = arith.constant 0 : i32
    %c0_i32_0 = arith.constant 0 : i32
    return %arg0, %c0_i32 : i32, i32
  }
}

module attributes {stable_mosaic.version = 11 : i64} {
  func.func @_gemm_bias_act_kernel(%arg0: i32, %arg1: memref<112x288xbf16, #tpu.memory_space<vmem>>, %arg2: memref<288x128xbf16, #tpu.memory_space<vmem>>, %arg3: memref<1x128xf32, #tpu.memory_space<vmem>>, %arg4: memref<112x128xbf16, #tpu.memory_space<vmem>>) attributes {dimension_semantics = [#tpu.dimension_semantics<parallel>], iteration_bounds = array<i64: 1>, scalar_prefetch = 0 : i64, scratch_operands = 0 : i64, tpu.core_type = #tpu.core_type<tc>, window_params = [{transform_indices = @transform_0, window_bounds = array<i64: 112, 288>}, {pipeline_mode = #tpu.pipeline_mode<synchronous>, transform_indices = @transform_1, window_bounds = array<i64: 288, 128>}, {pipeline_mode = #tpu.pipeline_mode<synchronous>, transform_indices = @transform_2, window_bounds = array<i64: 1, 128>}, {transform_indices = @transform_3, window_bounds = array<i64: 112, 128>}]} {
    %c0 = arith.constant 0 : index
    %c0_0 = arith.constant 0 : index
    %0 = vector.load %arg1[%c0, %c0_0] : memref<112x288xbf16, #tpu.memory_space<vmem>>, vector<112x288xbf16>
    %c0_1 = arith.constant 0 : index
    %c0_2 = arith.constant 0 : index
    %1 = vector.load %arg2[%c0_1, %c0_2] : memref<288x128xbf16, #tpu.memory_space<vmem>>, vector<288x128xbf16>
    %cst = arith.constant dense<0.000000e+00> : vector<112x128xf32>
    %2 = tpu.matmul %0, %1, %cst {dimension_numbers = #tpu.dot_dimension_numbers<[1], [0], [0], [1], [0, 0, 1, 1], [], []>} : vector<112x288xbf16>, vector<288x128xbf16>, vector<112x128xf32> -> vector<112x128xf32>
    %c0_3 = arith.constant 0 : index
    %c0_4 = arith.constant 0 : index
    %3 = vector.load %arg3[%c0_3, %c0_4] : memref<1x128xf32, #tpu.memory_space<vmem>>, vector<1x128xf32>
    %4 = vector.broadcast %3 : vector<1x128xf32> to vector<112x128xf32>
    %5 = arith.addf %2, %4 : vector<112x128xf32>
    %cst_5 = arith.constant 0.000000e+00 : f32
    %6 = vector.broadcast %cst_5 : f32 to vector<112x128xf32>
    %7 = arith.maximumf %5, %6 : vector<112x128xf32>
    %8 = arith.truncf %7 : vector<112x128xf32> to vector<112x128xbf16>
    %c0_6 = arith.constant 0 : index
    %c0_7 = arith.constant 0 : index
    %9 = vector.load %arg4[%c0_6, %c0_7] : memref<112x128xbf16, #tpu.memory_space<vmem>>, vector<112x128xbf16>
    tpu.vector_store %arg4[%c0_6, %c0_7], %8 {strides = array<i32>} : memref<112x128xbf16, #tpu.memory_space<vmem>>, vector<112x128xbf16>,
    return
  }
  func.func @transform_0(%arg0: i32) -> (i32, i32) {
    %c0_i32 = arith.constant 0 : i32
    %c0_i32_0 = arith.constant 0 : i32
    return %arg0, %c0_i32 : i32, i32
  }
  func.func @transform_1(%arg0: i32) -> (i32, i32) {
    %c0_i32 = arith.constant 0 : i32
    %c0_i32_0 = arith.constant 0 : i32
    %c0_i32_1 = arith.constant 0 : i32
    return %c0_i32, %c0_i32_0 : i32, i32
  }
  func.func @transform_2(%arg0: i32) -> (i32, i32) {
    %c0_i32 = arith.constant 0 : i32
    %c0_i32_0 = arith.constant 0 : i32
    %c0_i32_1 = arith.constant 0 : i32
    return %c0_i32, %c0_i32_0 : i32, i32
  }
  func.func @transform_3(%arg0: i32) -> (i32, i32) {
    %c0_i32 = arith.constant 0 : i32
    %c0_i32_0 = arith.constant 0 : i32
    return %arg0, %c0_i32 : i32, i32
  }
}

module attributes {stable_mosaic.version = 11 : i64} {
  func.func @_gemm_bias_act_kernel(%arg0: i32, %arg1: memref<112x576xbf16, #tpu.memory_space<vmem>>, %arg2: memref<576x128xbf16, #tpu.memory_space<vmem>>, %arg3: memref<1x128xf32, #tpu.memory_space<vmem>>, %arg4: memref<112x128xbf16, #tpu.memory_space<vmem>>) attributes {dimension_semantics = [#tpu.dimension_semantics<parallel>], iteration_bounds = array<i64: 1>, scalar_prefetch = 0 : i64, scratch_operands = 0 : i64, tpu.core_type = #tpu.core_type<tc>, window_params = [{transform_indices = @transform_0, window_bounds = array<i64: 112, 576>}, {pipeline_mode = #tpu.pipeline_mode<synchronous>, transform_indices = @transform_1, window_bounds = array<i64: 576, 128>}, {pipeline_mode = #tpu.pipeline_mode<synchronous>, transform_indices = @transform_2, window_bounds = array<i64: 1, 128>}, {transform_indices = @transform_3, window_bounds = array<i64: 112, 128>}]} {
    %c0 = arith.constant 0 : index
    %c0_0 = arith.constant 0 : index
    %0 = vector.load %arg1[%c0, %c0_0] : memref<112x576xbf16, #tpu.memory_space<vmem>>, vector<112x576xbf16>
    %c0_1 = arith.constant 0 : index
    %c0_2 = arith.constant 0 : index
    %1 = vector.load %arg2[%c0_1, %c0_2] : memref<576x128xbf16, #tpu.memory_space<vmem>>, vector<576x128xbf16>
    %cst = arith.constant dense<0.000000e+00> : vector<112x128xf32>
    %2 = tpu.matmul %0, %1, %cst {dimension_numbers = #tpu.dot_dimension_numbers<[1], [0], [0], [1], [0, 0, 1, 1], [], []>} : vector<112x576xbf16>, vector<576x128xbf16>, vector<112x128xf32> -> vector<112x128xf32>
    %c0_3 = arith.constant 0 : index
    %c0_4 = arith.constant 0 : index
    %3 = vector.load %arg3[%c0_3, %c0_4] : memref<1x128xf32, #tpu.memory_space<vmem>>, vector<1x128xf32>
    %4 = vector.broadcast %3 : vector<1x128xf32> to vector<112x128xf32>
    %5 = arith.addf %2, %4 : vector<112x128xf32>
    %cst_5 = arith.constant 0.000000e+00 : f32
    %6 = vector.broadcast %cst_5 : f32 to vector<112x128xf32>
    %7 = arith.maximumf %5, %6 : vector<112x128xf32>
    %8 = arith.truncf %7 : vector<112x128xf32> to vector<112x128xbf16>
    %c0_6 = arith.constant 0 : index
    %c0_7 = arith.constant 0 : index
    %9 = vector.load %arg4[%c0_6, %c0_7] : memref<112x128xbf16, #tpu.memory_space<vmem>>, vector<112x128xbf16>
    tpu.vector_store %arg4[%c0_6, %c0_7], %8 {strides = array<i32>} : memref<112x128xbf16, #tpu.memory_space<vmem>>, vector<112x128xbf16>,
    return
  }
  func.func @transform_0(%arg0: i32) -> (i32, i32) {
    %c0_i32 = arith.constant 0 : i32
    %c0_i32_0 = arith.constant 0 : i32
    return %arg0, %c0_i32 : i32, i32
  }
  func.func @transform_1(%arg0: i32) -> (i32, i32) {
    %c0_i32 = arith.constant 0 : i32
    %c0_i32_0 = arith.constant 0 : i32
    %c0_i32_1 = arith.constant 0 : i32
    return %c0_i32, %c0_i32_0 : i32, i32
  }
  func.func @transform_2(%arg0: i32) -> (i32, i32) {
    %c0_i32 = arith.constant 0 : i32
    %c0_i32_0 = arith.constant 0 : i32
    %c0_i32_1 = arith.constant 0 : i32
    return %c0_i32, %c0_i32_0 : i32, i32
  }
  func.func @transform_3(%arg0: i32) -> (i32, i32) {
    %c0_i32 = arith.constant 0 : i32
    %c0_i32_0 = arith.constant 0 : i32
    return %arg0, %c0_i32 : i32, i32
  }
}

module attributes {stable_mosaic.version = 11 : i64} {
  func.func @_zhead_fc1_kernel(%arg0: i32, %arg1: memref<16x3136xbf16, #tpu.memory_space<vmem>>, %arg2: memref<3136x256xbf16, #tpu.memory_space<vmem>>, %arg3: memref<1x256xf32, #tpu.memory_space<vmem>>, %arg4: memref<16x128xf32, #tpu.memory_space<vmem>>, %arg5: memref<16x128xbf16, #tpu.memory_space<vmem>>, %arg6: memref<256x3200xbf16, #tpu.memory_space<vmem>>, %arg7: memref<1x3200xf32, #tpu.memory_space<vmem>>, %arg8: memref<16x256xf32, #tpu.memory_space<vmem>>, %arg9: memref<16x128xf32, #tpu.memory_space<vmem>>, %arg10: memref<16x3200xbf16, #tpu.memory_space<vmem>>) attributes {dimension_semantics = [#tpu.dimension_semantics<arbitrary>], iteration_bounds = array<i64: 1>, scalar_prefetch = 0 : i64, scratch_operands = 0 : i64, tpu.core_type = #tpu.core_type<tc>, window_params = [{pipeline_mode = #tpu.pipeline_mode<synchronous>, transform_indices = @transform_0, window_bounds = array<i64: 16, 3136>}, {pipeline_mode = #tpu.pipeline_mode<synchronous>, transform_indices = @transform_1, window_bounds = array<i64: 3136, 256>}, {pipeline_mode = #tpu.pipeline_mode<synchronous>, transform_indices = @transform_2, window_bounds = array<i64: 1, 256>}, {pipeline_mode = #tpu.pipeline_mode<synchronous>, transform_indices = @transform_3, window_bounds = array<i64: 16, 128>}, {pipeline_mode = #tpu.pipeline_mode<synchronous>, transform_indices = @transform_4, window_bounds = array<i64: 16, 128>}, {pipeline_mode = #tpu.pipeline_mode<synchronous>, transform_indices = @transform_5, window_bounds = array<i64: 256, 3200>}, {pipeline_mode = #tpu.pipeline_mode<synchronous>, transform_indices = @transform_6, window_bounds = array<i64: 1, 3200>}, {pipeline_mode = #tpu.pipeline_mode<synchronous>, transform_indices = @transform_7, window_bounds = array<i64: 16, 256>}, {pipeline_mode = #tpu.pipeline_mode<synchronous>, transform_indices = @transform_8, window_bounds = array<i64: 16, 128>}, {pipeline_mode = #tpu.pipeline_mode<synchronous>, transform_indices = @transform_9, window_bounds = array<i64: 16, 3200>}]} {
    %c0 = arith.constant 0 : index
    %c0_0 = arith.constant 0 : index
    %0 = vector.load %arg1[%c0, %c0_0] : memref<16x3136xbf16, #tpu.memory_space<vmem>>, vector<16x3136xbf16>
    %c0_1 = arith.constant 0 : index
    %c0_2 = arith.constant 0 : index
    %1 = vector.load %arg2[%c0_1, %c0_2] : memref<3136x256xbf16, #tpu.memory_space<vmem>>, vector<3136x256xbf16>
    %cst = arith.constant dense<0.000000e+00> : vector<16x256xf32>
    %2 = tpu.matmul %0, %1, %cst {dimension_numbers = #tpu.dot_dimension_numbers<[1], [0], [0], [1], [0, 0, 1, 1], [], []>} : vector<16x3136xbf16>, vector<3136x256xbf16>, vector<16x256xf32> -> vector<16x256xf32>
    %c0_3 = arith.constant 0 : index
    %c0_4 = arith.constant 0 : index
    %3 = vector.load %arg3[%c0_3, %c0_4] : memref<1x256xf32, #tpu.memory_space<vmem>>, vector<1x256xf32>
    %4 = vector.broadcast %3 : vector<1x256xf32> to vector<16x256xf32>
    %5 = arith.addf %2, %4 : vector<16x256xf32>
    %6 = vector.extract_strided_slice %5 {offsets = [0, 0], sizes = [16, 128], strides = [1, 1]} : vector<16x256xf32> to vector<16x128xf32>
    %7 = vector.extract_strided_slice %5 {offsets = [0, 128], sizes = [16, 128], strides = [1, 1]} : vector<16x256xf32> to vector<16x128xf32>
    %cst_5 = arith.constant 5.000000e-01 : f32
    %8 = vector.broadcast %cst_5 : f32 to vector<16x128xf32>
    %9 = arith.mulf %7, %8 : vector<16x128xf32>
    %10 = math.exp %9 : vector<16x128xf32>
    %c0_6 = arith.constant 0 : index
    %c0_7 = arith.constant 0 : index
    %11 = vector.load %arg4[%c0_6, %c0_7] : memref<16x128xf32, #tpu.memory_space<vmem>>, vector<16x128xf32>
    %12 = arith.mulf %10, %11 : vector<16x128xf32>
    %13 = arith.addf %6, %12 : vector<16x128xf32>
    %c0_8 = arith.constant 0 : index
    %c0_9 = arith.constant 0 : index
    %14 = vector.load %arg8[%c0_8, %c0_9] : memref<16x256xf32, #tpu.memory_space<vmem>>, vector<16x256xf32>
    tpu.vector_store %arg8[%c0_8, %c0_9], %5 {strides = array<i32>} : memref<16x256xf32, #tpu.memory_space<vmem>>, vector<16x256xf32>,
    %c0_10 = arith.constant 0 : index
    %c0_11 = arith.constant 0 : index
    %15 = vector.load %arg9[%c0_10, %c0_11] : memref<16x128xf32, #tpu.memory_space<vmem>>, vector<16x128xf32>
    tpu.vector_store %arg9[%c0_10, %c0_11], %13 {strides = array<i32>} : memref<16x128xf32, #tpu.memory_space<vmem>>, vector<16x128xf32>,
    %16 = arith.truncf %13 : vector<16x128xf32> to vector<16x128xbf16>
    %c0_12 = arith.constant 0 : index
    %c0_13 = arith.constant 0 : index
    %17 = vector.load %arg5[%c0_12, %c0_13] : memref<16x128xbf16, #tpu.memory_space<vmem>>, vector<16x128xbf16>
    %18 = tpu.concatenate %16, %17 in 1 : vector<16x128xbf16>, vector<16x128xbf16> -> vector<16x256xbf16>
    %c0_14 = arith.constant 0 : index
    %c0_15 = arith.constant 0 : index
    %19 = vector.load %arg6[%c0_14, %c0_15] : memref<256x3200xbf16, #tpu.memory_space<vmem>>, vector<256x3200xbf16>
    %cst_16 = arith.constant dense<0.000000e+00> : vector<16x3200xf32>
    %20 = tpu.matmul %18, %19, %cst_16 {dimension_numbers = #tpu.dot_dimension_numbers<[1], [0], [0], [1], [0, 0, 1, 1], [], []>} : vector<16x256xbf16>, vector<256x3200xbf16>, vector<16x3200xf32> -> vector<16x3200xf32>
    %c0_17 = arith.constant 0 : index
    %c0_18 = arith.constant 0 : index
    %21 = vector.load %arg7[%c0_17, %c0_18] : memref<1x3200xf32, #tpu.memory_space<vmem>>, vector<1x3200xf32>
    %22 = vector.broadcast %21 : vector<1x3200xf32> to vector<16x3200xf32>
    %23 = arith.addf %20, %22 : vector<16x3200xf32>
    %cst_19 = arith.constant 0.000000e+00 : f32
    %24 = vector.broadcast %cst_19 : f32 to vector<16x3200xf32>
    %25 = arith.maximumf %23, %24 : vector<16x3200xf32>
    %26 = arith.truncf %25 : vector<16x3200xf32> to vector<16x3200xbf16>
    %c0_20 = arith.constant 0 : index
    %c0_21 = arith.constant 0 : index
    %27 = vector.load %arg10[%c0_20, %c0_21] : memref<16x3200xbf16, #tpu.memory_space<vmem>>, vector<16x3200xbf16>
    tpu.vector_store %arg10[%c0_20, %c0_21], %26 {strides = array<i32>} : memref<16x3200xbf16, #tpu.memory_space<vmem>>, vector<16x3200xbf16>,
    return
  }
  func.func @transform_0(%arg0: i32) -> (i32, i32) {
    %c0_i32 = arith.constant 0 : i32
    %c0_i32_0 = arith.constant 0 : i32
    %c0_i32_1 = arith.constant 0 : i32
    return %c0_i32, %c0_i32_0 : i32, i32
  }
  func.func @transform_1(%arg0: i32) -> (i32, i32) {
    %c0_i32 = arith.constant 0 : i32
    %c0_i32_0 = arith.constant 0 : i32
    %c0_i32_1 = arith.constant 0 : i32
    return %c0_i32, %c0_i32_0 : i32, i32
  }
  func.func @transform_2(%arg0: i32) -> (i32, i32) {
    %c0_i32 = arith.constant 0 : i32
    %c0_i32_0 = arith.constant 0 : i32
    %c0_i32_1 = arith.constant 0 : i32
    return %c0_i32, %c0_i32_0 : i32, i32
  }
  func.func @transform_3(%arg0: i32) -> (i32, i32) {
    %c0_i32 = arith.constant 0 : i32
    %c0_i32_0 = arith.constant 0 : i32
    %c0_i32_1 = arith.constant 0 : i32
    return %c0_i32, %c0_i32_0 : i32, i32
  }
  func.func @transform_4(%arg0: i32) -> (i32, i32) {
    %c0_i32 = arith.constant 0 : i32
    %c0_i32_0 = arith.constant 0 : i32
    %c0_i32_1 = arith.constant 0 : i32
    return %c0_i32, %c0_i32_0 : i32, i32
  }
  func.func @transform_5(%arg0: i32) -> (i32, i32) {
    %c0_i32 = arith.constant 0 : i32
    %c0_i32_0 = arith.constant 0 : i32
    %c0_i32_1 = arith.constant 0 : i32
    return %c0_i32, %c0_i32_0 : i32, i32
  }
  func.func @transform_6(%arg0: i32) -> (i32, i32) {
    %c0_i32 = arith.constant 0 : i32
    %c0_i32_0 = arith.constant 0 : i32
    %c0_i32_1 = arith.constant 0 : i32
    return %c0_i32, %c0_i32_0 : i32, i32
  }
  func.func @transform_7(%arg0: i32) -> (i32, i32) {
    %c0_i32 = arith.constant 0 : i32
    %c0_i32_0 = arith.constant 0 : i32
    %c0_i32_1 = arith.constant 0 : i32
    return %c0_i32, %c0_i32_0 : i32, i32
  }
  func.func @transform_8(%arg0: i32) -> (i32, i32) {
    %c0_i32 = arith.constant 0 : i32
    %c0_i32_0 = arith.constant 0 : i32
    %c0_i32_1 = arith.constant 0 : i32
    return %c0_i32, %c0_i32_0 : i32, i32
  }
  func.func @transform_9(%arg0: i32) -> (i32, i32) {
    %c0_i32 = arith.constant 0 : i32
    %c0_i32_0 = arith.constant 0 : i32
    %c0_i32_1 = arith.constant 0 : i32
    return %c0_i32, %c0_i32_0 : i32, i32
  }
}

module attributes {stable_mosaic.version = 11 : i64} {
  func.func @_gemm_bias_act_kernel(%arg0: i32, %arg1: memref<128x256xbf16, #tpu.memory_space<vmem>>, %arg2: memref<256x256xbf16, #tpu.memory_space<vmem>>, %arg3: memref<1x256xf32, #tpu.memory_space<vmem>>, %arg4: memref<128x256xbf16, #tpu.memory_space<vmem>>) attributes {dimension_semantics = [#tpu.dimension_semantics<parallel>], iteration_bounds = array<i64: 1>, scalar_prefetch = 0 : i64, scratch_operands = 0 : i64, tpu.core_type = #tpu.core_type<tc>, window_params = [{transform_indices = @transform_0, window_bounds = array<i64: 128, 256>}, {pipeline_mode = #tpu.pipeline_mode<synchronous>, transform_indices = @transform_1, window_bounds = array<i64: 256, 256>}, {pipeline_mode = #tpu.pipeline_mode<synchronous>, transform_indices = @transform_2, window_bounds = array<i64: 1, 256>}, {transform_indices = @transform_3, window_bounds = array<i64: 128, 256>}]} {
    %c0 = arith.constant 0 : index
    %c0_0 = arith.constant 0 : index
    %0 = vector.load %arg1[%c0, %c0_0] : memref<128x256xbf16, #tpu.memory_space<vmem>>, vector<128x256xbf16>
    %c0_1 = arith.constant 0 : index
    %c0_2 = arith.constant 0 : index
    %1 = vector.load %arg2[%c0_1, %c0_2] : memref<256x256xbf16, #tpu.memory_space<vmem>>, vector<256x256xbf16>
    %cst = arith.constant dense<0.000000e+00> : vector<128x256xf32>
    %2 = tpu.matmul %0, %1, %cst {dimension_numbers = #tpu.dot_dimension_numbers<[1], [0], [0], [1], [0, 0, 1, 1], [], []>} : vector<128x256xbf16>, vector<256x256xbf16>, vector<128x256xf32> -> vector<128x256xf32>
    %c0_3 = arith.constant 0 : index
    %c0_4 = arith.constant 0 : index
    %3 = vector.load %arg3[%c0_3, %c0_4] : memref<1x256xf32, #tpu.memory_space<vmem>>, vector<1x256xf32>
    %4 = vector.broadcast %3 : vector<1x256xf32> to vector<128x256xf32>
    %5 = arith.addf %2, %4 : vector<128x256xf32>
    %cst_5 = arith.constant 0.000000e+00 : f32
    %6 = vector.broadcast %cst_5 : f32 to vector<128x256xf32>
    %7 = arith.maximumf %5, %6 : vector<128x256xf32>
    %8 = arith.truncf %7 : vector<128x256xf32> to vector<128x256xbf16>
    %c0_6 = arith.constant 0 : index
    %c0_7 = arith.constant 0 : index
    %9 = vector.load %arg4[%c0_6, %c0_7] : memref<128x256xbf16, #tpu.memory_space<vmem>>, vector<128x256xbf16>
    tpu.vector_store %arg4[%c0_6, %c0_7], %8 {strides = array<i32>} : memref<128x256xbf16, #tpu.memory_space<vmem>>, vector<128x256xbf16>,
    return
  }
  func.func @transform_0(%arg0: i32) -> (i32, i32) {
    %c0_i32 = arith.constant 0 : i32
    %c0_i32_0 = arith.constant 0 : i32
    return %arg0, %c0_i32 : i32, i32
  }
  func.func @transform_1(%arg0: i32) -> (i32, i32) {
    %c0_i32 = arith.constant 0 : i32
    %c0_i32_0 = arith.constant 0 : i32
    %c0_i32_1 = arith.constant 0 : i32
    return %c0_i32, %c0_i32_0 : i32, i32
  }
  func.func @transform_2(%arg0: i32) -> (i32, i32) {
    %c0_i32 = arith.constant 0 : i32
    %c0_i32_0 = arith.constant 0 : i32
    %c0_i32_1 = arith.constant 0 : i32
    return %c0_i32, %c0_i32_0 : i32, i32
  }
  func.func @transform_3(%arg0: i32) -> (i32, i32) {
    %c0_i32 = arith.constant 0 : i32
    %c0_i32_0 = arith.constant 0 : i32
    return %arg0, %c0_i32 : i32, i32
  }
}

module attributes {stable_mosaic.version = 11 : i64} {
  func.func @_gemm_bias_act_kernel(%arg0: i32, %arg1: memref<240x256xbf16, #tpu.memory_space<vmem>>, %arg2: memref<256x128xbf16, #tpu.memory_space<vmem>>, %arg3: memref<1x128xf32, #tpu.memory_space<vmem>>, %arg4: memref<240x128xbf16, #tpu.memory_space<vmem>>) attributes {dimension_semantics = [#tpu.dimension_semantics<parallel>], iteration_bounds = array<i64: 2>, scalar_prefetch = 0 : i64, scratch_operands = 0 : i64, tpu.core_type = #tpu.core_type<tc>, window_params = [{transform_indices = @transform_0, window_bounds = array<i64: 240, 256>}, {pipeline_mode = #tpu.pipeline_mode<synchronous>, transform_indices = @transform_1, window_bounds = array<i64: 256, 128>}, {pipeline_mode = #tpu.pipeline_mode<synchronous>, transform_indices = @transform_2, window_bounds = array<i64: 1, 128>}, {transform_indices = @transform_3, window_bounds = array<i64: 240, 128>}]} {
    %c0 = arith.constant 0 : index
    %c0_0 = arith.constant 0 : index
    %0 = vector.load %arg1[%c0, %c0_0] : memref<240x256xbf16, #tpu.memory_space<vmem>>, vector<240x256xbf16>
    %c0_1 = arith.constant 0 : index
    %c0_2 = arith.constant 0 : index
    %1 = vector.load %arg2[%c0_1, %c0_2] : memref<256x128xbf16, #tpu.memory_space<vmem>>, vector<256x128xbf16>
    %cst = arith.constant dense<0.000000e+00> : vector<240x128xf32>
    %2 = tpu.matmul %0, %1, %cst {dimension_numbers = #tpu.dot_dimension_numbers<[1], [0], [0], [1], [0, 0, 1, 1], [], []>} : vector<240x256xbf16>, vector<256x128xbf16>, vector<240x128xf32> -> vector<240x128xf32>
    %c0_3 = arith.constant 0 : index
    %c0_4 = arith.constant 0 : index
    %3 = vector.load %arg3[%c0_3, %c0_4] : memref<1x128xf32, #tpu.memory_space<vmem>>, vector<1x128xf32>
    %4 = vector.broadcast %3 : vector<1x128xf32> to vector<240x128xf32>
    %5 = arith.addf %2, %4 : vector<240x128xf32>
    %cst_5 = arith.constant 0.000000e+00 : f32
    %6 = vector.broadcast %cst_5 : f32 to vector<240x128xf32>
    %7 = arith.maximumf %5, %6 : vector<240x128xf32>
    %8 = arith.truncf %7 : vector<240x128xf32> to vector<240x128xbf16>
    %c0_6 = arith.constant 0 : index
    %c0_7 = arith.constant 0 : index
    %9 = vector.load %arg4[%c0_6, %c0_7] : memref<240x128xbf16, #tpu.memory_space<vmem>>, vector<240x128xbf16>
    tpu.vector_store %arg4[%c0_6, %c0_7], %8 {strides = array<i32>} : memref<240x128xbf16, #tpu.memory_space<vmem>>, vector<240x128xbf16>,
    return
  }
  func.func @transform_0(%arg0: i32) -> (i32, i32) {
    %c0_i32 = arith.constant 0 : i32
    %c0_i32_0 = arith.constant 0 : i32
    return %arg0, %c0_i32 : i32, i32
  }
  func.func @transform_1(%arg0: i32) -> (i32, i32) {
    %c0_i32 = arith.constant 0 : i32
    %c0_i32_0 = arith.constant 0 : i32
    %c0_i32_1 = arith.constant 0 : i32
    return %c0_i32, %c0_i32_0 : i32, i32
  }
  func.func @transform_2(%arg0: i32) -> (i32, i32) {
    %c0_i32 = arith.constant 0 : i32
    %c0_i32_0 = arith.constant 0 : i32
    %c0_i32_1 = arith.constant 0 : i32
    return %c0_i32, %c0_i32_0 : i32, i32
  }
  func.func @transform_3(%arg0: i32) -> (i32, i32) {
    %c0_i32 = arith.constant 0 : i32
    %c0_i32_0 = arith.constant 0 : i32
    return %arg0, %c0_i32 : i32, i32
  }
}

module attributes {stable_mosaic.version = 11 : i64} {
  func.func @_gemm_bias_act_kernel(%arg0: i32, %arg1: memref<400x128xbf16, #tpu.memory_space<vmem>>, %arg2: memref<128x128xbf16, #tpu.memory_space<vmem>>, %arg3: memref<1x128xf32, #tpu.memory_space<vmem>>, %arg4: memref<400x128xf32, #tpu.memory_space<vmem>>) attributes {dimension_semantics = [#tpu.dimension_semantics<parallel>], iteration_bounds = array<i64: 4>, scalar_prefetch = 0 : i64, scratch_operands = 0 : i64, tpu.core_type = #tpu.core_type<tc>, window_params = [{transform_indices = @transform_0, window_bounds = array<i64: 400, 128>}, {pipeline_mode = #tpu.pipeline_mode<synchronous>, transform_indices = @transform_1, window_bounds = array<i64: 128, 128>}, {pipeline_mode = #tpu.pipeline_mode<synchronous>, transform_indices = @transform_2, window_bounds = array<i64: 1, 128>}, {transform_indices = @transform_3, window_bounds = array<i64: 400, 128>}]} {
    %c0 = arith.constant 0 : index
    %c0_0 = arith.constant 0 : index
    %0 = vector.load %arg1[%c0, %c0_0] : memref<400x128xbf16, #tpu.memory_space<vmem>>, vector<400x128xbf16>
    %c0_1 = arith.constant 0 : index
    %c0_2 = arith.constant 0 : index
    %1 = vector.load %arg2[%c0_1, %c0_2] : memref<128x128xbf16, #tpu.memory_space<vmem>>, vector<128x128xbf16>
    %cst = arith.constant dense<0.000000e+00> : vector<400x128xf32>
    %2 = tpu.matmul %0, %1, %cst {dimension_numbers = #tpu.dot_dimension_numbers<[1], [0], [0], [1], [0, 0, 1, 1], [], []>} : vector<400x128xbf16>, vector<128x128xbf16>, vector<400x128xf32> -> vector<400x128xf32>
    %c0_3 = arith.constant 0 : index
    %c0_4 = arith.constant 0 : index
    %3 = vector.load %arg3[%c0_3, %c0_4] : memref<1x128xf32, #tpu.memory_space<vmem>>, vector<1x128xf32>
    %4 = vector.broadcast %3 : vector<1x128xf32> to vector<400x128xf32>
    %5 = arith.addf %2, %4 : vector<400x128xf32>
    %6 = arith.negf %5 : vector<400x128xf32>
    %7 = math.exp %6 : vector<400x128xf32>
    %cst_5 = arith.constant 1.000000e+00 : f32
    %8 = vector.broadcast %cst_5 : f32 to vector<400x128xf32>
    %9 = arith.addf %8, %7 : vector<400x128xf32>
    %10 = arith.divf %8, %9 : vector<400x128xf32>
    %c0_6 = arith.constant 0 : index
    %c0_7 = arith.constant 0 : index
    %11 = vector.load %arg4[%c0_6, %c0_7] : memref<400x128xf32, #tpu.memory_space<vmem>>, vector<400x128xf32>
    tpu.vector_store %arg4[%c0_6, %c0_7], %10 {strides = array<i32>} : memref<400x128xf32, #tpu.memory_space<vmem>>, vector<400x128xf32>,
    return
  }
  func.func @transform_0(%arg0: i32) -> (i32, i32) {
    %c0_i32 = arith.constant 0 : i32
    %c0_i32_0 = arith.constant 0 : i32
    return %arg0, %c0_i32 : i32, i32
  }
  func.func @transform_1(%arg0: i32) -> (i32, i32) {
    %c0_i32 = arith.constant 0 : i32
    %c0_i32_0 = arith.constant 0 : i32
    %c0_i32_1 = arith.constant 0 : i32
    return %c0_i32, %c0_i32_0 : i32, i32
  }
  func.func @transform_2(%arg0: i32) -> (i32, i32) {
    %c0_i32 = arith.constant 0 : i32
    %c0_i32_0 = arith.constant 0 : i32
    %c0_i32_1 = arith.constant 0 : i32
    return %c0_i32, %c0_i32_0 : i32, i32
  }
  func.func @transform_3(%arg0: i32) -> (i32, i32) {
    %c0_i32 = arith.constant 0 : i32
    %c0_i32_0 = arith.constant 0 : i32
    return %arg0, %c0_i32 : i32, i32
  }
}

</mosaic_0001>

<bundles_post_ra>
// kernel: cond_vae_forward.7
= control target key start
LH: loop header
LB: loop body
LE: loop exit
PB: predicated region body
PF: predicated region fallthrough
CT: control target
= control target key end

     0   :  { %s1055_s12 = smov 0   ;;  %s1214_s0 = inlined_call_operand.vmem [shape: bf16[416,99], index: 0, kind: input, shape index: {}]   ;;  %s1215_s1 = inlined_call_operand.vmem [shape: bf16[99,128], index: 1, kind: input, shape index: {}]   ;;  %s1216_s2 = inlined_call_operand.vmem [shape: f32[1,128], index: 2, kind: input, shape index: {}]   ;;  %s1217_s3 = inlined_call_operand.vmem [shape: bf16[416,128], index: 3, kind: output, shape index: {}]  }
   0x1 LB: > { %s721_s13 = sadd.s32 4294967295, %s1030_s12   ;;  %p725_p0 = scmp.ge.s32.totalorder %s1030_s12, 1  ;;  %s1030_s12 = sphi %s1055_s12, %s13_s12  }
   0x2   : > { %p138_p1 = scmp.lt.s32.totalorder %s1030_s12, 3 }
   0x4   : > { %p139_p2 = pnand %p725_p0, %p138_p1 }
   0x5   : > { %v1004_v0 = vld [vmem:[%s1215_s1] sm:$0xff] (!%p139_p2)   ;;  %v1032_v1 = vmov (!%p139_p2), 0.0   ;;  %v1005_v2 = vld [vmem:[%s1215_s1 + $0x8] sm:$0xff] (!%p139_p2)   ;;  %v1006_v3 = vld [vmem:[%s1215_s1 + $0x10] sm:$0xff] (!%p139_p2)   ;;  %s162_s20 = smul.u32 (!%p139_p2), 26, %s721_s13  ;;  %vm1033_vm0 = vmmov (!%p139_p2), 0  }
   0x6   : > { %142 = sbr.rel (%p139_p2) target bundleno = 303 (0x12f), region = 32  ;;  %913 = vmatprep.subr.bf16.mxu0 (!%p139_p2), %v1032_v1  ;;  %979 = vmatprep.subr.bf16.mxu1 (!%p139_p2), %v1032_v1  ;;  %v1007_v4 = vld [vmem:[%s1215_s1 + $0x18] sm:$0xff] (!%p139_p2)   ;;  %vm365_vm1 = vcmask (!%p139_p2), 1040384   ;;  %v1008_v5 = vld [vmem:[%s1215_s1 + $0x20] sm:$0xff] (!%p139_p2)   ;;  %vm366_vm2 = vcmask (!%p139_p2), 1041408   ;;  %v1034_v7 = vmov (!%p139_p2), 65535  }
   0x7   : > { %914 = vmatpush3.bf16.msra.mxu0 (!%p139_p2), %v1004_v0  ;;  %986 = vmatpush3.bf16.msra.mxu1 (!%p139_p2), %v1004_v0  ;;  %p163_p3 = scmp.lt.s32.totalorder (!%p139_p2), %s162_s20, 51  ;;  %v1010_v6 = vld [vmem:[%s1215_s1 + $0x30] ss:$0 sps:$4 sm:$0x33] (!%p139_p2)   ;;  %v367_v8 = vsel (!%p139_p2), %vm365_vm1, 4294967295, %v1034_v7  ;;  %v1009_v9 = vld [vmem:[%s1215_s1 + $0x28] sm:$0xff] (!%p139_p2)  }
   0x8   : > { %915 = vmatprep.subr.bf16.mxu0 (!%p139_p2), %v1032_v1  ;;  %980 = vmatprep.subr.bf16.mxu1 (!%p139_p2), %v1032_v1  ;;  %v368_v10 = vsel (!%p139_p2), %vm366_vm2, %v367_v8, 0  ;;  %vm325_vm3 = vcmask (!%p139_p2), 809984   ;;  %v1163_v25 = vld [vmem:[%s1216_s2] ss:$0 sm:$0xff] (!%p139_p2) }
   0x9   : > { %927 = vmatprep.mubr.msk.bf16.mxu0 (!%p139_p2), %vm1033_vm0, %v1032_v1  ;;  %955 = vmatprep.mubr.msk.bf16.mxu1 (!%p139_p2), %vm1033_vm0, %v1032_v1  ;;  %v370_v11 = vand.u32 (!%p139_p2), %v1010_v6, %v368_v10 }
   0xb   : > { %916 = vmatpush3.bf16.msra.mxu0 (!%p139_p2), %v1005_v2  ;;  %987 = vmatpush3.bf16.msra.mxu1 (!%p139_p2), %v1005_v2 }
   0xc   : > { %917 = vmatprep.subr.bf16.mxu0 (!%p139_p2), %v1032_v1  ;;  %981 = vmatprep.subr.bf16.mxu1 (!%p139_p2), %v1032_v1 }
   0xd   : > { %s1219_s20 = smov (!%p163_p3, %s162_s20), 51 }
   0xe   : > { %s726_s23 = sshll.u32 %s1219_s20, 2 }
   0xf   : > { %918 = vmatpush3.bf16.msra.mxu0 %v1006_v3  ;;  %988 = vmatpush3.bf16.msra.mxu1 %v1006_v3  ;;  %s1098_s28 = scalar_lea.vmem %s1214_s0, %s726_s23  ;;  %s1174_s10 = scalar_lea.vmem %s1217_s3, %s726_s23 }
  0x10   : > { %919 = vmatprep.subr.bf16.mxu0 %v1032_v1  ;;  %982 = vmatprep.subr.bf16.mxu1 %v1032_v1  ;;  %v1011_v12 = vld [vmem:[%s1098_s28] sm:$0xff]   ;;  %v1012_v13 = vld [vmem:[%s1098_s28 + $0x38] sm:$0xff]   ;;  %v1013_v14 = vld [vmem:[%s1098_s28 + $0x8] sm:$0xff]  }
  0x11   : > { %v1014_v15 = vld [vmem:[%s1098_s28 + $0x40] sm:$0xff]   ;;  %v1015_v16 = vld [vmem:[%s1098_s28 + $0x10] sm:$0xff]   ;;  %v1016_v17 = vld [vmem:[%s1098_s28 + $0x48] sm:$0xff]  }
  0x12   : > { %v1017_v18 = vld [vmem:[%s1098_s28 + $0x18] sm:$0xff]   ;;  %v1018_v19 = vld [vmem:[%s1098_s28 + $0x50] sm:$0xff]   ;;  %v1019_v20 = vld [vmem:[%s1098_s28 + $0x20] sm:$0xff]  }
  0x13   : > { %920 = vmatpush3.bf16.msra.mxu0 %v1007_v4  ;;  %989 = vmatpush3.bf16.msra.mxu1 %v1007_v4  ;;  %v1020_v21 = vld [vmem:[%s1098_s28 + $0x58] sm:$0xff]   ;;  %v1021_v22 = vld [vmem:[%s1098_s28 + $0x28] sm:$0xff]   ;;  %v1022_v23 = vld [vmem:[%s1098_s28 + $0x60] sm:$0xff]  }
  0x14   : > { %921 = vmatprep.subr.bf16.mxu0 %v1032_v1  ;;  %983 = vmatprep.subr.bf16.mxu1 %v1032_v1  ;;  %v1023_v24 = vld [vmem:[%s1098_s28 + $0x30] sm:$0xff]  }
  0x17   : > { %922 = vmatpush3.bf16.msra.mxu0 %v1008_v5  ;;  %990 = vmatpush3.bf16.msra.mxu1 %v1008_v5 }
  0x18   : > { %923 = vmatprep.subr.bf16.mxu0 %v1032_v1  ;;  %984 = vmatprep.subr.bf16.mxu1 %v1032_v1 }
  0x1b   : > { %924 = vmatpush3.bf16.msra.mxu0 %v1009_v9  ;;  %991 = vmatpush3.bf16.msra.mxu1 %v1009_v9 }
  0x1c   : > { %925 = vmatprep.subr.bf16.mxu0 %v1032_v1  ;;  %985 = vmatprep.subr.bf16.mxu1 %v1032_v1 }
  0x1f   : > { %926 = vmatpush3.bf16.msra.mxu0 %v370_v11  ;;  %992 = vmatpush3.bf16.msra.mxu1 %v370_v11 }
  0x22   : > { %928 = vmatmul.mubr.msk.bf16.vlgmr.msra.gmra.mrb[0].mxu0 %vm325_vm3, %v1011_v12  ;;  %956 = vmatmul.mubr.msk.bf16.vlgmr.msra.gmra.mrb[0].mxu1 %vm325_vm3, %v1012_v13 }
  0x23   : > { %931 = vmatprep.mubr.msk.bf16.mxu0 %vm1033_vm0, %v1032_v1  ;;  %959 = vmatprep.mubr.msk.bf16.mxu1 %vm1033_vm0, %v1032_v1 }
  0x2a   : > { %932 = vmatmul.mubr.msk.bf16.gmra.mrb[4].mxu0 %vm325_vm3, %v1013_v14  ;;  %960 = vmatmul.mubr.msk.bf16.gmra.mrb[4].mxu1 %vm325_vm3, %v1014_v15 }
  0x2b   : > { %935 = vmatprep.mubr.msk.bf16.mxu0 %vm1033_vm0, %v1032_v1  ;;  %963 = vmatprep.mubr.msk.bf16.mxu1 %vm1033_vm0, %v1032_v1 }
  0x32   : > { %936 = vmatmul.mubr.msk.bf16.gmra.mrb[8].mxu0 %vm325_vm3, %v1015_v16  ;;  %964 = vmatmul.mubr.msk.bf16.gmra.mrb[8].mxu1 %vm325_vm3, %v1016_v17 }
  0x33   : > { %939 = vmatprep.mubr.msk.bf16.mxu0 %vm1033_vm0, %v1032_v1  ;;  %967 = vmatprep.mubr.msk.bf16.mxu1 %vm1033_vm0, %v1032_v1 }
  0x3a   : > { %940 = vmatmul.mubr.msk.bf16.gmra.mrb[12].mxu0 %vm325_vm3, %v1017_v18  ;;  %968 = vmatmul.mubr.msk.bf16.gmra.mrb[12].mxu1 %vm325_vm3, %v1018_v19 }
  0x3b   : > { %943 = vmatprep.mubr.msk.bf16.mxu0 %vm1033_vm0, %v1032_v1  ;;  %971 = vmatprep.mubr.msk.bf16.mxu1 %vm1033_vm0, %v1032_v1 }
  0x42   : > { %944 = vmatmul.mubr.msk.bf16.gmra.mrb[16].mxu0 %vm325_vm3, %v1019_v20  ;;  %972 = vmatmul.mubr.msk.bf16.gmra.mrb[16].mxu1 %vm325_vm3, %v1020_v21 }
  0x43   : > { %947 = vmatprep.mubr.msk.bf16.mxu0 %vm1033_vm0, %v1032_v1  ;;  %975 = vmatprep.mubr.msk.bf16.mxu1 %vm1033_vm0, %v1032_v1 }
  0x4a   : > { %948 = vmatmul.mubr.msk.bf16.gmra.mrb[20].mxu0 %vm325_vm3, %v1021_v22  ;;  %976 = vmatmul.mubr.msk.bf16.gmra.mrb[20].mxu1 %vm325_vm3, %v1022_v23 }
  0x4b   : > { %951 = vmatprep.mubr.msk.bf16.mxu0 %vm1033_vm0, %v1032_v1 }
  0x52   : > { %952 = vmatmul.mubr.msk.bf16.gmra.mrb[24].mxu0 %vm325_vm3, %v1023_v24 }
  0xf5   : > { %v406_v26 = vpop.f32.mrb[0].mxu0  ;;  %v462_v27 = vpop.f32.mrb[0].mxu1 }
  0xf6   : > { %v407_v28 = vadd.f32 %v1163_v25, %v406_v26  ;;  %v929_v29 = vpop.f32.mrb[1].mxu0  ;;  %v463_v30 = vadd.f32 %v1163_v25, %v462_v27  ;;  %v957_v31 = vpop.f32.mrb[1].mxu1 }
  0xf7   : > { %v409_v32 = vpop.f32.mrb[2].mxu0  ;;  %v465_v33 = vpop.f32.mrb[2].mxu1 }
  0xf8   : > { %v410_v34 = vadd.f32 %v1163_v25, %v409_v32  ;;  %v930_v35 = vpop.f32.mrb[3].mxu0  ;;  %v523_v36 = vmax.f32 %v463_v30, 0.0  ;;  %v466_v37 = vadd.f32 %v1163_v25, %v465_v33  ;;  %v958_v38 = vpop.f32.mrb[3].mxu1  ;;  %v509_v39 = vmax.f32 %v407_v28, 0.0 }
  0xfa   : > { %v510_v40 = vmax.f32 %v410_v34, 0.0  ;;  %v524_v41 = vmax.f32 %v466_v37, 0.0 }
  0xfc   : > { %v819_v42 = vpack.c.bf16 %v510_v40, %v509_v39  ;;  %v854_v43 = vpack.c.bf16 %v524_v41, %v523_v36 }
  0xfd   : > { %v414_v44 = vpop.f32.mrb[4].mxu0  ;;  %v470_v45 = vpop.f32.mrb[4].mxu1 }
  0xfe   : > { %820 = vst [vmem:[%s1174_s10] sm:$0xff] %v819_v42   ;;  %887 = vst [vmem:[%s1174_s10 + $0x38] sm:$0xff] %v854_v43   ;;  %v415_v46 = vadd.f32 %v1163_v25, %v414_v44  ;;  %v933_v47 = vpop.f32.mrb[5].mxu0  ;;  %v471_v48 = vadd.f32 %v1163_v25, %v470_v45  ;;  %v961_v49 = vpop.f32.mrb[5].mxu1 }
  0xff   : > { %v417_v50 = vpop.f32.mrb[6].mxu0  ;;  %v473_v51 = vpop.f32.mrb[6].mxu1 }
 0x100   : > { %v418_v52 = vadd.f32 %v1163_v25, %v417_v50  ;;  %v934_v53 = vpop.f32.mrb[7].mxu0  ;;  %v525_v54 = vmax.f32 %v471_v48, 0.0  ;;  %v474_v55 = vadd.f32 %v1163_v25, %v473_v51  ;;  %v962_v56 = vpop.f32.mrb[7].mxu1  ;;  %v511_v57 = vmax.f32 %v415_v46, 0.0 }
 0x102   : > { %v512_v58 = vmax.f32 %v418_v52, 0.0  ;;  %v526_v59 = vmax.f32 %v474_v55, 0.0 }
 0x104   : > { %v824_v60 = vpack.c.bf16 %v512_v58, %v511_v57  ;;  %v859_v61 = vpack.c.bf16 %v526_v59, %v525_v54 }
 0x105   : > { %v422_v62 = vpop.f32.mrb[8].mxu0  ;;  %v478_v63 = vpop.f32.mrb[8].mxu1 }
 0x106   : > { %881 = vst [vmem:[%s1174_s10 + $0x8] sm:$0xff] %v824_v60   ;;  %888 = vst [vmem:[%s1174_s10 + $0x40] sm:$0xff] %v859_v61   ;;  %v423_v0 = vadd.f32 %v1163_v25, %v422_v62  ;;  %v937_v1 = vpop.f32.mrb[9].mxu0  ;;  %v479_v2 = vadd.f32 %v1163_v25, %v478_v63  ;;  %v965_v3 = vpop.f32.mrb[9].mxu1 }
 0x107   : > { %v425_v4 = vpop.f32.mrb[10].mxu0  ;;  %v481_v5 = vpop.f32.mrb[10].mxu1 }
 0x108   : > { %v426_v6 = vadd.f32 %v1163_v25, %v425_v4  ;;  %v938_v7 = vpop.f32.mrb[11].mxu0  ;;  %v527_v8 = vmax.f32 %v479_v2, 0.0  ;;  %v482_v9 = vadd.f32 %v1163_v25, %v481_v5  ;;  %v966_v10 = vpop.f32.mrb[11].mxu1  ;;  %v513_v11 = vmax.f32 %v423_v0, 0.0 }
 0x10a   : > { %v514_v12 = vmax.f32 %v426_v6, 0.0  ;;  %v528_v13 = vmax.f32 %v482_v9, 0.0 }
 0x10c   : > { %v829_v14 = vpack.c.bf16 %v514_v12, %v513_v11  ;;  %v864_v15 = vpack.c.bf16 %v528_v13, %v527_v8 }
 0x10d   : > { %v430_v16 = vpop.f32.mrb[12].mxu0  ;;  %v486_v17 = vpop.f32.mrb[12].mxu1 }
 0x10e   : > { %882 = vst [vmem:[%s1174_s10 + $0x10] sm:$0xff] %v829_v14   ;;  %889 = vst [vmem:[%s1174_s10 + $0x48] sm:$0xff] %v864_v15   ;;  %v431_v18 = vadd.f32 %v1163_v25, %v430_v16  ;;  %v941_v19 = vpop.f32.mrb[13].mxu0  ;;  %v487_v20 = vadd.f32 %v1163_v25, %v486_v17  ;;  %v969_v21 = vpop.f32.mrb[13].mxu1 }
 0x10f   : > { %v433_v22 = vpop.f32.mrb[14].mxu0  ;;  %v489_v23 = vpop.f32.mrb[14].mxu1 }
 0x110   : > { %v434_v24 = vadd.f32 %v1163_v25, %v433_v22  ;;  %v942_v26 = vpop.f32.mrb[15].mxu0  ;;  %v529_v27 = vmax.f32 %v487_v20, 0.0  ;;  %v490_v28 = vadd.f32 %v1163_v25, %v489_v23  ;;  %v970_v29 = vpop.f32.mrb[15].mxu1  ;;  %v515_v30 = vmax.f32 %v431_v18, 0.0 }
 0x112   : > { %v516_v31 = vmax.f32 %v434_v24, 0.0  ;;  %v530_v32 = vmax.f32 %v490_v28, 0.0 }
 0x114   : > { %v834_v33 = vpack.c.bf16 %v516_v31, %v515_v30  ;;  %v869_v34 = vpack.c.bf16 %v530_v32, %v529_v27 }
 0x115   : > { %v438_v35 = vpop.f32.mrb[16].mxu0  ;;  %v494_v36 = vpop.f32.mrb[16].mxu1 }
 0x116   : > { %883 = vst [vmem:[%s1174_s10 + $0x18] sm:$0xff] %v834_v33   ;;  %890 = vst [vmem:[%s1174_s10 + $0x50] sm:$0xff] %v869_v34   ;;  %v439_v37 = vadd.f32 %v1163_v25, %v438_v35  ;;  %v945_v38 = vpop.f32.mrb[17].mxu0  ;;  %v495_v39 = vadd.f32 %v1163_v25, %v494_v36  ;;  %v973_v40 = vpop.f32.mrb[17].mxu1 }
 0x117   : > { %v441_v41 = vpop.f32.mrb[18].mxu0  ;;  %v497_v42 = vpop.f32.mrb[18].mxu1 }
 0x118   : > { %v442_v43 = vadd.f32 %v1163_v25, %v441_v41  ;;  %v946_v44 = vpop.f32.mrb[19].mxu0  ;;  %v531_v45 = vmax.f32 %v495_v39, 0.0  ;;  %v498_v46 = vadd.f32 %v1163_v25, %v497_v42  ;;  %v974_v47 = vpop.f32.mrb[19].mxu1  ;;  %v517_v48 = vmax.f32 %v439_v37, 0.0 }
 0x11a   : > { %v518_v49 = vmax.f32 %v442_v43, 0.0  ;;  %v532_v50 = vmax.f32 %v498_v46, 0.0 }
 0x11c   : > { %v839_v51 = vpack.c.bf16 %v518_v49, %v517_v48  ;;  %v874_v52 = vpack.c.bf16 %v532_v50, %v531_v45 }
 0x11d   : > { %v446_v53 = vpop.f32.mrb[20].mxu0  ;;  %v502_v54 = vpop.f32.mrb[20].mxu1 }
 0x11e   : > { %884 = vst [vmem:[%s1174_s10 + $0x20] sm:$0xff] %v839_v51   ;;  %891 = vst [vmem:[%s1174_s10 + $0x58] sm:$0xff] %v874_v52   ;;  %v447_v55 = vadd.f32 %v1163_v25, %v446_v53  ;;  %v949_v56 = vpop.f32.mrb[21].mxu0  ;;  %v503_v57 = vadd.f32 %v1163_v25, %v502_v54  ;;  %v977_v58 = vpop.f32.mrb[21].mxu1 }
 0x11f   : > { %v449_v59 = vpop.f32.mrb[22].mxu0  ;;  %v505_v60 = vpop.f32.mrb[22].mxu1 }
 0x120   : > { %v450_v61 = vadd.f32 %v1163_v25, %v449_v59  ;;  %v950_v62 = vpop.f32.mrb[23].mxu0  ;;  %v533_v63 = vmax.f32 %v503_v57, 0.0  ;;  %v506_v0 = vadd.f32 %v1163_v25, %v505_v60  ;;  %v978_v1 = vpop.f32.mrb[23].mxu1  ;;  %v519_v2 = vmax.f32 %v447_v55, 0.0 }
 0x122   : > { %v520_v3 = vmax.f32 %v450_v61, 0.0  ;;  %v534_v4 = vmax.f32 %v506_v0, 0.0 }
 0x124   : > { %v844_v5 = vpack.c.bf16 %v520_v3, %v519_v2  ;;  %v879_v6 = vpack.c.bf16 %v534_v4, %v533_v63 }
 0x125   : > { %v454_v7 = vpop.f32.mrb[24].mxu0 }
 0x126   : > { %885 = vst [vmem:[%s1174_s10 + $0x28] sm:$0xff] %v844_v5   ;;  %892 = vst [vmem:[%s1174_s10 + $0x60] sm:$0xff] %v879_v6   ;;  %v455_v8 = vadd.f32 %v1163_v25, %v454_v7  ;;  %v953_v9 = vpop.f32.mrb[25].mxu0 }
 0x127   : > { %v457_v10 = vpop.f32.mrb[26].mxu0 }
 0x128   : > { %v458_v11 = vadd.f32 %v1163_v25, %v457_v10  ;;  %v954_v12 = vpop.f32.mrb[27].mxu0  ;;  %v521_v13 = vmax.f32 %v455_v8, 0.0 }
 0x12a   : > { %v522_v14 = vmax.f32 %v458_v11, 0.0 }
 0x12c   : > { %v849_v15 = vpack.c.bf16 %v522_v14, %v521_v13 }
 0x12e   : > { %886 = vst [vmem:[%s1174_s10 + $0x30] sm:$0xff] %v849_v15  }
 0x12f PF: > { %s13_s12 = sadd.s32 1, %s1030_s12  }
 0x130   : > { %p10_p4 = scmp.ge.s32.totalorder %s13_s12, 4  }
 0x132   :  { %12 = sbr.rel (!%p10_p4) target bundleno = 1 (0x1), region = 62 }

// kernel: cond_vae_forward.8
= control target key start
LH: loop header
LB: loop body
LE: loop exit
PB: predicated region body
PF: predicated region fallthrough
CT: control target
= control target key end

     0   :  { %v850_v1 = vmov 0.0   ;;  %vm851_vm0 = vmmov 0   ;;  %vm299_vm1 = vcmask 261120   ;;  %s1052_s1 = inlined_call_operand.vmem [shape: bf16[288,128], index: 1, kind: input, shape index: {}]   ;;  %s1053_s0 = inlined_call_operand.vmem [shape: bf16[112,288], index: 0, kind: input, shape index: {}]   ;;  %s1054_s2 = inlined_call_operand.vmem [shape: f32[1,128], index: 2, kind: input, shape index: {}]   ;;  %s1055_s3 = inlined_call_operand.vmem [shape: bf16[112,128], index: 3, kind: output, shape index: {}]  }
   0x1   :  { %v804_v0 = vld [vmem:[%s1052_s1 + $0x40] sm:$0xff]   ;;  %770 = vmatprep.subr.bf16.mxu1 %v850_v1  ;;  %774 = vmatprep.mubr.msk.bf16.mxu1 %vm851_vm0, %v850_v1  ;;  %v806_v3 = vld [vmem:[%s1052_s1 + $0x48] sm:$0xff]   ;;  %v808_v5 = vld [vmem:[%s1052_s1 + $0x50] sm:$0xff]  }
   0x2   :  { %v805_v2 = vld [vmem:[%s1052_s1] sm:$0xff]   ;;  %703 = vmatprep.subr.bf16.mxu0 %v804_v0  ;;  %v807_v4 = vld [vmem:[%s1052_s1 + $0x8] sm:$0xff]   ;;  %v809_v6 = vld [vmem:[%s1052_s1 + $0x10] sm:$0xff]  }
   0x3   :  { %704 = vmatpush3.bf16.msra.mxu0 %v805_v2  ;;  %v810_v7 = vld [vmem:[%s1052_s1 + $0x58] sm:$0xff]   ;;  %v812_v9 = vld [vmem:[%s1052_s1 + $0x60] sm:$0xff]   ;;  %v814_v12 = vld [vmem:[%s1052_s1 + $0x68] sm:$0xff]  }
   0x4   :  { %705 = vmatprep.subr.bf16.mxu0 %v806_v3  ;;  %v811_v8 = vld [vmem:[%s1052_s1 + $0x18] sm:$0xff]   ;;  %v818_v10 = vld [vmem:[%s1052_s1 + $0x80] sm:$0xff]   ;;  %v815_v13 = vld [vmem:[%s1052_s1 + $0x28] sm:$0xff]  }
   0x5   :  { %v813_v11 = vld [vmem:[%s1052_s1 + $0x20] sm:$0xff]   ;;  %771 = vmatpush3.bf16.msra.mxu1 %v818_v10  ;;  %v816_v14 = vld [vmem:[%s1052_s1 + $0x70] sm:$0xff]   ;;  %v824_v16 = vld [vmem:[%s1052_s1 + $0x88] sm:$0xff]  }
   0x6   :  { %772 = vmatprep.subr.bf16.mxu1 %v850_v1  ;;  %v823_v15 = vld [vmem:[%s1053_s0 + $0x4] ss:$12 sps:$4 sm:$0xff]   ;;  %v825_v17 = vld [vmem:[%s1053_s0 + $0x8] ss:$12 sps:$4 sm:$0xff]   ;;  %v819_v19 = vld [vmem:[%s1052_s1 + $0x78] sm:$0xff]  }
   0x7   :  { %706 = vmatpush3.bf16.msra.mxu0 %v807_v4  ;;  %353 = vmatprep.mubr.bf16.mxu0 %v823_v15  ;;  %v817_v18 = vld [vmem:[%s1052_s1 + $0x30] sm:$0xff]   ;;  %v820_v20 = vld [vmem:[%s1052_s1 + $0x38] sm:$0xff]   ;;  %v829_v21 = vld [vmem:[%s1053_s0 + $0x20] ss:$12 sps:$4 sm:$0xff]  }
   0x8   :  { %707 = vmatprep.subr.bf16.mxu0 %v808_v5  ;;  %v821_v22 = vld [vmem:[%s1053_s0] ss:$12 sps:$4 sm:$0xff]   ;;  %v826_v23 = vld [vmem:[%s1053_s0 + $0x1c] ss:$12 sps:$4 sm:$0xff]   ;;  %v833_v24 = vld [vmem:[%s1053_s0 + $0x38] ss:$12 sps:$4 sm:$0xff]  }
   0x9   :  { %773 = vmatpush3.bf16.msra.mxu1 %v824_v16  ;;  %v828_v25 = vld [vmem:[%s1053_s0 + $0x18] ss:$12 sps:$4 sm:$0xff]   ;;  %v830_v26 = vld [vmem:[%s1053_s0 + $0x34] ss:$12 sps:$4 sm:$0xff]   ;;  %v837_v27 = vld [vmem:[%s1053_s0 + $0x50] ss:$12 sps:$4 sm:$0xff]  }
   0xa   :  { %v832_v28 = vld [vmem:[%s1053_s0 + $0x30] ss:$12 sps:$4 sm:$0xff]   ;;  %v834_v29 = vld [vmem:[%s1053_s0 + $0x4c] ss:$12 sps:$4 sm:$0xff]   ;;  %v841_v30 = vld [vmem:[%s1053_s0 + $0x68] ss:$12 sps:$4 sm:$0xff]  }
   0xb   :  { %708 = vmatpush3.bf16.msra.mxu0 %v809_v6  ;;  %v836_v31 = vld [vmem:[%s1053_s0 + $0x48] ss:$12 sps:$4 sm:$0xff]   ;;  %v838_v32 = vld [vmem:[%s1053_s0 + $0x64] ss:$12 sps:$4 sm:$0xff]   ;;  %v845_v33 = vld [vmem:[%s1053_s0 + $0x80] ss:$12 sps:$4 sm:$0xff]  }
   0xc   :  { %709 = vmatprep.subr.bf16.mxu0 %v810_v7  ;;  %775 = vmatmul.mubr.msk.bf16.vlgmr.msra.gmra.mrb[0].mxu1 %vm299_vm1, %v825_v17  ;;  %v840_v34 = vld [vmem:[%s1053_s0 + $0x60] ss:$12 sps:$4 sm:$0xff]   ;;  %v842_v35 = vld [vmem:[%s1053_s0 + $0x7c] ss:$12 sps:$4 sm:$0xff]   ;;  %v849_v36 = vld [vmem:[%s1053_s0 + $0x98] ss:$12 sps:$4 sm:$0xff]  }
   0xd   :  { %778 = vmatprep.mubr.msk.bf16.mxu1 %vm851_vm0, %v850_v1  ;;  %v844_v37 = vld [vmem:[%s1053_s0 + $0x78] ss:$12 sps:$4 sm:$0xff]   ;;  %v846_v38 = vld [vmem:[%s1053_s0 + $0x94] ss:$12 sps:$4 sm:$0xff]   ;;  %v848_v39 = vld [vmem:[%s1053_s0 + $0x90] ss:$12 sps:$4 sm:$0xff]  }
   0xe   :  { %v1015_v49 = vld [vmem:[%s1054_s2] ss:$0 sm:$0xff] }
   0xf   :  { %710 = vmatpush3.bf16.msra.mxu0 %v811_v8 }
  0x10   :  { %711 = vmatprep.subr.bf16.mxu0 %v812_v9 }
  0x13   :  { %712 = vmatpush3.bf16.msra.mxu0 %v813_v11 }
  0x14   :  { %713 = vmatprep.subr.bf16.mxu0 %v814_v12  ;;  %779 = vmatmul.mubr.msk.bf16.gmra.mrb[4].mxu1 %vm299_vm1, %v829_v21 }
  0x15   :  { %782 = vmatprep.mubr.msk.bf16.mxu1 %vm851_vm0, %v850_v1 }
  0x17   :  { %714 = vmatpush3.bf16.msra.mxu0 %v815_v13 }
  0x18   :  { %715 = vmatprep.subr.bf16.mxu0 %v816_v14 }
  0x1b   :  { %716 = vmatpush3.bf16.msra.mxu0 %v817_v18 }
  0x1c   :  { %717 = vmatprep.subr.bf16.mxu0 %v819_v19  ;;  %783 = vmatmul.mubr.msk.bf16.gmra.mrb[8].mxu1 %vm299_vm1, %v833_v24 }
  0x1d   :  { %786 = vmatprep.mubr.msk.bf16.mxu1 %vm851_vm0, %v850_v1 }
  0x1f   :  { %718 = vmatpush3.bf16.msra.mxu0 %v820_v20 }
  0x22   :  { %354 = vmatmul.mubr.bf16.vlgmr.msra.gmra.mrb[0].mxu0 %v821_v22 }
  0x23   :  { %361 = vmatprep.mubr.bf16.mxu0 %v826_v23 }
  0x24   :  { %787 = vmatmul.mubr.msk.bf16.gmra.mrb[12].mxu1 %vm299_vm1, %v837_v27 }
  0x25   :  { %790 = vmatprep.mubr.msk.bf16.mxu1 %vm851_vm0, %v850_v1 }
  0x2a   :  { %362 = vmatmul.mubr.bf16.gmra.mrb[4].mxu0 %v828_v25 }
  0x2b   :  { %369 = vmatprep.mubr.bf16.mxu0 %v830_v26 }
  0x2c   :  { %791 = vmatmul.mubr.msk.bf16.gmra.mrb[16].mxu1 %vm299_vm1, %v841_v30 }
  0x2d   :  { %794 = vmatprep.mubr.msk.bf16.mxu1 %vm851_vm0, %v850_v1 }
  0x32   :  { %370 = vmatmul.mubr.bf16.gmra.mrb[8].mxu0 %v832_v28 }
  0x33   :  { %377 = vmatprep.mubr.bf16.mxu0 %v834_v29 }
  0x34   :  { %795 = vmatmul.mubr.msk.bf16.gmra.mrb[20].mxu1 %vm299_vm1, %v845_v33 }
  0x35   :  { %798 = vmatprep.mubr.msk.bf16.mxu1 %vm851_vm0, %v850_v1 }
  0x3a   :  { %378 = vmatmul.mubr.bf16.gmra.mrb[12].mxu0 %v836_v31 }
  0x3b   :  { %385 = vmatprep.mubr.bf16.mxu0 %v838_v32 }
  0x3c   :  { %799 = vmatmul.mubr.msk.bf16.gmra.mrb[24].mxu1 %vm299_vm1, %v849_v36 }
  0x42   :  { %386 = vmatmul.mubr.bf16.gmra.mrb[16].mxu0 %v840_v34 }
  0x43   :  { %393 = vmatprep.mubr.bf16.mxu0 %v842_v35 }
  0x4a   :  { %394 = vmatmul.mubr.bf16.gmra.mrb[20].mxu0 %v844_v37 }
  0x4b   :  { %401 = vmatprep.mubr.bf16.mxu0 %v846_v38 }
  0x52   :  { %402 = vmatmul.mubr.bf16.gmra.mrb[24].mxu0 %v848_v39 }
  0xdf   :  { %v444_v40 = vpop.f32.mrb[0].mxu1 }
  0xe0   :  { %v776_v41 = vpop.f32.mrb[1].mxu1 }
  0xe1   :  { %v447_v42 = vpop.f32.mrb[2].mxu1 }
  0xe2   :  { %v777_v43 = vpop.f32.mrb[3].mxu1 }
  0xe7   :  { %v452_v44 = vpop.f32.mrb[4].mxu1 }
  0xe8   :  { %v780_v45 = vpop.f32.mrb[5].mxu1 }
  0xe9   :  { %v455_v47 = vpop.f32.mrb[6].mxu1 }
  0xea   :  { %v781_v50 = vpop.f32.mrb[7].mxu1 }
  0xef   :  { %v460_v58 = vpop.f32.mrb[8].mxu1 }
  0xf0   :  { %v784_v59 = vpop.f32.mrb[9].mxu1 }
  0xf1   :  { %v463_v62 = vpop.f32.mrb[10].mxu1 }
  0xf2   :  { %v785_v0 = vpop.f32.mrb[11].mxu1 }
  0xf5   :  { %v719_v46 = vpop.f32.mrb[0].mxu0 }
  0xf6   :  { %v720_v48 = vpop.f32.mrb[1].mxu0 }
  0xf7   :  { %v721_v51 = vadd.f32 %v720_v48, %v719_v46  ;;  %v722_v52 = vpop.f32.mrb[2].mxu0  ;;  %v468_v11 = vpop.f32.mrb[12].mxu1 }
  0xf8   :  { %v723_v53 = vpop.f32.mrb[3].mxu0  ;;  %v788_v12 = vpop.f32.mrb[13].mxu1 }
  0xf9   :  { %v356_v54 = vadd.f32 %v721_v51, %v1015_v49  ;;  %v724_v55 = vadd.f32 %v723_v53, %v722_v52  ;;  %v471_v15 = vpop.f32.mrb[14].mxu1 }
  0xfa   :  { %v789_v17 = vpop.f32.mrb[15].mxu1 }
  0xfb   :  { %v445_v56 = vadd.f32 %v444_v40, %v356_v54  ;;  %v359_v57 = vadd.f32 %v724_v55, %v1015_v49 }
  0xfd   :  { %v448_v60 = vadd.f32 %v447_v42, %v359_v57  ;;  %v725_v61 = vpop.f32.mrb[4].mxu0  ;;  %v499_v1 = vmax.f32 %v445_v56, 0.0 }
  0xfe   :  { %v726_v63 = vpop.f32.mrb[5].mxu0 }
  0xff   :  { %v500_v2 = vmax.f32 %v448_v60, 0.0  ;;  %v727_v3 = vadd.f32 %v726_v63, %v725_v61  ;;  %v728_v4 = vpop.f32.mrb[6].mxu0  ;;  %v476_v28 = vpop.f32.mrb[16].mxu1 }
 0x100   :  { %v729_v5 = vpop.f32.mrb[7].mxu0  ;;  %v792_v29 = vpop.f32.mrb[17].mxu1 }
 0x101   :  { %v665_v6 = vpack.c.bf16 %v500_v2, %v499_v1  ;;  %v364_v7 = vadd.f32 %v727_v3, %v1015_v49  ;;  %v730_v8 = vadd.f32 %v729_v5, %v728_v4  ;;  %v479_v32 = vpop.f32.mrb[18].mxu1 }
 0x102   :  { %v793_v34 = vpop.f32.mrb[19].mxu1 }
 0x103   :  { %666 = vst [vmem:[%s1055_s3] sm:$0xff] %v665_v6   ;;  %v453_v9 = vadd.f32 %v452_v44, %v364_v7  ;;  %v367_v10 = vadd.f32 %v730_v8, %v1015_v49 }
 0x105   :  { %v456_v13 = vadd.f32 %v455_v47, %v367_v10  ;;  %v731_v14 = vpop.f32.mrb[8].mxu0  ;;  %v501_v18 = vmax.f32 %v453_v9, 0.0 }
 0x106   :  { %v732_v16 = vpop.f32.mrb[9].mxu0 }
 0x107   :  { %v502_v19 = vmax.f32 %v456_v13, 0.0  ;;  %v733_v20 = vadd.f32 %v732_v16, %v731_v14  ;;  %v734_v21 = vpop.f32.mrb[10].mxu0  ;;  %v484_v45 = vpop.f32.mrb[20].mxu1 }
 0x108   :  { %v735_v22 = vpop.f32.mrb[11].mxu0  ;;  %v796_v46 = vpop.f32.mrb[21].mxu1 }
 0x109   :  { %v670_v23 = vpack.c.bf16 %v502_v19, %v501_v18  ;;  %v372_v24 = vadd.f32 %v733_v20, %v1015_v49  ;;  %v736_v25 = vadd.f32 %v735_v22, %v734_v21  ;;  %v487_v50 = vpop.f32.mrb[22].mxu1 }
 0x10a   :  { %v797_v52 = vpop.f32.mrb[23].mxu1 }
 0x10b   :  { %697 = vst [vmem:[%s1055_s3 + $0x8] sm:$0xff] %v670_v23   ;;  %v461_v26 = vadd.f32 %v460_v58, %v372_v24  ;;  %v375_v27 = vadd.f32 %v736_v25, %v1015_v49 }
 0x10d   :  { %v464_v30 = vadd.f32 %v463_v62, %v375_v27  ;;  %v737_v31 = vpop.f32.mrb[12].mxu0  ;;  %v503_v35 = vmax.f32 %v461_v26, 0.0 }
 0x10e   :  { %v738_v33 = vpop.f32.mrb[13].mxu0 }
 0x10f   :  { %v504_v36 = vmax.f32 %v464_v30, 0.0  ;;  %v739_v37 = vadd.f32 %v738_v33, %v737_v31  ;;  %v740_v38 = vpop.f32.mrb[14].mxu0  ;;  %v492_v63 = vpop.f32.mrb[24].mxu1 }
 0x110   :  { %v741_v39 = vpop.f32.mrb[15].mxu0  ;;  %v800_v0 = vpop.f32.mrb[25].mxu1 }
 0x111   :  { %v675_v40 = vpack.c.bf16 %v504_v36, %v503_v35  ;;  %v380_v41 = vadd.f32 %v739_v37, %v1015_v49  ;;  %v742_v42 = vadd.f32 %v741_v39, %v740_v38  ;;  %v495_v3 = vpop.f32.mrb[26].mxu1 }
 0x112   :  { %v801_v5 = vpop.f32.mrb[27].mxu1 }
 0x113   :  { %698 = vst [vmem:[%s1055_s3 + $0x10] sm:$0xff] %v675_v40   ;;  %v469_v43 = vadd.f32 %v468_v11, %v380_v41  ;;  %v383_v44 = vadd.f32 %v742_v42, %v1015_v49 }
 0x115   :  { %v472_v47 = vadd.f32 %v471_v15, %v383_v44  ;;  %v743_v48 = vpop.f32.mrb[16].mxu0  ;;  %v505_v53 = vmax.f32 %v469_v43, 0.0 }
 0x116   :  { %v744_v51 = vpop.f32.mrb[17].mxu0 }
 0x117   :  { %v506_v54 = vmax.f32 %v472_v47, 0.0  ;;  %v745_v55 = vadd.f32 %v744_v51, %v743_v48  ;;  %v746_v56 = vpop.f32.mrb[18].mxu0 }
 0x118   :  { %v747_v57 = vpop.f32.mrb[19].mxu0 }
 0x119   :  { %v680_v58 = vpack.c.bf16 %v506_v54, %v505_v53  ;;  %v388_v59 = vadd.f32 %v745_v55, %v1015_v49  ;;  %v748_v60 = vadd.f32 %v747_v57, %v746_v56 }
 0x11b   :  { %699 = vst [vmem:[%s1055_s3 + $0x18] sm:$0xff] %v680_v58   ;;  %v477_v61 = vadd.f32 %v476_v28, %v388_v59  ;;  %v391_v62 = vadd.f32 %v748_v60, %v1015_v49 }
 0x11d   :  { %v480_v1 = vadd.f32 %v479_v32, %v391_v62  ;;  %v749_v2 = vpop.f32.mrb[20].mxu0  ;;  %v507_v6 = vmax.f32 %v477_v61, 0.0 }
 0x11e   :  { %v750_v4 = vpop.f32.mrb[21].mxu0 }
 0x11f   :  { %v508_v7 = vmax.f32 %v480_v1, 0.0  ;;  %v751_v8 = vadd.f32 %v750_v4, %v749_v2  ;;  %v752_v9 = vpop.f32.mrb[22].mxu0 }
 0x120   :  { %v753_v10 = vpop.f32.mrb[23].mxu0 }
 0x121   :  { %v685_v11 = vpack.c.bf16 %v508_v7, %v507_v6  ;;  %v396_v12 = vadd.f32 %v751_v8, %v1015_v49  ;;  %v754_v13 = vadd.f32 %v753_v10, %v752_v9 }
 0x123   :  { %700 = vst [vmem:[%s1055_s3 + $0x20] sm:$0xff] %v685_v11   ;;  %v485_v14 = vadd.f32 %v484_v45, %v396_v12  ;;  %v399_v15 = vadd.f32 %v754_v13, %v1015_v49 }
 0x125   :  { %v488_v16 = vadd.f32 %v487_v50, %v399_v15  ;;  %v755_v17 = vpop.f32.mrb[24].mxu0  ;;  %v509_v19 = vmax.f32 %v485_v14, 0.0 }
 0x126   :  { %v756_v18 = vpop.f32.mrb[25].mxu0 }
 0x127   :  { %v510_v20 = vmax.f32 %v488_v16, 0.0  ;;  %v757_v21 = vadd.f32 %v756_v18, %v755_v17  ;;  %v758_v22 = vpop.f32.mrb[26].mxu0 }
 0x128   :  { %v759_v23 = vpop.f32.mrb[27].mxu0 }
 0x129   :  { %v690_v24 = vpack.c.bf16 %v510_v20, %v509_v19  ;;  %v404_v25 = vadd.f32 %v757_v21, %v1015_v49  ;;  %v760_v26 = vadd.f32 %v759_v23, %v758_v22 }
 0x12b   :  { %701 = vst [vmem:[%s1055_s3 + $0x28] sm:$0xff] %v690_v24   ;;  %v493_v27 = vadd.f32 %v492_v63, %v404_v25  ;;  %v407_v28 = vadd.f32 %v760_v26, %v1015_v49 }
 0x12d   :  { %v496_v29 = vadd.f32 %v495_v3, %v407_v28  ;;  %v511_v30 = vmax.f32 %v493_v27, 0.0 }
 0x12f   :  { %v512_v31 = vmax.f32 %v496_v29, 0.0 }
 0x131   :  { %v695_v32 = vpack.c.bf16 %v512_v31, %v511_v30 }
 0x133   :  { %702 = vst [vmem:[%s1055_s3 + $0x30] sm:$0xff] %v695_v32  }

// kernel: cond_vae_forward.9
= control target key start
LH: loop header
LB: loop body
LE: loop exit
PB: predicated region body
PF: predicated region fallthrough
CT: control target
= control target key end

     0   :  { %v1310_v34 = vmov 0.0   ;;  %vm1311_vm0 = vmmov 0   ;;  %vm527_vm1 = vcmask 523264   ;;  %s1638_s1 = inlined_call_operand.vmem [shape: bf16[576,128], index: 1, kind: input, shape index: {}]   ;;  %s1639_s0 = inlined_call_operand.vmem [shape: bf16[112,576], index: 0, kind: input, shape index: {}]   ;;  %s1640_s2 = inlined_call_operand.vmem [shape: f32[1,128], index: 2, kind: input, shape index: {}]   ;;  %s1641_s3 = inlined_call_operand.vmem [shape: bf16[112,128], index: 3, kind: output, shape index: {}]  }
   0x1   :  { %v1225_v0 = vld [vmem:[%s1638_s1 + $0x40] sm:$0xff]   ;;  %v1229_v4 = vld [vmem:[%s1638_s1 + $0x48] sm:$0xff]   ;;  %v1233_v8 = vld [vmem:[%s1638_s1 + $0x50] sm:$0xff]  }
   0x2   :  { %v1226_v1 = vld [vmem:[%s1638_s1 + $0xc0] sm:$0xff]   ;;  %1052 = vmatprep.subr.bf16.mxu0 %v1225_v0  ;;  %v1230_v5 = vld [vmem:[%s1638_s1 + $0xc8] sm:$0xff]   ;;  %v1234_v9 = vld [vmem:[%s1638_s1 + $0xd0] sm:$0xff]  }
   0x3   :  { %v1227_v2 = vld [vmem:[%s1638_s1] sm:$0xff]   ;;  %1110 = vmatprep.subr.bf16.mxu1 %v1226_v1  ;;  %v1231_v6 = vld [vmem:[%s1638_s1 + $0x8] sm:$0xff]   ;;  %v1235_v10 = vld [vmem:[%s1638_s1 + $0x10] sm:$0xff]  }
   0x4   :  { %v1228_v3 = vld [vmem:[%s1638_s1 + $0x80] sm:$0xff]   ;;  %1053 = vmatpush3.bf16.msra.mxu0 %v1227_v2  ;;  %v1232_v7 = vld [vmem:[%s1638_s1 + $0x88] sm:$0xff]   ;;  %v1236_v11 = vld [vmem:[%s1638_s1 + $0x90] sm:$0xff]  }
   0x5   :  { %1111 = vmatpush3.bf16.msra.mxu1 %v1228_v3  ;;  %1054 = vmatprep.subr.bf16.mxu0 %v1229_v4  ;;  %v1237_v12 = vld [vmem:[%s1638_s1 + $0x58] sm:$0xff]   ;;  %v1241_v16 = vld [vmem:[%s1638_s1 + $0x60] sm:$0xff]   ;;  %v1245_v20 = vld [vmem:[%s1638_s1 + $0x68] sm:$0xff]  }
   0x6   :  { %1112 = vmatprep.subr.bf16.mxu1 %v1230_v5  ;;  %v1238_v13 = vld [vmem:[%s1638_s1 + $0xd8] sm:$0xff]   ;;  %v1242_v17 = vld [vmem:[%s1638_s1 + $0xe0] sm:$0xff]   ;;  %v1246_v21 = vld [vmem:[%s1638_s1 + $0xe8] sm:$0xff]  }
   0x7   :  { %v1239_v14 = vld [vmem:[%s1638_s1 + $0x18] sm:$0xff]   ;;  %v1243_v18 = vld [vmem:[%s1638_s1 + $0x20] sm:$0xff]   ;;  %v1247_v22 = vld [vmem:[%s1638_s1 + $0x28] sm:$0xff]  }
   0x8   :  { %1055 = vmatpush3.bf16.msra.mxu0 %v1231_v6  ;;  %v1240_v15 = vld [vmem:[%s1638_s1 + $0x98] sm:$0xff]   ;;  %v1244_v19 = vld [vmem:[%s1638_s1 + $0xa0] sm:$0xff]   ;;  %v1248_v23 = vld [vmem:[%s1638_s1 + $0xa8] sm:$0xff]  }
   0x9   :  { %1113 = vmatpush3.bf16.msra.mxu1 %v1232_v7  ;;  %1056 = vmatprep.subr.bf16.mxu0 %v1233_v8  ;;  %v1249_v24 = vld [vmem:[%s1638_s1 + $0x70] sm:$0xff]   ;;  %v1253_v28 = vld [vmem:[%s1638_s1 + $0x78] sm:$0xff]   ;;  %v1262_v36 = vld [vmem:[%s1639_s0 + $0xc] ss:$20 sps:$4 sm:$0xff]  }
   0xa   :  { %1114 = vmatprep.subr.bf16.mxu1 %v1234_v9  ;;  %v1250_v25 = vld [vmem:[%s1638_s1 + $0xf0] sm:$0xff]   ;;  %v1254_v29 = vld [vmem:[%s1638_s1 + $0xf8] sm:$0xff]   ;;  %v1263_v37 = vld [vmem:[%s1638_s1 + $0x100] sm:$0xff]   ;;  %670 = vmatprep.mubr.bf16.mxu1 %v1262_v36 }
   0xb   :  { %v1251_v26 = vld [vmem:[%s1638_s1 + $0x30] sm:$0xff]   ;;  %v1255_v30 = vld [vmem:[%s1638_s1 + $0x38] sm:$0xff]   ;;  %v1264_v38 = vld [vmem:[%s1639_s0 + $0x2c] ss:$20 sps:$4 sm:$0xff]  }
   0xc   :  { %1057 = vmatpush3.bf16.msra.mxu0 %v1235_v10  ;;  %v1252_v27 = vld [vmem:[%s1638_s1 + $0xb0] sm:$0xff]   ;;  %v1256_v31 = vld [vmem:[%s1638_s1 + $0xb8] sm:$0xff]   ;;  %v1274_v43 = vld [vmem:[%s1638_s1 + $0x108] sm:$0xff]  }
   0xd   :  { %1115 = vmatpush3.bf16.msra.mxu1 %v1236_v11  ;;  %1058 = vmatprep.subr.bf16.mxu0 %v1237_v12  ;;  %v1257_v32 = vld [vmem:[%s1639_s0] ss:$20 sps:$4 sm:$0xff]   ;;  %v1259_v33 = vld [vmem:[%s1639_s0 + $0x4] ss:$20 sps:$4 sm:$0xff]   ;;  %v1260_v35 = vld [vmem:[%s1639_s0 + $0x8] ss:$20 sps:$4 sm:$0xff]  }
   0xe   :  { %1116 = vmatprep.subr.bf16.mxu1 %v1238_v13  ;;  %581 = vmatprep.mubr.bf16.mxu0 %v1259_v33  ;;  %v1266_v39 = vld [vmem:[%s1639_s0 + $0x34] ss:$20 sps:$4 sm:$0xff]   ;;  %v1269_v41 = vld [vmem:[%s1639_s0 + $0x30] ss:$20 sps:$4 sm:$0xff]   ;;  %v1276_v47 = vld [vmem:[%s1639_s0 + $0x58] ss:$20 sps:$4 sm:$0xff]  }
   0xf   :  { %v1268_v40 = vld [vmem:[%s1639_s0 + $0x28] ss:$20 sps:$4 sm:$0xff]   ;;  %v1283_v45 = vld [vmem:[%s1638_s1 + $0x110] sm:$0xff]   ;;  %v1279_v49 = vld [vmem:[%s1639_s0 + $0x84] ss:$20 sps:$4 sm:$0xff]  }
  0x10   :  { %1059 = vmatpush3.bf16.msra.mxu0 %v1239_v14  ;;  %v1270_v42 = vld [vmem:[%s1639_s0 + $0x54] ss:$20 sps:$4 sm:$0xff]   ;;  %v1272_v44 = vld [vmem:[%s1639_s0 + $0x5c] ss:$20 sps:$4 sm:$0xff]   ;;  %v1281_v51 = vld [vmem:[%s1639_s0 + $0x78] ss:$20 sps:$4 sm:$0xff]  }
  0x11   :  { %1117 = vmatpush3.bf16.msra.mxu1 %v1240_v15  ;;  %1060 = vmatprep.subr.bf16.mxu0 %v1241_v16  ;;  %v1275_v46 = vld [vmem:[%s1639_s0 + $0x50] ss:$20 sps:$4 sm:$0xff]   ;;  %v1296_v50 = vld [vmem:[%s1638_s1 + $0x118] sm:$0xff]   ;;  %v1282_v52 = vld [vmem:[%s1639_s0 + $0x80] ss:$20 sps:$4 sm:$0xff]  }
  0x12   :  { %1118 = vmatprep.subr.bf16.mxu1 %v1242_v17  ;;  %v1277_v48 = vld [vmem:[%s1639_s0 + $0x7c] ss:$20 sps:$4 sm:$0xff]   ;;  %v1284_v53 = vld [vmem:[%s1639_s0 + $0xa4] ss:$20 sps:$4 sm:$0xff]   ;;  %v1286_v54 = vld [vmem:[%s1639_s0 + $0xac] ss:$20 sps:$4 sm:$0xff]  }
  0x13   :  { %v1288_v55 = vld [vmem:[%s1639_s0 + $0xa0] ss:$20 sps:$4 sm:$0xff]   ;;  %v1289_v56 = vld [vmem:[%s1639_s0 + $0xa8] ss:$20 sps:$4 sm:$0xff]   ;;  %v1295_v60 = vld [vmem:[%s1639_s0 + $0xd0] ss:$20 sps:$4 sm:$0xff]  }
  0x14   :  { %1061 = vmatpush3.bf16.msra.mxu0 %v1243_v18  ;;  %v1290_v57 = vld [vmem:[%s1639_s0 + $0xcc] ss:$20 sps:$4 sm:$0xff]   ;;  %v1292_v58 = vld [vmem:[%s1639_s0 + $0xd4] ss:$20 sps:$4 sm:$0xff]   ;;  %v1299_v62 = vld [vmem:[%s1639_s0 + $0xfc] ss:$20 sps:$4 sm:$0xff]  }
  0x15   :  { %1119 = vmatpush3.bf16.msra.mxu1 %v1244_v19  ;;  %1062 = vmatprep.subr.bf16.mxu0 %v1245_v20  ;;  %v1294_v59 = vld [vmem:[%s1639_s0 + $0xc8] ss:$20 sps:$4 sm:$0xff]   ;;  %v1301_v63 = vld [vmem:[%s1639_s0 + $0xf0] ss:$20 sps:$4 sm:$0xff]   ;;  %v1302_v0 = vld [vmem:[%s1639_s0 + $0xf8] ss:$20 sps:$4 sm:$0xff]  }
  0x16   :  { %1120 = vmatprep.subr.bf16.mxu1 %v1246_v21  ;;  %v1297_v61 = vld [vmem:[%s1639_s0 + $0xf4] ss:$20 sps:$4 sm:$0xff]   ;;  %v1303_v1 = vld [vmem:[%s1639_s0 + $0x10] ss:$20 sps:$4 sm:$0xff]   ;;  %v1305_v3 = vld [vmem:[%s1639_s0 + $0x38] ss:$20 sps:$4 sm:$0xff]  }
  0x17   :  { %v1304_v2 = vld [vmem:[%s1639_s0 + $0xb0] ss:$20 sps:$4 sm:$0xff]   ;;  %v1306_v4 = vld [vmem:[%s1639_s0 + $0xd8] ss:$20 sps:$4 sm:$0xff]   ;;  %v1307_v5 = vld [vmem:[%s1639_s0 + $0x60] ss:$20 sps:$4 sm:$0xff]  }
  0x18   :  { %1063 = vmatpush3.bf16.msra.mxu0 %v1247_v22  ;;  %v1308_v6 = vld [vmem:[%s1639_s0 + $0x100] ss:$20 sps:$4 sm:$0xff]   ;;  %v1309_v7 = vld [vmem:[%s1639_s0 + $0x88] ss:$20 sps:$4 sm:$0xff]  }
  0x19   :  { %1121 = vmatpush3.bf16.msra.mxu1 %v1248_v23  ;;  %1064 = vmatprep.subr.bf16.mxu0 %v1249_v24  ;;  %v1577_v9 = vld [vmem:[%s1640_s2] ss:$0 sm:$0xff] }
  0x1a   :  { %1122 = vmatprep.subr.bf16.mxu1 %v1250_v25 }
  0x1c   :  { %1065 = vmatpush3.bf16.msra.mxu0 %v1251_v26 }
  0x1d   :  { %1123 = vmatpush3.bf16.msra.mxu1 %v1252_v27  ;;  %1066 = vmatprep.subr.bf16.mxu0 %v1253_v28 }
  0x1e   :  { %1124 = vmatprep.subr.bf16.mxu1 %v1254_v29 }
  0x20   :  { %1067 = vmatpush3.bf16.msra.mxu0 %v1255_v30 }
  0x21   :  { %1125 = vmatpush3.bf16.msra.mxu1 %v1256_v31  ;;  %1179 = vmatprep.subr.bf16.mxu0 %v1310_v34 }
  0x22   :  { %1215 = vmatprep.subr.bf16.mxu1 %v1310_v34 }
  0x23   :  { %582 = vmatmul.mubr.bf16.vlgmr.msra.gmra.mrb[0].mxu0 %v1257_v32 }
  0x24   :  { %671 = vmatmul.mubr.bf16.vlgmr.msra.gmra.mrb[0].mxu1 %v1260_v35  ;;  %1180 = vmatpush3.bf16.msra.mxu0 %v1263_v37 }
  0x25   :  { %589 = vmatprep.mubr.bf16.mxu0 %v1264_v38  ;;  %1219 = vmatpush3.bf16.msra.mxu1 %v1263_v37 }
  0x26   :  { %678 = vmatprep.mubr.bf16.mxu1 %v1266_v39  ;;  %1181 = vmatprep.subr.bf16.mxu0 %v1310_v34 }
  0x27   :  { %1216 = vmatprep.subr.bf16.mxu1 %v1310_v34 }
  0x28   :  { %1182 = vmatpush3.bf16.msra.mxu0 %v1274_v43 }
  0x29   :  { %1220 = vmatpush3.bf16.msra.mxu1 %v1274_v43  ;;  %1183 = vmatprep.subr.bf16.mxu0 %v1310_v34 }
  0x2a   :  { %1217 = vmatprep.subr.bf16.mxu1 %v1310_v34 }
  0x2b   :  { %590 = vmatmul.mubr.bf16.gmra.mrb[4].mxu0 %v1268_v40 }
  0x2c   :  { %679 = vmatmul.mubr.bf16.gmra.mrb[4].mxu1 %v1269_v41  ;;  %597 = vmatprep.mubr.bf16.mxu0 %v1270_v42 }
  0x2d   :  { %686 = vmatprep.mubr.bf16.mxu1 %v1272_v44  ;;  %1184 = vmatpush3.bf16.msra.mxu0 %v1283_v45 }
  0x2e   :  { %1221 = vmatpush3.bf16.msra.mxu1 %v1283_v45  ;;  %1185 = vmatprep.subr.bf16.mxu0 %v1310_v34 }
  0x2f   :  { %1218 = vmatprep.subr.bf16.mxu1 %v1310_v34 }
  0x31   :  { %1186 = vmatpush3.bf16.msra.mxu0 %v1296_v50 }
  0x32   :  { %1222 = vmatpush3.bf16.msra.mxu1 %v1296_v50 }
  0x33   :  { %598 = vmatmul.mubr.bf16.gmra.mrb[8].mxu0 %v1275_v46 }
  0x34   :  { %687 = vmatmul.mubr.bf16.gmra.mrb[8].mxu1 %v1276_v47  ;;  %605 = vmatprep.mubr.bf16.mxu0 %v1277_v48 }
  0x35   :  { %694 = vmatprep.mubr.bf16.mxu1 %v1279_v49 }
  0x3b   :  { %606 = vmatmul.mubr.bf16.gmra.mrb[12].mxu0 %v1281_v51 }
  0x3c   :  { %695 = vmatmul.mubr.bf16.gmra.mrb[12].mxu1 %v1282_v52  ;;  %613 = vmatprep.mubr.bf16.mxu0 %v1284_v53 }
  0x3d   :  { %702 = vmatprep.mubr.bf16.mxu1 %v1286_v54 }
  0x43   :  { %614 = vmatmul.mubr.bf16.gmra.mrb[16].mxu0 %v1288_v55 }
  0x44   :  { %703 = vmatmul.mubr.bf16.gmra.mrb[16].mxu1 %v1289_v56  ;;  %621 = vmatprep.mubr.bf16.mxu0 %v1290_v57 }
  0x45   :  { %710 = vmatprep.mubr.bf16.mxu1 %v1292_v58 }
  0x4b   :  { %622 = vmatmul.mubr.bf16.gmra.mrb[20].mxu0 %v1294_v59 }
  0x4c   :  { %711 = vmatmul.mubr.bf16.gmra.mrb[20].mxu1 %v1295_v60  ;;  %629 = vmatprep.mubr.bf16.mxu0 %v1297_v61 }
  0x4d   :  { %718 = vmatprep.mubr.bf16.mxu1 %v1299_v62 }
  0x53   :  { %630 = vmatmul.mubr.bf16.gmra.mrb[24].mxu0 %v1301_v63 }
  0x54   :  { %719 = vmatmul.mubr.bf16.gmra.mrb[24].mxu1 %v1302_v0  ;;  %1187 = vmatprep.mubr.msk.bf16.mxu0 %vm1311_vm0, %v1310_v34 }
  0x55   :  { %1203 = vmatprep.mubr.msk.bf16.mxu1 %vm1311_vm0, %v1310_v34 }
  0x5b   :  { %1188 = vmatmul.mubr.msk.bf16.vlgmr.msra.gmra.mrb[28].mxu0 %vm527_vm1, %v1303_v1 }
  0x5c   :  { %1204 = vmatmul.mubr.msk.bf16.vlgmr.msra.gmra.mrb[28].mxu1 %vm527_vm1, %v1304_v2  ;;  %1191 = vmatprep.mubr.msk.bf16.mxu0 %vm1311_vm0, %v1310_v34 }
  0x5d   :  { %1207 = vmatprep.mubr.msk.bf16.mxu1 %vm1311_vm0, %v1310_v34 }
  0x63   :  { %1192 = vmatmul.mubr.msk.bf16.gmra.mrb[32].mxu0 %vm527_vm1, %v1305_v3 }
  0x64   :  { %1208 = vmatmul.mubr.msk.bf16.gmra.mrb[32].mxu1 %vm527_vm1, %v1306_v4  ;;  %1195 = vmatprep.mubr.msk.bf16.mxu0 %vm1311_vm0, %v1310_v34 }
  0x65   :  { %1211 = vmatprep.mubr.msk.bf16.mxu1 %vm1311_vm0, %v1310_v34 }
  0x6b   :  { %1196 = vmatmul.mubr.msk.bf16.gmra.mrb[36].mxu0 %vm527_vm1, %v1307_v5 }
  0x6c   :  { %1212 = vmatmul.mubr.msk.bf16.gmra.mrb[36].mxu1 %vm527_vm1, %v1308_v6  ;;  %1199 = vmatprep.mubr.msk.bf16.mxu0 %vm1311_vm0, %v1310_v34 }
  0x73   :  { %1200 = vmatmul.mubr.msk.bf16.gmra.mrb[40].mxu0 %vm527_vm1, %v1309_v7 }
  0xf6   :  { %v1068_v8 = vpop.f32.mrb[0].mxu0 }
  0xf7   :  { %v1069_v10 = vpop.f32.mrb[1].mxu0  ;;  %v1126_v11 = vpop.f32.mrb[0].mxu1 }
  0xf8   :  { %v1070_v12 = vadd.f32 %v1069_v10, %v1068_v8  ;;  %v1071_v13 = vpop.f32.mrb[2].mxu0  ;;  %v1127_v14 = vpop.f32.mrb[1].mxu1 }
  0xf9   :  { %v1072_v15 = vpop.f32.mrb[3].mxu0  ;;  %v1128_v16 = vadd.f32 %v1127_v14, %v1126_v11  ;;  %v1129_v17 = vpop.f32.mrb[2].mxu1 }
  0xfa   :  { %v584_v18 = vadd.f32 %v1070_v12, %v1577_v9  ;;  %v1073_v19 = vadd.f32 %v1072_v15, %v1071_v13  ;;  %v1130_v20 = vpop.f32.mrb[3].mxu1 }
  0xfb   :  { %v1131_v21 = vadd.f32 %v1130_v20, %v1129_v17 }
  0xfc   :  { %v587_v22 = vadd.f32 %v1073_v19, %v1577_v9  ;;  %v1581_v23 = vadd.f32 %v1128_v16, %v584_v18 }
  0xfe   :  { %v1074_v24 = vpop.f32.mrb[4].mxu0  ;;  %v1583_v25 = vadd.f32 %v1131_v21, %v587_v22 }
  0xff   :  { %v1075_v26 = vpop.f32.mrb[5].mxu0  ;;  %v1132_v27 = vpop.f32.mrb[4].mxu1 }
 0x100   :  { %v1076_v28 = vadd.f32 %v1075_v26, %v1074_v24  ;;  %v1077_v29 = vpop.f32.mrb[6].mxu0  ;;  %v1133_v30 = vpop.f32.mrb[5].mxu1 }
 0x101   :  { %v1078_v31 = vpop.f32.mrb[7].mxu0  ;;  %v1134_v32 = vadd.f32 %v1133_v30, %v1132_v27  ;;  %v1135_v33 = vpop.f32.mrb[6].mxu1 }
 0x102   :  { %v592_v34 = vadd.f32 %v1076_v28, %v1577_v9  ;;  %v1079_v35 = vadd.f32 %v1078_v31, %v1077_v29  ;;  %v1136_v36 = vpop.f32.mrb[7].mxu1 }
 0x103   :  { %v1137_v37 = vadd.f32 %v1136_v36, %v1135_v33 }
 0x104   :  { %v595_v38 = vadd.f32 %v1079_v35, %v1577_v9  ;;  %v1587_v39 = vadd.f32 %v1134_v32, %v592_v34 }
 0x106   :  { %v1080_v40 = vpop.f32.mrb[8].mxu0  ;;  %v1589_v41 = vadd.f32 %v1137_v37, %v595_v38 }
 0x107   :  { %v1081_v42 = vpop.f32.mrb[9].mxu0  ;;  %v1138_v43 = vpop.f32.mrb[8].mxu1 }
 0x108   :  { %v1082_v44 = vadd.f32 %v1081_v42, %v1080_v40  ;;  %v1083_v45 = vpop.f32.mrb[10].mxu0  ;;  %v1139_v46 = vpop.f32.mrb[9].mxu1 }
 0x109   :  { %v1084_v47 = vpop.f32.mrb[11].mxu0  ;;  %v1140_v48 = vadd.f32 %v1139_v46, %v1138_v43  ;;  %v1141_v49 = vpop.f32.mrb[10].mxu1 }
 0x10a   :  { %v600_v50 = vadd.f32 %v1082_v44, %v1577_v9  ;;  %v1085_v51 = vadd.f32 %v1084_v47, %v1083_v45  ;;  %v1142_v52 = vpop.f32.mrb[11].mxu1 }
 0x10b   :  { %v1143_v53 = vadd.f32 %v1142_v52, %v1141_v49 }
 0x10c   :  { %v603_v54 = vadd.f32 %v1085_v51, %v1577_v9  ;;  %v1593_v55 = vadd.f32 %v1140_v48, %v600_v50 }
 0x10e   :  { %v1086_v56 = vpop.f32.mrb[12].mxu0  ;;  %v1595_v57 = vadd.f32 %v1143_v53, %v603_v54 }
 0x10f   :  { %v1087_v58 = vpop.f32.mrb[13].mxu0  ;;  %v1144_v59 = vpop.f32.mrb[12].mxu1 }
 0x110   :  { %v1088_v60 = vadd.f32 %v1087_v58, %v1086_v56  ;;  %v1089_v61 = vpop.f32.mrb[14].mxu0  ;;  %v1145_v62 = vpop.f32.mrb[13].mxu1 }
 0x111   :  { %v1090_v63 = vpop.f32.mrb[15].mxu0  ;;  %v1146_v0 = vadd.f32 %v1145_v62, %v1144_v59  ;;  %v1147_v1 = vpop.f32.mrb[14].mxu1 }
 0x112   :  { %v608_v2 = vadd.f32 %v1088_v60, %v1577_v9  ;;  %v1091_v3 = vadd.f32 %v1090_v63, %v1089_v61  ;;  %v1148_v4 = vpop.f32.mrb[15].mxu1 }
 0x113   :  { %v1149_v5 = vadd.f32 %v1148_v4, %v1147_v1 }
 0x114   :  { %v611_v6 = vadd.f32 %v1091_v3, %v1577_v9  ;;  %v1599_v7 = vadd.f32 %v1146_v0, %v608_v2 }
 0x116   :  { %v1092_v8 = vpop.f32.mrb[16].mxu0  ;;  %v1601_v10 = vadd.f32 %v1149_v5, %v611_v6 }
 0x117   :  { %v1093_v11 = vpop.f32.mrb[17].mxu0  ;;  %v1150_v12 = vpop.f32.mrb[16].mxu1 }
 0x118   :  { %v1094_v13 = vadd.f32 %v1093_v11, %v1092_v8  ;;  %v1095_v14 = vpop.f32.mrb[18].mxu0  ;;  %v1151_v15 = vpop.f32.mrb[17].mxu1 }
 0x119   :  { %v1096_v16 = vpop.f32.mrb[19].mxu0  ;;  %v1152_v17 = vadd.f32 %v1151_v15, %v1150_v12  ;;  %v1153_v18 = vpop.f32.mrb[18].mxu1 }
 0x11a   :  { %v616_v19 = vadd.f32 %v1094_v13, %v1577_v9  ;;  %v1097_v20 = vadd.f32 %v1096_v16, %v1095_v14  ;;  %v1154_v21 = vpop.f32.mrb[19].mxu1 }
 0x11b   :  { %v1155_v22 = vadd.f32 %v1154_v21, %v1153_v18 }
 0x11c   :  { %v619_v24 = vadd.f32 %v1097_v20, %v1577_v9  ;;  %v705_v26 = vadd.f32 %v1152_v17, %v616_v19 }
 0x11e   :  { %v1098_v27 = vpop.f32.mrb[20].mxu0  ;;  %v708_v28 = vadd.f32 %v1155_v22, %v619_v24 }
 0x11f   :  { %v1099_v29 = vpop.f32.mrb[21].mxu0  ;;  %v1156_v30 = vpop.f32.mrb[20].mxu1 }
 0x120   :  { %v1100_v31 = vadd.f32 %v1099_v29, %v1098_v27  ;;  %v1101_v32 = vpop.f32.mrb[22].mxu0  ;;  %v1157_v33 = vpop.f32.mrb[21].mxu1 }
 0x121   :  { %v1102_v34 = vpop.f32.mrb[23].mxu0  ;;  %v1158_v35 = vadd.f32 %v1157_v33, %v1156_v30  ;;  %v1159_v36 = vpop.f32.mrb[22].mxu1 }
 0x122   :  { %v624_v37 = vadd.f32 %v1100_v31, %v1577_v9  ;;  %v1103_v38 = vadd.f32 %v1102_v34, %v1101_v32  ;;  %v1160_v40 = vpop.f32.mrb[23].mxu1 }
 0x123   :  { %v1161_v42 = vadd.f32 %v1160_v40, %v1159_v36 }
 0x124   :  { %v627_v43 = vadd.f32 %v1103_v38, %v1577_v9  ;;  %v713_v44 = vadd.f32 %v1158_v35, %v624_v37 }
 0x126   :  { %v1104_v45 = vpop.f32.mrb[24].mxu0  ;;  %v716_v46 = vadd.f32 %v1161_v42, %v627_v43 }
 0x127   :  { %v1105_v47 = vpop.f32.mrb[25].mxu0  ;;  %v1162_v48 = vpop.f32.mrb[24].mxu1 }
 0x128   :  { %v1106_v49 = vadd.f32 %v1105_v47, %v1104_v45  ;;  %v1107_v50 = vpop.f32.mrb[26].mxu0  ;;  %v1163_v51 = vpop.f32.mrb[25].mxu1 }
 0x129   :  { %v1108_v52 = vpop.f32.mrb[27].mxu0  ;;  %v1164_v53 = vadd.f32 %v1163_v51, %v1162_v48  ;;  %v1165_v54 = vpop.f32.mrb[26].mxu1 }
 0x12a   :  { %v632_v56 = vadd.f32 %v1106_v49, %v1577_v9  ;;  %v1109_v58 = vadd.f32 %v1108_v52, %v1107_v50  ;;  %v1166_v59 = vpop.f32.mrb[27].mxu1 }
 0x12b   :  { %v1167_v60 = vadd.f32 %v1166_v59, %v1165_v54 }
 0x12c   :  { %v635_v61 = vadd.f32 %v1109_v58, %v1577_v9  ;;  %v721_v62 = vadd.f32 %v1164_v53, %v632_v56 }
 0x12e   :  { %v761_v63 = vpop.f32.mrb[28].mxu0  ;;  %v724_v0 = vadd.f32 %v1167_v60, %v635_v61 }
 0x12f   :  { %v762_v1 = vadd.f32 %v761_v63, %v1581_v23  ;;  %v793_v2 = vpop.f32.mrb[28].mxu1  ;;  %v1189_v3 = vpop.f32.mrb[29].mxu0 }
 0x130   :  { %v794_v4 = vadd.f32 %v793_v2, %v705_v26  ;;  %v1205_v5 = vpop.f32.mrb[29].mxu1  ;;  %v764_v6 = vpop.f32.mrb[30].mxu0 }
 0x131   :  { %v765_v8 = vadd.f32 %v764_v6, %v1583_v25  ;;  %v796_v11 = vpop.f32.mrb[30].mxu1  ;;  %v1190_v12 = vpop.f32.mrb[31].mxu0  ;;  %v816_v15 = vmax.f32 %v762_v1, 0.0 }
 0x132   :  { %v797_v13 = vadd.f32 %v796_v11, %v708_v28  ;;  %v1206_v14 = vpop.f32.mrb[31].mxu1  ;;  %v824_v17 = vmax.f32 %v794_v4, 0.0 }
 0x133   :  { %v817_v16 = vmax.f32 %v765_v8, 0.0 }
 0x134   :  { %v825_v9 = vmax.f32 %v797_v13, 0.0 }
 0x135   :  { %v1014_v18 = vpack.c.bf16 %v817_v16, %v816_v15 }
 0x136   :  { %v1034_v19 = vpack.c.bf16 %v825_v9, %v824_v17  ;;  %v769_v20 = vpop.f32.mrb[32].mxu0 }
 0x137   :  { %1015 = vst [vmem:[%s1641_s3] sm:$0xff] %v1014_v18   ;;  %v770_v23 = vadd.f32 %v769_v20, %v1587_v39  ;;  %v801_v21 = vpop.f32.mrb[32].mxu1  ;;  %v1193_v22 = vpop.f32.mrb[33].mxu0 }
 0x138   :  { %1049 = vst [vmem:[%s1641_s3 + $0x20] sm:$0xff] %v1034_v19   ;;  %v802_v25 = vadd.f32 %v801_v21, %v713_v44  ;;  %v1209_v24 = vpop.f32.mrb[33].mxu1  ;;  %v772_v26 = vpop.f32.mrb[34].mxu0 }
 0x139   :  { %v773_v27 = vadd.f32 %v772_v26, %v1589_v41  ;;  %v804_v28 = vpop.f32.mrb[34].mxu1  ;;  %v1194_v29 = vpop.f32.mrb[35].mxu0  ;;  %v818_v32 = vmax.f32 %v770_v23, 0.0 }
 0x13a   :  { %v805_v30 = vadd.f32 %v804_v28, %v716_v46  ;;  %v1210_v31 = vpop.f32.mrb[35].mxu1  ;;  %v826_v34 = vmax.f32 %v802_v25, 0.0 }
 0x13b   :  { %v819_v33 = vmax.f32 %v773_v27, 0.0 }
 0x13c   :  { %v827_v35 = vmax.f32 %v805_v30, 0.0 }
 0x13d   :  { %v1019_v39 = vpack.c.bf16 %v819_v33, %v818_v32 }
 0x13e   :  { %v1039_v36 = vpack.c.bf16 %v827_v35, %v826_v34  ;;  %v777_v37 = vpop.f32.mrb[36].mxu0 }
 0x13f   :  { %1046 = vst [vmem:[%s1641_s3 + $0x8] sm:$0xff] %v1019_v39   ;;  %v778_v38 = vadd.f32 %v777_v37, %v1593_v55  ;;  %v809_v40 = vpop.f32.mrb[36].mxu1  ;;  %v1197_v42 = vpop.f32.mrb[37].mxu0 }
 0x140   :  { %1050 = vst [vmem:[%s1641_s3 + $0x28] sm:$0xff] %v1039_v36   ;;  %v810_v41 = vadd.f32 %v809_v40, %v721_v62  ;;  %v1213_v43 = vpop.f32.mrb[37].mxu1  ;;  %v780_v44 = vpop.f32.mrb[38].mxu0 }
 0x141   :  { %v781_v45 = vadd.f32 %v780_v44, %v1595_v57  ;;  %v812_v46 = vpop.f32.mrb[38].mxu1  ;;  %v1198_v47 = vpop.f32.mrb[39].mxu0  ;;  %v820_v50 = vmax.f32 %v778_v38, 0.0 }
 0x142   :  { %v813_v48 = vadd.f32 %v812_v46, %v724_v0  ;;  %v1214_v49 = vpop.f32.mrb[39].mxu1  ;;  %v828_v52 = vmax.f32 %v810_v41, 0.0 }
 0x143   :  { %v821_v51 = vmax.f32 %v781_v45, 0.0 }
 0x144   :  { %v829_v53 = vmax.f32 %v813_v48, 0.0 }
 0x145   :  { %v1024_v55 = vpack.c.bf16 %v821_v51, %v820_v50 }
 0x146   :  { %v1044_v54 = vpack.c.bf16 %v829_v53, %v828_v52  ;;  %v785_v56 = vpop.f32.mrb[40].mxu0 }
 0x147   :  { %1047 = vst [vmem:[%s1641_s3 + $0x10] sm:$0xff] %v1024_v55   ;;  %v786_v58 = vadd.f32 %v785_v56, %v1599_v7  ;;  %v1201_v59 = vpop.f32.mrb[41].mxu0 }
 0x148   :  { %1051 = vst [vmem:[%s1641_s3 + $0x30] sm:$0xff] %v1044_v54   ;;  %v788_v57 = vpop.f32.mrb[42].mxu0 }
 0x149   :  { %v789_v60 = vadd.f32 %v788_v57, %v1601_v10  ;;  %v1202_v61 = vpop.f32.mrb[43].mxu0  ;;  %v822_v62 = vmax.f32 %v786_v58, 0.0 }
 0x14b   :  { %v823_v63 = vmax.f32 %v789_v60, 0.0 }
 0x14d   :  { %v1029_v0 = vpack.c.bf16 %v823_v63, %v822_v62 }
 0x14f   :  { %1048 = vst [vmem:[%s1641_s3 + $0x18] sm:$0xff] %v1029_v0  }

// kernel: cond_vae_forward.11
= control target key start
LH: loop header
LB: loop body
LE: loop exit
PB: predicated region body
PF: predicated region fallthrough
CT: control target
= control target key end

     0   :  { %v64_v48 = vlaneseq  ;;  %s1010_s1 = inlined_call_operand.vmem [shape: bf16[256,256], index: 1, kind: input, shape index: {}]   ;;  %s1011_s0 = inlined_call_operand.vmem [shape: bf16[128,256], index: 0, kind: input, shape index: {}]   ;;  %s1012_s2 = inlined_call_operand.vmem [shape: f32[1,256], index: 2, kind: input, shape index: {}]   ;;  %s1013_s3 = inlined_call_operand.vmem [shape: bf16[128,256], index: 3, kind: output, shape index: {}]  }
   0x1   :  { %v687_v0 = vld [vmem:[%s1010_s1 + $0x4] ss:$8 sps:$4 sm:$0xff]   ;;  %v689_v1 = vld [vmem:[%s1010_s1] ss:$8 sps:$4 sm:$0xff]   ;;  %v690_v2 = vld [vmem:[%s1010_s1 + $0x14] ss:$8 sps:$4 sm:$0xff]  }
   0x2   :  { %314 = vmatprep.subr.bf16.mxu0 %v687_v0  ;;  %655 = vmatprep.subr.bf16.mxu1 %v687_v0  ;;  %v692_v3 = vld [vmem:[%s1010_s1 + $0x10] ss:$8 sps:$4 sm:$0xff]   ;;  %v693_v4 = vld [vmem:[%s1010_s1 + $0x24] ss:$8 sps:$4 sm:$0xff]   ;;  %v695_v5 = vld [vmem:[%s1010_s1 + $0x20] ss:$8 sps:$4 sm:$0xff]  }
   0x3   :  { %315 = vmatpush1.bf16.msra.mxu0 %v689_v1  ;;  %671 = vmatpush1.bf16.msra.mxu1 %v689_v1  ;;  %v696_v6 = vld [vmem:[%s1010_s1 + $0x34] ss:$8 sps:$4 sm:$0xff]   ;;  %v698_v7 = vld [vmem:[%s1010_s1 + $0x30] ss:$8 sps:$4 sm:$0xff]   ;;  %v699_v8 = vld [vmem:[%s1010_s1 + $0x44] ss:$8 sps:$4 sm:$0xff]  }
   0x4   :  { %316 = vmatprep.subr.bf16.mxu0 %v690_v2  ;;  %656 = vmatprep.subr.bf16.mxu1 %v690_v2  ;;  %v701_v9 = vld [vmem:[%s1010_s1 + $0x40] ss:$8 sps:$4 sm:$0xff]   ;;  %v702_v10 = vld [vmem:[%s1010_s1 + $0x54] ss:$8 sps:$4 sm:$0xff]   ;;  %v704_v11 = vld [vmem:[%s1010_s1 + $0x50] ss:$8 sps:$4 sm:$0xff]  }
   0x5   :  { %v705_v12 = vld [vmem:[%s1010_s1 + $0x64] ss:$8 sps:$4 sm:$0xff]   ;;  %v707_v14 = vld [vmem:[%s1010_s1 + $0x60] ss:$8 sps:$4 sm:$0xff]   ;;  %v708_v16 = vld [vmem:[%s1010_s1 + $0x74] ss:$8 sps:$4 sm:$0xff]  }
   0x6   :  { %v737_v13 = vld [vmem:[%s1011_s0 + $0x4] ss:$8 sps:$4 sm:$0xff]   ;;  %v710_v17 = vld [vmem:[%s1010_s1 + $0x70] ss:$8 sps:$4 sm:$0xff]   ;;  %v713_v19 = vld [vmem:[%s1010_s1 + $0x80] ss:$8 sps:$4 sm:$0xff]  }
   0x7   :  { %317 = vmatpush1.bf16.msra.mxu0 %v692_v3  ;;  %672 = vmatpush1.bf16.msra.mxu1 %v692_v3  ;;  %v740_v15 = vld [vmem:[%s1011_s0 + $0x44] ss:$8 sps:$4 sm:$0xff]   ;;  %v714_v20 = vld [vmem:[%s1010_s1 + $0x94] ss:$8 sps:$4 sm:$0xff]   ;;  %v716_v21 = vld [vmem:[%s1010_s1 + $0x90] ss:$8 sps:$4 sm:$0xff]  }
   0x8   :  { %318 = vmatprep.subr.bf16.mxu0 %v693_v4  ;;  %657 = vmatprep.subr.bf16.mxu1 %v693_v4  ;;  %v711_v18 = vld [vmem:[%s1010_s1 + $0x84] ss:$8 sps:$4 sm:$0xff]   ;;  %v719_v23 = vld [vmem:[%s1010_s1 + $0xa0] ss:$8 sps:$4 sm:$0xff]   ;;  %v720_v24 = vld [vmem:[%s1010_s1 + $0xb4] ss:$8 sps:$4 sm:$0xff]  }
   0x9   :  { %346 = vmatprep.mubr.bf16.mxu0 %v737_v13  ;;  %386 = vmatprep.mubr.bf16.mxu1 %v740_v15  ;;  %v717_v22 = vld [vmem:[%s1010_s1 + $0xa4] ss:$8 sps:$4 sm:$0xff]   ;;  %v722_v25 = vld [vmem:[%s1010_s1 + $0xb0] ss:$8 sps:$4 sm:$0xff]   ;;  %v725_v27 = vld [vmem:[%s1010_s1 + $0xc0] ss:$8 sps:$4 sm:$0xff]  }
   0xa   :  { %v723_v26 = vld [vmem:[%s1010_s1 + $0xc4] ss:$8 sps:$4 sm:$0xff]   ;;  %v726_v28 = vld [vmem:[%s1010_s1 + $0xd4] ss:$8 sps:$4 sm:$0xff]   ;;  %v728_v29 = vld [vmem:[%s1010_s1 + $0xd0] ss:$8 sps:$4 sm:$0xff]  }
   0xb   :  { %319 = vmatpush1.bf16.msra.mxu0 %v695_v5  ;;  %673 = vmatpush1.bf16.msra.mxu1 %v695_v5  ;;  %v729_v30 = vld [vmem:[%s1010_s1 + $0xe4] ss:$8 sps:$4 sm:$0xff]   ;;  %v731_v31 = vld [vmem:[%s1010_s1 + $0xe0] ss:$8 sps:$4 sm:$0xff]   ;;  %v732_v32 = vld [vmem:[%s1010_s1 + $0xf4] ss:$8 sps:$4 sm:$0xff]  }
   0xc   :  { %320 = vmatprep.subr.bf16.mxu0 %v696_v6  ;;  %658 = vmatprep.subr.bf16.mxu1 %v696_v6  ;;  %v734_v33 = vld [vmem:[%s1010_s1 + $0xf0] ss:$8 sps:$4 sm:$0xff]   ;;  %v735_v34 = vld [vmem:[%s1011_s0] ss:$8 sps:$4 sm:$0xff]   ;;  %v741_v36 = vld [vmem:[%s1011_s0 + $0x14] ss:$8 sps:$4 sm:$0xff]  }
   0xd   :  { %v738_v35 = vld [vmem:[%s1011_s0 + $0x40] ss:$8 sps:$4 sm:$0xff]   ;;  %v743_v37 = vld [vmem:[%s1011_s0 + $0x54] ss:$8 sps:$4 sm:$0xff]   ;;  %v745_v38 = vld [vmem:[%s1011_s0 + $0x10] ss:$8 sps:$4 sm:$0xff]  }
   0xe   :  { %v746_v39 = vld [vmem:[%s1011_s0 + $0x50] ss:$8 sps:$4 sm:$0xff]   ;;  %v747_v40 = vld [vmem:[%s1011_s0 + $0x24] ss:$8 sps:$4 sm:$0xff]   ;;  %v751_v42 = vld [vmem:[%s1011_s0 + $0x20] ss:$8 sps:$4 sm:$0xff]  }
   0xf   :  { %321 = vmatpush1.bf16.msra.mxu0 %v698_v7  ;;  %674 = vmatpush1.bf16.msra.mxu1 %v698_v7  ;;  %v749_v41 = vld [vmem:[%s1011_s0 + $0x64] ss:$8 sps:$4 sm:$0xff]   ;;  %v752_v43 = vld [vmem:[%s1011_s0 + $0x60] ss:$8 sps:$4 sm:$0xff]   ;;  %v753_v44 = vld [vmem:[%s1011_s0 + $0x34] ss:$8 sps:$4 sm:$0xff]  }
  0x10   :  { %322 = vmatprep.subr.bf16.mxu0 %v699_v8  ;;  %659 = vmatprep.subr.bf16.mxu1 %v699_v8  ;;  %v755_v45 = vld [vmem:[%s1011_s0 + $0x74] ss:$8 sps:$4 sm:$0xff]   ;;  %v757_v46 = vld [vmem:[%s1011_s0 + $0x30] ss:$8 sps:$4 sm:$0xff]   ;;  %v65_v49 = vshrl.u32 %v64_v48, 7 }
  0x11   :  { %v758_v47 = vld [vmem:[%s1011_s0 + $0x70] ss:$8 sps:$4 sm:$0xff]   ;;  %v62_v51 = vld [vmem:[%s1012_s2] sm:$0x3] }
  0x12   :  { %v66_v50 = vsub.s32 0, %v65_v49  ;;  %v70_v52 = vsub.s32 1, %v65_v49 }
  0x13   :  { %323 = vmatpush1.bf16.msra.mxu0 %v701_v9  ;;  %675 = vmatpush1.bf16.msra.mxu1 %v701_v9 }
  0x14   :  { %324 = vmatprep.subr.bf16.mxu0 %v702_v10  ;;  %660 = vmatprep.subr.bf16.mxu1 %v702_v10  ;;  %v926_v53 = vrot.slane %v62_v51, %v66_v50  ;;  %v928_v54 = vrot.slane %v62_v51, %v70_v52 }
  0x17   :  { %325 = vmatpush1.bf16.msra.mxu0 %v704_v11  ;;  %676 = vmatpush1.bf16.msra.mxu1 %v704_v11 }
  0x18   :  { %326 = vmatprep.subr.bf16.mxu0 %v705_v12  ;;  %661 = vmatprep.subr.bf16.mxu1 %v705_v12 }
  0x1b   :  { %327 = vmatpush1.bf16.msra.mxu0 %v707_v14  ;;  %677 = vmatpush1.bf16.msra.mxu1 %v707_v14 }
  0x1c   :  { %328 = vmatprep.subr.bf16.mxu0 %v708_v16  ;;  %662 = vmatprep.subr.bf16.mxu1 %v708_v16 }
  0x1f   :  { %329 = vmatpush1.bf16.msra.mxu0 %v710_v17  ;;  %678 = vmatpush1.bf16.msra.mxu1 %v710_v17 }
  0x20   :  { %330 = vmatprep.subr.bf16.mxu0 %v711_v18  ;;  %663 = vmatprep.subr.bf16.mxu1 %v711_v18 }
  0x23   :  { %331 = vmatpush1.bf16.msra.mxu0 %v713_v19  ;;  %679 = vmatpush1.bf16.msra.mxu1 %v713_v19 }
  0x24   :  { %332 = vmatprep.subr.bf16.mxu0 %v714_v20  ;;  %664 = vmatprep.subr.bf16.mxu1 %v714_v20 }
  0x27   :  { %333 = vmatpush1.bf16.msra.mxu0 %v716_v21  ;;  %680 = vmatpush1.bf16.msra.mxu1 %v716_v21 }
  0x28   :  { %334 = vmatprep.subr.bf16.mxu0 %v717_v22  ;;  %665 = vmatprep.subr.bf16.mxu1 %v717_v22 }
  0x2b   :  { %335 = vmatpush1.bf16.msra.mxu0 %v719_v23  ;;  %681 = vmatpush1.bf16.msra.mxu1 %v719_v23 }
  0x2c   :  { %336 = vmatprep.subr.bf16.mxu0 %v720_v24  ;;  %666 = vmatprep.subr.bf16.mxu1 %v720_v24 }
  0x2f   :  { %337 = vmatpush1.bf16.msra.mxu0 %v722_v25  ;;  %682 = vmatpush1.bf16.msra.mxu1 %v722_v25 }
  0x30   :  { %338 = vmatprep.subr.bf16.mxu0 %v723_v26  ;;  %667 = vmatprep.subr.bf16.mxu1 %v723_v26 }
  0x33   :  { %339 = vmatpush1.bf16.msra.mxu0 %v725_v27  ;;  %683 = vmatpush1.bf16.msra.mxu1 %v725_v27 }
  0x34   :  { %340 = vmatprep.subr.bf16.mxu0 %v726_v28  ;;  %668 = vmatprep.subr.bf16.mxu1 %v726_v28 }
  0x37   :  { %341 = vmatpush1.bf16.msra.mxu0 %v728_v29  ;;  %684 = vmatpush1.bf16.msra.mxu1 %v728_v29 }
  0x38   :  { %342 = vmatprep.subr.bf16.mxu0 %v729_v30  ;;  %669 = vmatprep.subr.bf16.mxu1 %v729_v30 }
  0x3b   :  { %343 = vmatpush1.bf16.msra.mxu0 %v731_v31  ;;  %685 = vmatpush1.bf16.msra.mxu1 %v731_v31 }
  0x3c   :  { %344 = vmatprep.subr.bf16.mxu0 %v732_v32  ;;  %670 = vmatprep.subr.bf16.mxu1 %v732_v32 }
  0x3f   :  { %345 = vmatpush1.bf16.msra.mxu0 %v734_v33  ;;  %686 = vmatpush1.bf16.msra.mxu1 %v734_v33 }
  0x42   :  { %347 = vmatmul.mubr.bf16.vlgmr.msra.gmra.mrb[0].mxu0 %v735_v34  ;;  %387 = vmatmul.mubr.bf16.vlgmr.msra.gmra.mrb[0].mxu1 %v738_v35 }
  0x43   :  { %356 = vmatprep.mubr.bf16.mxu0 %v741_v36  ;;  %396 = vmatprep.mubr.bf16.mxu1 %v743_v37 }
  0x4a   :  { %357 = vmatmul.mubr.bf16.gmra.mrb[4].mxu0 %v745_v38  ;;  %397 = vmatmul.mubr.bf16.gmra.mrb[4].mxu1 %v746_v39 }
  0x4b   :  { %366 = vmatprep.mubr.bf16.mxu0 %v747_v40  ;;  %406 = vmatprep.mubr.bf16.mxu1 %v749_v41 }
  0x52   :  { %367 = vmatmul.mubr.bf16.gmra.mrb[8].mxu0 %v751_v42  ;;  %407 = vmatmul.mubr.bf16.gmra.mrb[8].mxu1 %v752_v43 }
  0x53   :  { %376 = vmatprep.mubr.bf16.mxu0 %v753_v44  ;;  %416 = vmatprep.mubr.bf16.mxu1 %v755_v45 }
  0x5a   :  { %377 = vmatmul.mubr.bf16.gmra.mrb[12].mxu0 %v757_v46  ;;  %417 = vmatmul.mubr.bf16.gmra.mrb[12].mxu1 %v758_v47 }
 0x115   :  { %v348_v55 = vpop.f32.mrb[0].mxu0  ;;  %v388_v56 = vpop.f32.mrb[0].mxu1 }
 0x116   :  { %v349_v57 = vadd.f32 %v348_v55, %v926_v53  ;;  %v389_v58 = vadd.f32 %v388_v56, %v926_v53  ;;  %v350_v59 = vpop.f32.mrb[1].mxu0  ;;  %v390_v60 = vpop.f32.mrb[1].mxu1 }
 0x117   :  { %v351_v61 = vadd.f32 %v350_v59, %v928_v54  ;;  %v391_v62 = vadd.f32 %v390_v60, %v928_v54  ;;  %v352_v63 = vpop.f32.mrb[2].mxu0  ;;  %v392_v0 = vpop.f32.mrb[2].mxu1 }
 0x118   :  { %v427_v1 = vmax.f32 %v349_v57, 0.0  ;;  %v443_v2 = vmax.f32 %v389_v58, 0.0  ;;  %v353_v3 = vadd.f32 %v352_v63, %v926_v53  ;;  %v393_v4 = vadd.f32 %v392_v0, %v926_v53  ;;  %v354_v5 = vpop.f32.mrb[3].mxu0  ;;  %v394_v6 = vpop.f32.mrb[3].mxu1 }
 0x119   :  { %v428_v7 = vmax.f32 %v351_v61, 0.0  ;;  %v444_v8 = vmax.f32 %v391_v62, 0.0  ;;  %v355_v9 = vadd.f32 %v354_v5, %v928_v54  ;;  %v395_v10 = vadd.f32 %v394_v6, %v928_v54 }
 0x11a   :  { %v429_v11 = vmax.f32 %v353_v3, 0.0  ;;  %v445_v12 = vmax.f32 %v393_v4, 0.0 }
 0x11b   :  { %v639_v13 = vpack.c.bf16 %v428_v7, %v427_v1  ;;  %v647_v14 = vpack.c.bf16 %v444_v8, %v443_v2  ;;  %v430_v15 = vmax.f32 %v355_v9, 0.0  ;;  %v446_v16 = vmax.f32 %v395_v10, 0.0 }
 0x11d   :  { %555 = vst [vmem:[%s1013_s3] sm:$0xff] %v639_v13  ;;  %563 = vst [vmem:[%s1013_s3 + $0x40] sm:$0xff] %v647_v14  ;;  %v640_v17 = vpack.c.bf16 %v430_v15, %v429_v11  ;;  %v648_v18 = vpack.c.bf16 %v446_v16, %v445_v12  ;;  %v358_v19 = vpop.f32.mrb[4].mxu0  ;;  %v398_v20 = vpop.f32.mrb[4].mxu1 }
 0x11e   :  { %v359_v21 = vadd.f32 %v358_v19, %v926_v53  ;;  %v399_v22 = vadd.f32 %v398_v20, %v926_v53  ;;  %v360_v23 = vpop.f32.mrb[5].mxu0  ;;  %v400_v24 = vpop.f32.mrb[5].mxu1 }
 0x11f   :  { %556 = vst [vmem:[%s1013_s3 + $0x8] sm:$0xff] %v640_v17  ;;  %564 = vst [vmem:[%s1013_s3 + $0x48] sm:$0xff] %v648_v18  ;;  %v361_v25 = vadd.f32 %v360_v23, %v928_v54  ;;  %v401_v26 = vadd.f32 %v400_v24, %v928_v54  ;;  %v362_v27 = vpop.f32.mrb[6].mxu0  ;;  %v402_v28 = vpop.f32.mrb[6].mxu1 }
 0x120   :  { %v431_v29 = vmax.f32 %v359_v21, 0.0  ;;  %v447_v30 = vmax.f32 %v399_v22, 0.0  ;;  %v363_v31 = vadd.f32 %v362_v27, %v926_v53  ;;  %v403_v32 = vadd.f32 %v402_v28, %v926_v53  ;;  %v364_v33 = vpop.f32.mrb[7].mxu0  ;;  %v404_v34 = vpop.f32.mrb[7].mxu1 }
 0x121   :  { %v432_v35 = vmax.f32 %v361_v25, 0.0  ;;  %v448_v36 = vmax.f32 %v401_v26, 0.0  ;;  %v365_v37 = vadd.f32 %v364_v33, %v928_v54  ;;  %v405_v38 = vadd.f32 %v404_v34, %v928_v54 }
 0x122   :  { %v433_v39 = vmax.f32 %v363_v31, 0.0  ;;  %v449_v40 = vmax.f32 %v403_v32, 0.0 }
 0x123   :  { %v641_v41 = vpack.c.bf16 %v432_v35, %v431_v29  ;;  %v649_v42 = vpack.c.bf16 %v448_v36, %v447_v30  ;;  %v434_v43 = vmax.f32 %v365_v37, 0.0  ;;  %v450_v44 = vmax.f32 %v405_v38, 0.0 }
 0x125   :  { %557 = vst [vmem:[%s1013_s3 + $0x10] sm:$0xff] %v641_v41  ;;  %565 = vst [vmem:[%s1013_s3 + $0x50] sm:$0xff] %v649_v42  ;;  %v642_v45 = vpack.c.bf16 %v434_v43, %v433_v39  ;;  %v650_v46 = vpack.c.bf16 %v450_v44, %v449_v40  ;;  %v368_v47 = vpop.f32.mrb[8].mxu0  ;;  %v408_v48 = vpop.f32.mrb[8].mxu1 }
 0x126   :  { %v369_v49 = vadd.f32 %v368_v47, %v926_v53  ;;  %v409_v50 = vadd.f32 %v408_v48, %v926_v53  ;;  %v370_v51 = vpop.f32.mrb[9].mxu0  ;;  %v410_v52 = vpop.f32.mrb[9].mxu1 }
 0x127   :  { %558 = vst [vmem:[%s1013_s3 + $0x18] sm:$0xff] %v642_v45  ;;  %566 = vst [vmem:[%s1013_s3 + $0x58] sm:$0xff] %v650_v46  ;;  %v371_v55 = vadd.f32 %v370_v51, %v928_v54  ;;  %v411_v56 = vadd.f32 %v410_v52, %v928_v54  ;;  %v372_v57 = vpop.f32.mrb[10].mxu0  ;;  %v412_v58 = vpop.f32.mrb[10].mxu1 }
 0x128   :  { %v435_v59 = vmax.f32 %v369_v49, 0.0  ;;  %v451_v60 = vmax.f32 %v409_v50, 0.0  ;;  %v373_v61 = vadd.f32 %v372_v57, %v926_v53  ;;  %v413_v62 = vadd.f32 %v412_v58, %v926_v53  ;;  %v374_v63 = vpop.f32.mrb[11].mxu0  ;;  %v414_v0 = vpop.f32.mrb[11].mxu1 }
 0x129   :  { %v436_v1 = vmax.f32 %v371_v55, 0.0  ;;  %v452_v2 = vmax.f32 %v411_v56, 0.0  ;;  %v375_v3 = vadd.f32 %v374_v63, %v928_v54  ;;  %v415_v4 = vadd.f32 %v414_v0, %v928_v54 }
 0x12a   :  { %v437_v5 = vmax.f32 %v373_v61, 0.0  ;;  %v453_v6 = vmax.f32 %v413_v62, 0.0 }
 0x12b   :  { %v643_v7 = vpack.c.bf16 %v436_v1, %v435_v59  ;;  %v651_v8 = vpack.c.bf16 %v452_v2, %v451_v60  ;;  %v438_v9 = vmax.f32 %v375_v3, 0.0  ;;  %v454_v10 = vmax.f32 %v415_v4, 0.0 }
 0x12d   :  { %559 = vst [vmem:[%s1013_s3 + $0x20] sm:$0xff] %v643_v7  ;;  %567 = vst [vmem:[%s1013_s3 + $0x60] sm:$0xff] %v651_v8  ;;  %v644_v11 = vpack.c.bf16 %v438_v9, %v437_v5  ;;  %v652_v12 = vpack.c.bf16 %v454_v10, %v453_v6  ;;  %v378_v13 = vpop.f32.mrb[12].mxu0  ;;  %v418_v14 = vpop.f32.mrb[12].mxu1 }
 0x12e   :  { %v379_v15 = vadd.f32 %v378_v13, %v926_v53  ;;  %v419_v16 = vadd.f32 %v418_v14, %v926_v53  ;;  %v380_v17 = vpop.f32.mrb[13].mxu0  ;;  %v420_v18 = vpop.f32.mrb[13].mxu1 }
 0x12f   :  { %560 = vst [vmem:[%s1013_s3 + $0x28] sm:$0xff] %v644_v11  ;;  %568 = vst [vmem:[%s1013_s3 + $0x68] sm:$0xff] %v652_v12  ;;  %v381_v19 = vadd.f32 %v380_v17, %v928_v54  ;;  %v421_v20 = vadd.f32 %v420_v18, %v928_v54  ;;  %v382_v21 = vpop.f32.mrb[14].mxu0  ;;  %v422_v22 = vpop.f32.mrb[14].mxu1 }
 0x130   :  { %v439_v23 = vmax.f32 %v379_v15, 0.0  ;;  %v455_v24 = vmax.f32 %v419_v16, 0.0  ;;  %v383_v25 = vadd.f32 %v382_v21, %v926_v53  ;;  %v423_v26 = vadd.f32 %v422_v22, %v926_v53  ;;  %v384_v27 = vpop.f32.mrb[15].mxu0  ;;  %v424_v28 = vpop.f32.mrb[15].mxu1 }
 0x131   :  { %v440_v29 = vmax.f32 %v381_v19, 0.0  ;;  %v456_v30 = vmax.f32 %v421_v20, 0.0  ;;  %v385_v31 = vadd.f32 %v384_v27, %v928_v54  ;;  %v425_v32 = vadd.f32 %v424_v28, %v928_v54 }
 0x132   :  { %v441_v33 = vmax.f32 %v383_v25, 0.0  ;;  %v457_v34 = vmax.f32 %v423_v26, 0.0 }
 0x133   :  { %v645_v35 = vpack.c.bf16 %v440_v29, %v439_v23  ;;  %v653_v36 = vpack.c.bf16 %v456_v30, %v455_v24  ;;  %v442_v37 = vmax.f32 %v385_v31, 0.0  ;;  %v458_v38 = vmax.f32 %v425_v32, 0.0 }
 0x135   :  { %561 = vst [vmem:[%s1013_s3 + $0x30] sm:$0xff] %v645_v35  ;;  %569 = vst [vmem:[%s1013_s3 + $0x70] sm:$0xff] %v653_v36  ;;  %v646_v53 = vpack.c.bf16 %v442_v37, %v441_v33  ;;  %v654_v39 = vpack.c.bf16 %v458_v38, %v457_v34 }
 0x137   :  { %562 = vst [vmem:[%s1013_s3 + $0x38] sm:$0xff] %v646_v53  ;;  %570 = vst [vmem:[%s1013_s3 + $0x78] sm:$0xff] %v654_v39 }

// kernel: cond_vae_forward.12
= control target key start
LH: loop header
LB: loop body
LE: loop exit
PB: predicated region body
PF: predicated region fallthrough
CT: control target
= control target key end

     0   :  { %s1308_s12 = smov 0   ;;  %s1461_s0 = inlined_call_operand.vmem [shape: bf16[480,256], index: 0, kind: input, shape index: {}]   ;;  %s1462_s1 = inlined_call_operand.vmem [shape: bf16[256,128], index: 1, kind: input, shape index: {}]   ;;  %s1463_s2 = inlined_call_operand.vmem [shape: f32[1,128], index: 2, kind: input, shape index: {}]   ;;  %s1464_s3 = inlined_call_operand.vmem [shape: bf16[480,128], index: 3, kind: output, shape index: {}]  }
   0x1 LB: > { %s882_s13 = sadd.s32 4294967295, %s1286_s12   ;;  %p886_p0 = scmp.ge.s32.totalorder %s1286_s12, 1  ;;  %s1286_s12 = sphi %s1308_s12, %s13_s12  }
   0x2   : > { %p139_p1 = scmp.lt.s32.totalorder %s1286_s12, 3 }
   0x4   : > { %p140_p2 = pnand %p886_p0, %p139_p1 }
   0x5   : > { %v1219_v0 = vld [vmem:[%s1462_s1 + $0x40] sm:$0xff] (!%p140_p2)   ;;  %s164_s16 = smul.u32 (!%p140_p2), 30, %s882_s13  ;;  %v1221_v2 = vld [vmem:[%s1462_s1 + $0x48] sm:$0xff] (!%p140_p2)   ;;  %v1223_v4 = vld [vmem:[%s1462_s1 + $0x50] sm:$0xff] (!%p140_p2)  }
   0x6   : > { %143 = sbr.rel (%p140_p2) target bundleno = 318 (0x13e), region = 32  ;;  %v1220_v1 = vld [vmem:[%s1462_s1] sm:$0xff] (!%p140_p2)   ;;  %1089 = vmatprep.subr.bf16.mxu0 (!%p140_p2), %v1219_v0  ;;  %1195 = vmatprep.subr.bf16.mxu1 (!%p140_p2), %v1219_v0  ;;  %v1222_v3 = vld [vmem:[%s1462_s1 + $0x8] sm:$0xff] (!%p140_p2)   ;;  %v1224_v5 = vld [vmem:[%s1462_s1 + $0x10] sm:$0xff] (!%p140_p2)  }
   0x7   : > { %1090 = vmatpush3.bf16.msra.mxu0 (!%p140_p2), %v1220_v1  ;;  %1203 = vmatpush3.bf16.msra.mxu1 (!%p140_p2), %v1220_v1  ;;  %p165_p3 = scmp.lt.s32.totalorder (!%p140_p2), %s164_s16, 59  ;;  %v1225_v6 = vld [vmem:[%s1462_s1 + $0x58] sm:$0xff] (!%p140_p2)   ;;  %v1227_v8 = vld [vmem:[%s1462_s1 + $0x60] sm:$0xff] (!%p140_p2)   ;;  %v1229_v10 = vld [vmem:[%s1462_s1 + $0x68] sm:$0xff] (!%p140_p2)  }
   0x8   : > { %1091 = vmatprep.subr.bf16.mxu0 (!%p140_p2), %v1221_v2  ;;  %1196 = vmatprep.subr.bf16.mxu1 (!%p140_p2), %v1221_v2  ;;  %v1226_v7 = vld [vmem:[%s1462_s1 + $0x18] sm:$0xff] (!%p140_p2)   ;;  %v1228_v9 = vld [vmem:[%s1462_s1 + $0x20] sm:$0xff] (!%p140_p2)   ;;  %v1230_v13 = vld [vmem:[%s1462_s1 + $0x28] sm:$0xff] (!%p140_p2)  }
   0x9   : > { %v1231_v14 = vld [vmem:[%s1462_s1 + $0x70] sm:$0xff] (!%p140_p2)   ;;  %v1233_v16 = vld [vmem:[%s1462_s1 + $0x78] sm:$0xff] (!%p140_p2)   ;;  %v1405_v48 = vld [vmem:[%s1463_s2] ss:$0 sm:$0xff] (!%p140_p2) }
   0xa   : > { %v1232_v15 = vld [vmem:[%s1462_s1 + $0x30] sm:$0xff] (!%p140_p2)   ;;  %v1234_v17 = vld [vmem:[%s1462_s1 + $0x38] sm:$0xff] (!%p140_p2)  }
   0xb   : > { %1092 = vmatpush3.bf16.msra.mxu0 (!%p140_p2), %v1222_v3  ;;  %1204 = vmatpush3.bf16.msra.mxu1 (!%p140_p2), %v1222_v3 }
   0xc   : > { %1093 = vmatprep.subr.bf16.mxu0 (!%p140_p2), %v1223_v4  ;;  %1197 = vmatprep.subr.bf16.mxu1 (!%p140_p2), %v1223_v4 }
   0xd   : > { %s1466_s16 = smov (!%p165_p3, %s164_s16), 59 }
   0xe   : > { %s969_s4 = sshll.u32 %s1466_s16, 3  ;;  %s889_s28 = sshll.u32 %s1466_s16, 2 }
   0xf   : > { %1094 = vmatpush3.bf16.msra.mxu0 %v1224_v5  ;;  %1205 = vmatpush3.bf16.msra.mxu1 %v1224_v5  ;;  %s1349_s9 = scalar_lea.vmem %s1461_s0, %s969_s4  ;;  %s1415_s4 = scalar_lea.vmem %s1464_s3, %s889_s28 }
  0x10   : > { %1095 = vmatprep.subr.bf16.mxu0 %v1225_v6  ;;  %1198 = vmatprep.subr.bf16.mxu1 %v1225_v6  ;;  %v1237_v11 = vld [vmem:[%s1349_s9 + $0x4] ss:$8 sps:$4 sm:$0xff]   ;;  %v1235_v18 = vld [vmem:[%s1349_s9] ss:$8 sps:$4 sm:$0xff]   ;;  %v1241_v20 = vld [vmem:[%s1349_s9 + $0x14] ss:$8 sps:$4 sm:$0xff]  }
  0x11   : > { %v1240_v12 = vld [vmem:[%s1349_s9 + $0x84] ss:$8 sps:$4 sm:$0xff]   ;;  %525 = vmatprep.mubr.bf16.mxu0 %v1237_v11  ;;  %v1238_v19 = vld [vmem:[%s1349_s9 + $0x80] ss:$8 sps:$4 sm:$0xff]   ;;  %v1244_v21 = vld [vmem:[%s1349_s9 + $0x94] ss:$8 sps:$4 sm:$0xff]  }
  0x12   : > { %589 = vmatprep.mubr.bf16.mxu1 %v1240_v12  ;;  %v1243_v22 = vld [vmem:[%s1349_s9 + $0x10] ss:$8 sps:$4 sm:$0xff]   ;;  %v1247_v24 = vld [vmem:[%s1349_s9 + $0x24] ss:$8 sps:$4 sm:$0xff]   ;;  %v1249_v26 = vld [vmem:[%s1349_s9 + $0x20] ss:$8 sps:$4 sm:$0xff]  }
  0x13   : > { %1096 = vmatpush3.bf16.msra.mxu0 %v1226_v7  ;;  %1206 = vmatpush3.bf16.msra.mxu1 %v1226_v7  ;;  %v1246_v23 = vld [vmem:[%s1349_s9 + $0x90] ss:$8 sps:$4 sm:$0xff]   ;;  %v1250_v25 = vld [vmem:[%s1349_s9 + $0xa4] ss:$8 sps:$4 sm:$0xff]   ;;  %v1252_v27 = vld [vmem:[%s1349_s9 + $0xa0] ss:$8 sps:$4 sm:$0xff]  }
  0x14   : > { %1097 = vmatprep.subr.bf16.mxu0 %v1227_v8  ;;  %1199 = vmatprep.subr.bf16.mxu1 %v1227_v8  ;;  %v1253_v28 = vld [vmem:[%s1349_s9 + $0x34] ss:$8 sps:$4 sm:$0xff]   ;;  %v1255_v30 = vld [vmem:[%s1349_s9 + $0x30] ss:$8 sps:$4 sm:$0xff]   ;;  %v1259_v32 = vld [vmem:[%s1349_s9 + $0x44] ss:$8 sps:$4 sm:$0xff]  }
  0x15   : > { %v1256_v29 = vld [vmem:[%s1349_s9 + $0xb4] ss:$8 sps:$4 sm:$0xff]   ;;  %v1258_v31 = vld [vmem:[%s1349_s9 + $0xb0] ss:$8 sps:$4 sm:$0xff]   ;;  %v1262_v33 = vld [vmem:[%s1349_s9 + $0xc4] ss:$8 sps:$4 sm:$0xff]  }
  0x16   : > { %v1261_v34 = vld [vmem:[%s1349_s9 + $0x40] ss:$8 sps:$4 sm:$0xff]   ;;  %v1265_v36 = vld [vmem:[%s1349_s9 + $0x54] ss:$8 sps:$4 sm:$0xff]   ;;  %v1267_v38 = vld [vmem:[%s1349_s9 + $0x50] ss:$8 sps:$4 sm:$0xff]  }
  0x17   : > { %1098 = vmatpush3.bf16.msra.mxu0 %v1228_v9  ;;  %1207 = vmatpush3.bf16.msra.mxu1 %v1228_v9  ;;  %v1264_v35 = vld [vmem:[%s1349_s9 + $0xc0] ss:$8 sps:$4 sm:$0xff]   ;;  %v1268_v37 = vld [vmem:[%s1349_s9 + $0xd4] ss:$8 sps:$4 sm:$0xff]   ;;  %v1270_v39 = vld [vmem:[%s1349_s9 + $0xd0] ss:$8 sps:$4 sm:$0xff]  }
  0x18   : > { %1099 = vmatprep.subr.bf16.mxu0 %v1229_v10  ;;  %1200 = vmatprep.subr.bf16.mxu1 %v1229_v10  ;;  %v1271_v40 = vld [vmem:[%s1349_s9 + $0x64] ss:$8 sps:$4 sm:$0xff]   ;;  %v1273_v42 = vld [vmem:[%s1349_s9 + $0x60] ss:$8 sps:$4 sm:$0xff]   ;;  %v1277_v44 = vld [vmem:[%s1349_s9 + $0x74] ss:$8 sps:$4 sm:$0xff]  }
  0x19   : > { %v1274_v41 = vld [vmem:[%s1349_s9 + $0xe4] ss:$8 sps:$4 sm:$0xff]   ;;  %v1276_v43 = vld [vmem:[%s1349_s9 + $0xe0] ss:$8 sps:$4 sm:$0xff]   ;;  %v1279_v45 = vld [vmem:[%s1349_s9 + $0x70] ss:$8 sps:$4 sm:$0xff]  }
  0x1b   : > { %1100 = vmatpush3.bf16.msra.mxu0 %v1230_v13  ;;  %1208 = vmatpush3.bf16.msra.mxu1 %v1230_v13 }
  0x1c   : > { %1101 = vmatprep.subr.bf16.mxu0 %v1231_v14  ;;  %1201 = vmatprep.subr.bf16.mxu1 %v1231_v14 }
  0x1f   : > { %1102 = vmatpush3.bf16.msra.mxu0 %v1232_v15  ;;  %1209 = vmatpush3.bf16.msra.mxu1 %v1232_v15 }
  0x20   : > { %1103 = vmatprep.subr.bf16.mxu0 %v1233_v16  ;;  %1202 = vmatprep.subr.bf16.mxu1 %v1233_v16 }
  0x23   : > { %1104 = vmatpush3.bf16.msra.mxu0 %v1234_v17  ;;  %1210 = vmatpush3.bf16.msra.mxu1 %v1234_v17 }
  0x26   : > { %526 = vmatmul.mubr.bf16.vlgmr.msra.gmra.mrb[0].mxu0 %v1235_v18  ;;  %590 = vmatmul.mubr.bf16.vlgmr.msra.gmra.mrb[0].mxu1 %v1238_v19 }
  0x27   : > { %533 = vmatprep.mubr.bf16.mxu0 %v1241_v20  ;;  %597 = vmatprep.mubr.bf16.mxu1 %v1244_v21 }
  0x2e   : > { %534 = vmatmul.mubr.bf16.gmra.mrb[4].mxu0 %v1243_v22  ;;  %598 = vmatmul.mubr.bf16.gmra.mrb[4].mxu1 %v1246_v23 }
  0x2f   : > { %541 = vmatprep.mubr.bf16.mxu0 %v1247_v24  ;;  %605 = vmatprep.mubr.bf16.mxu1 %v1250_v25 }
  0x36   : > { %542 = vmatmul.mubr.bf16.gmra.mrb[8].mxu0 %v1249_v26  ;;  %606 = vmatmul.mubr.bf16.gmra.mrb[8].mxu1 %v1252_v27 }
  0x37   : > { %549 = vmatprep.mubr.bf16.mxu0 %v1253_v28  ;;  %613 = vmatprep.mubr.bf16.mxu1 %v1256_v29 }
  0x3e   : > { %550 = vmatmul.mubr.bf16.gmra.mrb[12].mxu0 %v1255_v30  ;;  %614 = vmatmul.mubr.bf16.gmra.mrb[12].mxu1 %v1258_v31 }
  0x3f   : > { %557 = vmatprep.mubr.bf16.mxu0 %v1259_v32  ;;  %621 = vmatprep.mubr.bf16.mxu1 %v1262_v33 }
  0x46   : > { %558 = vmatmul.mubr.bf16.gmra.mrb[16].mxu0 %v1261_v34  ;;  %622 = vmatmul.mubr.bf16.gmra.mrb[16].mxu1 %v1264_v35 }
  0x47   : > { %565 = vmatprep.mubr.bf16.mxu0 %v1265_v36  ;;  %629 = vmatprep.mubr.bf16.mxu1 %v1268_v37 }
  0x4e   : > { %566 = vmatmul.mubr.bf16.gmra.mrb[20].mxu0 %v1267_v38  ;;  %630 = vmatmul.mubr.bf16.gmra.mrb[20].mxu1 %v1270_v39 }
  0x4f   : > { %573 = vmatprep.mubr.bf16.mxu0 %v1271_v40  ;;  %637 = vmatprep.mubr.bf16.mxu1 %v1274_v41 }
  0x56   : > { %574 = vmatmul.mubr.bf16.gmra.mrb[24].mxu0 %v1273_v42  ;;  %638 = vmatmul.mubr.bf16.gmra.mrb[24].mxu1 %v1276_v43 }
  0x57   : > { %581 = vmatprep.mubr.bf16.mxu0 %v1277_v44 }
  0x5e   : > { %582 = vmatmul.mubr.bf16.gmra.mrb[28].mxu0 %v1279_v45 }
  0xf9   : > { %v1105_v46 = vpop.f32.mrb[0].mxu0  ;;  %v1153_v47 = vpop.f32.mrb[0].mxu1 }
  0xfa   : > { %v1106_v49 = vpop.f32.mrb[1].mxu0  ;;  %v1154_v50 = vpop.f32.mrb[1].mxu1 }
  0xfb   : > { %v1107_v51 = vadd.f32 %v1106_v49, %v1105_v46  ;;  %v1108_v52 = vpop.f32.mrb[2].mxu0  ;;  %v1155_v53 = vadd.f32 %v1154_v50, %v1153_v47  ;;  %v1156_v54 = vpop.f32.mrb[2].mxu1 }
  0xfc   : > { %v1109_v55 = vpop.f32.mrb[3].mxu0  ;;  %v1157_v56 = vpop.f32.mrb[3].mxu1 }
  0xfd   : > { %v528_v57 = vadd.f32 %v1107_v51, %v1405_v48  ;;  %v1110_v58 = vadd.f32 %v1109_v55, %v1108_v52  ;;  %v592_v59 = vadd.f32 %v1155_v53, %v1405_v48  ;;  %v1158_v60 = vadd.f32 %v1157_v56, %v1156_v54 }
  0xff   : > { %v531_v61 = vadd.f32 %v1110_v58, %v1405_v48  ;;  %v662_v62 = vmax.f32 %v592_v59, 0.0  ;;  %v595_v63 = vadd.f32 %v1158_v60, %v1405_v48  ;;  %v646_v0 = vmax.f32 %v528_v57, 0.0 }
 0x101   : > { %v647_v1 = vmax.f32 %v531_v61, 0.0  ;;  %v1111_v2 = vpop.f32.mrb[4].mxu0  ;;  %v663_v3 = vmax.f32 %v595_v63, 0.0  ;;  %v1159_v4 = vpop.f32.mrb[4].mxu1 }
 0x102   : > { %v1112_v5 = vpop.f32.mrb[5].mxu0  ;;  %v1160_v6 = vpop.f32.mrb[5].mxu1 }
 0x103   : > { %v1003_v7 = vpack.c.bf16 %v647_v1, %v646_v0  ;;  %v1043_v8 = vpack.c.bf16 %v663_v3, %v662_v62  ;;  %v1113_v9 = vadd.f32 %v1112_v5, %v1111_v2  ;;  %v1114_v10 = vpop.f32.mrb[6].mxu0  ;;  %v1161_v11 = vadd.f32 %v1160_v6, %v1159_v4  ;;  %v1162_v12 = vpop.f32.mrb[6].mxu1 }
 0x104   : > { %v1115_v13 = vpop.f32.mrb[7].mxu0  ;;  %v1163_v14 = vpop.f32.mrb[7].mxu1 }
 0x105   : > { %1004 = vst [vmem:[%s1415_s4] sm:$0xff] %v1003_v7   ;;  %1082 = vst [vmem:[%s1415_s4 + $0x40] sm:$0xff] %v1043_v8   ;;  %v536_v15 = vadd.f32 %v1113_v9, %v1405_v48  ;;  %v1116_v16 = vadd.f32 %v1115_v13, %v1114_v10  ;;  %v600_v17 = vadd.f32 %v1161_v11, %v1405_v48 }
 0x106   : > { %v1164_v18 = vadd.f32 %v1163_v14, %v1162_v12 }
 0x107   : > { %v539_v19 = vadd.f32 %v1116_v16, %v1405_v48  ;;  %v664_v20 = vmax.f32 %v600_v17, 0.0  ;;  %v648_v22 = vmax.f32 %v536_v15, 0.0 }
 0x108   : > { %v603_v21 = vadd.f32 %v1164_v18, %v1405_v48 }
 0x109   : > { %v649_v23 = vmax.f32 %v539_v19, 0.0  ;;  %v1117_v24 = vpop.f32.mrb[8].mxu0  ;;  %v1165_v26 = vpop.f32.mrb[8].mxu1 }
 0x10a   : > { %v665_v25 = vmax.f32 %v603_v21, 0.0  ;;  %v1118_v27 = vpop.f32.mrb[9].mxu0  ;;  %v1166_v28 = vpop.f32.mrb[9].mxu1 }
 0x10b   : > { %v1008_v29 = vpack.c.bf16 %v649_v23, %v648_v22  ;;  %v1119_v31 = vadd.f32 %v1118_v27, %v1117_v24  ;;  %v1120_v32 = vpop.f32.mrb[10].mxu0  ;;  %v1167_v33 = vadd.f32 %v1166_v28, %v1165_v26  ;;  %v1168_v34 = vpop.f32.mrb[10].mxu1 }
 0x10c   : > { %v1048_v30 = vpack.c.bf16 %v665_v25, %v664_v20  ;;  %v1121_v35 = vpop.f32.mrb[11].mxu0  ;;  %v1169_v36 = vpop.f32.mrb[11].mxu1 }
 0x10d   : > { %1075 = vst [vmem:[%s1415_s4 + $0x8] sm:$0xff] %v1008_v29   ;;  %v544_v37 = vadd.f32 %v1119_v31, %v1405_v48  ;;  %v1122_v38 = vadd.f32 %v1121_v35, %v1120_v32  ;;  %v608_v39 = vadd.f32 %v1167_v33, %v1405_v48  ;;  %v1170_v40 = vadd.f32 %v1169_v36, %v1168_v34 }
 0x10e   : > { %1083 = vst [vmem:[%s1415_s4 + $0x48] sm:$0xff] %v1048_v30  }
 0x10f   : > { %v547_v41 = vadd.f32 %v1122_v38, %v1405_v48  ;;  %v666_v42 = vmax.f32 %v608_v39, 0.0  ;;  %v611_v43 = vadd.f32 %v1170_v40, %v1405_v48  ;;  %v650_v44 = vmax.f32 %v544_v37, 0.0 }
 0x111   : > { %v651_v45 = vmax.f32 %v547_v41, 0.0  ;;  %v1123_v46 = vpop.f32.mrb[12].mxu0  ;;  %v667_v47 = vmax.f32 %v611_v43, 0.0  ;;  %v1171_v49 = vpop.f32.mrb[12].mxu1 }
 0x112   : > { %v1124_v50 = vpop.f32.mrb[13].mxu0  ;;  %v1172_v51 = vpop.f32.mrb[13].mxu1 }
 0x113   : > { %v1013_v52 = vpack.c.bf16 %v651_v45, %v650_v44  ;;  %v1053_v53 = vpack.c.bf16 %v667_v47, %v666_v42  ;;  %v1125_v54 = vadd.f32 %v1124_v50, %v1123_v46  ;;  %v1126_v55 = vpop.f32.mrb[14].mxu0  ;;  %v1173_v56 = vadd.f32 %v1172_v51, %v1171_v49  ;;  %v1174_v57 = vpop.f32.mrb[14].mxu1 }
 0x114   : > { %v1127_v58 = vpop.f32.mrb[15].mxu0  ;;  %v1175_v59 = vpop.f32.mrb[15].mxu1 }
 0x115   : > { %1076 = vst [vmem:[%s1415_s4 + $0x10] sm:$0xff] %v1013_v52   ;;  %1084 = vst [vmem:[%s1415_s4 + $0x50] sm:$0xff] %v1053_v53   ;;  %v552_v60 = vadd.f32 %v1125_v54, %v1405_v48  ;;  %v1128_v61 = vadd.f32 %v1127_v58, %v1126_v55  ;;  %v616_v62 = vadd.f32 %v1173_v56, %v1405_v48 }
 0x116   : > { %v1176_v63 = vadd.f32 %v1175_v59, %v1174_v57 }
 0x117   : > { %v555_v0 = vadd.f32 %v1128_v61, %v1405_v48  ;;  %v668_v1 = vmax.f32 %v616_v62, 0.0  ;;  %v652_v3 = vmax.f32 %v552_v60, 0.0 }
 0x118   : > { %v619_v2 = vadd.f32 %v1176_v63, %v1405_v48 }
 0x119   : > { %v653_v4 = vmax.f32 %v555_v0, 0.0  ;;  %v1129_v5 = vpop.f32.mrb[16].mxu0  ;;  %v1177_v7 = vpop.f32.mrb[16].mxu1 }
 0x11a   : > { %v669_v6 = vmax.f32 %v619_v2, 0.0  ;;  %v1130_v8 = vpop.f32.mrb[17].mxu0  ;;  %v1178_v9 = vpop.f32.mrb[17].mxu1 }
 0x11b   : > { %v1018_v10 = vpack.c.bf16 %v653_v4, %v652_v3  ;;  %v1131_v12 = vadd.f32 %v1130_v8, %v1129_v5  ;;  %v1132_v13 = vpop.f32.mrb[18].mxu0  ;;  %v1179_v14 = vadd.f32 %v1178_v9, %v1177_v7  ;;  %v1180_v15 = vpop.f32.mrb[18].mxu1 }
 0x11c   : > { %v1058_v11 = vpack.c.bf16 %v669_v6, %v668_v1  ;;  %v1133_v16 = vpop.f32.mrb[19].mxu0  ;;  %v1181_v17 = vpop.f32.mrb[19].mxu1 }
 0x11d   : > { %1077 = vst [vmem:[%s1415_s4 + $0x18] sm:$0xff] %v1018_v10   ;;  %v560_v18 = vadd.f32 %v1131_v12, %v1405_v48  ;;  %v1134_v19 = vadd.f32 %v1133_v16, %v1132_v13  ;;  %v624_v20 = vadd.f32 %v1179_v14, %v1405_v48  ;;  %v1182_v21 = vadd.f32 %v1181_v17, %v1180_v15 }
 0x11e   : > { %1085 = vst [vmem:[%s1415_s4 + $0x58] sm:$0xff] %v1058_v11  }
 0x11f   : > { %v563_v22 = vadd.f32 %v1134_v19, %v1405_v48  ;;  %v670_v23 = vmax.f32 %v624_v20, 0.0  ;;  %v627_v24 = vadd.f32 %v1182_v21, %v1405_v48  ;;  %v654_v25 = vmax.f32 %v560_v18, 0.0 }
 0x121   : > { %v655_v26 = vmax.f32 %v563_v22, 0.0  ;;  %v1135_v27 = vpop.f32.mrb[20].mxu0  ;;  %v671_v28 = vmax.f32 %v627_v24, 0.0  ;;  %v1183_v29 = vpop.f32.mrb[20].mxu1 }
 0x122   : > { %v1136_v30 = vpop.f32.mrb[21].mxu0  ;;  %v1184_v31 = vpop.f32.mrb[21].mxu1 }
 0x123   : > { %v1023_v32 = vpack.c.bf16 %v655_v26, %v654_v25  ;;  %v1063_v33 = vpack.c.bf16 %v671_v28, %v670_v23  ;;  %v1137_v34 = vadd.f32 %v1136_v30, %v1135_v27  ;;  %v1138_v35 = vpop.f32.mrb[22].mxu0  ;;  %v1185_v36 = vadd.f32 %v1184_v31, %v1183_v29  ;;  %v1186_v37 = vpop.f32.mrb[22].mxu1 }
 0x124   : > { %v1139_v38 = vpop.f32.mrb[23].mxu0  ;;  %v1187_v39 = vpop.f32.mrb[23].mxu1 }
 0x125   : > { %1078 = vst [vmem:[%s1415_s4 + $0x20] sm:$0xff] %v1023_v32   ;;  %1086 = vst [vmem:[%s1415_s4 + $0x60] sm:$0xff] %v1063_v33   ;;  %v568_v40 = vadd.f32 %v1137_v34, %v1405_v48  ;;  %v1140_v41 = vadd.f32 %v1139_v38, %v1138_v35  ;;  %v632_v42 = vadd.f32 %v1185_v36, %v1405_v48 }
 0x126   : > { %v1188_v43 = vadd.f32 %v1187_v39, %v1186_v37 }
 0x127   : > { %v571_v44 = vadd.f32 %v1140_v41, %v1405_v48  ;;  %v672_v45 = vmax.f32 %v632_v42, 0.0  ;;  %v656_v47 = vmax.f32 %v568_v40, 0.0 }
 0x128   : > { %v635_v46 = vadd.f32 %v1188_v43, %v1405_v48 }
 0x129   : > { %v657_v49 = vmax.f32 %v571_v44, 0.0  ;;  %v1141_v50 = vpop.f32.mrb[24].mxu0  ;;  %v1189_v52 = vpop.f32.mrb[24].mxu1 }
 0x12a   : > { %v673_v51 = vmax.f32 %v635_v46, 0.0  ;;  %v1142_v53 = vpop.f32.mrb[25].mxu0  ;;  %v1190_v54 = vpop.f32.mrb[25].mxu1 }
 0x12b   : > { %v1028_v55 = vpack.c.bf16 %v657_v49, %v656_v47  ;;  %v1143_v57 = vadd.f32 %v1142_v53, %v1141_v50  ;;  %v1144_v58 = vpop.f32.mrb[26].mxu0  ;;  %v1191_v59 = vadd.f32 %v1190_v54, %v1189_v52  ;;  %v1192_v60 = vpop.f32.mrb[26].mxu1 }
 0x12c   : > { %v1068_v56 = vpack.c.bf16 %v673_v51, %v672_v45  ;;  %v1145_v61 = vpop.f32.mrb[27].mxu0  ;;  %v1193_v62 = vpop.f32.mrb[27].mxu1 }
 0x12d   : > { %1079 = vst [vmem:[%s1415_s4 + $0x28] sm:$0xff] %v1028_v55   ;;  %v576_v63 = vadd.f32 %v1143_v57, %v1405_v48  ;;  %v1146_v0 = vadd.f32 %v1145_v61, %v1144_v58  ;;  %v640_v1 = vadd.f32 %v1191_v59, %v1405_v48  ;;  %v1194_v2 = vadd.f32 %v1193_v62, %v1192_v60 }
 0x12e   : > { %1087 = vst [vmem:[%s1415_s4 + $0x68] sm:$0xff] %v1068_v56  }
 0x12f   : > { %v579_v3 = vadd.f32 %v1146_v0, %v1405_v48  ;;  %v674_v4 = vmax.f32 %v640_v1, 0.0  ;;  %v643_v5 = vadd.f32 %v1194_v2, %v1405_v48  ;;  %v658_v6 = vmax.f32 %v576_v63, 0.0 }
 0x131   : > { %v659_v7 = vmax.f32 %v579_v3, 0.0  ;;  %v1147_v8 = vpop.f32.mrb[28].mxu0  ;;  %v675_v9 = vmax.f32 %v643_v5, 0.0 }
 0x132   : > { %v1148_v10 = vpop.f32.mrb[29].mxu0 }
 0x133   : > { %v1033_v11 = vpack.c.bf16 %v659_v7, %v658_v6  ;;  %v1073_v12 = vpack.c.bf16 %v675_v9, %v674_v4  ;;  %v1149_v13 = vadd.f32 %v1148_v10, %v1147_v8  ;;  %v1150_v14 = vpop.f32.mrb[30].mxu0 }
 0x134   : > { %v1151_v15 = vpop.f32.mrb[31].mxu0 }
 0x135   : > { %1080 = vst [vmem:[%s1415_s4 + $0x30] sm:$0xff] %v1033_v11   ;;  %1088 = vst [vmem:[%s1415_s4 + $0x70] sm:$0xff] %v1073_v12   ;;  %v584_v16 = vadd.f32 %v1149_v13, %v1405_v48  ;;  %v1152_v17 = vadd.f32 %v1151_v15, %v1150_v14 }
 0x137   : > { %v587_v18 = vadd.f32 %v1152_v17, %v1405_v48  ;;  %v660_v19 = vmax.f32 %v584_v16, 0.0 }
 0x139   : > { %v661_v20 = vmax.f32 %v587_v18, 0.0 }
 0x13b   : > { %v1038_v21 = vpack.c.bf16 %v661_v20, %v660_v19 }
 0x13d   : > { %1081 = vst [vmem:[%s1415_s4 + $0x38] sm:$0xff] %v1038_v21  }
 0x13e PF: > { %s13_s12 = sadd.s32 1, %s1286_s12  }
 0x13f   : > { %p10_p4 = scmp.ge.s32.totalorder %s13_s12, 4  }
 0x141   :  { %12 = sbr.rel (!%p10_p4) target bundleno = 1 (0x1), region = 62 }

// kernel: cond_vae_forward.10
= control target key start
LH: loop header
LB: loop body
LE: loop exit
PB: predicated region body
PF: predicated region fallthrough
CT: control target
= control target key end

     0   :  { %vm2545_vm0 = vcmask 523264   ;;  %s11406_s1 = inlined_call_operand.vmem [shape: bf16[3136,256], index: 1, kind: input, shape index: {}]   ;;  %s11407_s0 = inlined_call_operand.vmem [shape: bf16[16,3136], index: 0, kind: input, shape index: {}]   ;;  %s11408_s5 = inlined_call_operand.vmem [shape: bf16[256,3200], index: 5, kind: input, shape index: {}]   ;;  %s11409_s4 = inlined_call_operand.vmem [shape: bf16[16,128], index: 4, kind: input, shape index: {}]   ;;  %s11410_s2 = inlined_call_operand.vmem [shape: f32[1,256], index: 2, kind: input, shape index: {}]   ;;  %s11411_s7 = inlined_call_operand.vmem [shape: f32[16,256], index: 7, kind: output, shape index: {0}]   ;;  %s11412_s3 = inlined_call_operand.vmem [shape: f32[16,128], index: 3, kind: input, shape index: {}]   ;;  %s11413_s8 = inlined_call_operand.vmem [shape: f32[16,128], index: 8, kind: output, shape index: {1}]   ;;  %s11414_s6 = inlined_call_operand.vmem [shape: f32[1,3200], index: 6, kind: input, shape index: {}]   ;;  %s11415_s9 = inlined_call_operand.vmem [shape: bf16[16,3200], index: 9, kind: output, shape index: {2}]  }
   0x1   :  { %v7444_v0 = vld [vmem:[%s11406_s1 + $0x4] ss:$8 sps:$4 sm:$0xff]   ;;  %v7446_v1 = vld [vmem:[%s11406_s1] ss:$8 sps:$4 sm:$0xff]   ;;  %v7447_v2 = vld [vmem:[%s11406_s1 + $0x14] ss:$8 sps:$4 sm:$0xff]  }
   0x2   :  { %2549 = vmatprep.subr.bf16.mxu0 %v7444_v0  ;;  %v7449_v3 = vld [vmem:[%s11406_s1 + $0x10] ss:$8 sps:$4 sm:$0xff]   ;;  %v7450_v4 = vld [vmem:[%s11406_s1 + $0x24] ss:$8 sps:$4 sm:$0xff]   ;;  %v7452_v5 = vld [vmem:[%s11406_s1 + $0x20] ss:$8 sps:$4 sm:$0xff]  }
   0x3   :  { %2550 = vmatpush1.bf16.msra.mxu0 %v7446_v1  ;;  %v7453_v6 = vld [vmem:[%s11406_s1 + $0x34] ss:$8 sps:$4 sm:$0xff]   ;;  %v7455_v7 = vld [vmem:[%s11406_s1 + $0x30] ss:$8 sps:$4 sm:$0xff]   ;;  %v7456_v8 = vld [vmem:[%s11406_s1 + $0x44] ss:$8 sps:$4 sm:$0xff]  }
   0x4   :  { %2551 = vmatprep.subr.bf16.mxu0 %v7447_v2  ;;  %v7458_v9 = vld [vmem:[%s11406_s1 + $0x40] ss:$8 sps:$4 sm:$0xff]   ;;  %v7459_v10 = vld [vmem:[%s11406_s1 + $0x54] ss:$8 sps:$4 sm:$0xff]   ;;  %v7461_v11 = vld [vmem:[%s11406_s1 + $0x50] ss:$8 sps:$4 sm:$0xff]  }
   0x5   :  { %v7462_v12 = vld [vmem:[%s11406_s1 + $0x64] ss:$8 sps:$4 sm:$0xff]   ;;  %v7464_v14 = vld [vmem:[%s11406_s1 + $0x60] ss:$8 sps:$4 sm:$0xff]   ;;  %v7465_v15 = vld [vmem:[%s11406_s1 + $0x74] ss:$8 sps:$4 sm:$0xff]  }
   0x6   :  { %v7494_v13 = vld [vmem:[%s11407_s0 + $0x4] ss:$100 sps:$4 sm:$0xff]   ;;  %v7467_v16 = vld [vmem:[%s11406_s1 + $0x70] ss:$8 sps:$4 sm:$0xff]   ;;  %v7471_v19 = vld [vmem:[%s11406_s1 + $0x94] ss:$8 sps:$4 sm:$0xff]  }
   0x7   :  { %2552 = vmatpush1.bf16.msra.mxu0 %v7449_v3  ;;  %2581 = vmatprep.mubr.bf16.mxu0 %v7494_v13  ;;  %v7468_v17 = vld [vmem:[%s11406_s1 + $0x84] ss:$8 sps:$4 sm:$0xff]   ;;  %v7470_v18 = vld [vmem:[%s11406_s1 + $0x80] ss:$8 sps:$4 sm:$0xff]   ;;  %v7473_v20 = vld [vmem:[%s11406_s1 + $0x90] ss:$8 sps:$4 sm:$0xff]  }
   0x8   :  { %2553 = vmatprep.subr.bf16.mxu0 %v7450_v4  ;;  %v7474_v21 = vld [vmem:[%s11406_s1 + $0xa4] ss:$8 sps:$4 sm:$0xff]   ;;  %v7476_v22 = vld [vmem:[%s11406_s1 + $0xa0] ss:$8 sps:$4 sm:$0xff]   ;;  %v7477_v23 = vld [vmem:[%s11406_s1 + $0xb4] ss:$8 sps:$4 sm:$0xff]  }
   0x9   :  { %v7479_v24 = vld [vmem:[%s11406_s1 + $0xb0] ss:$8 sps:$4 sm:$0xff]   ;;  %v7480_v25 = vld [vmem:[%s11406_s1 + $0xc4] ss:$8 sps:$4 sm:$0xff]   ;;  %v7482_v26 = vld [vmem:[%s11406_s1 + $0xc0] ss:$8 sps:$4 sm:$0xff]  }
   0xa   :  { %v7483_v27 = vld [vmem:[%s11406_s1 + $0xd4] ss:$8 sps:$4 sm:$0xff]   ;;  %v7485_v28 = vld [vmem:[%s11406_s1 + $0xd0] ss:$8 sps:$4 sm:$0xff]   ;;  %v7486_v29 = vld [vmem:[%s11406_s1 + $0xe4] ss:$8 sps:$4 sm:$0xff]  }
   0xb   :  { %2554 = vmatpush1.bf16.msra.mxu0 %v7452_v5  ;;  %v7488_v30 = vld [vmem:[%s11406_s1 + $0xe0] ss:$8 sps:$4 sm:$0xff]   ;;  %v7489_v31 = vld [vmem:[%s11406_s1 + $0xf4] ss:$8 sps:$4 sm:$0xff]   ;;  %v7491_v32 = vld [vmem:[%s11406_s1 + $0xf0] ss:$8 sps:$4 sm:$0xff]  }
   0xc   :  { %2555 = vmatprep.subr.bf16.mxu0 %v7453_v6  ;;  %v7497_v33 = vld [vmem:[%s11406_s1 + $0x104] ss:$8 sps:$4 sm:$0xff]   ;;  %v7495_v35 = vld [vmem:[%s11406_s1 + $0x100] ss:$8 sps:$4 sm:$0xff]   ;;  %v7500_v37 = vld [vmem:[%s11406_s1 + $0x114] ss:$8 sps:$4 sm:$0xff]  }
   0xd   :  { %v7492_v34 = vld [vmem:[%s11407_s0] ss:$100 sps:$4 sm:$0xff]   ;;  %v7545_v36 = vld [vmem:[%s11407_s0 + $0xc] ss:$100 sps:$4 sm:$0xff]   ;;  %v7506_v41 = vld [vmem:[%s11406_s1 + $0x134] ss:$8 sps:$4 sm:$0xff]  }
   0xe   :  { %v7498_v38 = vld [vmem:[%s11406_s1 + $0x110] ss:$8 sps:$4 sm:$0xff]   ;;  %v7503_v39 = vld [vmem:[%s11406_s1 + $0x124] ss:$8 sps:$4 sm:$0xff]   ;;  %v7501_v40 = vld [vmem:[%s11406_s1 + $0x120] ss:$8 sps:$4 sm:$0xff]  }
   0xf   :  { %2556 = vmatpush1.bf16.msra.mxu0 %v7455_v7  ;;  %v7504_v42 = vld [vmem:[%s11406_s1 + $0x130] ss:$8 sps:$4 sm:$0xff]   ;;  %v7509_v43 = vld [vmem:[%s11406_s1 + $0x144] ss:$8 sps:$4 sm:$0xff]   ;;  %v7507_v44 = vld [vmem:[%s11406_s1 + $0x140] ss:$8 sps:$4 sm:$0xff]  }
  0x10   :  { %2557 = vmatprep.subr.bf16.mxu0 %v7456_v8  ;;  %v7512_v45 = vld [vmem:[%s11406_s1 + $0x154] ss:$8 sps:$4 sm:$0xff]   ;;  %v7510_v46 = vld [vmem:[%s11406_s1 + $0x150] ss:$8 sps:$4 sm:$0xff]   ;;  %v7515_v47 = vld [vmem:[%s11406_s1 + $0x164] ss:$8 sps:$4 sm:$0xff]  }
  0x11   :  { %v7513_v48 = vld [vmem:[%s11406_s1 + $0x160] ss:$8 sps:$4 sm:$0xff]   ;;  %v7518_v49 = vld [vmem:[%s11406_s1 + $0x174] ss:$8 sps:$4 sm:$0xff]   ;;  %v7516_v50 = vld [vmem:[%s11406_s1 + $0x170] ss:$8 sps:$4 sm:$0xff]  }
  0x12   :  { %v7521_v51 = vld [vmem:[%s11406_s1 + $0x184] ss:$8 sps:$4 sm:$0xff]   ;;  %v7519_v52 = vld [vmem:[%s11406_s1 + $0x180] ss:$8 sps:$4 sm:$0xff]   ;;  %v7524_v53 = vld [vmem:[%s11406_s1 + $0x194] ss:$8 sps:$4 sm:$0xff]  }
  0x13   :  { %2558 = vmatpush1.bf16.msra.mxu0 %v7458_v9  ;;  %v7522_v54 = vld [vmem:[%s11406_s1 + $0x190] ss:$8 sps:$4 sm:$0xff]   ;;  %v7527_v55 = vld [vmem:[%s11406_s1 + $0x1a4] ss:$8 sps:$4 sm:$0xff]   ;;  %v7525_v56 = vld [vmem:[%s11406_s1 + $0x1a0] ss:$8 sps:$4 sm:$0xff]  }
  0x14   :  { %2559 = vmatprep.subr.bf16.mxu0 %v7459_v10  ;;  %v7530_v57 = vld [vmem:[%s11406_s1 + $0x1b4] ss:$8 sps:$4 sm:$0xff]   ;;  %v7528_v58 = vld [vmem:[%s11406_s1 + $0x1b0] ss:$8 sps:$4 sm:$0xff]   ;;  %v7533_v59 = vld [vmem:[%s11406_s1 + $0x1c4] ss:$8 sps:$4 sm:$0xff]  }
  0x15   :  { %v7531_v60 = vld [vmem:[%s11406_s1 + $0x1c0] ss:$8 sps:$4 sm:$0xff]   ;;  %v7536_v61 = vld [vmem:[%s11406_s1 + $0x1d4] ss:$8 sps:$4 sm:$0xff]   ;;  %v7534_v62 = vld [vmem:[%s11406_s1 + $0x1d0] ss:$8 sps:$4 sm:$0xff]  }
  0x16   :  { %v7539_v63 = vld [vmem:[%s11406_s1 + $0x1e4] ss:$8 sps:$4 sm:$0xff]   ;;  %v7537_v0 = vld [vmem:[%s11406_s1 + $0x1e0] ss:$8 sps:$4 sm:$0xff]   ;;  %v7542_v1 = vld [vmem:[%s11406_s1 + $0x1f4] ss:$8 sps:$4 sm:$0xff]  }
  0x17   :  { %2560 = vmatpush1.bf16.msra.mxu0 %v7461_v11  ;;  %v7540_v2 = vld [vmem:[%s11406_s1 + $0x1f0] ss:$8 sps:$4 sm:$0xff]   ;;  %v7548_v3 = vld [vmem:[%s11406_s1 + $0x204] ss:$8 sps:$4 sm:$0xff]   ;;  %v7546_v5 = vld [vmem:[%s11406_s1 + $0x200] ss:$8 sps:$4 sm:$0xff]  }
  0x18   :  { %2561 = vmatprep.subr.bf16.mxu0 %v7462_v12  ;;  %v7543_v4 = vld [vmem:[%s11407_s0 + $0x8] ss:$100 sps:$4 sm:$0xff]   ;;  %v7596_v6 = vld [vmem:[%s11407_s0 + $0x14] ss:$100 sps:$4 sm:$0xff]  }
  0x19   :  { %v7551_v7 = vld [vmem:[%s11406_s1 + $0x214] ss:$8 sps:$4 sm:$0xff]   ;;  %v7549_v8 = vld [vmem:[%s11406_s1 + $0x210] ss:$8 sps:$4 sm:$0xff]   ;;  %v7554_v9 = vld [vmem:[%s11406_s1 + $0x224] ss:$8 sps:$4 sm:$0xff]  }
  0x1a   :  { %v7552_v10 = vld [vmem:[%s11406_s1 + $0x220] ss:$8 sps:$4 sm:$0xff]   ;;  %v7557_v11 = vld [vmem:[%s11406_s1 + $0x234] ss:$8 sps:$4 sm:$0xff]   ;;  %v7555_v12 = vld [vmem:[%s11406_s1 + $0x230] ss:$8 sps:$4 sm:$0xff]  }
  0x1b   :  { %2562 = vmatpush1.bf16.msra.mxu0 %v7464_v14  ;;  %v7560_v13 = vld [vmem:[%s11406_s1 + $0x244] ss:$8 sps:$4 sm:$0xff]   ;;  %v7558_v14 = vld [vmem:[%s11406_s1 + $0x240] ss:$8 sps:$4 sm:$0xff]  }
  0x1c   :  { %2563 = vmatprep.subr.bf16.mxu0 %v7465_v15  ;;  %v7563_v15 = vld [vmem:[%s11406_s1 + $0x254] ss:$8 sps:$4 sm:$0xff]  }
  0x1f   :  { %2564 = vmatpush1.bf16.msra.mxu0 %v7467_v16  ;;  %v7561_v16 = vld [vmem:[%s11406_s1 + $0x250] ss:$8 sps:$4 sm:$0xff]  }
  0x20   :  { %2565 = vmatprep.subr.bf16.mxu0 %v7468_v17  ;;  %v7566_v17 = vld [vmem:[%s11406_s1 + $0x264] ss:$8 sps:$4 sm:$0xff]  }
  0x23   :  { %2566 = vmatpush1.bf16.msra.mxu0 %v7470_v18  ;;  %v7564_v18 = vld [vmem:[%s11406_s1 + $0x260] ss:$8 sps:$4 sm:$0xff]  }
  0x24   :  { %2567 = vmatprep.subr.bf16.mxu0 %v7471_v19  ;;  %v7569_v19 = vld [vmem:[%s11406_s1 + $0x274] ss:$8 sps:$4 sm:$0xff]  }
  0x27   :  { %2568 = vmatpush1.bf16.msra.mxu0 %v7473_v20  ;;  %v7567_v20 = vld [vmem:[%s11406_s1 + $0x270] ss:$8 sps:$4 sm:$0xff]  }
  0x28   :  { %2569 = vmatprep.subr.bf16.mxu0 %v7474_v21  ;;  %v7572_v21 = vld [vmem:[%s11406_s1 + $0x284] ss:$8 sps:$4 sm:$0xff]  }
  0x2b   :  { %2570 = vmatpush1.bf16.msra.mxu0 %v7476_v22  ;;  %v7570_v22 = vld [vmem:[%s11406_s1 + $0x280] ss:$8 sps:$4 sm:$0xff]  }
  0x2c   :  { %2571 = vmatprep.subr.bf16.mxu0 %v7477_v23  ;;  %v7575_v23 = vld [vmem:[%s11406_s1 + $0x294] ss:$8 sps:$4 sm:$0xff]  }
  0x2f   :  { %2572 = vmatpush1.bf16.msra.mxu0 %v7479_v24  ;;  %v7573_v24 = vld [vmem:[%s11406_s1 + $0x290] ss:$8 sps:$4 sm:$0xff]  }
  0x30   :  { %2573 = vmatprep.subr.bf16.mxu0 %v7480_v25  ;;  %v7578_v25 = vld [vmem:[%s11406_s1 + $0x2a4] ss:$8 sps:$4 sm:$0xff]  }
  0x33   :  { %2574 = vmatpush1.bf16.msra.mxu0 %v7482_v26  ;;  %v7576_v26 = vld [vmem:[%s11406_s1 + $0x2a0] ss:$8 sps:$4 sm:$0xff]  }
  0x34   :  { %2575 = vmatprep.subr.bf16.mxu0 %v7483_v27  ;;  %v7581_v27 = vld [vmem:[%s11406_s1 + $0x2b4] ss:$8 sps:$4 sm:$0xff]  }
  0x37   :  { %2576 = vmatpush1.bf16.msra.mxu0 %v7485_v28  ;;  %v7579_v28 = vld [vmem:[%s11406_s1 + $0x2b0] ss:$8 sps:$4 sm:$0xff]  }
  0x38   :  { %2577 = vmatprep.subr.bf16.mxu0 %v7486_v29  ;;  %v7584_v29 = vld [vmem:[%s11406_s1 + $0x2c4] ss:$8 sps:$4 sm:$0xff]  }
  0x3b   :  { %2578 = vmatpush1.bf16.msra.mxu0 %v7488_v30  ;;  %v7582_v30 = vld [vmem:[%s11406_s1 + $0x2c0] ss:$8 sps:$4 sm:$0xff]  }
  0x3c   :  { %2579 = vmatprep.subr.bf16.mxu0 %v7489_v31  ;;  %v7587_v31 = vld [vmem:[%s11406_s1 + $0x2d4] ss:$8 sps:$4 sm:$0xff]  }
  0x3f   :  { %2580 = vmatpush1.bf16.msra.mxu0 %v7491_v32  ;;  %v7585_v32 = vld [vmem:[%s11406_s1 + $0x2d0] ss:$8 sps:$4 sm:$0xff]  }
  0x40   :  { %2592 = vmatprep.subr.bf16.mxu0 %v7497_v33  ;;  %v7590_v33 = vld [vmem:[%s11406_s1 + $0x2e4] ss:$8 sps:$4 sm:$0xff]  }
  0x42   :  { %2582 = vmatmul.mubr.bf16.vlgmr.msra.gmra.mrb[0].mxu0 %v7492_v34  ;;  %v7588_v34 = vld [vmem:[%s11406_s1 + $0x2e0] ss:$8 sps:$4 sm:$0xff]  }
  0x43   :  { %2593 = vmatpush1.bf16.msra.mxu0 %v7495_v35  ;;  %2624 = vmatprep.mubr.bf16.mxu0 %v7545_v36  ;;  %v7593_v35 = vld [vmem:[%s11406_s1 + $0x2f4] ss:$8 sps:$4 sm:$0xff]   ;;  %v7591_v36 = vld [vmem:[%s11406_s1 + $0x2f0] ss:$8 sps:$4 sm:$0xff]  }
  0x44   :  { %2594 = vmatprep.subr.bf16.mxu0 %v7500_v37  ;;  %v7599_v37 = vld [vmem:[%s11406_s1 + $0x304] ss:$8 sps:$4 sm:$0xff]  }
  0x47   :  { %2595 = vmatpush1.bf16.msra.mxu0 %v7498_v38  ;;  %v7594_v38 = vld [vmem:[%s11407_s0 + $0x10] ss:$100 sps:$4 sm:$0xff]  }
  0x48   :  { %2596 = vmatprep.subr.bf16.mxu0 %v7503_v39  ;;  %v7597_v39 = vld [vmem:[%s11406_s1 + $0x300] ss:$8 sps:$4 sm:$0xff]  }
  0x4b   :  { %2597 = vmatpush1.bf16.msra.mxu0 %v7501_v40  ;;  %v7647_v40 = vld [vmem:[%s11407_s0 + $0x1c] ss:$100 sps:$4 sm:$0xff]  }
  0x4c   :  { %2598 = vmatprep.subr.bf16.mxu0 %v7506_v41  ;;  %v7602_v41 = vld [vmem:[%s11406_s1 + $0x314] ss:$8 sps:$4 sm:$0xff]  }
  0x4f   :  { %2599 = vmatpush1.bf16.msra.mxu0 %v7504_v42  ;;  %v7600_v42 = vld [vmem:[%s11406_s1 + $0x310] ss:$8 sps:$4 sm:$0xff]  }
  0x50   :  { %2600 = vmatprep.subr.bf16.mxu0 %v7509_v43  ;;  %v7605_v43 = vld [vmem:[%s11406_s1 + $0x324] ss:$8 sps:$4 sm:$0xff]  }
  0x53   :  { %2601 = vmatpush1.bf16.msra.mxu0 %v7507_v44  ;;  %v7603_v44 = vld [vmem:[%s11406_s1 + $0x320] ss:$8 sps:$4 sm:$0xff]  }
  0x54   :  { %2602 = vmatprep.subr.bf16.mxu0 %v7512_v45  ;;  %v7608_v45 = vld [vmem:[%s11406_s1 + $0x334] ss:$8 sps:$4 sm:$0xff]  }
  0x57   :  { %2603 = vmatpush1.bf16.msra.mxu0 %v7510_v46  ;;  %v7606_v46 = vld [vmem:[%s11406_s1 + $0x330] ss:$8 sps:$4 sm:$0xff]  }
  0x58   :  { %2604 = vmatprep.subr.bf16.mxu0 %v7515_v47  ;;  %v7611_v47 = vld [vmem:[%s11406_s1 + $0x344] ss:$8 sps:$4 sm:$0xff]  }
  0x5b   :  { %2605 = vmatpush1.bf16.msra.mxu0 %v7513_v48  ;;  %v7609_v48 = vld [vmem:[%s11406_s1 + $0x340] ss:$8 sps:$4 sm:$0xff]  }
  0x5c   :  { %2606 = vmatprep.subr.bf16.mxu0 %v7518_v49  ;;  %v7614_v49 = vld [vmem:[%s11406_s1 + $0x354] ss:$8 sps:$4 sm:$0xff]  }
  0x5f   :  { %2607 = vmatpush1.bf16.msra.mxu0 %v7516_v50  ;;  %v7612_v50 = vld [vmem:[%s11406_s1 + $0x350] ss:$8 sps:$4 sm:$0xff]  }
  0x60   :  { %2608 = vmatprep.subr.bf16.mxu0 %v7521_v51  ;;  %v7617_v51 = vld [vmem:[%s11406_s1 + $0x364] ss:$8 sps:$4 sm:$0xff]  }
  0x63   :  { %2609 = vmatpush1.bf16.msra.mxu0 %v7519_v52  ;;  %v7615_v52 = vld [vmem:[%s11406_s1 + $0x360] ss:$8 sps:$4 sm:$0xff]  }
  0x64   :  { %2610 = vmatprep.subr.bf16.mxu0 %v7524_v53  ;;  %v7620_v53 = vld [vmem:[%s11406_s1 + $0x374] ss:$8 sps:$4 sm:$0xff]  }
  0x67   :  { %2611 = vmatpush1.bf16.msra.mxu0 %v7522_v54  ;;  %v7618_v54 = vld [vmem:[%s11406_s1 + $0x370] ss:$8 sps:$4 sm:$0xff]  }
  0x68   :  { %2612 = vmatprep.subr.bf16.mxu0 %v7527_v55  ;;  %v7623_v55 = vld [vmem:[%s11406_s1 + $0x384] ss:$8 sps:$4 sm:$0xff]  }
  0x6b   :  { %2613 = vmatpush1.bf16.msra.mxu0 %v7525_v56  ;;  %v7621_v56 = vld [vmem:[%s11406_s1 + $0x380] ss:$8 sps:$4 sm:$0xff]  }
  0x6c   :  { %2614 = vmatprep.subr.bf16.mxu0 %v7530_v57  ;;  %v7626_v57 = vld [vmem:[%s11406_s1 + $0x394] ss:$8 sps:$4 sm:$0xff]  }
  0x6f   :  { %2615 = vmatpush1.bf16.msra.mxu0 %v7528_v58  ;;  %v7624_v58 = vld [vmem:[%s11406_s1 + $0x390] ss:$8 sps:$4 sm:$0xff]  }
  0x70   :  { %2616 = vmatprep.subr.bf16.mxu0 %v7533_v59  ;;  %v7629_v59 = vld [vmem:[%s11406_s1 + $0x3a4] ss:$8 sps:$4 sm:$0xff]  }
  0x73   :  { %2617 = vmatpush1.bf16.msra.mxu0 %v7531_v60  ;;  %v7627_v60 = vld [vmem:[%s11406_s1 + $0x3a0] ss:$8 sps:$4 sm:$0xff]  }
  0x74   :  { %2618 = vmatprep.subr.bf16.mxu0 %v7536_v61  ;;  %v7632_v61 = vld [vmem:[%s11406_s1 + $0x3b4] ss:$8 sps:$4 sm:$0xff]  }
  0x77   :  { %2619 = vmatpush1.bf16.msra.mxu0 %v7534_v62  ;;  %v7630_v62 = vld [vmem:[%s11406_s1 + $0x3b0] ss:$8 sps:$4 sm:$0xff]  }
  0x78   :  { %2620 = vmatprep.subr.bf16.mxu0 %v7539_v63  ;;  %v7635_v63 = vld [vmem:[%s11406_s1 + $0x3c4] ss:$8 sps:$4 sm:$0xff]  }
  0x7b   :  { %2621 = vmatpush1.bf16.msra.mxu0 %v7537_v0  ;;  %v7633_v0 = vld [vmem:[%s11406_s1 + $0x3c0] ss:$8 sps:$4 sm:$0xff]  }
  0x7c   :  { %2622 = vmatprep.subr.bf16.mxu0 %v7542_v1  ;;  %v7638_v1 = vld [vmem:[%s11406_s1 + $0x3d4] ss:$8 sps:$4 sm:$0xff]  }
  0x7f   :  { %2623 = vmatpush1.bf16.msra.mxu0 %v7540_v2  ;;  %v7636_v2 = vld [vmem:[%s11406_s1 + $0x3d0] ss:$8 sps:$4 sm:$0xff]  }
  0x80   :  { %2635 = vmatprep.subr.bf16.mxu0 %v7548_v3  ;;  %v7641_v3 = vld [vmem:[%s11406_s1 + $0x3e4] ss:$8 sps:$4 sm:$0xff]  }
  0x82   :  { %2625 = vmatmul.mubr.bf16.vlgmr.msra.gmra.mrb[0].mxu0 %v7543_v4  ;;  %v7639_v4 = vld [vmem:[%s11406_s1 + $0x3e0] ss:$8 sps:$4 sm:$0xff]  }
  0x83   :  { %2636 = vmatpush1.bf16.msra.mxu0 %v7546_v5  ;;  %2667 = vmatprep.mubr.bf16.mxu0 %v7596_v6  ;;  %v7644_v5 = vld [vmem:[%s11406_s1 + $0x3f4] ss:$8 sps:$4 sm:$0xff]   ;;  %v7642_v6 = vld [vmem:[%s11406_s1 + $0x3f0] ss:$8 sps:$4 sm:$0xff]  }
  0x84   :  { %2637 = vmatprep.subr.bf16.mxu0 %v7551_v7  ;;  %v7650_v7 = vld [vmem:[%s11406_s1 + $0x404] ss:$8 sps:$4 sm:$0xff]  }
  0x87   :  { %2638 = vmatpush1.bf16.msra.mxu0 %v7549_v8  ;;  %v7645_v8 = vld [vmem:[%s11407_s0 + $0x18] ss:$100 sps:$4 sm:$0xff]  }
  0x88   :  { %2639 = vmatprep.subr.bf16.mxu0 %v7554_v9  ;;  %v7648_v9 = vld [vmem:[%s11406_s1 + $0x400] ss:$8 sps:$4 sm:$0xff]  }
  0x8b   :  { %2640 = vmatpush1.bf16.msra.mxu0 %v7552_v10  ;;  %v7698_v10 = vld [vmem:[%s11407_s0 + $0x24] ss:$100 sps:$4 sm:$0xff]  }
  0x8c   :  { %2641 = vmatprep.subr.bf16.mxu0 %v7557_v11  ;;  %v7653_v11 = vld [vmem:[%s11406_s1 + $0x414] ss:$8 sps:$4 sm:$0xff]  }
  0x8f   :  { %2642 = vmatpush1.bf16.msra.mxu0 %v7555_v12  ;;  %v7651_v12 = vld [vmem:[%s11406_s1 + $0x410] ss:$8 sps:$4 sm:$0xff]  }
  0x90   :  { %2643 = vmatprep.subr.bf16.mxu0 %v7560_v13  ;;  %v7656_v13 = vld [vmem:[%s11406_s1 + $0x424] ss:$8 sps:$4 sm:$0xff]  }
  0x93   :  { %2644 = vmatpush1.bf16.msra.mxu0 %v7558_v14  ;;  %v7654_v14 = vld [vmem:[%s11406_s1 + $0x420] ss:$8 sps:$4 sm:$0xff]  }
  0x94   :  { %2645 = vmatprep.subr.bf16.mxu0 %v7563_v15  ;;  %v7659_v15 = vld [vmem:[%s11406_s1 + $0x434] ss:$8 sps:$4 sm:$0xff]  }
  0x97   :  { %2646 = vmatpush1.bf16.msra.mxu0 %v7561_v16  ;;  %v7657_v16 = vld [vmem:[%s11406_s1 + $0x430] ss:$8 sps:$4 sm:$0xff]  }
  0x98   :  { %2647 = vmatprep.subr.bf16.mxu0 %v7566_v17  ;;  %v7662_v17 = vld [vmem:[%s11406_s1 + $0x444] ss:$8 sps:$4 sm:$0xff]  }
  0x9b   :  { %2648 = vmatpush1.bf16.msra.mxu0 %v7564_v18  ;;  %v7660_v18 = vld [vmem:[%s11406_s1 + $0x440] ss:$8 sps:$4 sm:$0xff]  }
  0x9c   :  { %2649 = vmatprep.subr.bf16.mxu0 %v7569_v19  ;;  %v7665_v19 = vld [vmem:[%s11406_s1 + $0x454] ss:$8 sps:$4 sm:$0xff]  }
  0x9f   :  { %2650 = vmatpush1.bf16.msra.mxu0 %v7567_v20  ;;  %v7663_v20 = vld [vmem:[%s11406_s1 + $0x450] ss:$8 sps:$4 sm:$0xff]  }
  0xa0   :  { %2651 = vmatprep.subr.bf16.mxu0 %v7572_v21  ;;  %v7668_v21 = vld [vmem:[%s11406_s1 + $0x464] ss:$8 sps:$4 sm:$0xff]  }
  0xa3   :  { %2652 = vmatpush1.bf16.msra.mxu0 %v7570_v22  ;;  %v7666_v22 = vld [vmem:[%s11406_s1 + $0x460] ss:$8 sps:$4 sm:$0xff]  }
  0xa4   :  { %2653 = vmatprep.subr.bf16.mxu0 %v7575_v23  ;;  %v7671_v23 = vld [vmem:[%s11406_s1 + $0x474] ss:$8 sps:$4 sm:$0xff]  }
  0xa7   :  { %2654 = vmatpush1.bf16.msra.mxu0 %v7573_v24  ;;  %v7669_v24 = vld [vmem:[%s11406_s1 + $0x470] ss:$8 sps:$4 sm:$0xff]  }
  0xa8   :  { %2655 = vmatprep.subr.bf16.mxu0 %v7578_v25  ;;  %v7674_v25 = vld [vmem:[%s11406_s1 + $0x484] ss:$8 sps:$4 sm:$0xff]  }
  0xab   :  { %2656 = vmatpush1.bf16.msra.mxu0 %v7576_v26  ;;  %v7672_v26 = vld [vmem:[%s11406_s1 + $0x480] ss:$8 sps:$4 sm:$0xff]  }
  0xac   :  { %2657 = vmatprep.subr.bf16.mxu0 %v7581_v27  ;;  %v7677_v27 = vld [vmem:[%s11406_s1 + $0x494] ss:$8 sps:$4 sm:$0xff]  }
  0xaf   :  { %2658 = vmatpush1.bf16.msra.mxu0 %v7579_v28  ;;  %v7675_v28 = vld [vmem:[%s11406_s1 + $0x490] ss:$8 sps:$4 sm:$0xff]  }
  0xb0   :  { %2659 = vmatprep.subr.bf16.mxu0 %v7584_v29  ;;  %v7680_v29 = vld [vmem:[%s11406_s1 + $0x4a4] ss:$8 sps:$4 sm:$0xff]  }
  0xb3   :  { %2660 = vmatpush1.bf16.msra.mxu0 %v7582_v30  ;;  %v7678_v30 = vld [vmem:[%s11406_s1 + $0x4a0] ss:$8 sps:$4 sm:$0xff]  }
  0xb4   :  { %2661 = vmatprep.subr.bf16.mxu0 %v7587_v31  ;;  %v7683_v31 = vld [vmem:[%s11406_s1 + $0x4b4] ss:$8 sps:$4 sm:$0xff]  }
  0xb7   :  { %2662 = vmatpush1.bf16.msra.mxu0 %v7585_v32  ;;  %v7681_v32 = vld [vmem:[%s11406_s1 + $0x4b0] ss:$8 sps:$4 sm:$0xff]  }
  0xb8   :  { %2663 = vmatprep.subr.bf16.mxu0 %v7590_v33  ;;  %v7686_v33 = vld [vmem:[%s11406_s1 + $0x4c4] ss:$8 sps:$4 sm:$0xff]  }
  0xbb   :  { %2664 = vmatpush1.bf16.msra.mxu0 %v7588_v34  ;;  %v7684_v34 = vld [vmem:[%s11406_s1 + $0x4c0] ss:$8 sps:$4 sm:$0xff]  }
  0xbc   :  { %2665 = vmatprep.subr.bf16.mxu0 %v7593_v35  ;;  %v7689_v35 = vld [vmem:[%s11406_s1 + $0x4d4] ss:$8 sps:$4 sm:$0xff]  }
  0xbf   :  { %2666 = vmatpush1.bf16.msra.mxu0 %v7591_v36  ;;  %v7687_v36 = vld [vmem:[%s11406_s1 + $0x4d0] ss:$8 sps:$4 sm:$0xff]  }
  0xc0   :  { %2678 = vmatprep.subr.bf16.mxu0 %v7599_v37  ;;  %v7692_v37 = vld [vmem:[%s11406_s1 + $0x4e4] ss:$8 sps:$4 sm:$0xff]  }
  0xc2   :  { %2668 = vmatmul.mubr.bf16.vlgmr.msra.gmra.mrb[0].mxu0 %v7594_v38  ;;  %v7690_v38 = vld [vmem:[%s11406_s1 + $0x4e0] ss:$8 sps:$4 sm:$0xff]  }
  0xc3   :  { %2679 = vmatpush1.bf16.msra.mxu0 %v7597_v39  ;;  %2710 = vmatprep.mubr.bf16.mxu0 %v7647_v40  ;;  %v7695_v39 = vld [vmem:[%s11406_s1 + $0x4f4] ss:$8 sps:$4 sm:$0xff]   ;;  %v7693_v40 = vld [vmem:[%s11406_s1 + $0x4f0] ss:$8 sps:$4 sm:$0xff]  }
  0xc4   :  { %2680 = vmatprep.subr.bf16.mxu0 %v7602_v41  ;;  %v7701_v41 = vld [vmem:[%s11406_s1 + $0x504] ss:$8 sps:$4 sm:$0xff]  }
  0xc7   :  { %2681 = vmatpush1.bf16.msra.mxu0 %v7600_v42  ;;  %v7696_v42 = vld [vmem:[%s11407_s0 + $0x20] ss:$100 sps:$4 sm:$0xff]  }
  0xc8   :  { %2682 = vmatprep.subr.bf16.mxu0 %v7605_v43  ;;  %v7699_v43 = vld [vmem:[%s11406_s1 + $0x500] ss:$8 sps:$4 sm:$0xff]  }
  0xcb   :  { %2683 = vmatpush1.bf16.msra.mxu0 %v7603_v44  ;;  %v7749_v44 = vld [vmem:[%s11407_s0 + $0x2c] ss:$100 sps:$4 sm:$0xff]  }
  0xcc   :  { %2684 = vmatprep.subr.bf16.mxu0 %v7608_v45  ;;  %v7704_v45 = vld [vmem:[%s11406_s1 + $0x514] ss:$8 sps:$4 sm:$0xff]  }
  0xcf   :  { %2685 = vmatpush1.bf16.msra.mxu0 %v7606_v46  ;;  %v7702_v46 = vld [vmem:[%s11406_s1 + $0x510] ss:$8 sps:$4 sm:$0xff]  }
  0xd0   :  { %2686 = vmatprep.subr.bf16.mxu0 %v7611_v47  ;;  %v7707_v47 = vld [vmem:[%s11406_s1 + $0x524] ss:$8 sps:$4 sm:$0xff]  }
  0xd3   :  { %2687 = vmatpush1.bf16.msra.mxu0 %v7609_v48  ;;  %v7705_v48 = vld [vmem:[%s11406_s1 + $0x520] ss:$8 sps:$4 sm:$0xff]  }
  0xd4   :  { %2688 = vmatprep.subr.bf16.mxu0 %v7614_v49  ;;  %v7710_v49 = vld [vmem:[%s11406_s1 + $0x534] ss:$8 sps:$4 sm:$0xff]  }
  0xd7   :  { %2689 = vmatpush1.bf16.msra.mxu0 %v7612_v50  ;;  %v7708_v50 = vld [vmem:[%s11406_s1 + $0x530] ss:$8 sps:$4 sm:$0xff]  }
  0xd8   :  { %2690 = vmatprep.subr.bf16.mxu0 %v7617_v51  ;;  %v7713_v51 = vld [vmem:[%s11406_s1 + $0x544] ss:$8 sps:$4 sm:$0xff]  }
  0xdb   :  { %2691 = vmatpush1.bf16.msra.mxu0 %v7615_v52  ;;  %v7711_v52 = vld [vmem:[%s11406_s1 + $0x540] ss:$8 sps:$4 sm:$0xff]  }
  0xdc   :  { %2692 = vmatprep.subr.bf16.mxu0 %v7620_v53  ;;  %v7716_v53 = vld [vmem:[%s11406_s1 + $0x554] ss:$8 sps:$4 sm:$0xff]  }
  0xdf   :  { %2693 = vmatpush1.bf16.msra.mxu0 %v7618_v54  ;;  %v7714_v54 = vld [vmem:[%s11406_s1 + $0x550] ss:$8 sps:$4 sm:$0xff]  }
  0xe0   :  { %2694 = vmatprep.subr.bf16.mxu0 %v7623_v55  ;;  %v7719_v55 = vld [vmem:[%s11406_s1 + $0x564] ss:$8 sps:$4 sm:$0xff]  }
  0xe3   :  { %2695 = vmatpush1.bf16.msra.mxu0 %v7621_v56  ;;  %v7717_v56 = vld [vmem:[%s11406_s1 + $0x560] ss:$8 sps:$4 sm:$0xff]  }
  0xe4   :  { %2696 = vmatprep.subr.bf16.mxu0 %v7626_v57  ;;  %v7722_v57 = vld [vmem:[%s11406_s1 + $0x574] ss:$8 sps:$4 sm:$0xff]  }
  0xe7   :  { %2697 = vmatpush1.bf16.msra.mxu0 %v7624_v58  ;;  %v7720_v58 = vld [vmem:[%s11406_s1 + $0x570] ss:$8 sps:$4 sm:$0xff]  }
  0xe8   :  { %2698 = vmatprep.subr.bf16.mxu0 %v7629_v59  ;;  %v7725_v59 = vld [vmem:[%s11406_s1 + $0x584] ss:$8 sps:$4 sm:$0xff]  }
  0xeb   :  { %2699 = vmatpush1.bf16.msra.mxu0 %v7627_v60  ;;  %v7723_v60 = vld [vmem:[%s11406_s1 + $0x580] ss:$8 sps:$4 sm:$0xff]  }
  0xec   :  { %2700 = vmatprep.subr.bf16.mxu0 %v7632_v61  ;;  %v7728_v61 = vld [vmem:[%s11406_s1 + $0x594] ss:$8 sps:$4 sm:$0xff]  }
  0xef   :  { %2701 = vmatpush1.bf16.msra.mxu0 %v7630_v62  ;;  %v7726_v62 = vld [vmem:[%s11406_s1 + $0x590] ss:$8 sps:$4 sm:$0xff]  }
  0xf0   :  { %2702 = vmatprep.subr.bf16.mxu0 %v7635_v63  ;;  %v7731_v63 = vld [vmem:[%s11406_s1 + $0x5a4] ss:$8 sps:$4 sm:$0xff]  }
  0xf3   :  { %2703 = vmatpush1.bf16.msra.mxu0 %v7633_v0  ;;  %v7729_v0 = vld [vmem:[%s11406_s1 + $0x5a0] ss:$8 sps:$4 sm:$0xff]  }
  0xf4   :  { %2704 = vmatprep.subr.bf16.mxu0 %v7638_v1  ;;  %v7734_v1 = vld [vmem:[%s11406_s1 + $0x5b4] ss:$8 sps:$4 sm:$0xff]  }
  0xf7   :  { %2705 = vmatpush1.bf16.msra.mxu0 %v7636_v2  ;;  %v7732_v2 = vld [vmem:[%s11406_s1 + $0x5b0] ss:$8 sps:$4 sm:$0xff]  }
  0xf8   :  { %2706 = vmatprep.subr.bf16.mxu0 %v7641_v3  ;;  %v7737_v3 = vld [vmem:[%s11406_s1 + $0x5c4] ss:$8 sps:$4 sm:$0xff]  }
  0xfb   :  { %2707 = vmatpush1.bf16.msra.mxu0 %v7639_v4  ;;  %v7735_v4 = vld [vmem:[%s11406_s1 + $0x5c0] ss:$8 sps:$4 sm:$0xff]  }
  0xfc   :  { %2708 = vmatprep.subr.bf16.mxu0 %v7644_v5  ;;  %v7740_v5 = vld [vmem:[%s11406_s1 + $0x5d4] ss:$8 sps:$4 sm:$0xff]  }
  0xff   :  { %2709 = vmatpush1.bf16.msra.mxu0 %v7642_v6  ;;  %v7738_v6 = vld [vmem:[%s11406_s1 + $0x5d0] ss:$8 sps:$4 sm:$0xff]  }
 0x100   :  { %2721 = vmatprep.subr.bf16.mxu0 %v7650_v7  ;;  %v7743_v7 = vld [vmem:[%s11406_s1 + $0x5e4] ss:$8 sps:$4 sm:$0xff]  }
 0x102   :  { %2711 = vmatmul.mubr.bf16.vlgmr.msra.gmra.mrb[0].mxu0 %v7645_v8  ;;  %v7741_v8 = vld [vmem:[%s11406_s1 + $0x5e0] ss:$8 sps:$4 sm:$0xff]  }
 0x103   :  { %2722 = vmatpush1.bf16.msra.mxu0 %v7648_v9  ;;  %2753 = vmatprep.mubr.bf16.mxu0 %v7698_v10  ;;  %v7746_v9 = vld [vmem:[%s11406_s1 + $0x5f4] ss:$8 sps:$4 sm:$0xff]   ;;  %v7744_v10 = vld [vmem:[%s11406_s1 + $0x5f0] ss:$8 sps:$4 sm:$0xff]  }
 0x104   :  { %2723 = vmatprep.subr.bf16.mxu0 %v7653_v11  ;;  %v7752_v11 = vld [vmem:[%s11406_s1 + $0x604] ss:$8 sps:$4 sm:$0xff]  }
 0x107   :  { %2724 = vmatpush1.bf16.msra.mxu0 %v7651_v12  ;;  %v7747_v12 = vld [vmem:[%s11407_s0 + $0x28] ss:$100 sps:$4 sm:$0xff]  }
 0x108   :  { %2725 = vmatprep.subr.bf16.mxu0 %v7656_v13  ;;  %v7750_v13 = vld [vmem:[%s11406_s1 + $0x600] ss:$8 sps:$4 sm:$0xff]  }
 0x10b   :  { %2726 = vmatpush1.bf16.msra.mxu0 %v7654_v14  ;;  %v7800_v14 = vld [vmem:[%s11407_s0 + $0x34] ss:$100 sps:$4 sm:$0xff]  }
 0x10c   :  { %2727 = vmatprep.subr.bf16.mxu0 %v7659_v15  ;;  %v7755_v15 = vld [vmem:[%s11406_s1 + $0x614] ss:$8 sps:$4 sm:$0xff]  }
 0x10f   :  { %2728 = vmatpush1.bf16.msra.mxu0 %v7657_v16  ;;  %v7753_v16 = vld [vmem:[%s11406_s1 + $0x610] ss:$8 sps:$4 sm:$0xff]  }
 0x110   :  { %2729 = vmatprep.subr.bf16.mxu0 %v7662_v17  ;;  %v7758_v17 = vld [vmem:[%s11406_s1 + $0x624] ss:$8 sps:$4 sm:$0xff]  }
 0x113   :  { %2730 = vmatpush1.bf16.msra.mxu0 %v7660_v18  ;;  %v7756_v18 = vld [vmem:[%s11406_s1 + $0x620] ss:$8 sps:$4 sm:$0xff]  }
 0x114   :  { %2731 = vmatprep.subr.bf16.mxu0 %v7665_v19  ;;  %v7761_v19 = vld [vmem:[%s11406_s1 + $0x634] ss:$8 sps:$4 sm:$0xff]  }
 0x117   :  { %2732 = vmatpush1.bf16.msra.mxu0 %v7663_v20  ;;  %v7759_v20 = vld [vmem:[%s11406_s1 + $0x630] ss:$8 sps:$4 sm:$0xff]  }
 0x118   :  { %2733 = vmatprep.subr.bf16.mxu0 %v7668_v21  ;;  %v7764_v21 = vld [vmem:[%s11406_s1 + $0x644] ss:$8 sps:$4 sm:$0xff]  }
 0x11b   :  { %2734 = vmatpush1.bf16.msra.mxu0 %v7666_v22  ;;  %v7762_v22 = vld [vmem:[%s11406_s1 + $0x640] ss:$8 sps:$4 sm:$0xff]  }
 0x11c   :  { %2735 = vmatprep.subr.bf16.mxu0 %v7671_v23  ;;  %v7767_v23 = vld [vmem:[%s11406_s1 + $0x654] ss:$8 sps:$4 sm:$0xff]  }
 0x11f   :  { %2736 = vmatpush1.bf16.msra.mxu0 %v7669_v24  ;;  %v7765_v24 = vld [vmem:[%s11406_s1 + $0x650] ss:$8 sps:$4 sm:$0xff]  }
 0x120   :  { %2737 = vmatprep.subr.bf16.mxu0 %v7674_v25  ;;  %v7770_v25 = vld [vmem:[%s11406_s1 + $0x664] ss:$8 sps:$4 sm:$0xff]  }
 0x123   :  { %2738 = vmatpush1.bf16.msra.mxu0 %v7672_v26  ;;  %v7768_v26 = vld [vmem:[%s11406_s1 + $0x660] ss:$8 sps:$4 sm:$0xff]  }
 0x124   :  { %2739 = vmatprep.subr.bf16.mxu0 %v7677_v27  ;;  %v7773_v27 = vld [vmem:[%s11406_s1 + $0x674] ss:$8 sps:$4 sm:$0xff]  }
 0x127   :  { %2740 = vmatpush1.bf16.msra.mxu0 %v7675_v28  ;;  %v7771_v28 = vld [vmem:[%s11406_s1 + $0x670] ss:$8 sps:$4 sm:$0xff]  }
 0x128   :  { %2741 = vmatprep.subr.bf16.mxu0 %v7680_v29  ;;  %v7776_v29 = vld [vmem:[%s11406_s1 + $0x684] ss:$8 sps:$4 sm:$0xff]  }
 0x12b   :  { %2742 = vmatpush1.bf16.msra.mxu0 %v7678_v30  ;;  %v7774_v30 = vld [vmem:[%s11406_s1 + $0x680] ss:$8 sps:$4 sm:$0xff]  }
 0x12c   :  { %2743 = vmatprep.subr.bf16.mxu0 %v7683_v31  ;;  %v7779_v31 = vld [vmem:[%s11406_s1 + $0x694] ss:$8 sps:$4 sm:$0xff]  }
 0x12f   :  { %2744 = vmatpush1.bf16.msra.mxu0 %v7681_v32  ;;  %v7777_v32 = vld [vmem:[%s11406_s1 + $0x690] ss:$8 sps:$4 sm:$0xff]  }
 0x130   :  { %2745 = vmatprep.subr.bf16.mxu0 %v7686_v33  ;;  %v7782_v33 = vld [vmem:[%s11406_s1 + $0x6a4] ss:$8 sps:$4 sm:$0xff]  }
 0x133   :  { %2746 = vmatpush1.bf16.msra.mxu0 %v7684_v34  ;;  %v7780_v34 = vld [vmem:[%s11406_s1 + $0x6a0] ss:$8 sps:$4 sm:$0xff]  }
 0x134   :  { %2747 = vmatprep.subr.bf16.mxu0 %v7689_v35  ;;  %v7785_v35 = vld [vmem:[%s11406_s1 + $0x6b4] ss:$8 sps:$4 sm:$0xff]  }
 0x137   :  { %2748 = vmatpush1.bf16.msra.mxu0 %v7687_v36  ;;  %v7783_v36 = vld [vmem:[%s11406_s1 + $0x6b0] ss:$8 sps:$4 sm:$0xff]  }
 0x138   :  { %2749 = vmatprep.subr.bf16.mxu0 %v7692_v37  ;;  %v7788_v37 = vld [vmem:[%s11406_s1 + $0x6c4] ss:$8 sps:$4 sm:$0xff]  }
 0x13b   :  { %2750 = vmatpush1.bf16.msra.mxu0 %v7690_v38  ;;  %v7786_v38 = vld [vmem:[%s11406_s1 + $0x6c0] ss:$8 sps:$4 sm:$0xff]  }
 0x13c   :  { %2751 = vmatprep.subr.bf16.mxu0 %v7695_v39  ;;  %v7791_v39 = vld [vmem:[%s11406_s1 + $0x6d4] ss:$8 sps:$4 sm:$0xff]  }
 0x13f   :  { %2752 = vmatpush1.bf16.msra.mxu0 %v7693_v40  ;;  %v7789_v40 = vld [vmem:[%s11406_s1 + $0x6d0] ss:$8 sps:$4 sm:$0xff]  }
 0x140   :  { %2764 = vmatprep.subr.bf16.mxu0 %v7701_v41  ;;  %v7794_v41 = vld [vmem:[%s11406_s1 + $0x6e4] ss:$8 sps:$4 sm:$0xff]  }
 0x142   :  { %2754 = vmatmul.mubr.bf16.vlgmr.msra.gmra.mrb[0].mxu0 %v7696_v42  ;;  %v7792_v42 = vld [vmem:[%s11406_s1 + $0x6e0] ss:$8 sps:$4 sm:$0xff]  }
 0x143   :  { %2765 = vmatpush1.bf16.msra.mxu0 %v7699_v43  ;;  %2796 = vmatprep.mubr.bf16.mxu0 %v7749_v44  ;;  %v7797_v43 = vld [vmem:[%s11406_s1 + $0x6f4] ss:$8 sps:$4 sm:$0xff]   ;;  %v7795_v44 = vld [vmem:[%s11406_s1 + $0x6f0] ss:$8 sps:$4 sm:$0xff]  }
 0x144   :  { %2766 = vmatprep.subr.bf16.mxu0 %v7704_v45  ;;  %v7803_v45 = vld [vmem:[%s11406_s1 + $0x704] ss:$8 sps:$4 sm:$0xff]  }
 0x147   :  { %2767 = vmatpush1.bf16.msra.mxu0 %v7702_v46  ;;  %v7798_v46 = vld [vmem:[%s11407_s0 + $0x30] ss:$100 sps:$4 sm:$0xff]  }
 0x148   :  { %2768 = vmatprep.subr.bf16.mxu0 %v7707_v47  ;;  %v7801_v47 = vld [vmem:[%s11406_s1 + $0x700] ss:$8 sps:$4 sm:$0xff]  }
 0x14b   :  { %2769 = vmatpush1.bf16.msra.mxu0 %v7705_v48  ;;  %v7851_v48 = vld [vmem:[%s11407_s0 + $0x3c] ss:$100 sps:$4 sm:$0xff]  }
 0x14c   :  { %2770 = vmatprep.subr.bf16.mxu0 %v7710_v49  ;;  %v7806_v49 = vld [vmem:[%s11406_s1 + $0x714] ss:$8 sps:$4 sm:$0xff]  }
 0x14f   :  { %2771 = vmatpush1.bf16.msra.mxu0 %v7708_v50  ;;  %v7804_v50 = vld [vmem:[%s11406_s1 + $0x710] ss:$8 sps:$4 sm:$0xff]  }
 0x150   :  { %2772 = vmatprep.subr.bf16.mxu0 %v7713_v51  ;;  %v7809_v51 = vld [vmem:[%s11406_s1 + $0x724] ss:$8 sps:$4 sm:$0xff]  }
 0x153   :  { %2773 = vmatpush1.bf16.msra.mxu0 %v7711_v52  ;;  %v7807_v52 = vld [vmem:[%s11406_s1 + $0x720] ss:$8 sps:$4 sm:$0xff]  }
 0x154   :  { %2774 = vmatprep.subr.bf16.mxu0 %v7716_v53  ;;  %v7812_v53 = vld [vmem:[%s11406_s1 + $0x734] ss:$8 sps:$4 sm:$0xff]  }
 0x157   :  { %2775 = vmatpush1.bf16.msra.mxu0 %v7714_v54  ;;  %v7810_v54 = vld [vmem:[%s11406_s1 + $0x730] ss:$8 sps:$4 sm:$0xff]  }
 0x158   :  { %2776 = vmatprep.subr.bf16.mxu0 %v7719_v55  ;;  %v7815_v55 = vld [vmem:[%s11406_s1 + $0x744] ss:$8 sps:$4 sm:$0xff]  }
 0x15b   :  { %2777 = vmatpush1.bf16.msra.mxu0 %v7717_v56  ;;  %v7813_v56 = vld [vmem:[%s11406_s1 + $0x740] ss:$8 sps:$4 sm:$0xff]  }
 0x15c   :  { %2778 = vmatprep.subr.bf16.mxu0 %v7722_v57  ;;  %v7818_v57 = vld [vmem:[%s11406_s1 + $0x754] ss:$8 sps:$4 sm:$0xff]  }
 0x15f   :  { %2779 = vmatpush1.bf16.msra.mxu0 %v7720_v58  ;;  %v7816_v58 = vld [vmem:[%s11406_s1 + $0x750] ss:$8 sps:$4 sm:$0xff]  }
 0x160   :  { %2780 = vmatprep.subr.bf16.mxu0 %v7725_v59  ;;  %v7821_v59 = vld [vmem:[%s11406_s1 + $0x764] ss:$8 sps:$4 sm:$0xff]  }
 0x163   :  { %2781 = vmatpush1.bf16.msra.mxu0 %v7723_v60  ;;  %v7819_v60 = vld [vmem:[%s11406_s1 + $0x760] ss:$8 sps:$4 sm:$0xff]  }
 0x164   :  { %2782 = vmatprep.subr.bf16.mxu0 %v7728_v61  ;;  %v7824_v61 = vld [vmem:[%s11406_s1 + $0x774] ss:$8 sps:$4 sm:$0xff]  }
 0x167   :  { %2783 = vmatpush1.bf16.msra.mxu0 %v7726_v62  ;;  %v7822_v62 = vld [vmem:[%s11406_s1 + $0x770] ss:$8 sps:$4 sm:$0xff]  }
 0x168   :  { %2784 = vmatprep.subr.bf16.mxu0 %v7731_v63  ;;  %v7827_v63 = vld [vmem:[%s11406_s1 + $0x784] ss:$8 sps:$4 sm:$0xff]  }
 0x16b   :  { %2785 = vmatpush1.bf16.msra.mxu0 %v7729_v0  ;;  %v7825_v0 = vld [vmem:[%s11406_s1 + $0x780] ss:$8 sps:$4 sm:$0xff]  }
 0x16c   :  { %2786 = vmatprep.subr.bf16.mxu0 %v7734_v1  ;;  %v7830_v1 = vld [vmem:[%s11406_s1 + $0x794] ss:$8 sps:$4 sm:$0xff]  }
 0x16f   :  { %2787 = vmatpush1.bf16.msra.mxu0 %v7732_v2  ;;  %v7828_v2 = vld [vmem:[%s11406_s1 + $0x790] ss:$8 sps:$4 sm:$0xff]  }
 0x170   :  { %2788 = vmatprep.subr.bf16.mxu0 %v7737_v3  ;;  %v7833_v3 = vld [vmem:[%s11406_s1 + $0x7a4] ss:$8 sps:$4 sm:$0xff]  }
 0x173   :  { %2789 = vmatpush1.bf16.msra.mxu0 %v7735_v4  ;;  %v7831_v4 = vld [vmem:[%s11406_s1 + $0x7a0] ss:$8 sps:$4 sm:$0xff]  }
 0x174   :  { %2790 = vmatprep.subr.bf16.mxu0 %v7740_v5  ;;  %v7836_v5 = vld [vmem:[%s11406_s1 + $0x7b4] ss:$8 sps:$4 sm:$0xff]  }
 0x177   :  { %2791 = vmatpush1.bf16.msra.mxu0 %v7738_v6  ;;  %v7834_v6 = vld [vmem:[%s11406_s1 + $0x7b0] ss:$8 sps:$4 sm:$0xff]  }
 0x178   :  { %2792 = vmatprep.subr.bf16.mxu0 %v7743_v7  ;;  %v7839_v7 = vld [vmem:[%s11406_s1 + $0x7c4] ss:$8 sps:$4 sm:$0xff]  }
 0x17b   :  { %2793 = vmatpush1.bf16.msra.mxu0 %v7741_v8  ;;  %v7837_v8 = vld [vmem:[%s11406_s1 + $0x7c0] ss:$8 sps:$4 sm:$0xff]  }
 0x17c   :  { %2794 = vmatprep.subr.bf16.mxu0 %v7746_v9  ;;  %v7842_v9 = vld [vmem:[%s11406_s1 + $0x7d4] ss:$8 sps:$4 sm:$0xff]  }
 0x17f   :  { %2795 = vmatpush1.bf16.msra.mxu0 %v7744_v10  ;;  %v7840_v10 = vld [vmem:[%s11406_s1 + $0x7d0] ss:$8 sps:$4 sm:$0xff]  }
 0x180   :  { %2807 = vmatprep.subr.bf16.mxu0 %v7752_v11  ;;  %v7845_v11 = vld [vmem:[%s11406_s1 + $0x7e4] ss:$8 sps:$4 sm:$0xff]  }
 0x182   :  { %2797 = vmatmul.mubr.bf16.vlgmr.msra.gmra.mrb[0].mxu0 %v7747_v12  ;;  %v7843_v12 = vld [vmem:[%s11406_s1 + $0x7e0] ss:$8 sps:$4 sm:$0xff]  }
 0x183   :  { %2808 = vmatpush1.bf16.msra.mxu0 %v7750_v13  ;;  %2839 = vmatprep.mubr.bf16.mxu0 %v7800_v14  ;;  %v7848_v13 = vld [vmem:[%s11406_s1 + $0x7f4] ss:$8 sps:$4 sm:$0xff]   ;;  %v7846_v14 = vld [vmem:[%s11406_s1 + $0x7f0] ss:$8 sps:$4 sm:$0xff]  }
 0x184   :  { %2809 = vmatprep.subr.bf16.mxu0 %v7755_v15  ;;  %v7854_v15 = vld [vmem:[%s11406_s1 + $0x804] ss:$8 sps:$4 sm:$0xff]  }
 0x187   :  { %2810 = vmatpush1.bf16.msra.mxu0 %v7753_v16  ;;  %v7849_v16 = vld [vmem:[%s11407_s0 + $0x38] ss:$100 sps:$4 sm:$0xff]  }
 0x188   :  { %2811 = vmatprep.subr.bf16.mxu0 %v7758_v17  ;;  %v7852_v17 = vld [vmem:[%s11406_s1 + $0x800] ss:$8 sps:$4 sm:$0xff]  }
 0x18b   :  { %2812 = vmatpush1.bf16.msra.mxu0 %v7756_v18  ;;  %v7902_v18 = vld [vmem:[%s11407_s0 + $0x44] ss:$100 sps:$4 sm:$0xff]  }
 0x18c   :  { %2813 = vmatprep.subr.bf16.mxu0 %v7761_v19  ;;  %v7857_v19 = vld [vmem:[%s11406_s1 + $0x814] ss:$8 sps:$4 sm:$0xff]  }
 0x18f   :  { %2814 = vmatpush1.bf16.msra.mxu0 %v7759_v20  ;;  %v7855_v20 = vld [vmem:[%s11406_s1 + $0x810] ss:$8 sps:$4 sm:$0xff]  }
 0x190   :  { %2815 = vmatprep.subr.bf16.mxu0 %v7764_v21  ;;  %v7860_v21 = vld [vmem:[%s11406_s1 + $0x824] ss:$8 sps:$4 sm:$0xff]  }
 0x193   :  { %2816 = vmatpush1.bf16.msra.mxu0 %v7762_v22  ;;  %v7858_v22 = vld [vmem:[%s11406_s1 + $0x820] ss:$8 sps:$4 sm:$0xff]  }
 0x194   :  { %2817 = vmatprep.subr.bf16.mxu0 %v7767_v23  ;;  %v7863_v23 = vld [vmem:[%s11406_s1 + $0x834] ss:$8 sps:$4 sm:$0xff]  }
 0x197   :  { %2818 = vmatpush1.bf16.msra.mxu0 %v7765_v24  ;;  %v7861_v24 = vld [vmem:[%s11406_s1 + $0x830] ss:$8 sps:$4 sm:$0xff]  }
 0x198   :  { %2819 = vmatprep.subr.bf16.mxu0 %v7770_v25  ;;  %v7866_v25 = vld [vmem:[%s11406_s1 + $0x844] ss:$8 sps:$4 sm:$0xff]  }
 0x19b   :  { %2820 = vmatpush1.bf16.msra.mxu0 %v7768_v26  ;;  %v7864_v26 = vld [vmem:[%s11406_s1 + $0x840] ss:$8 sps:$4 sm:$0xff]  }
 0x19c   :  { %2821 = vmatprep.subr.bf16.mxu0 %v7773_v27  ;;  %v7869_v27 = vld [vmem:[%s11406_s1 + $0x854] ss:$8 sps:$4 sm:$0xff]  }
 0x19f   :  { %2822 = vmatpush1.bf16.msra.mxu0 %v7771_v28  ;;  %v7867_v28 = vld [vmem:[%s11406_s1 + $0x850] ss:$8 sps:$4 sm:$0xff]  }
 0x1a0   :  { %2823 = vmatprep.subr.bf16.mxu0 %v7776_v29  ;;  %v7872_v29 = vld [vmem:[%s11406_s1 + $0x864] ss:$8 sps:$4 sm:$0xff]  }
 0x1a3   :  { %2824 = vmatpush1.bf16.msra.mxu0 %v7774_v30  ;;  %v7870_v30 = vld [vmem:[%s11406_s1 + $0x860] ss:$8 sps:$4 sm:$0xff]  }
 0x1a4   :  { %2825 = vmatprep.subr.bf16.mxu0 %v7779_v31  ;;  %v7875_v31 = vld [vmem:[%s11406_s1 + $0x874] ss:$8 sps:$4 sm:$0xff]  }
 0x1a7   :  { %2826 = vmatpush1.bf16.msra.mxu0 %v7777_v32  ;;  %v7873_v32 = vld [vmem:[%s11406_s1 + $0x870] ss:$8 sps:$4 sm:$0xff]  }
 0x1a8   :  { %2827 = vmatprep.subr.bf16.mxu0 %v7782_v33  ;;  %v7878_v33 = vld [vmem:[%s11406_s1 + $0x884] ss:$8 sps:$4 sm:$0xff]  }
 0x1ab   :  { %2828 = vmatpush1.bf16.msra.mxu0 %v7780_v34  ;;  %v7876_v34 = vld [vmem:[%s11406_s1 + $0x880] ss:$8 sps:$4 sm:$0xff]  }
 0x1ac   :  { %2829 = vmatprep.subr.bf16.mxu0 %v7785_v35  ;;  %v7881_v35 = vld [vmem:[%s11406_s1 + $0x894] ss:$8 sps:$4 sm:$0xff]  }
 0x1af   :  { %2830 = vmatpush1.bf16.msra.mxu0 %v7783_v36  ;;  %v7879_v36 = vld [vmem:[%s11406_s1 + $0x890] ss:$8 sps:$4 sm:$0xff]  }
 0x1b0   :  { %2831 = vmatprep.subr.bf16.mxu0 %v7788_v37  ;;  %v7884_v37 = vld [vmem:[%s11406_s1 + $0x8a4] ss:$8 sps:$4 sm:$0xff]  }
 0x1b3   :  { %2832 = vmatpush1.bf16.msra.mxu0 %v7786_v38  ;;  %v7882_v38 = vld [vmem:[%s11406_s1 + $0x8a0] ss:$8 sps:$4 sm:$0xff]  }
 0x1b4   :  { %2833 = vmatprep.subr.bf16.mxu0 %v7791_v39  ;;  %v7887_v39 = vld [vmem:[%s11406_s1 + $0x8b4] ss:$8 sps:$4 sm:$0xff]  }
 0x1b7   :  { %2834 = vmatpush1.bf16.msra.mxu0 %v7789_v40  ;;  %v7885_v40 = vld [vmem:[%s11406_s1 + $0x8b0] ss:$8 sps:$4 sm:$0xff]  }
 0x1b8   :  { %2835 = vmatprep.subr.bf16.mxu0 %v7794_v41  ;;  %v7890_v41 = vld [vmem:[%s11406_s1 + $0x8c4] ss:$8 sps:$4 sm:$0xff]  }
 0x1bb   :  { %2836 = vmatpush1.bf16.msra.mxu0 %v7792_v42  ;;  %v7888_v42 = vld [vmem:[%s11406_s1 + $0x8c0] ss:$8 sps:$4 sm:$0xff]  }
 0x1bc   :  { %2837 = vmatprep.subr.bf16.mxu0 %v7797_v43  ;;  %v7893_v43 = vld [vmem:[%s11406_s1 + $0x8d4] ss:$8 sps:$4 sm:$0xff]  }
 0x1bf   :  { %2838 = vmatpush1.bf16.msra.mxu0 %v7795_v44  ;;  %v7891_v44 = vld [vmem:[%s11406_s1 + $0x8d0] ss:$8 sps:$4 sm:$0xff]  }
 0x1c0   :  { %2850 = vmatprep.subr.bf16.mxu0 %v7803_v45  ;;  %v7896_v45 = vld [vmem:[%s11406_s1 + $0x8e4] ss:$8 sps:$4 sm:$0xff]  }
 0x1c2   :  { %2840 = vmatmul.mubr.bf16.vlgmr.msra.gmra.mrb[0].mxu0 %v7798_v46  ;;  %v7894_v46 = vld [vmem:[%s11406_s1 + $0x8e0] ss:$8 sps:$4 sm:$0xff]  }
 0x1c3   :  { %2851 = vmatpush1.bf16.msra.mxu0 %v7801_v47  ;;  %2882 = vmatprep.mubr.bf16.mxu0 %v7851_v48  ;;  %v7899_v47 = vld [vmem:[%s11406_s1 + $0x8f4] ss:$8 sps:$4 sm:$0xff]   ;;  %v7897_v48 = vld [vmem:[%s11406_s1 + $0x8f0] ss:$8 sps:$4 sm:$0xff]  }
 0x1c4   :  { %2852 = vmatprep.subr.bf16.mxu0 %v7806_v49  ;;  %v7905_v49 = vld [vmem:[%s11406_s1 + $0x904] ss:$8 sps:$4 sm:$0xff]  }
 0x1c7   :  { %2853 = vmatpush1.bf16.msra.mxu0 %v7804_v50  ;;  %v7900_v50 = vld [vmem:[%s11407_s0 + $0x40] ss:$100 sps:$4 sm:$0xff]  }
 0x1c8   :  { %2854 = vmatprep.subr.bf16.mxu0 %v7809_v51  ;;  %v7903_v51 = vld [vmem:[%s11406_s1 + $0x900] ss:$8 sps:$4 sm:$0xff]  }
 0x1cb   :  { %2855 = vmatpush1.bf16.msra.mxu0 %v7807_v52  ;;  %v7953_v52 = vld [vmem:[%s11407_s0 + $0x4c] ss:$100 sps:$4 sm:$0xff]  }
 0x1cc   :  { %2856 = vmatprep.subr.bf16.mxu0 %v7812_v53  ;;  %v7908_v53 = vld [vmem:[%s11406_s1 + $0x914] ss:$8 sps:$4 sm:$0xff]  }
 0x1cf   :  { %2857 = vmatpush1.bf16.msra.mxu0 %v7810_v54  ;;  %v7906_v54 = vld [vmem:[%s11406_s1 + $0x910] ss:$8 sps:$4 sm:$0xff]  }
 0x1d0   :  { %2858 = vmatprep.subr.bf16.mxu0 %v7815_v55  ;;  %v7911_v55 = vld [vmem:[%s11406_s1 + $0x924] ss:$8 sps:$4 sm:$0xff]  }
 0x1d3   :  { %2859 = vmatpush1.bf16.msra.mxu0 %v7813_v56  ;;  %v7909_v56 = vld [vmem:[%s11406_s1 + $0x920] ss:$8 sps:$4 sm:$0xff]  }
 0x1d4   :  { %2860 = vmatprep.subr.bf16.mxu0 %v7818_v57  ;;  %v7914_v57 = vld [vmem:[%s11406_s1 + $0x934] ss:$8 sps:$4 sm:$0xff]  }
 0x1d7   :  { %2861 = vmatpush1.bf16.msra.mxu0 %v7816_v58  ;;  %v7912_v58 = vld [vmem:[%s11406_s1 + $0x930] ss:$8 sps:$4 sm:$0xff]  }
 0x1d8   :  { %2862 = vmatprep.subr.bf16.mxu0 %v7821_v59  ;;  %v7917_v59 = vld [vmem:[%s11406_s1 + $0x944] ss:$8 sps:$4 sm:$0xff]  }
 0x1db   :  { %2863 = vmatpush1.bf16.msra.mxu0 %v7819_v60  ;;  %v7915_v60 = vld [vmem:[%s11406_s1 + $0x940] ss:$8 sps:$4 sm:$0xff]  }
 0x1dc   :  { %2864 = vmatprep.subr.bf16.mxu0 %v7824_v61  ;;  %v7920_v61 = vld [vmem:[%s11406_s1 + $0x954] ss:$8 sps:$4 sm:$0xff]  }
 0x1df   :  { %2865 = vmatpush1.bf16.msra.mxu0 %v7822_v62  ;;  %v7918_v62 = vld [vmem:[%s11406_s1 + $0x950] ss:$8 sps:$4 sm:$0xff]  }
 0x1e0   :  { %2866 = vmatprep.subr.bf16.mxu0 %v7827_v63  ;;  %v7923_v63 = vld [vmem:[%s11406_s1 + $0x964] ss:$8 sps:$4 sm:$0xff]  }
 0x1e3   :  { %2867 = vmatpush1.bf16.msra.mxu0 %v7825_v0  ;;  %v7921_v0 = vld [vmem:[%s11406_s1 + $0x960] ss:$8 sps:$4 sm:$0xff]  }
 0x1e4   :  { %2868 = vmatprep.subr.bf16.mxu0 %v7830_v1  ;;  %v7926_v1 = vld [vmem:[%s11406_s1 + $0x974] ss:$8 sps:$4 sm:$0xff]  }
 0x1e7   :  { %2869 = vmatpush1.bf16.msra.mxu0 %v7828_v2  ;;  %v7924_v2 = vld [vmem:[%s11406_s1 + $0x970] ss:$8 sps:$4 sm:$0xff]  }
 0x1e8   :  { %2870 = vmatprep.subr.bf16.mxu0 %v7833_v3  ;;  %v7929_v3 = vld [vmem:[%s11406_s1 + $0x984] ss:$8 sps:$4 sm:$0xff]  }
 0x1eb   :  { %2871 = vmatpush1.bf16.msra.mxu0 %v7831_v4  ;;  %v7927_v4 = vld [vmem:[%s11406_s1 + $0x980] ss:$8 sps:$4 sm:$0xff]  }
 0x1ec   :  { %2872 = vmatprep.subr.bf16.mxu0 %v7836_v5  ;;  %v7932_v5 = vld [vmem:[%s11406_s1 + $0x994] ss:$8 sps:$4 sm:$0xff]  }
 0x1ef   :  { %2873 = vmatpush1.bf16.msra.mxu0 %v7834_v6  ;;  %v7930_v6 = vld [vmem:[%s11406_s1 + $0x990] ss:$8 sps:$4 sm:$0xff]  }
 0x1f0   :  { %2874 = vmatprep.subr.bf16.mxu0 %v7839_v7  ;;  %v7935_v7 = vld [vmem:[%s11406_s1 + $0x9a4] ss:$8 sps:$4 sm:$0xff]  }
 0x1f3   :  { %2875 = vmatpush1.bf16.msra.mxu0 %v7837_v8  ;;  %v7933_v8 = vld [vmem:[%s11406_s1 + $0x9a0] ss:$8 sps:$4 sm:$0xff]  }
 0x1f4   :  { %2876 = vmatprep.subr.bf16.mxu0 %v7842_v9  ;;  %v7938_v9 = vld [vmem:[%s11406_s1 + $0x9b4] ss:$8 sps:$4 sm:$0xff]  }
 0x1f7   :  { %2877 = vmatpush1.bf16.msra.mxu0 %v7840_v10  ;;  %v7936_v10 = vld [vmem:[%s11406_s1 + $0x9b0] ss:$8 sps:$4 sm:$0xff]  }
 0x1f8   :  { %2878 = vmatprep.subr.bf16.mxu0 %v7845_v11  ;;  %v7941_v11 = vld [vmem:[%s11406_s1 + $0x9c4] ss:$8 sps:$4 sm:$0xff]  }
 0x1fb   :  { %2879 = vmatpush1.bf16.msra.mxu0 %v7843_v12  ;;  %v7939_v12 = vld [vmem:[%s11406_s1 + $0x9c0] ss:$8 sps:$4 sm:$0xff]  }
 0x1fc   :  { %2880 = vmatprep.subr.bf16.mxu0 %v7848_v13  ;;  %v7944_v13 = vld [vmem:[%s11406_s1 + $0x9d4] ss:$8 sps:$4 sm:$0xff]  }
 0x1ff   :  { %2881 = vmatpush1.bf16.msra.mxu0 %v7846_v14  ;;  %v7942_v14 = vld [vmem:[%s11406_s1 + $0x9d0] ss:$8 sps:$4 sm:$0xff]  }
 0x200   :  { %2893 = vmatprep.subr.bf16.mxu0 %v7854_v15  ;;  %v7947_v15 = vld [vmem:[%s11406_s1 + $0x9e4] ss:$8 sps:$4 sm:$0xff]  }
 0x202   :  { %2883 = vmatmul.mubr.bf16.vlgmr.msra.gmra.mrb[0].mxu0 %v7849_v16  ;;  %v7945_v16 = vld [vmem:[%s11406_s1 + $0x9e0] ss:$8 sps:$4 sm:$0xff]  }
 0x203   :  { %2894 = vmatpush1.bf16.msra.mxu0 %v7852_v17  ;;  %2925 = vmatprep.mubr.bf16.mxu0 %v7902_v18  ;;  %v7950_v17 = vld [vmem:[%s11406_s1 + $0x9f4] ss:$8 sps:$4 sm:$0xff]   ;;  %v7948_v18 = vld [vmem:[%s11406_s1 + $0x9f0] ss:$8 sps:$4 sm:$0xff]  }
 0x204   :  { %2895 = vmatprep.subr.bf16.mxu0 %v7857_v19  ;;  %v7956_v19 = vld [vmem:[%s11406_s1 + $0xa04] ss:$8 sps:$4 sm:$0xff]  }
 0x207   :  { %2896 = vmatpush1.bf16.msra.mxu0 %v7855_v20  ;;  %v7951_v20 = vld [vmem:[%s11407_s0 + $0x48] ss:$100 sps:$4 sm:$0xff]  }
 0x208   :  { %2897 = vmatprep.subr.bf16.mxu0 %v7860_v21  ;;  %v7954_v21 = vld [vmem:[%s11406_s1 + $0xa00] ss:$8 sps:$4 sm:$0xff]  }
 0x20b   :  { %2898 = vmatpush1.bf16.msra.mxu0 %v7858_v22  ;;  %v8004_v22 = vld [vmem:[%s11407_s0 + $0x54] ss:$100 sps:$4 sm:$0xff]  }
 0x20c   :  { %2899 = vmatprep.subr.bf16.mxu0 %v7863_v23  ;;  %v7959_v23 = vld [vmem:[%s11406_s1 + $0xa14] ss:$8 sps:$4 sm:$0xff]  }
 0x20f   :  { %2900 = vmatpush1.bf16.msra.mxu0 %v7861_v24  ;;  %v7957_v24 = vld [vmem:[%s11406_s1 + $0xa10] ss:$8 sps:$4 sm:$0xff]  }
 0x210   :  { %2901 = vmatprep.subr.bf16.mxu0 %v7866_v25  ;;  %v7962_v25 = vld [vmem:[%s11406_s1 + $0xa24] ss:$8 sps:$4 sm:$0xff]  }
 0x213   :  { %2902 = vmatpush1.bf16.msra.mxu0 %v7864_v26  ;;  %v7960_v26 = vld [vmem:[%s11406_s1 + $0xa20] ss:$8 sps:$4 sm:$0xff]  }
 0x214   :  { %2903 = vmatprep.subr.bf16.mxu0 %v7869_v27  ;;  %v7965_v27 = vld [vmem:[%s11406_s1 + $0xa34] ss:$8 sps:$4 sm:$0xff]  }
 0x217   :  { %2904 = vmatpush1.bf16.msra.mxu0 %v7867_v28  ;;  %v7963_v28 = vld [vmem:[%s11406_s1 + $0xa30] ss:$8 sps:$4 sm:$0xff]  }
 0x218   :  { %2905 = vmatprep.subr.bf16.mxu0 %v7872_v29  ;;  %v7968_v29 = vld [vmem:[%s11406_s1 + $0xa44] ss:$8 sps:$4 sm:$0xff]  }
 0x21b   :  { %2906 = vmatpush1.bf16.msra.mxu0 %v7870_v30  ;;  %v7966_v30 = vld [vmem:[%s11406_s1 + $0xa40] ss:$8 sps:$4 sm:$0xff]  }
 0x21c   :  { %2907 = vmatprep.subr.bf16.mxu0 %v7875_v31  ;;  %v7971_v31 = vld [vmem:[%s11406_s1 + $0xa54] ss:$8 sps:$4 sm:$0xff]  }
 0x21f   :  { %2908 = vmatpush1.bf16.msra.mxu0 %v7873_v32  ;;  %v7969_v32 = vld [vmem:[%s11406_s1 + $0xa50] ss:$8 sps:$4 sm:$0xff]  }
 0x220   :  { %2909 = vmatprep.subr.bf16.mxu0 %v7878_v33  ;;  %v7974_v33 = vld [vmem:[%s11406_s1 + $0xa64] ss:$8 sps:$4 sm:$0xff]  }
 0x223   :  { %2910 = vmatpush1.bf16.msra.mxu0 %v7876_v34  ;;  %v8069_v34 = vld [vmem:[%s11408_s5 + $0x4] ss:$100 sps:$4 sm:$0xff]  }
 0x224   :  { %2911 = vmatprep.subr.bf16.mxu0 %v7881_v35  ;;  %v8071_v35 = vld [vmem:[%s11408_s5] ss:$100 sps:$4 sm:$0xff]   ;;  %5700 = vmatprep.subr.bf16.mxu1 %v8069_v34  ;;  %v8038_v34 = vld [vmem:[%s11406_s1 + $0xbb0] ss:$8 sps:$4 sm:$0xff]  }
 0x225   :  { %5701 = vmatpush1.bf16.msra.mxu1 %v8071_v35  ;;  %v8043_v35 = vld [vmem:[%s11406_s1 + $0xbc4] ss:$8 sps:$4 sm:$0xff]  }
 0x227   :  { %2912 = vmatpush1.bf16.msra.mxu0 %v7879_v36  ;;  %v8072_v36 = vld [vmem:[%s11408_s5 + $0xcc] ss:$100 sps:$4 sm:$0xff]  }
 0x228   :  { %2913 = vmatprep.subr.bf16.mxu0 %v7884_v37  ;;  %v7972_v37 = vld [vmem:[%s11406_s1 + $0xa60] ss:$8 sps:$4 sm:$0xff]   ;;  %5702 = vmatprep.subr.bf16.mxu1 %v8072_v36 }
 0x229   :  { %v8041_v36 = vld [vmem:[%s11406_s1 + $0xbc0] ss:$8 sps:$4 sm:$0xff]  }
 0x22b   :  { %2914 = vmatpush1.bf16.msra.mxu0 %v7882_v38  ;;  %v8074_v38 = vld [vmem:[%s11408_s5 + $0xc8] ss:$100 sps:$4 sm:$0xff]  }
 0x22c   :  { %2915 = vmatprep.subr.bf16.mxu0 %v7887_v39  ;;  %v8075_v39 = vld [vmem:[%s11408_s5 + $0x194] ss:$100 sps:$4 sm:$0xff]   ;;  %5703 = vmatpush1.bf16.msra.mxu1 %v8074_v38 }
 0x22d   :  { %5704 = vmatprep.subr.bf16.mxu1 %v8075_v39  ;;  %v8044_v38 = vld [vmem:[%s11406_s1 + $0xbd0] ss:$8 sps:$4 sm:$0xff]   ;;  %v8049_v39 = vld [vmem:[%s11406_s1 + $0xbe4] ss:$8 sps:$4 sm:$0xff]  }
 0x22f   :  { %2916 = vmatpush1.bf16.msra.mxu0 %v7885_v40  ;;  %v7977_v40 = vld [vmem:[%s11406_s1 + $0xa74] ss:$8 sps:$4 sm:$0xff]  }
 0x230   :  { %2917 = vmatprep.subr.bf16.mxu0 %v7890_v41  ;;  %v7975_v41 = vld [vmem:[%s11406_s1 + $0xa70] ss:$8 sps:$4 sm:$0xff]  }
 0x233   :  { %2918 = vmatpush1.bf16.msra.mxu0 %v7888_v42  ;;  %v8077_v42 = vld [vmem:[%s11408_s5 + $0x190] ss:$100 sps:$4 sm:$0xff]  }
 0x234   :  { %2919 = vmatprep.subr.bf16.mxu0 %v7893_v43  ;;  %v8078_v43 = vld [vmem:[%s11408_s5 + $0x25c] ss:$100 sps:$4 sm:$0xff]   ;;  %5705 = vmatpush1.bf16.msra.mxu1 %v8077_v42  ;;  %v8050_v42 = vld [vmem:[%s11406_s1 + $0xbf0] ss:$8 sps:$4 sm:$0xff]  }
 0x235   :  { %5706 = vmatprep.subr.bf16.mxu1 %v8078_v43  ;;  %v8058_v43 = vld [vmem:[%s11406_s1 + $0xc04] ss:$8 sps:$4 sm:$0xff]  }
 0x237   :  { %2920 = vmatpush1.bf16.msra.mxu0 %v7891_v44  ;;  %v7980_v44 = vld [vmem:[%s11406_s1 + $0xa84] ss:$8 sps:$4 sm:$0xff]  }
 0x238   :  { %2921 = vmatprep.subr.bf16.mxu0 %v7896_v45  ;;  %v7978_v45 = vld [vmem:[%s11406_s1 + $0xa80] ss:$8 sps:$4 sm:$0xff]  }
 0x23b   :  { %2922 = vmatpush1.bf16.msra.mxu0 %v7894_v46  ;;  %v8080_v46 = vld [vmem:[%s11408_s5 + $0x258] ss:$100 sps:$4 sm:$0xff]  }
 0x23c   :  { %2923 = vmatprep.subr.bf16.mxu0 %v7899_v47  ;;  %v8081_v47 = vld [vmem:[%s11408_s5 + $0x324] ss:$100 sps:$4 sm:$0xff]   ;;  %5707 = vmatpush1.bf16.msra.mxu1 %v8080_v46  ;;  %v8061_v46 = vld [vmem:[%s11406_s1 + $0xc14] ss:$8 sps:$4 sm:$0xff]  }
 0x23d   :  { %5708 = vmatprep.subr.bf16.mxu1 %v8081_v47  ;;  %v8059_v47 = vld [vmem:[%s11406_s1 + $0xc10] ss:$8 sps:$4 sm:$0xff]  }
 0x23f   :  { %2924 = vmatpush1.bf16.msra.mxu0 %v7897_v48  ;;  %v7983_v48 = vld [vmem:[%s11406_s1 + $0xa94] ss:$8 sps:$4 sm:$0xff]  }
 0x240   :  { %2936 = vmatprep.subr.bf16.mxu0 %v7905_v49  ;;  %v8083_v49 = vld [vmem:[%s11408_s5 + $0x320] ss:$100 sps:$4 sm:$0xff]  }
 0x241   :  { %5709 = vmatpush1.bf16.msra.mxu1 %v8083_v49  ;;  %v8667_v49 = vmov 0  }
 0x242   :  { %2926 = vmatmul.mubr.bf16.vlgmr.msra.gmra.mrb[0].mxu0 %v7900_v50  ;;  %v7981_v50 = vld [vmem:[%s11406_s1 + $0xa90] ss:$8 sps:$4 sm:$0xff]  }
 0x243   :  { %2937 = vmatpush1.bf16.msra.mxu0 %v7903_v51  ;;  %2968 = vmatprep.mubr.bf16.mxu0 %v7953_v52  ;;  %v8084_v51 = vld [vmem:[%s11408_s5 + $0x3ec] ss:$100 sps:$4 sm:$0xff]  }
 0x244   :  { %2938 = vmatprep.subr.bf16.mxu0 %v7908_v53  ;;  %v7986_v52 = vld [vmem:[%s11406_s1 + $0xaa4] ss:$8 sps:$4 sm:$0xff]   ;;  %5710 = vmatprep.subr.bf16.mxu1 %v8084_v51  ;;  %v8067_v51 = vld [vmem:[%s11406_s1 + $0xc34] ss:$8 sps:$4 sm:$0xff]  }
 0x245   :  { %v8086_v53 = vld [vmem:[%s11408_s5 + $0x3e8] ss:$100 sps:$4 sm:$0xff]  }
 0x246   :  { %5711 = vmatpush1.bf16.msra.mxu1 %v8086_v53  ;;  %v8068_v53 = vld [vmem:[%s11407_s0 + $0x60] ss:$100 sps:$4 sm:$0xff]  }
 0x247   :  { %2939 = vmatpush1.bf16.msra.mxu0 %v7906_v54  ;;  %v7984_v54 = vld [vmem:[%s11406_s1 + $0xaa0] ss:$8 sps:$4 sm:$0xff]  }
 0x248   :  { %2940 = vmatprep.subr.bf16.mxu0 %v7911_v55  ;;  %v8087_v55 = vld [vmem:[%s11408_s5 + $0x4b4] ss:$100 sps:$4 sm:$0xff]  }
 0x249   :  { %5712 = vmatprep.subr.bf16.mxu1 %v8087_v55  ;;  %v8101_v55 = vld [vmem:[%s11408_s5 + $0x7d0] ss:$100 sps:$4 sm:$0xff]  }
 0x24b   :  { %2941 = vmatpush1.bf16.msra.mxu0 %v7909_v56  ;;  %v7989_v56 = vld [vmem:[%s11406_s1 + $0xab4] ss:$8 sps:$4 sm:$0xff]  }
 0x24c   :  { %2942 = vmatprep.subr.bf16.mxu0 %v7914_v57  ;;  %v8089_v57 = vld [vmem:[%s11408_s5 + $0x4b0] ss:$100 sps:$4 sm:$0xff]  }
 0x24d   :  { %5713 = vmatpush1.bf16.msra.mxu1 %v8089_v57  ;;  %v8104_v57 = vld [vmem:[%s11408_s5 + $0x898] ss:$100 sps:$4 sm:$0xff]  }
 0x24f   :  { %2943 = vmatpush1.bf16.msra.mxu0 %v7912_v58  ;;  %v7987_v58 = vld [vmem:[%s11406_s1 + $0xab0] ss:$8 sps:$4 sm:$0xff]  }
 0x250   :  { %2944 = vmatprep.subr.bf16.mxu0 %v7917_v59  ;;  %v8090_v59 = vld [vmem:[%s11408_s5 + $0x57c] ss:$100 sps:$4 sm:$0xff]  }
 0x251   :  { %5714 = vmatprep.subr.bf16.mxu1 %v8090_v59  ;;  %v8107_v59 = vld [vmem:[%s11408_s5 + $0x960] ss:$100 sps:$4 sm:$0xff]  }
 0x253   :  { %2945 = vmatpush1.bf16.msra.mxu0 %v7915_v60  ;;  %v7992_v60 = vld [vmem:[%s11406_s1 + $0xac4] ss:$8 sps:$4 sm:$0xff]  }
 0x254   :  { %2946 = vmatprep.subr.bf16.mxu0 %v7920_v61  ;;  %v8092_v61 = vld [vmem:[%s11408_s5 + $0x578] ss:$100 sps:$4 sm:$0xff]  }
 0x255   :  { %5715 = vmatpush1.bf16.msra.mxu1 %v8092_v61  ;;  %v8110_v61 = vld [vmem:[%s11408_s5 + $0xa28] ss:$100 sps:$4 sm:$0xff]  }
 0x257   :  { %2947 = vmatpush1.bf16.msra.mxu0 %v7918_v62  ;;  %v7990_v62 = vld [vmem:[%s11406_s1 + $0xac0] ss:$8 sps:$4 sm:$0xff]  }
 0x258   :  { %2948 = vmatprep.subr.bf16.mxu0 %v7923_v63  ;;  %v8093_v63 = vld [vmem:[%s11408_s5 + $0x644] ss:$100 sps:$4 sm:$0xff]  }
 0x259   :  { %5716 = vmatprep.subr.bf16.mxu1 %v8093_v63  ;;  %v8113_v63 = vld [vmem:[%s11408_s5 + $0xaf0] ss:$100 sps:$4 sm:$0xff]  }
 0x25b   :  { %2949 = vmatpush1.bf16.msra.mxu0 %v7921_v0  ;;  %v7995_v0 = vld [vmem:[%s11406_s1 + $0xad4] ss:$8 sps:$4 sm:$0xff]  }
 0x25c   :  { %2950 = vmatprep.subr.bf16.mxu0 %v7926_v1  ;;  %v8095_v1 = vld [vmem:[%s11408_s5 + $0x640] ss:$100 sps:$4 sm:$0xff]  }
 0x25d   :  { %5717 = vmatpush1.bf16.msra.mxu1 %v8095_v1  ;;  %v8116_v1 = vld [vmem:[%s11408_s5 + $0xbb8] ss:$100 sps:$4 sm:$0xff]  }
 0x25f   :  { %2951 = vmatpush1.bf16.msra.mxu0 %v7924_v2  ;;  %v7993_v2 = vld [vmem:[%s11406_s1 + $0xad0] ss:$8 sps:$4 sm:$0xff]  }
 0x260   :  { %2952 = vmatprep.subr.bf16.mxu0 %v7929_v3  ;;  %v8096_v3 = vld [vmem:[%s11408_s5 + $0x70c] ss:$100 sps:$4 sm:$0xff]  }
 0x261   :  { %5718 = vmatprep.subr.bf16.mxu1 %v8096_v3  ;;  %v8120_v3 = vld [vmem:[%s11408_s5 + $0xc] ss:$100 sps:$4 sm:$0xff]  }
 0x263   :  { %2953 = vmatpush1.bf16.msra.mxu0 %v7927_v4  ;;  %v7998_v4 = vld [vmem:[%s11406_s1 + $0xae4] ss:$8 sps:$4 sm:$0xff]  }
 0x264   :  { %2954 = vmatprep.subr.bf16.mxu0 %v7932_v5  ;;  %v8098_v5 = vld [vmem:[%s11408_s5 + $0x708] ss:$100 sps:$4 sm:$0xff]  }
 0x265   :  { %5719 = vmatpush1.bf16.msra.mxu1 %v8098_v5 }
 0x267   :  { %2955 = vmatpush1.bf16.msra.mxu0 %v7930_v6  ;;  %v7996_v6 = vld [vmem:[%s11406_s1 + $0xae0] ss:$8 sps:$4 sm:$0xff]  }
 0x268   :  { %2956 = vmatprep.subr.bf16.mxu0 %v7935_v7  ;;  %v8001_v7 = vld [vmem:[%s11406_s1 + $0xaf4] ss:$8 sps:$4 sm:$0xff]  }
 0x26b   :  { %2957 = vmatpush1.bf16.msra.mxu0 %v7933_v8  ;;  %v7999_v8 = vld [vmem:[%s11406_s1 + $0xaf0] ss:$8 sps:$4 sm:$0xff]  }
 0x26c   :  { %2958 = vmatprep.subr.bf16.mxu0 %v7938_v9  ;;  %v8007_v9 = vld [vmem:[%s11406_s1 + $0xb04] ss:$8 sps:$4 sm:$0xff]  }
 0x26f   :  { %2959 = vmatpush1.bf16.msra.mxu0 %v7936_v10  ;;  %v8002_v10 = vld [vmem:[%s11407_s0 + $0x50] ss:$100 sps:$4 sm:$0xff]  }
 0x270   :  { %2960 = vmatprep.subr.bf16.mxu0 %v7941_v11  ;;  %v8005_v11 = vld [vmem:[%s11406_s1 + $0xb00] ss:$8 sps:$4 sm:$0xff]  }
 0x273   :  { %2961 = vmatpush1.bf16.msra.mxu0 %v7939_v12  ;;  %v8055_v12 = vld [vmem:[%s11407_s0 + $0x5c] ss:$100 sps:$4 sm:$0xff]  }
 0x274   :  { %2962 = vmatprep.subr.bf16.mxu0 %v7944_v13  ;;  %v8010_v13 = vld [vmem:[%s11406_s1 + $0xb14] ss:$8 sps:$4 sm:$0xff]  }
 0x277   :  { %2963 = vmatpush1.bf16.msra.mxu0 %v7942_v14  ;;  %v8008_v14 = vld [vmem:[%s11406_s1 + $0xb10] ss:$8 sps:$4 sm:$0xff]  }
 0x278   :  { %2964 = vmatprep.subr.bf16.mxu0 %v7947_v15  ;;  %v8013_v15 = vld [vmem:[%s11406_s1 + $0xb24] ss:$8 sps:$4 sm:$0xff]  }
 0x27b   :  { %2965 = vmatpush1.bf16.msra.mxu0 %v7945_v16  ;;  %v8011_v16 = vld [vmem:[%s11406_s1 + $0xb20] ss:$8 sps:$4 sm:$0xff]  }
 0x27c   :  { %2966 = vmatprep.subr.bf16.mxu0 %v7950_v17  ;;  %v8016_v17 = vld [vmem:[%s11406_s1 + $0xb34] ss:$8 sps:$4 sm:$0xff]  }
 0x27f   :  { %2967 = vmatpush1.bf16.msra.mxu0 %v7948_v18  ;;  %v8014_v18 = vld [vmem:[%s11406_s1 + $0xb30] ss:$8 sps:$4 sm:$0xff]  }
 0x280   :  { %2979 = vmatprep.subr.bf16.mxu0 %v7956_v19  ;;  %v8019_v19 = vld [vmem:[%s11406_s1 + $0xb44] ss:$8 sps:$4 sm:$0xff]  }
 0x282   :  { %2969 = vmatmul.mubr.bf16.vlgmr.msra.gmra.mrb[0].mxu0 %v7951_v20  ;;  %v8017_v20 = vld [vmem:[%s11406_s1 + $0xb40] ss:$8 sps:$4 sm:$0xff]  }
 0x283   :  { %2980 = vmatpush1.bf16.msra.mxu0 %v7954_v21  ;;  %3011 = vmatprep.mubr.bf16.mxu0 %v8004_v22  ;;  %v8022_v21 = vld [vmem:[%s11406_s1 + $0xb54] ss:$8 sps:$4 sm:$0xff]   ;;  %v8020_v22 = vld [vmem:[%s11406_s1 + $0xb50] ss:$8 sps:$4 sm:$0xff]  }
 0x284   :  { %2981 = vmatprep.subr.bf16.mxu0 %v7959_v23  ;;  %v8025_v23 = vld [vmem:[%s11406_s1 + $0xb64] ss:$8 sps:$4 sm:$0xff]  }
 0x287   :  { %2982 = vmatpush1.bf16.msra.mxu0 %v7957_v24  ;;  %v8023_v24 = vld [vmem:[%s11406_s1 + $0xb60] ss:$8 sps:$4 sm:$0xff]  }
 0x288   :  { %2983 = vmatprep.subr.bf16.mxu0 %v7962_v25  ;;  %v8028_v25 = vld [vmem:[%s11406_s1 + $0xb74] ss:$8 sps:$4 sm:$0xff]  }
 0x28b   :  { %2984 = vmatpush1.bf16.msra.mxu0 %v7960_v26  ;;  %v8026_v26 = vld [vmem:[%s11406_s1 + $0xb70] ss:$8 sps:$4 sm:$0xff]  }
 0x28c   :  { %2985 = vmatprep.subr.bf16.mxu0 %v7965_v27  ;;  %v8031_v27 = vld [vmem:[%s11406_s1 + $0xb84] ss:$8 sps:$4 sm:$0xff]  }
 0x28f   :  { %2986 = vmatpush1.bf16.msra.mxu0 %v7963_v28  ;;  %v8029_v28 = vld [vmem:[%s11406_s1 + $0xb80] ss:$8 sps:$4 sm:$0xff]  }
 0x290   :  { %2987 = vmatprep.subr.bf16.mxu0 %v7968_v29  ;;  %v8034_v29 = vld [vmem:[%s11406_s1 + $0xb94] ss:$8 sps:$4 sm:$0xff]  }
 0x293   :  { %2988 = vmatpush1.bf16.msra.mxu0 %v7966_v30  ;;  %v8032_v30 = vld [vmem:[%s11406_s1 + $0xb90] ss:$8 sps:$4 sm:$0xff]  }
 0x294   :  { %2989 = vmatprep.subr.bf16.mxu0 %v7971_v31  ;;  %v8037_v31 = vld [vmem:[%s11406_s1 + $0xba4] ss:$8 sps:$4 sm:$0xff]  }
 0x297   :  { %2990 = vmatpush1.bf16.msra.mxu0 %v7969_v32  ;;  %v8035_v32 = vld [vmem:[%s11406_s1 + $0xba0] ss:$8 sps:$4 sm:$0xff]  }
 0x298   :  { %2991 = vmatprep.subr.bf16.mxu0 %v7974_v33  ;;  %v8040_v33 = vld [vmem:[%s11406_s1 + $0xbb4] ss:$8 sps:$4 sm:$0xff]  }
 0x29b   :  { %2992 = vmatpush1.bf16.msra.mxu0 %v7972_v37  ;;  %v8046_v37 = vld [vmem:[%s11406_s1 + $0xbd4] ss:$8 sps:$4 sm:$0xff]  }
 0x29c   :  { %2993 = vmatprep.subr.bf16.mxu0 %v7977_v40  ;;  %v8047_v40 = vld [vmem:[%s11406_s1 + $0xbe0] ss:$8 sps:$4 sm:$0xff]  }
 0x29f   :  { %2994 = vmatpush1.bf16.msra.mxu0 %v7975_v41  ;;  %v8052_v41 = vld [vmem:[%s11406_s1 + $0xbf4] ss:$8 sps:$4 sm:$0xff]  }
 0x2a0   :  { %2995 = vmatprep.subr.bf16.mxu0 %v7980_v44  ;;  %v8053_v44 = vld [vmem:[%s11407_s0 + $0x58] ss:$100 sps:$4 sm:$0xff]  }
 0x2a3   :  { %2996 = vmatpush1.bf16.msra.mxu0 %v7978_v45  ;;  %v8056_v45 = vld [vmem:[%s11406_s1 + $0xc00] ss:$8 sps:$4 sm:$0xff]  }
 0x2a4   :  { %2997 = vmatprep.subr.bf16.mxu0 %v7983_v48  ;;  %v8064_v48 = vld [vmem:[%s11406_s1 + $0xc24] ss:$8 sps:$4 sm:$0xff]  }
 0x2a7   :  { %2998 = vmatpush1.bf16.msra.mxu0 %v7981_v50  ;;  %v8062_v50 = vld [vmem:[%s11406_s1 + $0xc20] ss:$8 sps:$4 sm:$0xff]  }
 0x2a8   :  { %2999 = vmatprep.subr.bf16.mxu0 %v7986_v52  ;;  %v8065_v52 = vld [vmem:[%s11406_s1 + $0xc30] ss:$8 sps:$4 sm:$0xff]  }
 0x2ab   :  { %3000 = vmatpush1.bf16.msra.mxu0 %v7984_v54  ;;  %v8099_v54 = vld [vmem:[%s11408_s5 + $0x7d4] ss:$100 sps:$4 sm:$0xff]  }
 0x2ac   :  { %3001 = vmatprep.subr.bf16.mxu0 %v7989_v56  ;;  %5720 = vmatprep.subr.bf16.mxu1 %v8099_v54  ;;  %v8102_v56 = vld [vmem:[%s11408_s5 + $0x89c] ss:$100 sps:$4 sm:$0xff]  }
 0x2ad   :  { %5721 = vmatpush1.bf16.msra.mxu1 %v8101_v55  ;;  %v8151_v54 = vld [vmem:[%s11408_s5 + $0x8a0] ss:$100 sps:$4 sm:$0xff]   ;;  %v8156_v55 = vld [vmem:[%s11408_s5 + $0x96c] ss:$100 sps:$4 sm:$0xff]  }
 0x2ae   :  { %5722 = vmatprep.subr.bf16.mxu1 %v8102_v56  ;;  %v8154_v56 = vld [vmem:[%s11408_s5 + $0x968] ss:$100 sps:$4 sm:$0xff]  }
 0x2af   :  { %3002 = vmatpush1.bf16.msra.mxu0 %v7987_v58  ;;  %v8105_v58 = vld [vmem:[%s11408_s5 + $0x964] ss:$100 sps:$4 sm:$0xff]  }
 0x2b0   :  { %3003 = vmatprep.subr.bf16.mxu0 %v7992_v60  ;;  %v8108_v60 = vld [vmem:[%s11408_s5 + $0xa2c] ss:$100 sps:$4 sm:$0xff]  }
 0x2b1   :  { %5723 = vmatpush1.bf16.msra.mxu1 %v8104_v57  ;;  %v8159_v57 = vld [vmem:[%s11408_s5 + $0xa34] ss:$100 sps:$4 sm:$0xff]  }
 0x2b2   :  { %5724 = vmatprep.subr.bf16.mxu1 %v8105_v58  ;;  %v8157_v58 = vld [vmem:[%s11408_s5 + $0xa30] ss:$100 sps:$4 sm:$0xff]  }
 0x2b3   :  { %3004 = vmatpush1.bf16.msra.mxu0 %v7990_v62  ;;  %v8111_v62 = vld [vmem:[%s11408_s5 + $0xaf4] ss:$100 sps:$4 sm:$0xff]  }
 0x2b4   :  { %3005 = vmatprep.subr.bf16.mxu0 %v7995_v0  ;;  %v8114_v0 = vld [vmem:[%s11408_s5 + $0xbbc] ss:$100 sps:$4 sm:$0xff]  }
 0x2b5   :  { %5725 = vmatpush1.bf16.msra.mxu1 %v8107_v59  ;;  %v8162_v59 = vld [vmem:[%s11408_s5 + $0xafc] ss:$100 sps:$4 sm:$0xff]  }
 0x2b6   :  { %5726 = vmatprep.subr.bf16.mxu1 %v8108_v60  ;;  %v8160_v60 = vld [vmem:[%s11408_s5 + $0xaf8] ss:$100 sps:$4 sm:$0xff]  }
 0x2b7   :  { %3006 = vmatpush1.bf16.msra.mxu0 %v7993_v2  ;;  %v10068_v2 = vld [vmem:[%s11409_s4] sm:$0xff]  }
 0x2b8   :  { %3007 = vmatprep.subr.bf16.mxu0 %v7998_v4  ;;  %5732 = vmatprep.mubr.bf16.mxu1 %v10068_v2  ;;  %v450_v4 = vlaneseq }
 0x2b9   :  { %5727 = vmatpush1.bf16.msra.mxu1 %v8110_v61  ;;  %v8165_v61 = vld [vmem:[%s11408_s5 + $0xbc4] ss:$100 sps:$4 sm:$0xff]  }
 0x2ba   :  { %5728 = vmatprep.subr.bf16.mxu1 %v8111_v62  ;;  %v10074_v5 = vshrl.u32 %v450_v4, 7  ;;  %v8163_v62 = vld [vmem:[%s11408_s5 + $0xbc0] ss:$100 sps:$4 sm:$0xff]  }
 0x2bb   :  { %3008 = vmatpush1.bf16.msra.mxu0 %v7996_v6  ;;  %v8174_v4 = vld [vmem:[%s11408_s5 + $0x1a4] ss:$100 sps:$4 sm:$0xff]  }
 0x2bc   :  { %3009 = vmatprep.subr.bf16.mxu0 %v8001_v7  ;;  %v10077_v6 = vsub.s32 0, %v10074_v5  ;;  %v448_v7 = vld [vmem:[%s11410_s2] sm:$0x3] }
 0x2bd   :  { %5729 = vmatpush1.bf16.msra.mxu1 %v8113_v63  ;;  %v8168_v63 = vld [vmem:[%s11408_s5 + $0x14] ss:$100 sps:$4 sm:$0xff]  }
 0x2be   :  { %5730 = vmatprep.subr.bf16.mxu1 %v8114_v0  ;;  %v8166_v0 = vld [vmem:[%s11408_s5 + $0x10] ss:$100 sps:$4 sm:$0xff]  }
 0x2bf   :  { %3010 = vmatpush1.bf16.msra.mxu0 %v7999_v8  ;;  %v10083_v8 = vsub.s32 1, %v10074_v5 }
 0x2c0   :  { %3022 = vmatprep.subr.bf16.mxu0 %v8007_v9  ;;  %v453_v9 = vrot.slane %v448_v7, %v10077_v6 }
 0x2c1   :  { %5731 = vmatpush1.bf16.msra.mxu1 %v8116_v1  ;;  %v8171_v1 = vld [vmem:[%s11408_s5 + $0xdc] ss:$100 sps:$4 sm:$0xff]  }
 0x2c2   :  { %3012 = vmatmul.mubr.bf16.vlgmr.msra.gmra.mrb[0].mxu0 %v8002_v10  ;;  %5743 = vmatprep.subr.bf16.mxu1 %v8120_v3  ;;  %v457_v10 = vrot.slane %v448_v7, %v10083_v8  ;;  %v8169_v3 = vld [vmem:[%s11408_s5 + $0xd8] ss:$100 sps:$4 sm:$0xff]   ;;  %v8172_v7 = vld [vmem:[%s11408_s5 + $0x1a0] ss:$100 sps:$4 sm:$0xff]  }
 0x2c3   :  { %3023 = vmatpush1.bf16.msra.mxu0 %v8005_v11  ;;  %3054 = vmatprep.mubr.bf16.mxu0 %v8055_v12 }
 0x2c4   :  { %3024 = vmatprep.subr.bf16.mxu0 %v8010_v13 }
 0x2c7   :  { %3025 = vmatpush1.bf16.msra.mxu0 %v8008_v14 }
 0x2c8   :  { %3026 = vmatprep.subr.bf16.mxu0 %v8013_v15 }
 0x2cb   :  { %3027 = vmatpush1.bf16.msra.mxu0 %v8011_v16 }
 0x2cc   :  { %3028 = vmatprep.subr.bf16.mxu0 %v8016_v17 }
 0x2cf   :  { %3029 = vmatpush1.bf16.msra.mxu0 %v8014_v18 }
 0x2d0   :  { %3030 = vmatprep.subr.bf16.mxu0 %v8019_v19 }
 0x2d3   :  { %3031 = vmatpush1.bf16.msra.mxu0 %v8017_v20 }
 0x2d4   :  { %3032 = vmatprep.subr.bf16.mxu0 %v8022_v21 }
 0x2d7   :  { %3033 = vmatpush1.bf16.msra.mxu0 %v8020_v22 }
 0x2d8   :  { %3034 = vmatprep.subr.bf16.mxu0 %v8025_v23  ;;  %v3114_v23 = vld [vmem:[%s11412_s3] sm:$0xff] }
 0x2db   :  { %3035 = vmatpush1.bf16.msra.mxu0 %v8023_v24 }
 0x2dc   :  { %3036 = vmatprep.subr.bf16.mxu0 %v8028_v25  ;;  %v3115_v25 = vld [vmem:[%s11412_s3 + $0x8] sm:$0xff] }
 0x2df   :  { %3037 = vmatpush1.bf16.msra.mxu0 %v8026_v26 }
 0x2e0   :  { %3038 = vmatprep.subr.bf16.mxu0 %v8031_v27 }
 0x2e3   :  { %3039 = vmatpush1.bf16.msra.mxu0 %v8029_v28 }
 0x2e4   :  { %3040 = vmatprep.subr.bf16.mxu0 %v8034_v29 }
 0x2e7   :  { %3041 = vmatpush1.bf16.msra.mxu0 %v8032_v30 }
 0x2e8   :  { %3042 = vmatprep.subr.bf16.mxu0 %v8037_v31  ;;  %v8118_v31 = vld [vmem:[%s11408_s5 + $0x8] ss:$100 sps:$4 sm:$0xff]  }
 0x2eb   :  { %3043 = vmatpush1.bf16.msra.mxu0 %v8035_v32 }
 0x2ec   :  { %3044 = vmatprep.subr.bf16.mxu0 %v8040_v33  ;;  %v8123_v33 = vld [vmem:[%s11408_s5 + $0xd4] ss:$100 sps:$4 sm:$0xff]  }
 0x2ef   :  { %3045 = vmatpush1.bf16.msra.mxu0 %v8038_v34  ;;  %v8121_v34 = vld [vmem:[%s11408_s5 + $0xd0] ss:$100 sps:$4 sm:$0xff]  }
 0x2f0   :  { %3046 = vmatprep.subr.bf16.mxu0 %v8043_v35  ;;  %v8126_v35 = vld [vmem:[%s11408_s5 + $0x19c] ss:$100 sps:$4 sm:$0xff]  }
 0x2f3   :  { %3047 = vmatpush1.bf16.msra.mxu0 %v8041_v36  ;;  %v8124_v36 = vld [vmem:[%s11408_s5 + $0x198] ss:$100 sps:$4 sm:$0xff]  }
 0x2f4   :  { %3048 = vmatprep.subr.bf16.mxu0 %v8046_v37  ;;  %v8129_v37 = vld [vmem:[%s11408_s5 + $0x264] ss:$100 sps:$4 sm:$0xff]  }
 0x2f7   :  { %3049 = vmatpush1.bf16.msra.mxu0 %v8044_v38  ;;  %v8127_v38 = vld [vmem:[%s11408_s5 + $0x260] ss:$100 sps:$4 sm:$0xff]  }
 0x2f8   :  { %3050 = vmatprep.subr.bf16.mxu0 %v8049_v39  ;;  %v8132_v39 = vld [vmem:[%s11408_s5 + $0x32c] ss:$100 sps:$4 sm:$0xff]  }
 0x2fb   :  { %3051 = vmatpush1.bf16.msra.mxu0 %v8047_v40  ;;  %v8130_v40 = vld [vmem:[%s11408_s5 + $0x328] ss:$100 sps:$4 sm:$0xff]  }
 0x2fc   :  { %3052 = vmatprep.subr.bf16.mxu0 %v8052_v41  ;;  %v8135_v41 = vld [vmem:[%s11408_s5 + $0x3f4] ss:$100 sps:$4 sm:$0xff]  }
 0x2ff   :  { %3053 = vmatpush1.bf16.msra.mxu0 %v8050_v42  ;;  %v8133_v42 = vld [vmem:[%s11408_s5 + $0x3f0] ss:$100 sps:$4 sm:$0xff]  }
 0x300   :  { %3065 = vmatprep.subr.bf16.mxu0 %v8058_v43  ;;  %v8138_v43 = vld [vmem:[%s11408_s5 + $0x4bc] ss:$100 sps:$4 sm:$0xff]  }
 0x302   :  { %3055 = vmatmul.mubr.bf16.vlgmr.msra.gmra.mrb[0].mxu0 %v8053_v44  ;;  %v8136_v44 = vld [vmem:[%s11408_s5 + $0x4b8] ss:$100 sps:$4 sm:$0xff]  }
 0x303   :  { %3066 = vmatpush1.bf16.msra.mxu0 %v8056_v45  ;;  %3097 = vmatprep.mubr.bf16.mxu0 %v8667_v49  ;;  %v8141_v45 = vld [vmem:[%s11408_s5 + $0x584] ss:$100 sps:$4 sm:$0xff]   ;;  %v8147_v49 = vld [vmem:[%s11408_s5 + $0x714] ss:$100 sps:$4 sm:$0xff]  }
 0x304   :  { %3067 = vmatprep.subr.bf16.mxu0 %v8061_v46  ;;  %v8139_v46 = vld [vmem:[%s11408_s5 + $0x580] ss:$100 sps:$4 sm:$0xff]  }
 0x307   :  { %3068 = vmatpush1.bf16.msra.mxu0 %v8059_v47  ;;  %v8144_v47 = vld [vmem:[%s11408_s5 + $0x64c] ss:$100 sps:$4 sm:$0xff]  }
 0x308   :  { %3069 = vmatprep.subr.bf16.mxu0 %v8064_v48  ;;  %v8142_v48 = vld [vmem:[%s11408_s5 + $0x648] ss:$100 sps:$4 sm:$0xff]  }
 0x30b   :  { %3070 = vmatpush1.bf16.msra.mxu0 %v8062_v50  ;;  %v8145_v50 = vld [vmem:[%s11408_s5 + $0x710] ss:$100 sps:$4 sm:$0xff]  }
 0x30c   :  { %3071 = vmatprep.subr.bf16.mxu0 %v8067_v51  ;;  %v8150_v51 = vld [vmem:[%s11408_s5 + $0x7dc] ss:$100 sps:$4 sm:$0xff]  }
 0x30f   :  { %3072 = vmatpush1.bf16.msra.mxu0 %v8065_v52  ;;  %v8148_v52 = vld [vmem:[%s11408_s5 + $0x7d8] ss:$100 sps:$4 sm:$0xff]  }
 0x312   :  { %6914 = vmatmul.mubr.msk.bf16.vlgmr.msra.gmra.mrb[0].mxu0 %vm2545_vm0, %v8068_v53  ;;  %v8153_v53 = vld [vmem:[%s11408_s5 + $0x8a4] ss:$100 sps:$4 sm:$0xff]  }
 0x3e5   :  { %v3099_v11 = vpop.f32.mrb[0].mxu0 }
 0x3e6   :  { %v7391_v12 = vadd.f32 %v3099_v11, %v453_v9  ;;  %v3101_v13 = vpop.f32.mrb[1].mxu0  ;;  %v8180_v11 = vld [vmem:[%s11408_s5 + $0x334] ss:$100 sps:$4 sm:$0xff]  }
 0x3e7   :  { %v7392_v14 = vadd.f32 %v3101_v13, %v457_v10  ;;  %v3103_v15 = vpop.f32.mrb[2].mxu0  ;;  %v8183_v13 = vld [vmem:[%s11408_s5 + $0x3fc] ss:$100 sps:$4 sm:$0xff]  }
 0x3e8   :  { %3120 = vst [vmem:[%s11411_s7] sm:$0xff] %v7391_v12  ;;  %v7393_v16 = vadd.f32 %v3103_v15, %v453_v9  ;;  %v3105_v17 = vpop.f32.mrb[3].mxu0  ;;  %v8177_v9 = vld [vmem:[%s11408_s5 + $0x26c] ss:$100 sps:$4 sm:$0xff]   ;;  %v8186_v15 = vld [vmem:[%s11408_s5 + $0x4c4] ss:$100 sps:$4 sm:$0xff]  }
 0x3e9   :  { %v3108_v18 = vmul.f32 0.5, %v7392_v14  ;;  %3121 = vst [vmem:[%s11411_s7 + $0x8] sm:$0xff] %v7392_v14  ;;  %v7394_v19 = vadd.f32 %v3105_v17, %v457_v10  ;;  %v8175_v10 = vld [vmem:[%s11408_s5 + $0x268] ss:$100 sps:$4 sm:$0xff]   ;;  %v8181_v14 = vld [vmem:[%s11408_s5 + $0x3f8] ss:$100 sps:$4 sm:$0xff]  }
 0x3ea   :  { %3122 = vst [vmem:[%s11411_s7 + $0x10] sm:$0xff] %v7393_v16  ;;  %v8189_v17 = vld [vmem:[%s11408_s5 + $0x58c] ss:$100 sps:$4 sm:$0xff]  }
 0x3eb   :  { %v3110_v20 = vmul.f32 1.442695, %v3108_v18  ;;  %v3109_v21 = vmul.f32 0.5, %v7394_v19  ;;  %3123 = vst [vmem:[%s11411_s7 + $0x18] sm:$0xff] %v7394_v19  ;;  %v8187_v18 = vld [vmem:[%s11408_s5 + $0x588] ss:$100 sps:$4 sm:$0xff]  }
 0x3ec   :  { %v8192_v19 = vld [vmem:[%s11408_s5 + $0x654] ss:$100 sps:$4 sm:$0xff]  }
 0x3ed   :  { %8662 = vpow2.f32 %v3110_v20  ;;  %v3112_v22 = vmul.f32 1.442695, %v3109_v21  ;;  %v8190_v20 = vld [vmem:[%s11408_s5 + $0x650] ss:$100 sps:$4 sm:$0xff]   ;;  %v8195_v21 = vld [vmem:[%s11408_s5 + $0x71c] ss:$100 sps:$4 sm:$0xff]  }
 0x3ef   :  { %8664 = vpow2.f32 %v3112_v22  ;;  %v8193_v22 = vld [vmem:[%s11408_s5 + $0x718] ss:$100 sps:$4 sm:$0xff]  }
 0x3f7   :  { %v8663_v24 = vpop.eup %8662 }
 0x3f8   :  { %v3116_v26 = vmul.f32 %v8663_v24, %v3114_v23  ;;  %v8198_v23 = vld [vmem:[%s11408_s5 + $0x7e4] ss:$100 sps:$4 sm:$0xff]  }
 0x3f9   :  { %v8665_v27 = vpop.eup %8664  ;;  %v8196_v24 = vld [vmem:[%s11408_s5 + $0x7e0] ss:$100 sps:$4 sm:$0xff]  }
 0x3fa   :  { %v3118_v28 = vadd.f32 %v7391_v12, %v3116_v26  ;;  %v3117_v29 = vmul.f32 %v8665_v27, %v3115_v25  ;;  %v8178_v12 = vld [vmem:[%s11408_s5 + $0x330] ss:$100 sps:$4 sm:$0xff]   ;;  %v8199_v26 = vld [vmem:[%s11408_s5 + $0x8a8] ss:$100 sps:$4 sm:$0xff]  }
 0x3fb   :  { %v8201_v25 = vld [vmem:[%s11408_s5 + $0x8ac] ss:$100 sps:$4 sm:$0xff]   ;;  %v8204_v27 = vld [vmem:[%s11408_s5 + $0x974] ss:$100 sps:$4 sm:$0xff]  }
 0x3fc   :  { %3124 = vst [vmem:[%s11413_s8] sm:$0xff] %v3118_v28  ;;  %v3119_v30 = vadd.f32 %v7393_v16, %v3117_v29  ;;  %v8184_v16 = vld [vmem:[%s11408_s5 + $0x4c0] ss:$100 sps:$4 sm:$0xff]  }
 0x3fd   :  { %v8207_v29 = vld [vmem:[%s11408_s5 + $0xa3c] ss:$100 sps:$4 sm:$0xff]  }
 0x3fe   :  { %3125 = vst [vmem:[%s11413_s8 + $0x8] sm:$0xff] %v3119_v30  ;;  %v10114_v32 = vpack.c.bf16 %v3119_v30, %v3118_v28  ;;  %v8202_v28 = vld [vmem:[%s11408_s5 + $0x970] ss:$100 sps:$4 sm:$0xff]   ;;  %v8205_v30 = vld [vmem:[%s11408_s5 + $0xa38] ss:$100 sps:$4 sm:$0xff]  }
 0x400   :  { %5733 = vmatmul.mubr.bf16.vlgmr.msra.gmra.mrb[0].mxu1 %v10114_v32 }
 0x401   :  { %5744 = vmatpush1.bf16.msra.mxu1 %v8118_v31  ;;  %5775 = vmatprep.mubr.bf16.mxu1 %v10068_v2  ;;  %v8210_v31 = vld [vmem:[%s11408_s5 + $0xb04] ss:$100 sps:$4 sm:$0xff]  }
 0x402   :  { %5745 = vmatprep.subr.bf16.mxu1 %v8123_v33  ;;  %v8208_v33 = vld [vmem:[%s11408_s5 + $0xb00] ss:$100 sps:$4 sm:$0xff]  }
 0x405   :  { %5746 = vmatpush1.bf16.msra.mxu1 %v8121_v34  ;;  %v8213_v34 = vld [vmem:[%s11408_s5 + $0xbcc] ss:$100 sps:$4 sm:$0xff]  }
 0x406   :  { %5747 = vmatprep.subr.bf16.mxu1 %v8126_v35  ;;  %v8211_v35 = vld [vmem:[%s11408_s5 + $0xbc8] ss:$100 sps:$4 sm:$0xff]  }
 0x409   :  { %5748 = vmatpush1.bf16.msra.mxu1 %v8124_v36  ;;  %v8216_v36 = vld [vmem:[%s11408_s5 + $0x1c] ss:$100 sps:$4 sm:$0xff]  }
 0x40a   :  { %5749 = vmatprep.subr.bf16.mxu1 %v8129_v37  ;;  %v8214_v37 = vld [vmem:[%s11408_s5 + $0x18] ss:$100 sps:$4 sm:$0xff]  }
 0x40d   :  { %5750 = vmatpush1.bf16.msra.mxu1 %v8127_v38  ;;  %v8219_v38 = vld [vmem:[%s11408_s5 + $0xe4] ss:$100 sps:$4 sm:$0xff]  }
 0x40e   :  { %5751 = vmatprep.subr.bf16.mxu1 %v8132_v39  ;;  %v8217_v39 = vld [vmem:[%s11408_s5 + $0xe0] ss:$100 sps:$4 sm:$0xff]  }
 0x411   :  { %5752 = vmatpush1.bf16.msra.mxu1 %v8130_v40  ;;  %v8222_v40 = vld [vmem:[%s11408_s5 + $0x1ac] ss:$100 sps:$4 sm:$0xff]  }
 0x412   :  { %5753 = vmatprep.subr.bf16.mxu1 %v8135_v41  ;;  %v8220_v41 = vld [vmem:[%s11408_s5 + $0x1a8] ss:$100 sps:$4 sm:$0xff]  }
 0x415   :  { %5754 = vmatpush1.bf16.msra.mxu1 %v8133_v42  ;;  %v8225_v42 = vld [vmem:[%s11408_s5 + $0x274] ss:$100 sps:$4 sm:$0xff]  }
 0x416   :  { %5755 = vmatprep.subr.bf16.mxu1 %v8138_v43  ;;  %v8223_v43 = vld [vmem:[%s11408_s5 + $0x270] ss:$100 sps:$4 sm:$0xff]  }
 0x419   :  { %5756 = vmatpush1.bf16.msra.mxu1 %v8136_v44  ;;  %v8228_v44 = vld [vmem:[%s11408_s5 + $0x33c] ss:$100 sps:$4 sm:$0xff]  }
 0x41a   :  { %5757 = vmatprep.subr.bf16.mxu1 %v8141_v45  ;;  %v8226_v45 = vld [vmem:[%s11408_s5 + $0x338] ss:$100 sps:$4 sm:$0xff]  }
 0x41d   :  { %5758 = vmatpush1.bf16.msra.mxu1 %v8139_v46  ;;  %v8231_v46 = vld [vmem:[%s11408_s5 + $0x404] ss:$100 sps:$4 sm:$0xff]  }
 0x41e   :  { %5759 = vmatprep.subr.bf16.mxu1 %v8144_v47  ;;  %v8229_v47 = vld [vmem:[%s11408_s5 + $0x400] ss:$100 sps:$4 sm:$0xff]  }
 0x421   :  { %5760 = vmatpush1.bf16.msra.mxu1 %v8142_v48  ;;  %v8234_v48 = vld [vmem:[%s11408_s5 + $0x4cc] ss:$100 sps:$4 sm:$0xff]  }
 0x422   :  { %5761 = vmatprep.subr.bf16.mxu1 %v8147_v49  ;;  %v8232_v49 = vld [vmem:[%s11408_s5 + $0x4c8] ss:$100 sps:$4 sm:$0xff]  }
 0x425   :  { %5762 = vmatpush1.bf16.msra.mxu1 %v8145_v50  ;;  %v8237_v50 = vld [vmem:[%s11408_s5 + $0x594] ss:$100 sps:$4 sm:$0xff]  }
 0x426   :  { %5763 = vmatprep.subr.bf16.mxu1 %v8150_v51  ;;  %v8235_v51 = vld [vmem:[%s11408_s5 + $0x590] ss:$100 sps:$4 sm:$0xff]  }
 0x429   :  { %5764 = vmatpush1.bf16.msra.mxu1 %v8148_v52  ;;  %v8240_v52 = vld [vmem:[%s11408_s5 + $0x65c] ss:$100 sps:$4 sm:$0xff]  }
 0x42a   :  { %5765 = vmatprep.subr.bf16.mxu1 %v8153_v53  ;;  %v8238_v53 = vld [vmem:[%s11408_s5 + $0x658] ss:$100 sps:$4 sm:$0xff]  }
 0x42d   :  { %5766 = vmatpush1.bf16.msra.mxu1 %v8151_v54  ;;  %v8243_v54 = vld [vmem:[%s11408_s5 + $0x724] ss:$100 sps:$4 sm:$0xff]  }
 0x42e   :  { %5767 = vmatprep.subr.bf16.mxu1 %v8156_v55  ;;  %v8241_v55 = vld [vmem:[%s11408_s5 + $0x720] ss:$100 sps:$4 sm:$0xff]  }
 0x431   :  { %5768 = vmatpush1.bf16.msra.mxu1 %v8154_v56  ;;  %v8246_v56 = vld [vmem:[%s11408_s5 + $0x7ec] ss:$100 sps:$4 sm:$0xff]  }
 0x432   :  { %5769 = vmatprep.subr.bf16.mxu1 %v8159_v57  ;;  %v8244_v57 = vld [vmem:[%s11408_s5 + $0x7e8] ss:$100 sps:$4 sm:$0xff]  }
 0x435   :  { %5770 = vmatpush1.bf16.msra.mxu1 %v8157_v58  ;;  %v8249_v58 = vld [vmem:[%s11408_s5 + $0x8b4] ss:$100 sps:$4 sm:$0xff]  }
 0x436   :  { %5771 = vmatprep.subr.bf16.mxu1 %v8162_v59  ;;  %v8247_v59 = vld [vmem:[%s11408_s5 + $0x8b0] ss:$100 sps:$4 sm:$0xff]  }
 0x439   :  { %5772 = vmatpush1.bf16.msra.mxu1 %v8160_v60  ;;  %v8252_v60 = vld [vmem:[%s11408_s5 + $0x97c] ss:$100 sps:$4 sm:$0xff]  }
 0x43a   :  { %5773 = vmatprep.subr.bf16.mxu1 %v8165_v61  ;;  %v8250_v61 = vld [vmem:[%s11408_s5 + $0x978] ss:$100 sps:$4 sm:$0xff]  }
 0x43d   :  { %5774 = vmatpush1.bf16.msra.mxu1 %v8163_v62  ;;  %v8255_v62 = vld [vmem:[%s11408_s5 + $0xa44] ss:$100 sps:$4 sm:$0xff]  }
 0x43e   :  { %5786 = vmatprep.subr.bf16.mxu1 %v8168_v63  ;;  %v8253_v63 = vld [vmem:[%s11408_s5 + $0xa40] ss:$100 sps:$4 sm:$0xff]  }
 0x440   :  { %5776 = vmatmul.mubr.bf16.vlgmr.msra.gmra.mrb[4].mxu1 %v10114_v32 }
 0x441   :  { %5787 = vmatpush1.bf16.msra.mxu1 %v8166_v0  ;;  %5818 = vmatprep.mubr.bf16.mxu1 %v10068_v2  ;;  %v8258_v0 = vld [vmem:[%s11408_s5 + $0xb0c] ss:$100 sps:$4 sm:$0xff]  }
 0x442   :  { %5788 = vmatprep.subr.bf16.mxu1 %v8171_v1  ;;  %v8256_v1 = vld [vmem:[%s11408_s5 + $0xb08] ss:$100 sps:$4 sm:$0xff]  }
 0x445   :  { %5789 = vmatpush1.bf16.msra.mxu1 %v8169_v3  ;;  %v8261_v3 = vld [vmem:[%s11408_s5 + $0xbd4] ss:$100 sps:$4 sm:$0xff]  }
 0x446   :  { %5790 = vmatprep.subr.bf16.mxu1 %v8174_v4  ;;  %v8259_v4 = vld [vmem:[%s11408_s5 + $0xbd0] ss:$100 sps:$4 sm:$0xff]  }
 0x449   :  { %5791 = vmatpush1.bf16.msra.mxu1 %v8172_v7  ;;  %v8264_v7 = vld [vmem:[%s11408_s5 + $0x24] ss:$100 sps:$4 sm:$0xff]  }
 0x44a   :  { %5792 = vmatprep.subr.bf16.mxu1 %v8177_v9  ;;  %v8262_v9 = vld [vmem:[%s11408_s5 + $0x20] ss:$100 sps:$4 sm:$0xff]  }
 0x44d   :  { %5793 = vmatpush1.bf16.msra.mxu1 %v8175_v10  ;;  %v8267_v10 = vld [vmem:[%s11408_s5 + $0xec] ss:$100 sps:$4 sm:$0xff]  }
 0x44e   :  { %5794 = vmatprep.subr.bf16.mxu1 %v8180_v11  ;;  %v8265_v11 = vld [vmem:[%s11408_s5 + $0xe8] ss:$100 sps:$4 sm:$0xff]  }
 0x451   :  { %5795 = vmatpush1.bf16.msra.mxu1 %v8178_v12  ;;  %v8270_v12 = vld [vmem:[%s11408_s5 + $0x1b4] ss:$100 sps:$4 sm:$0xff]  }
 0x452   :  { %5796 = vmatprep.subr.bf16.mxu1 %v8183_v13  ;;  %v8268_v13 = vld [vmem:[%s11408_s5 + $0x1b0] ss:$100 sps:$4 sm:$0xff]  }
 0x455   :  { %5797 = vmatpush1.bf16.msra.mxu1 %v8181_v14  ;;  %v8273_v14 = vld [vmem:[%s11408_s5 + $0x27c] ss:$100 sps:$4 sm:$0xff]  }
 0x456   :  { %5798 = vmatprep.subr.bf16.mxu1 %v8186_v15  ;;  %v8271_v15 = vld [vmem:[%s11408_s5 + $0x278] ss:$100 sps:$4 sm:$0xff]  }
 0x459   :  { %5799 = vmatpush1.bf16.msra.mxu1 %v8184_v16  ;;  %v8276_v16 = vld [vmem:[%s11408_s5 + $0x344] ss:$100 sps:$4 sm:$0xff]  }
 0x45a   :  { %5800 = vmatprep.subr.bf16.mxu1 %v8189_v17  ;;  %v8274_v17 = vld [vmem:[%s11408_s5 + $0x340] ss:$100 sps:$4 sm:$0xff]  }
 0x45d   :  { %5801 = vmatpush1.bf16.msra.mxu1 %v8187_v18  ;;  %v10439_v18 = vld [vmem:[%s11414_s6] sm:$0xff] }
 0x45e   :  { %5802 = vmatprep.subr.bf16.mxu1 %v8192_v19  ;;  %v8279_v19 = vld [vmem:[%s11408_s5 + $0x40c] ss:$100 sps:$4 sm:$0xff]  }
 0x461   :  { %5803 = vmatpush1.bf16.msra.mxu1 %v8190_v20  ;;  %v3562_v20 = vrot.slane %v10439_v18, %v10077_v6 }
 0x462   :  { %5804 = vmatprep.subr.bf16.mxu1 %v8195_v21  ;;  %v8277_v21 = vld [vmem:[%s11408_s5 + $0x408] ss:$100 sps:$4 sm:$0xff]  }
 0x465   :  { %5805 = vmatpush1.bf16.msra.mxu1 %v8193_v22  ;;  %v3566_v22 = vrot.slane %v10439_v18, %v10083_v8 }
 0x466   :  { %5806 = vmatprep.subr.bf16.mxu1 %v8198_v23  ;;  %v8282_v23 = vld [vmem:[%s11408_s5 + $0x4d4] ss:$100 sps:$4 sm:$0xff]  }
 0x469   :  { %5807 = vmatpush1.bf16.msra.mxu1 %v8196_v24 }
 0x46a   :  { %5808 = vmatprep.subr.bf16.mxu1 %v8201_v25 }
 0x46d   :  { %5809 = vmatpush1.bf16.msra.mxu1 %v8199_v26 }
 0x46e   :  { %5810 = vmatprep.subr.bf16.mxu1 %v8204_v27 }
 0x471   :  { %5811 = vmatpush1.bf16.msra.mxu1 %v8202_v28 }
 0x472   :  { %5812 = vmatprep.subr.bf16.mxu1 %v8207_v29  ;;  %v8280_v29 = vld [vmem:[%s11408_s5 + $0x4d0] ss:$100 sps:$4 sm:$0xff]  }
 0x475   :  { %5813 = vmatpush1.bf16.msra.mxu1 %v8205_v30 }
 0x476   :  { %5814 = vmatprep.subr.bf16.mxu1 %v8210_v31 }
 0x479   :  { %5815 = vmatpush1.bf16.msra.mxu1 %v8208_v33 }
 0x47a   :  { %5816 = vmatprep.subr.bf16.mxu1 %v8213_v34  ;;  %v8285_v34 = vld [vmem:[%s11408_s5 + $0x59c] ss:$100 sps:$4 sm:$0xff]  }
 0x47d   :  { %5817 = vmatpush1.bf16.msra.mxu1 %v8211_v35 }
 0x47e   :  { %5829 = vmatprep.subr.bf16.mxu1 %v8216_v36 }
 0x480   :  { %5819 = vmatmul.mubr.bf16.vlgmr.msra.gmra.mrb[8].mxu1 %v10114_v32 }
 0x481   :  { %5830 = vmatpush1.bf16.msra.mxu1 %v8214_v37  ;;  %5861 = vmatprep.mubr.bf16.mxu1 %v10068_v2 }
 0x482   :  { %5831 = vmatprep.subr.bf16.mxu1 %v8219_v38 }
 0x485   :  { %5832 = vmatpush1.bf16.msra.mxu1 %v8217_v39 }
 0x486   :  { %5833 = vmatprep.subr.bf16.mxu1 %v8222_v40  ;;  %v8283_v40 = vld [vmem:[%s11408_s5 + $0x598] ss:$100 sps:$4 sm:$0xff]  }
 0x489   :  { %5834 = vmatpush1.bf16.msra.mxu1 %v8220_v41  ;;  %v8288_v41 = vld [vmem:[%s11408_s5 + $0x664] ss:$100 sps:$4 sm:$0xff]  }
 0x48a   :  { %5835 = vmatprep.subr.bf16.mxu1 %v8225_v42 }
 0x48d   :  { %5836 = vmatpush1.bf16.msra.mxu1 %v8223_v43  ;;  %v8286_v43 = vld [vmem:[%s11408_s5 + $0x660] ss:$100 sps:$4 sm:$0xff]  }
 0x48e   :  { %5837 = vmatprep.subr.bf16.mxu1 %v8228_v44  ;;  %v8291_v44 = vld [vmem:[%s11408_s5 + $0x72c] ss:$100 sps:$4 sm:$0xff]  }
 0x491   :  { %5838 = vmatpush1.bf16.msra.mxu1 %v8226_v45  ;;  %v8289_v45 = vld [vmem:[%s11408_s5 + $0x728] ss:$100 sps:$4 sm:$0xff]  }
 0x492   :  { %5839 = vmatprep.subr.bf16.mxu1 %v8231_v46  ;;  %v8294_v46 = vld [vmem:[%s11408_s5 + $0x7f4] ss:$100 sps:$4 sm:$0xff]  }
 0x495   :  { %5840 = vmatpush1.bf16.msra.mxu1 %v8229_v47  ;;  %v8292_v47 = vld [vmem:[%s11408_s5 + $0x7f0] ss:$100 sps:$4 sm:$0xff]  }
 0x496   :  { %5841 = vmatprep.subr.bf16.mxu1 %v8234_v48  ;;  %v8297_v48 = vld [vmem:[%s11408_s5 + $0x8bc] ss:$100 sps:$4 sm:$0xff]  }
 0x499   :  { %5842 = vmatpush1.bf16.msra.mxu1 %v8232_v49  ;;  %v8295_v49 = vld [vmem:[%s11408_s5 + $0x8b8] ss:$100 sps:$4 sm:$0xff]  }
 0x49a   :  { %5843 = vmatprep.subr.bf16.mxu1 %v8237_v50  ;;  %v8300_v50 = vld [vmem:[%s11408_s5 + $0x984] ss:$100 sps:$4 sm:$0xff]  }
 0x49d   :  { %5844 = vmatpush1.bf16.msra.mxu1 %v8235_v51  ;;  %v8298_v51 = vld [vmem:[%s11408_s5 + $0x980] ss:$100 sps:$4 sm:$0xff]  }
 0x49e   :  { %5845 = vmatprep.subr.bf16.mxu1 %v8240_v52  ;;  %v8303_v52 = vld [vmem:[%s11408_s5 + $0xa4c] ss:$100 sps:$4 sm:$0xff]  }
 0x4a1   :  { %5846 = vmatpush1.bf16.msra.mxu1 %v8238_v53  ;;  %v8301_v53 = vld [vmem:[%s11408_s5 + $0xa48] ss:$100 sps:$4 sm:$0xff]  }
 0x4a2   :  { %5847 = vmatprep.subr.bf16.mxu1 %v8243_v54  ;;  %v8306_v54 = vld [vmem:[%s11408_s5 + $0xb14] ss:$100 sps:$4 sm:$0xff]  }
 0x4a5   :  { %5848 = vmatpush1.bf16.msra.mxu1 %v8241_v55  ;;  %v8304_v55 = vld [vmem:[%s11408_s5 + $0xb10] ss:$100 sps:$4 sm:$0xff]  }
 0x4a6   :  { %5849 = vmatprep.subr.bf16.mxu1 %v8246_v56  ;;  %v8309_v56 = vld [vmem:[%s11408_s5 + $0xbdc] ss:$100 sps:$4 sm:$0xff]  }
 0x4a9   :  { %5850 = vmatpush1.bf16.msra.mxu1 %v8244_v57  ;;  %v8307_v57 = vld [vmem:[%s11408_s5 + $0xbd8] ss:$100 sps:$4 sm:$0xff]  }
 0x4aa   :  { %5851 = vmatprep.subr.bf16.mxu1 %v8249_v58  ;;  %v8312_v58 = vld [vmem:[%s11408_s5 + $0x2c] ss:$100 sps:$4 sm:$0xff]  }
 0x4ad   :  { %5852 = vmatpush1.bf16.msra.mxu1 %v8247_v59  ;;  %v8310_v59 = vld [vmem:[%s11408_s5 + $0x28] ss:$100 sps:$4 sm:$0xff]  }
 0x4ae   :  { %5853 = vmatprep.subr.bf16.mxu1 %v8252_v60  ;;  %v8315_v60 = vld [vmem:[%s11408_s5 + $0xf4] ss:$100 sps:$4 sm:$0xff]  }
 0x4b1   :  { %5854 = vmatpush1.bf16.msra.mxu1 %v8250_v61  ;;  %v8313_v61 = vld [vmem:[%s11408_s5 + $0xf0] ss:$100 sps:$4 sm:$0xff]  }
 0x4b2   :  { %5855 = vmatprep.subr.bf16.mxu1 %v8255_v62  ;;  %v8318_v62 = vld [vmem:[%s11408_s5 + $0x1bc] ss:$100 sps:$4 sm:$0xff]  }
 0x4b5   :  { %5856 = vmatpush1.bf16.msra.mxu1 %v8253_v63  ;;  %v8316_v63 = vld [vmem:[%s11408_s5 + $0x1b8] ss:$100 sps:$4 sm:$0xff]  }
 0x4b6   :  { %5857 = vmatprep.subr.bf16.mxu1 %v8258_v0  ;;  %v8321_v0 = vld [vmem:[%s11408_s5 + $0x284] ss:$100 sps:$4 sm:$0xff]  }
 0x4b9   :  { %5858 = vmatpush1.bf16.msra.mxu1 %v8256_v1  ;;  %v8319_v1 = vld [vmem:[%s11408_s5 + $0x280] ss:$100 sps:$4 sm:$0xff]  }
 0x4ba   :  { %5859 = vmatprep.subr.bf16.mxu1 %v8261_v3  ;;  %v8324_v3 = vld [vmem:[%s11408_s5 + $0x34c] ss:$100 sps:$4 sm:$0xff]  }
 0x4bd   :  { %5860 = vmatpush1.bf16.msra.mxu1 %v8259_v4  ;;  %v10547_v4 = vsub.s32 2, %v10074_v5 }
 0x4be   :  { %5872 = vmatprep.subr.bf16.mxu1 %v8264_v7  ;;  %v8322_v7 = vld [vmem:[%s11408_s5 + $0x348] ss:$100 sps:$4 sm:$0xff]  }
 0x4c0   :  { %5862 = vmatmul.mubr.bf16.vlgmr.msra.gmra.mrb[12].mxu1 %v10114_v32 }
 0x4c1   :  { %5873 = vmatpush1.bf16.msra.mxu1 %v8262_v9  ;;  %5904 = vmatprep.mubr.bf16.mxu1 %v10068_v2  ;;  %v10553_v9 = vsub.s32 3, %v10074_v5 }
 0x4c2   :  { %5874 = vmatprep.subr.bf16.mxu1 %v8267_v10  ;;  %v8327_v10 = vld [vmem:[%s11408_s5 + $0x414] ss:$100 sps:$4 sm:$0xff]  }
 0x4c5   :  { %5875 = vmatpush1.bf16.msra.mxu1 %v8265_v11  ;;  %v3570_v11 = vrot.slane %v10439_v18, %v10547_v4 }
 0x4c6   :  { %5876 = vmatprep.subr.bf16.mxu1 %v8270_v12  ;;  %v3574_v12 = vrot.slane %v10439_v18, %v10553_v9 }
 0x4c9   :  { %5877 = vmatpush1.bf16.msra.mxu1 %v8268_v13  ;;  %v8325_v13 = vld [vmem:[%s11408_s5 + $0x410] ss:$100 sps:$4 sm:$0xff]  }
 0x4ca   :  { %5878 = vmatprep.subr.bf16.mxu1 %v8273_v14  ;;  %v8330_v14 = vld [vmem:[%s11408_s5 + $0x4dc] ss:$100 sps:$4 sm:$0xff]  }
 0x4cd   :  { %5879 = vmatpush1.bf16.msra.mxu1 %v8271_v15 }
 0x4ce   :  { %5880 = vmatprep.subr.bf16.mxu1 %v8276_v16 }
 0x4d1   :  { %5881 = vmatpush1.bf16.msra.mxu1 %v8274_v17 }
 0x4d2   :  { %5882 = vmatprep.subr.bf16.mxu1 %v8279_v19 }
 0x4d3   :  { %v5734_v24 = vpop.f32.mrb[0].mxu1 }
 0x4d4   :  { %v5735_v25 = vadd.f32 %v5734_v24, %v3562_v20  ;;  %v5736_v26 = vpop.f32.mrb[1].mxu1 }
 0x4d5   :  { %v5737_v27 = vadd.f32 %v5736_v26, %v3566_v22  ;;  %5883 = vmatpush1.bf16.msra.mxu1 %v8277_v21  ;;  %v5738_v28 = vpop.f32.mrb[2].mxu1  ;;  %v8328_v21 = vld [vmem:[%s11408_s5 + $0x4d8] ss:$100 sps:$4 sm:$0xff]  }
 0x4d6   :  { %v6257_v30 = vmax.f32 %v5735_v25, 0.0  ;;  %v5739_v31 = vadd.f32 %v5738_v28, %v3562_v20  ;;  %v5740_v33 = vpop.f32.mrb[3].mxu1  ;;  %5884 = vmatprep.subr.bf16.mxu1 %v8282_v23  ;;  %v8333_v25 = vld [vmem:[%s11408_s5 + $0x5a4] ss:$100 sps:$4 sm:$0xff]  }
 0x4d7   :  { %v6258_v35 = vmax.f32 %v5737_v27, 0.0  ;;  %v5741_v36 = vadd.f32 %v5740_v33, %v3566_v22  ;;  %v8336_v33 = vld [vmem:[%s11408_s5 + $0x66c] ss:$100 sps:$4 sm:$0xff]  }
 0x4d8   :  { %v6282_v37 = vmax.f32 %v5739_v31, 0.0  ;;  %v8331_v31 = vld [vmem:[%s11408_s5 + $0x5a0] ss:$100 sps:$4 sm:$0xff]  }
 0x4d9   :  { %v7343_v38 = vpack.c.bf16 %v6258_v35, %v6257_v30  ;;  %v6283_v39 = vmax.f32 %v5741_v36, 0.0  ;;  %5885 = vmatpush1.bf16.msra.mxu1 %v8280_v29  ;;  %v8334_v35 = vld [vmem:[%s11408_s5 + $0x668] ss:$100 sps:$4 sm:$0xff]   ;;  %v8339_v36 = vld [vmem:[%s11408_s5 + $0x734] ss:$100 sps:$4 sm:$0xff]  }
 0x4da   :  { %5886 = vmatprep.subr.bf16.mxu1 %v8285_v34 }
 0x4db   :  { %6459 = vst [vmem:[%s11415_s9] sm:$0xff] %v7343_v38  ;;  %v7356_v42 = vpack.c.bf16 %v6283_v39, %v6282_v37  ;;  %v8337_v37 = vld [vmem:[%s11408_s5 + $0x730] ss:$100 sps:$4 sm:$0xff]   ;;  %v8342_v38 = vld [vmem:[%s11408_s5 + $0x7fc] ss:$100 sps:$4 sm:$0xff]  }
 0x4dc   :  { %v8340_v39 = vld [vmem:[%s11408_s5 + $0x7f8] ss:$100 sps:$4 sm:$0xff]  }
 0x4dd   :  { %6472 = vst [vmem:[%s11415_s9 + $0x64] sm:$0xff] %v7356_v42  ;;  %5887 = vmatpush1.bf16.msra.mxu1 %v8283_v40  ;;  %v8345_v40 = vld [vmem:[%s11408_s5 + $0x8c4] ss:$100 sps:$4 sm:$0xff]   ;;  %v8348_v42 = vld [vmem:[%s11408_s5 + $0x98c] ss:$100 sps:$4 sm:$0xff]  }
 0x4de   :  { %5888 = vmatprep.subr.bf16.mxu1 %v8288_v41  ;;  %v8343_v41 = vld [vmem:[%s11408_s5 + $0x8c0] ss:$100 sps:$4 sm:$0xff]  }
 0x4e1   :  { %5889 = vmatpush1.bf16.msra.mxu1 %v8286_v43  ;;  %v8346_v43 = vld [vmem:[%s11408_s5 + $0x988] ss:$100 sps:$4 sm:$0xff]  }
 0x4e2   :  { %5890 = vmatprep.subr.bf16.mxu1 %v8291_v44  ;;  %v8351_v44 = vld [vmem:[%s11408_s5 + $0xa54] ss:$100 sps:$4 sm:$0xff]  }
 0x4e5   :  { %5891 = vmatpush1.bf16.msra.mxu1 %v8289_v45  ;;  %v8349_v45 = vld [vmem:[%s11408_s5 + $0xa50] ss:$100 sps:$4 sm:$0xff]  }
 0x4e6   :  { %5892 = vmatprep.subr.bf16.mxu1 %v8294_v46  ;;  %v8354_v46 = vld [vmem:[%s11408_s5 + $0xb1c] ss:$100 sps:$4 sm:$0xff]  }
 0x4e9   :  { %5893 = vmatpush1.bf16.msra.mxu1 %v8292_v47  ;;  %v8352_v47 = vld [vmem:[%s11408_s5 + $0xb18] ss:$100 sps:$4 sm:$0xff]  }
 0x4ea   :  { %5894 = vmatprep.subr.bf16.mxu1 %v8297_v48  ;;  %v8357_v48 = vld [vmem:[%s11408_s5 + $0xbe4] ss:$100 sps:$4 sm:$0xff]  }
 0x4ed   :  { %5895 = vmatpush1.bf16.msra.mxu1 %v8295_v49  ;;  %v8355_v49 = vld [vmem:[%s11408_s5 + $0xbe0] ss:$100 sps:$4 sm:$0xff]  }
 0x4ee   :  { %5896 = vmatprep.subr.bf16.mxu1 %v8300_v50  ;;  %v8360_v50 = vld [vmem:[%s11408_s5 + $0x34] ss:$100 sps:$4 sm:$0xff]  }
 0x4f1   :  { %5897 = vmatpush1.bf16.msra.mxu1 %v8298_v51  ;;  %v8358_v51 = vld [vmem:[%s11408_s5 + $0x30] ss:$100 sps:$4 sm:$0xff]  }
 0x4f2   :  { %5898 = vmatprep.subr.bf16.mxu1 %v8303_v52  ;;  %v8363_v52 = vld [vmem:[%s11408_s5 + $0xfc] ss:$100 sps:$4 sm:$0xff]  }
 0x4f5   :  { %5899 = vmatpush1.bf16.msra.mxu1 %v8301_v53  ;;  %v8361_v53 = vld [vmem:[%s11408_s5 + $0xf8] ss:$100 sps:$4 sm:$0xff]  }
 0x4f6   :  { %5900 = vmatprep.subr.bf16.mxu1 %v8306_v54  ;;  %v8366_v54 = vld [vmem:[%s11408_s5 + $0x1c4] ss:$100 sps:$4 sm:$0xff]  }
 0x4f9   :  { %5901 = vmatpush1.bf16.msra.mxu1 %v8304_v55  ;;  %v8364_v55 = vld [vmem:[%s11408_s5 + $0x1c0] ss:$100 sps:$4 sm:$0xff]  }
 0x4fa   :  { %5902 = vmatprep.subr.bf16.mxu1 %v8309_v56  ;;  %v8369_v56 = vld [vmem:[%s11408_s5 + $0x28c] ss:$100 sps:$4 sm:$0xff]  }
 0x4fd   :  { %5903 = vmatpush1.bf16.msra.mxu1 %v8307_v57  ;;  %v8367_v57 = vld [vmem:[%s11408_s5 + $0x288] ss:$100 sps:$4 sm:$0xff]  }
 0x4fe   :  { %5915 = vmatprep.subr.bf16.mxu1 %v8312_v58  ;;  %v8372_v58 = vld [vmem:[%s11408_s5 + $0x354] ss:$100 sps:$4 sm:$0xff]  }
 0x500   :  { %5905 = vmatmul.mubr.bf16.vlgmr.msra.gmra.mrb[16].mxu1 %v10114_v32 }
 0x501   :  { %5916 = vmatpush1.bf16.msra.mxu1 %v8310_v59  ;;  %5947 = vmatprep.mubr.bf16.mxu1 %v10068_v2  ;;  %v10661_v59 = vsub.s32 4, %v10074_v5 }
 0x502   :  { %5917 = vmatprep.subr.bf16.mxu1 %v8315_v60  ;;  %v8370_v60 = vld [vmem:[%s11408_s5 + $0x350] ss:$100 sps:$4 sm:$0xff]  }
 0x505   :  { %5918 = vmatpush1.bf16.msra.mxu1 %v8313_v61  ;;  %v10667_v61 = vsub.s32 5, %v10074_v5 }
 0x506   :  { %5919 = vmatprep.subr.bf16.mxu1 %v8318_v62  ;;  %v8375_v62 = vld [vmem:[%s11408_s5 + $0x41c] ss:$100 sps:$4 sm:$0xff]  }
 0x509   :  { %5920 = vmatpush1.bf16.msra.mxu1 %v8316_v63  ;;  %v3578_v63 = vrot.slane %v10439_v18, %v10661_v59 }
 0x50a   :  { %5921 = vmatprep.subr.bf16.mxu1 %v8321_v0  ;;  %v3582_v0 = vrot.slane %v10439_v18, %v10667_v61 }
 0x50d   :  { %5922 = vmatpush1.bf16.msra.mxu1 %v8319_v1  ;;  %v8373_v1 = vld [vmem:[%s11408_s5 + $0x418] ss:$100 sps:$4 sm:$0xff]  }
 0x50e   :  { %5923 = vmatprep.subr.bf16.mxu1 %v8324_v3  ;;  %v8378_v3 = vld [vmem:[%s11408_s5 + $0x4e4] ss:$100 sps:$4 sm:$0xff]  }
 0x511   :  { %5924 = vmatpush1.bf16.msra.mxu1 %v8322_v7 }
 0x512   :  { %5925 = vmatprep.subr.bf16.mxu1 %v8327_v10 }
 0x513   :  { %v5777_v15 = vpop.f32.mrb[4].mxu1 }
 0x514   :  { %v5778_v16 = vadd.f32 %v5777_v15, %v3570_v11  ;;  %v5779_v17 = vpop.f32.mrb[5].mxu1 }
 0x515   :  { %v5780_v19 = vadd.f32 %v5779_v17, %v3574_v12  ;;  %v5781_v20 = vpop.f32.mrb[6].mxu1  ;;  %5926 = vmatpush1.bf16.msra.mxu1 %v8325_v13 }
 0x516   :  { %v6259_v22 = vmax.f32 %v5778_v16, 0.0  ;;  %v5782_v23 = vadd.f32 %v5781_v20, %v3570_v11  ;;  %v5783_v24 = vpop.f32.mrb[7].mxu1  ;;  %5927 = vmatprep.subr.bf16.mxu1 %v8330_v14  ;;  %v8376_v14 = vld [vmem:[%s11408_s5 + $0x4e0] ss:$100 sps:$4 sm:$0xff]  }
 0x517   :  { %v6260_v26 = vmax.f32 %v5780_v19, 0.0  ;;  %v5784_v27 = vadd.f32 %v5783_v24, %v3574_v12  ;;  %v8381_v19 = vld [vmem:[%s11408_s5 + $0x5ac] ss:$100 sps:$4 sm:$0xff]  }
 0x518   :  { %v6284_v28 = vmax.f32 %v5782_v23, 0.0 }
 0x519   :  { %v7344_v29 = vpack.c.bf16 %v6260_v26, %v6259_v22  ;;  %v6285_v30 = vmax.f32 %v5784_v27, 0.0  ;;  %5928 = vmatpush1.bf16.msra.mxu1 %v8328_v21  ;;  %v8384_v26 = vld [vmem:[%s11408_s5 + $0x674] ss:$100 sps:$4 sm:$0xff]  }
 0x51a   :  { %5929 = vmatprep.subr.bf16.mxu1 %v8333_v25  ;;  %v8379_v25 = vld [vmem:[%s11408_s5 + $0x5a8] ss:$100 sps:$4 sm:$0xff]  }
 0x51b   :  { %6460 = vst [vmem:[%s11415_s9 + $0x8] sm:$0xff] %v7344_v29  ;;  %v7357_v34 = vpack.c.bf16 %v6285_v30, %v6284_v28  ;;  %v8382_v28 = vld [vmem:[%s11408_s5 + $0x670] ss:$100 sps:$4 sm:$0xff]   ;;  %v8387_v29 = vld [vmem:[%s11408_s5 + $0x73c] ss:$100 sps:$4 sm:$0xff]  }
 0x51c   :  { %v8385_v30 = vld [vmem:[%s11408_s5 + $0x738] ss:$100 sps:$4 sm:$0xff]  }
 0x51d   :  { %6473 = vst [vmem:[%s11415_s9 + $0x6c] sm:$0xff] %v7357_v34  ;;  %5930 = vmatpush1.bf16.msra.mxu1 %v8331_v31  ;;  %v8390_v31 = vld [vmem:[%s11408_s5 + $0x804] ss:$100 sps:$4 sm:$0xff]   ;;  %v8393_v34 = vld [vmem:[%s11408_s5 + $0x8cc] ss:$100 sps:$4 sm:$0xff]  }
 0x51e   :  { %5931 = vmatprep.subr.bf16.mxu1 %v8336_v33  ;;  %v8388_v33 = vld [vmem:[%s11408_s5 + $0x800] ss:$100 sps:$4 sm:$0xff]  }
 0x521   :  { %5932 = vmatpush1.bf16.msra.mxu1 %v8334_v35  ;;  %v8391_v35 = vld [vmem:[%s11408_s5 + $0x8c8] ss:$100 sps:$4 sm:$0xff]  }
 0x522   :  { %5933 = vmatprep.subr.bf16.mxu1 %v8339_v36  ;;  %v8396_v36 = vld [vmem:[%s11408_s5 + $0x994] ss:$100 sps:$4 sm:$0xff]  }
 0x525   :  { %5934 = vmatpush1.bf16.msra.mxu1 %v8337_v37  ;;  %v8394_v37 = vld [vmem:[%s11408_s5 + $0x990] ss:$100 sps:$4 sm:$0xff]  }
 0x526   :  { %5935 = vmatprep.subr.bf16.mxu1 %v8342_v38  ;;  %v8399_v38 = vld [vmem:[%s11408_s5 + $0xa5c] ss:$100 sps:$4 sm:$0xff]  }
 0x529   :  { %5936 = vmatpush1.bf16.msra.mxu1 %v8340_v39  ;;  %v8397_v39 = vld [vmem:[%s11408_s5 + $0xa58] ss:$100 sps:$4 sm:$0xff]  }
 0x52a   :  { %5937 = vmatprep.subr.bf16.mxu1 %v8345_v40  ;;  %v8402_v40 = vld [vmem:[%s11408_s5 + $0xb24] ss:$100 sps:$4 sm:$0xff]  }
 0x52d   :  { %5938 = vmatpush1.bf16.msra.mxu1 %v8343_v41  ;;  %v8400_v41 = vld [vmem:[%s11408_s5 + $0xb20] ss:$100 sps:$4 sm:$0xff]  }
 0x52e   :  { %5939 = vmatprep.subr.bf16.mxu1 %v8348_v42  ;;  %v8405_v42 = vld [vmem:[%s11408_s5 + $0xbec] ss:$100 sps:$4 sm:$0xff]  }
 0x531   :  { %5940 = vmatpush1.bf16.msra.mxu1 %v8346_v43  ;;  %v8403_v43 = vld [vmem:[%s11408_s5 + $0xbe8] ss:$100 sps:$4 sm:$0xff]  }
 0x532   :  { %5941 = vmatprep.subr.bf16.mxu1 %v8351_v44  ;;  %v8408_v44 = vld [vmem:[%s11408_s5 + $0x3c] ss:$100 sps:$4 sm:$0xff]  }
 0x535   :  { %5942 = vmatpush1.bf16.msra.mxu1 %v8349_v45  ;;  %v8406_v45 = vld [vmem:[%s11408_s5 + $0x38] ss:$100 sps:$4 sm:$0xff]  }
 0x536   :  { %5943 = vmatprep.subr.bf16.mxu1 %v8354_v46  ;;  %v8411_v46 = vld [vmem:[%s11408_s5 + $0x104] ss:$100 sps:$4 sm:$0xff]  }
 0x539   :  { %5944 = vmatpush1.bf16.msra.mxu1 %v8352_v47  ;;  %v8409_v47 = vld [vmem:[%s11408_s5 + $0x100] ss:$100 sps:$4 sm:$0xff]  }
 0x53a   :  { %5945 = vmatprep.subr.bf16.mxu1 %v8357_v48  ;;  %v8414_v48 = vld [vmem:[%s11408_s5 + $0x1cc] ss:$100 sps:$4 sm:$0xff]  }
 0x53d   :  { %5946 = vmatpush1.bf16.msra.mxu1 %v8355_v49  ;;  %v8412_v49 = vld [vmem:[%s11408_s5 + $0x1c8] ss:$100 sps:$4 sm:$0xff]  }
 0x53e   :  { %5958 = vmatprep.subr.bf16.mxu1 %v8360_v50  ;;  %v8417_v50 = vld [vmem:[%s11408_s5 + $0x294] ss:$100 sps:$4 sm:$0xff]  }
 0x540   :  { %5948 = vmatmul.mubr.bf16.vlgmr.msra.gmra.mrb[20].mxu1 %v10114_v32 }
 0x541   :  { %5959 = vmatpush1.bf16.msra.mxu1 %v8358_v51  ;;  %5990 = vmatprep.mubr.bf16.mxu1 %v10068_v2  ;;  %v8420_v51 = vld [vmem:[%s11408_s5 + $0x35c] ss:$100 sps:$4 sm:$0xff]  }
 0x542   :  { %5960 = vmatprep.subr.bf16.mxu1 %v8363_v52  ;;  %v10775_v52 = vsub.s32 6, %v10074_v5 }
 0x545   :  { %5961 = vmatpush1.bf16.msra.mxu1 %v8361_v53  ;;  %v8418_v53 = vld [vmem:[%s11408_s5 + $0x358] ss:$100 sps:$4 sm:$0xff]  }
 0x546   :  { %5962 = vmatprep.subr.bf16.mxu1 %v8366_v54  ;;  %v10781_v54 = vsub.s32 7, %v10074_v5  ;;  %v8426_v5 = vld [vmem:[%s11408_s5 + $0x4ec] ss:$100 sps:$4 sm:$0xff]  }
 0x549   :  { %5963 = vmatpush1.bf16.msra.mxu1 %v8364_v55  ;;  %v8423_v55 = vld [vmem:[%s11408_s5 + $0x424] ss:$100 sps:$4 sm:$0xff]  }
 0x54a   :  { %5964 = vmatprep.subr.bf16.mxu1 %v8369_v56  ;;  %v3586_v56 = vrot.slane %v10439_v18, %v10775_v52 }
 0x54d   :  { %5965 = vmatpush1.bf16.msra.mxu1 %v8367_v57  ;;  %v3590_v57 = vrot.slane %v10439_v18, %v10781_v54 }
 0x54e   :  { %5966 = vmatprep.subr.bf16.mxu1 %v8372_v58  ;;  %v8421_v58 = vld [vmem:[%s11408_s5 + $0x420] ss:$100 sps:$4 sm:$0xff]  }
 0x551   :  { %5967 = vmatpush1.bf16.msra.mxu1 %v8370_v60 }
 0x552   :  { %5968 = vmatprep.subr.bf16.mxu1 %v8375_v62 }
 0x553   :  { %v5820_v7 = vpop.f32.mrb[8].mxu1 }
 0x554   :  { %v5821_v10 = vadd.f32 %v5820_v7, %v3578_v63  ;;  %v5822_v11 = vpop.f32.mrb[9].mxu1 }
 0x555   :  { %v5823_v12 = vadd.f32 %v5822_v11, %v3582_v0  ;;  %v5824_v13 = vpop.f32.mrb[10].mxu1  ;;  %5969 = vmatpush1.bf16.msra.mxu1 %v8373_v1  ;;  %v8429_v11 = vld [vmem:[%s11408_s5 + $0x5b4] ss:$100 sps:$4 sm:$0xff]  }
 0x556   :  { %v6261_v15 = vmax.f32 %v5821_v10, 0.0  ;;  %v5825_v16 = vadd.f32 %v5824_v13, %v3578_v63  ;;  %v5826_v17 = vpop.f32.mrb[11].mxu1  ;;  %5970 = vmatprep.subr.bf16.mxu1 %v8378_v3  ;;  %v8424_v3 = vld [vmem:[%s11408_s5 + $0x4e8] ss:$100 sps:$4 sm:$0xff]  }
 0x557   :  { %v6262_v20 = vmax.f32 %v5823_v12, 0.0  ;;  %v5827_v21 = vadd.f32 %v5826_v17, %v3582_v0  ;;  %v8427_v17 = vld [vmem:[%s11408_s5 + $0x5b0] ss:$100 sps:$4 sm:$0xff]  }
 0x558   :  { %v6286_v22 = vmax.f32 %v5825_v16, 0.0 }
 0x559   :  { %v7345_v23 = vpack.c.bf16 %v6262_v20, %v6261_v15  ;;  %v6287_v24 = vmax.f32 %v5827_v21, 0.0  ;;  %5971 = vmatpush1.bf16.msra.mxu1 %v8376_v14  ;;  %v8430_v21 = vld [vmem:[%s11408_s5 + $0x678] ss:$100 sps:$4 sm:$0xff]  }
 0x55a   :  { %5972 = vmatprep.subr.bf16.mxu1 %v8381_v19  ;;  %v8432_v19 = vld [vmem:[%s11408_s5 + $0x67c] ss:$100 sps:$4 sm:$0xff]  }
 0x55b   :  { %6461 = vst [vmem:[%s11415_s9 + $0x10] sm:$0xff] %v7345_v23  ;;  %v7358_v27 = vpack.c.bf16 %v6287_v24, %v6286_v22  ;;  %v8435_v22 = vld [vmem:[%s11408_s5 + $0x744] ss:$100 sps:$4 sm:$0xff]   ;;  %v8438_v24 = vld [vmem:[%s11408_s5 + $0x80c] ss:$100 sps:$4 sm:$0xff]  }
 0x55c   :  { %v8433_v23 = vld [vmem:[%s11408_s5 + $0x740] ss:$100 sps:$4 sm:$0xff]  }
 0x55d   :  { %6474 = vst [vmem:[%s11415_s9 + $0x74] sm:$0xff] %v7358_v27  ;;  %5973 = vmatpush1.bf16.msra.mxu1 %v8379_v25  ;;  %v8436_v25 = vld [vmem:[%s11408_s5 + $0x808] ss:$100 sps:$4 sm:$0xff]   ;;  %v8439_v27 = vld [vmem:[%s11408_s5 + $0x8d0] ss:$100 sps:$4 sm:$0xff]  }
 0x55e   :  { %5974 = vmatprep.subr.bf16.mxu1 %v8384_v26  ;;  %v8441_v26 = vld [vmem:[%s11408_s5 + $0x8d4] ss:$100 sps:$4 sm:$0xff]  }
 0x561   :  { %5975 = vmatpush1.bf16.msra.mxu1 %v8382_v28  ;;  %v8444_v28 = vld [vmem:[%s11408_s5 + $0x99c] ss:$100 sps:$4 sm:$0xff]  }
 0x562   :  { %5976 = vmatprep.subr.bf16.mxu1 %v8387_v29  ;;  %v8442_v29 = vld [vmem:[%s11408_s5 + $0x998] ss:$100 sps:$4 sm:$0xff]  }
 0x565   :  { %5977 = vmatpush1.bf16.msra.mxu1 %v8385_v30  ;;  %v8447_v30 = vld [vmem:[%s11408_s5 + $0xa64] ss:$100 sps:$4 sm:$0xff]  }
 0x566   :  { %5978 = vmatprep.subr.bf16.mxu1 %v8390_v31  ;;  %v8445_v31 = vld [vmem:[%s11408_s5 + $0xa60] ss:$100 sps:$4 sm:$0xff]  }
 0x569   :  { %5979 = vmatpush1.bf16.msra.mxu1 %v8388_v33  ;;  %v8450_v33 = vld [vmem:[%s11408_s5 + $0xb2c] ss:$100 sps:$4 sm:$0xff]  }
 0x56a   :  { %5980 = vmatprep.subr.bf16.mxu1 %v8393_v34  ;;  %v8448_v34 = vld [vmem:[%s11408_s5 + $0xb28] ss:$100 sps:$4 sm:$0xff]  }
 0x56d   :  { %5981 = vmatpush1.bf16.msra.mxu1 %v8391_v35  ;;  %v8453_v35 = vld [vmem:[%s11408_s5 + $0xbf4] ss:$100 sps:$4 sm:$0xff]  }
 0x56e   :  { %5982 = vmatprep.subr.bf16.mxu1 %v8396_v36  ;;  %v8451_v36 = vld [vmem:[%s11408_s5 + $0xbf0] ss:$100 sps:$4 sm:$0xff]  }
 0x571   :  { %5983 = vmatpush1.bf16.msra.mxu1 %v8394_v37  ;;  %v8456_v37 = vld [vmem:[%s11408_s5 + $0x44] ss:$100 sps:$4 sm:$0xff]  }
 0x572   :  { %5984 = vmatprep.subr.bf16.mxu1 %v8399_v38  ;;  %v8454_v38 = vld [vmem:[%s11408_s5 + $0x40] ss:$100 sps:$4 sm:$0xff]  }
 0x575   :  { %5985 = vmatpush1.bf16.msra.mxu1 %v8397_v39  ;;  %v8459_v39 = vld [vmem:[%s11408_s5 + $0x10c] ss:$100 sps:$4 sm:$0xff]  }
 0x576   :  { %5986 = vmatprep.subr.bf16.mxu1 %v8402_v40  ;;  %v8457_v40 = vld [vmem:[%s11408_s5 + $0x108] ss:$100 sps:$4 sm:$0xff]  }
 0x579   :  { %5987 = vmatpush1.bf16.msra.mxu1 %v8400_v41  ;;  %v10875_v41 = vld [vmem:[%s11409_s4] sm:$0xff]  }
 0x57a   :  { %5988 = vmatprep.subr.bf16.mxu1 %v8405_v42  ;;  %v8462_v42 = vld [vmem:[%s11408_s5 + $0x1d4] ss:$100 sps:$4 sm:$0xff]  }
 0x57d   :  { %5989 = vmatpush1.bf16.msra.mxu1 %v8403_v43  ;;  %v8460_v43 = vld [vmem:[%s11408_s5 + $0x1d0] ss:$100 sps:$4 sm:$0xff]  }
 0x57e   :  { %6001 = vmatprep.subr.bf16.mxu1 %v8408_v44  ;;  %v8465_v44 = vld [vmem:[%s11408_s5 + $0x29c] ss:$100 sps:$4 sm:$0xff]  }
 0x580   :  { %5991 = vmatmul.mubr.bf16.vlgmr.msra.gmra.mrb[24].mxu1 %v10114_v32 }
 0x581   :  { %6002 = vmatpush1.bf16.msra.mxu1 %v8406_v45  ;;  %6033 = vmatprep.mubr.bf16.mxu1 %v10068_v2  ;;  %v8415_v2 = vld [vmem:[%s11408_s5 + $0x290] ss:$100 sps:$4 sm:$0xff]   ;;  %v8463_v45 = vld [vmem:[%s11408_s5 + $0x298] ss:$100 sps:$4 sm:$0xff]  }
 0x582   :  { %6003 = vmatprep.subr.bf16.mxu1 %v8411_v46  ;;  %v8468_v46 = vld [vmem:[%s11408_s5 + $0x364] ss:$100 sps:$4 sm:$0xff]  }
 0x585   :  { %6004 = vmatpush1.bf16.msra.mxu1 %v8409_v47  ;;  %v8466_v47 = vld [vmem:[%s11408_s5 + $0x360] ss:$100 sps:$4 sm:$0xff]  }
 0x586   :  { %6005 = vmatprep.subr.bf16.mxu1 %v8414_v48  ;;  %v10899_v48 = vld [vmem:[%s11414_s6 + $0x8] sm:$0xff] }
 0x589   :  { %6006 = vmatpush1.bf16.msra.mxu1 %v8412_v49  ;;  %v8471_v49 = vld [vmem:[%s11408_s5 + $0x42c] ss:$100 sps:$4 sm:$0xff]  }
 0x58a   :  { %6007 = vmatprep.subr.bf16.mxu1 %v8417_v50  ;;  %v3594_v50 = vrot.slane %v10899_v48, %v10077_v6 }
 0x58d   :  { %6008 = vmatpush1.bf16.msra.mxu1 %v8415_v2  ;;  %v3598_v2 = vrot.slane %v10899_v48, %v10083_v8 }
 0x58e   :  { %6009 = vmatprep.subr.bf16.mxu1 %v8420_v51  ;;  %v8469_v51 = vld [vmem:[%s11408_s5 + $0x428] ss:$100 sps:$4 sm:$0xff]  }
 0x591   :  { %6010 = vmatpush1.bf16.msra.mxu1 %v8418_v53  ;;  %v8474_v53 = vld [vmem:[%s11408_s5 + $0x4f4] ss:$100 sps:$4 sm:$0xff]  }
 0x592   :  { %6011 = vmatprep.subr.bf16.mxu1 %v8423_v55 }
 0x593   :  { %v5863_v60 = vpop.f32.mrb[12].mxu1 }
 0x594   :  { %v5864_v62 = vadd.f32 %v5863_v60, %v3586_v56  ;;  %v5865_v63 = vpop.f32.mrb[13].mxu1  ;;  %v8472_v60 = vld [vmem:[%s11408_s5 + $0x4f0] ss:$100 sps:$4 sm:$0xff]  }
 0x595   :  { %v5866_v0 = vadd.f32 %v5865_v63, %v3590_v57  ;;  %v5867_v1 = vpop.f32.mrb[14].mxu1  ;;  %6012 = vmatpush1.bf16.msra.mxu1 %v8421_v58 }
 0x596   :  { %v6263_v18 = vmax.f32 %v5864_v62, 0.0  ;;  %v5868_v7 = vadd.f32 %v5867_v1, %v3586_v56  ;;  %v5869_v10 = vpop.f32.mrb[15].mxu1  ;;  %6013 = vmatprep.subr.bf16.mxu1 %v8426_v5  ;;  %v8477_v1 = vld [vmem:[%s11408_s5 + $0x5bc] ss:$100 sps:$4 sm:$0xff]  }
 0x597   :  { %v6264_v12 = vmax.f32 %v5866_v0, 0.0  ;;  %v5870_v13 = vadd.f32 %v5869_v10, %v3590_v57 }
 0x598   :  { %v6288_v14 = vmax.f32 %v5868_v7, 0.0 }
 0x599   :  { %v7346_v15 = vpack.c.bf16 %v6264_v12, %v6263_v18  ;;  %v6289_v16 = vmax.f32 %v5870_v13, 0.0  ;;  %6014 = vmatpush1.bf16.msra.mxu1 %v8424_v3  ;;  %v8475_v12 = vld [vmem:[%s11408_s5 + $0x5b8] ss:$100 sps:$4 sm:$0xff]   ;;  %v8480_v13 = vld [vmem:[%s11408_s5 + $0x684] ss:$100 sps:$4 sm:$0xff]  }
 0x59a   :  { %6015 = vmatprep.subr.bf16.mxu1 %v8429_v11 }
 0x59b   :  { %6462 = vst [vmem:[%s11415_s9 + $0x18] sm:$0xff] %v7346_v15  ;;  %v7359_v20 = vpack.c.bf16 %v6289_v16, %v6288_v14  ;;  %v8478_v15 = vld [vmem:[%s11408_s5 + $0x680] ss:$100 sps:$4 sm:$0xff]   ;;  %v8483_v16 = vld [vmem:[%s11408_s5 + $0x74c] ss:$100 sps:$4 sm:$0xff]  }
 0x59d   :  { %6475 = vst [vmem:[%s11415_s9 + $0x7c] sm:$0xff] %v7359_v20  ;;  %6016 = vmatpush1.bf16.msra.mxu1 %v8427_v17  ;;  %v8481_v17 = vld [vmem:[%s11408_s5 + $0x748] ss:$100 sps:$4 sm:$0xff]   ;;  %v8484_v20 = vld [vmem:[%s11408_s5 + $0x810] ss:$100 sps:$4 sm:$0xff]  }
 0x59e   :  { %6017 = vmatprep.subr.bf16.mxu1 %v8432_v19  ;;  %v8486_v19 = vld [vmem:[%s11408_s5 + $0x814] ss:$100 sps:$4 sm:$0xff]  }
 0x5a1   :  { %6018 = vmatpush1.bf16.msra.mxu1 %v8430_v21  ;;  %v8489_v21 = vld [vmem:[%s11408_s5 + $0x8dc] ss:$100 sps:$4 sm:$0xff]  }
 0x5a2   :  { %6019 = vmatprep.subr.bf16.mxu1 %v8435_v22  ;;  %v8487_v22 = vld [vmem:[%s11408_s5 + $0x8d8] ss:$100 sps:$4 sm:$0xff]  }
 0x5a5   :  { %6020 = vmatpush1.bf16.msra.mxu1 %v8433_v23  ;;  %v8492_v23 = vld [vmem:[%s11408_s5 + $0x9a4] ss:$100 sps:$4 sm:$0xff]  }
 0x5a6   :  { %6021 = vmatprep.subr.bf16.mxu1 %v8438_v24  ;;  %v8490_v24 = vld [vmem:[%s11408_s5 + $0x9a0] ss:$100 sps:$4 sm:$0xff]  }
 0x5a9   :  { %6022 = vmatpush1.bf16.msra.mxu1 %v8436_v25  ;;  %v8495_v25 = vld [vmem:[%s11408_s5 + $0xa6c] ss:$100 sps:$4 sm:$0xff]  }
 0x5aa   :  { %6023 = vmatprep.subr.bf16.mxu1 %v8441_v26  ;;  %v8493_v26 = vld [vmem:[%s11408_s5 + $0xa68] ss:$100 sps:$4 sm:$0xff]  }
 0x5ad   :  { %6024 = vmatpush1.bf16.msra.mxu1 %v8439_v27  ;;  %v8498_v27 = vld [vmem:[%s11408_s5 + $0xb34] ss:$100 sps:$4 sm:$0xff]  }
 0x5ae   :  { %6025 = vmatprep.subr.bf16.mxu1 %v8444_v28  ;;  %v8496_v28 = vld [vmem:[%s11408_s5 + $0xb30] ss:$100 sps:$4 sm:$0xff]  }
 0x5b1   :  { %6026 = vmatpush1.bf16.msra.mxu1 %v8442_v29  ;;  %v8501_v29 = vld [vmem:[%s11408_s5 + $0xbfc] ss:$100 sps:$4 sm:$0xff]  }
 0x5b2   :  { %6027 = vmatprep.subr.bf16.mxu1 %v8447_v30  ;;  %v8499_v30 = vld [vmem:[%s11408_s5 + $0xbf8] ss:$100 sps:$4 sm:$0xff]  }
 0x5b5   :  { %6028 = vmatpush1.bf16.msra.mxu1 %v8445_v31  ;;  %v8504_v31 = vld [vmem:[%s11408_s5 + $0x4c] ss:$100 sps:$4 sm:$0xff]  }
 0x5b6   :  { %6029 = vmatprep.subr.bf16.mxu1 %v8450_v33  ;;  %v8502_v33 = vld [vmem:[%s11408_s5 + $0x48] ss:$100 sps:$4 sm:$0xff]  }
 0x5b9   :  { %6030 = vmatpush1.bf16.msra.mxu1 %v8448_v34  ;;  %v8507_v34 = vld [vmem:[%s11408_s5 + $0x114] ss:$100 sps:$4 sm:$0xff]  }
 0x5ba   :  { %6031 = vmatprep.subr.bf16.mxu1 %v8453_v35  ;;  %v8505_v35 = vld [vmem:[%s11408_s5 + $0x110] ss:$100 sps:$4 sm:$0xff]  }
 0x5bd   :  { %6032 = vmatpush1.bf16.msra.mxu1 %v8451_v36  ;;  %v8510_v36 = vld [vmem:[%s11408_s5 + $0x1dc] ss:$100 sps:$4 sm:$0xff]  }
 0x5be   :  { %6044 = vmatprep.subr.bf16.mxu1 %v8456_v37  ;;  %v8508_v37 = vld [vmem:[%s11408_s5 + $0x1d8] ss:$100 sps:$4 sm:$0xff]  }
 0x5c0   :  { %6034 = vmatmul.mubr.bf16.vlgmr.msra.gmra.mrb[28].mxu1 %v10114_v32 }
 0x5c1   :  { %6045 = vmatpush1.bf16.msra.mxu1 %v8454_v38  ;;  %6076 = vmatprep.mubr.bf16.mxu1 %v10875_v41  ;;  %v8513_v38 = vld [vmem:[%s11408_s5 + $0x2a4] ss:$100 sps:$4 sm:$0xff]  }
 0x5c2   :  { %6046 = vmatprep.subr.bf16.mxu1 %v8459_v39  ;;  %v8511_v39 = vld [vmem:[%s11408_s5 + $0x2a0] ss:$100 sps:$4 sm:$0xff]  }
 0x5c5   :  { %6047 = vmatpush1.bf16.msra.mxu1 %v8457_v40  ;;  %v8516_v40 = vld [vmem:[%s11408_s5 + $0x36c] ss:$100 sps:$4 sm:$0xff]  }
 0x5c6   :  { %6048 = vmatprep.subr.bf16.mxu1 %v8462_v42  ;;  %v8514_v42 = vld [vmem:[%s11408_s5 + $0x368] ss:$100 sps:$4 sm:$0xff]  }
 0x5c9   :  { %6049 = vmatpush1.bf16.msra.mxu1 %v8460_v43  ;;  %v8519_v43 = vld [vmem:[%s11408_s5 + $0x434] ss:$100 sps:$4 sm:$0xff]  }
 0x5ca   :  { %6050 = vmatprep.subr.bf16.mxu1 %v8465_v44  ;;  %v3602_v44 = vrot.slane %v10899_v48, %v10547_v4 }
 0x5cd   :  { %6051 = vmatpush1.bf16.msra.mxu1 %v8463_v45  ;;  %v3606_v45 = vrot.slane %v10899_v48, %v10553_v9 }
 0x5ce   :  { %6052 = vmatprep.subr.bf16.mxu1 %v8468_v46  ;;  %v8517_v46 = vld [vmem:[%s11408_s5 + $0x430] ss:$100 sps:$4 sm:$0xff]  }
 0x5d1   :  { %6053 = vmatpush1.bf16.msra.mxu1 %v8466_v47  ;;  %v8522_v47 = vld [vmem:[%s11408_s5 + $0x4fc] ss:$100 sps:$4 sm:$0xff]  }
 0x5d2   :  { %6054 = vmatprep.subr.bf16.mxu1 %v8471_v49 }
 0x5d3   :  { %v5906_v55 = vpop.f32.mrb[16].mxu1 }
 0x5d4   :  { %v5907_v56 = vadd.f32 %v5906_v55, %v3594_v50  ;;  %v5908_v57 = vpop.f32.mrb[17].mxu1  ;;  %v8520_v55 = vld [vmem:[%s11408_s5 + $0x4f8] ss:$100 sps:$4 sm:$0xff]  }
 0x5d5   :  { %v5909_v58 = vadd.f32 %v5908_v57, %v3598_v2  ;;  %v5910_v5 = vpop.f32.mrb[18].mxu1  ;;  %6055 = vmatpush1.bf16.msra.mxu1 %v8469_v51 }
 0x5d6   :  { %v6265_v62 = vmax.f32 %v5907_v56, 0.0  ;;  %v5911_v63 = vadd.f32 %v5910_v5, %v3594_v50  ;;  %v5912_v0 = vpop.f32.mrb[19].mxu1  ;;  %6056 = vmatprep.subr.bf16.mxu1 %v8474_v53  ;;  %v8525_v5 = vld [vmem:[%s11408_s5 + $0x5c4] ss:$100 sps:$4 sm:$0xff]  }
 0x5d7   :  { %v6266_v3 = vmax.f32 %v5909_v58, 0.0  ;;  %v5913_v18 = vadd.f32 %v5912_v0, %v3598_v2 }
 0x5d8   :  { %v6290_v7 = vmax.f32 %v5911_v63, 0.0 }
 0x5d9   :  { %v7347_v10 = vpack.c.bf16 %v6266_v3, %v6265_v62  ;;  %v6291_v11 = vmax.f32 %v5913_v18, 0.0  ;;  %6057 = vmatpush1.bf16.msra.mxu1 %v8472_v60  ;;  %v8523_v3 = vld [vmem:[%s11408_s5 + $0x5c0] ss:$100 sps:$4 sm:$0xff]   ;;  %v8528_v18 = vld [vmem:[%s11408_s5 + $0x68c] ss:$100 sps:$4 sm:$0xff]  }
 0x5da   :  { %6058 = vmatprep.subr.bf16.mxu1 %v8477_v1 }
 0x5db   :  { %6463 = vst [vmem:[%s11415_s9 + $0x20] sm:$0xff] %v7347_v10  ;;  %v7360_v14 = vpack.c.bf16 %v6291_v11, %v6290_v7  ;;  %v8526_v10 = vld [vmem:[%s11408_s5 + $0x688] ss:$100 sps:$4 sm:$0xff]   ;;  %v8531_v11 = vld [vmem:[%s11408_s5 + $0x754] ss:$100 sps:$4 sm:$0xff]  }
 0x5dd   :  { %6476 = vst [vmem:[%s11415_s9 + $0x84] sm:$0xff] %v7360_v14  ;;  %6059 = vmatpush1.bf16.msra.mxu1 %v8475_v12  ;;  %v8529_v12 = vld [vmem:[%s11408_s5 + $0x750] ss:$100 sps:$4 sm:$0xff]   ;;  %v8532_v14 = vld [vmem:[%s11408_s5 + $0x818] ss:$100 sps:$4 sm:$0xff]  }
 0x5de   :  { %6060 = vmatprep.subr.bf16.mxu1 %v8480_v13  ;;  %v8534_v13 = vld [vmem:[%s11408_s5 + $0x81c] ss:$100 sps:$4 sm:$0xff]  }
 0x5e1   :  { %6061 = vmatpush1.bf16.msra.mxu1 %v8478_v15  ;;  %v8537_v15 = vld [vmem:[%s11408_s5 + $0x8e4] ss:$100 sps:$4 sm:$0xff]  }
 0x5e2   :  { %6062 = vmatprep.subr.bf16.mxu1 %v8483_v16  ;;  %v8535_v16 = vld [vmem:[%s11408_s5 + $0x8e0] ss:$100 sps:$4 sm:$0xff]  }
 0x5e5   :  { %6063 = vmatpush1.bf16.msra.mxu1 %v8481_v17  ;;  %v8540_v17 = vld [vmem:[%s11408_s5 + $0x9ac] ss:$100 sps:$4 sm:$0xff]  }
 0x5e6   :  { %6064 = vmatprep.subr.bf16.mxu1 %v8486_v19  ;;  %v8538_v19 = vld [vmem:[%s11408_s5 + $0x9a8] ss:$100 sps:$4 sm:$0xff]  }
 0x5e9   :  { %6065 = vmatpush1.bf16.msra.mxu1 %v8484_v20  ;;  %v8543_v20 = vld [vmem:[%s11408_s5 + $0xa74] ss:$100 sps:$4 sm:$0xff]  }
 0x5ea   :  { %6066 = vmatprep.subr.bf16.mxu1 %v8489_v21  ;;  %v8541_v21 = vld [vmem:[%s11408_s5 + $0xa70] ss:$100 sps:$4 sm:$0xff]  }
 0x5ed   :  { %6067 = vmatpush1.bf16.msra.mxu1 %v8487_v22  ;;  %v8546_v22 = vld [vmem:[%s11408_s5 + $0xb3c] ss:$100 sps:$4 sm:$0xff]  }
 0x5ee   :  { %6068 = vmatprep.subr.bf16.mxu1 %v8492_v23  ;;  %v8544_v23 = vld [vmem:[%s11408_s5 + $0xb38] ss:$100 sps:$4 sm:$0xff]  }
 0x5f1   :  { %6069 = vmatpush1.bf16.msra.mxu1 %v8490_v24  ;;  %v8549_v24 = vld [vmem:[%s11408_s5 + $0xc04] ss:$100 sps:$4 sm:$0xff]  }
 0x5f2   :  { %6070 = vmatprep.subr.bf16.mxu1 %v8495_v25  ;;  %v8547_v25 = vld [vmem:[%s11408_s5 + $0xc00] ss:$100 sps:$4 sm:$0xff]  }
 0x5f5   :  { %6071 = vmatpush1.bf16.msra.mxu1 %v8493_v26  ;;  %v8552_v26 = vld [vmem:[%s11408_s5 + $0x54] ss:$100 sps:$4 sm:$0xff]  }
 0x5f6   :  { %6072 = vmatprep.subr.bf16.mxu1 %v8498_v27  ;;  %v8550_v27 = vld [vmem:[%s11408_s5 + $0x50] ss:$100 sps:$4 sm:$0xff]  }
 0x5f9   :  { %6073 = vmatpush1.bf16.msra.mxu1 %v8496_v28  ;;  %v8555_v28 = vld [vmem:[%s11408_s5 + $0x11c] ss:$100 sps:$4 sm:$0xff]  }
 0x5fa   :  { %6074 = vmatprep.subr.bf16.mxu1 %v8501_v29  ;;  %v8553_v29 = vld [vmem:[%s11408_s5 + $0x118] ss:$100 sps:$4 sm:$0xff]  }
 0x5fd   :  { %6075 = vmatpush1.bf16.msra.mxu1 %v8499_v30  ;;  %v8558_v30 = vld [vmem:[%s11408_s5 + $0x1e4] ss:$100 sps:$4 sm:$0xff]  }
 0x5fe   :  { %6087 = vmatprep.subr.bf16.mxu1 %v8504_v31  ;;  %v8556_v31 = vld [vmem:[%s11408_s5 + $0x1e0] ss:$100 sps:$4 sm:$0xff]  }
 0x600   :  { %6077 = vmatmul.mubr.bf16.vlgmr.msra.gmra.mrb[32].mxu1 %v10114_v32 }
 0x601   :  { %6088 = vmatpush1.bf16.msra.mxu1 %v8502_v33  ;;  %6119 = vmatprep.mubr.bf16.mxu1 %v10875_v41  ;;  %v8561_v33 = vld [vmem:[%s11408_s5 + $0x2ac] ss:$100 sps:$4 sm:$0xff]  }
 0x602   :  { %6089 = vmatprep.subr.bf16.mxu1 %v8507_v34  ;;  %v8559_v34 = vld [vmem:[%s11408_s5 + $0x2a8] ss:$100 sps:$4 sm:$0xff]  }
 0x605   :  { %6090 = vmatpush1.bf16.msra.mxu1 %v8505_v35  ;;  %v8564_v35 = vld [vmem:[%s11408_s5 + $0x374] ss:$100 sps:$4 sm:$0xff]  }
 0x606   :  { %6091 = vmatprep.subr.bf16.mxu1 %v8510_v36  ;;  %v8562_v36 = vld [vmem:[%s11408_s5 + $0x370] ss:$100 sps:$4 sm:$0xff]  }
 0x609   :  { %6092 = vmatpush1.bf16.msra.mxu1 %v8508_v37  ;;  %v8567_v37 = vld [vmem:[%s11408_s5 + $0x43c] ss:$100 sps:$4 sm:$0xff]  }
 0x60a   :  { %6093 = vmatprep.subr.bf16.mxu1 %v8513_v38  ;;  %v3610_v38 = vrot.slane %v10899_v48, %v10661_v59 }
 0x60d   :  { %6094 = vmatpush1.bf16.msra.mxu1 %v8511_v39  ;;  %v3614_v39 = vrot.slane %v10899_v48, %v10667_v61 }
 0x60e   :  { %6095 = vmatprep.subr.bf16.mxu1 %v8516_v40  ;;  %v8565_v40 = vld [vmem:[%s11408_s5 + $0x438] ss:$100 sps:$4 sm:$0xff]  }
 0x611   :  { %6096 = vmatpush1.bf16.msra.mxu1 %v8514_v42  ;;  %v8570_v42 = vld [vmem:[%s11408_s5 + $0x504] ss:$100 sps:$4 sm:$0xff]  }
 0x612   :  { %6097 = vmatprep.subr.bf16.mxu1 %v8519_v43 }
 0x613   :  { %v5949_v49 = vpop.f32.mrb[20].mxu1 }
 0x614   :  { %v5950_v50 = vadd.f32 %v5949_v49, %v3602_v44  ;;  %v5951_v2 = vpop.f32.mrb[21].mxu1  ;;  %v8568_v49 = vld [vmem:[%s11408_s5 + $0x500] ss:$100 sps:$4 sm:$0xff]  }
 0x615   :  { %v5952_v51 = vadd.f32 %v5951_v2, %v3606_v45  ;;  %v5953_v53 = vpop.f32.mrb[22].mxu1  ;;  %6098 = vmatpush1.bf16.msra.mxu1 %v8517_v46 }
 0x616   :  { %v6267_v56 = vmax.f32 %v5950_v50, 0.0  ;;  %v5954_v57 = vadd.f32 %v5953_v53, %v3602_v44  ;;  %v5955_v58 = vpop.f32.mrb[23].mxu1  ;;  %6099 = vmatprep.subr.bf16.mxu1 %v8522_v47  ;;  %v8573_v53 = vld [vmem:[%s11408_s5 + $0x5cc] ss:$100 sps:$4 sm:$0xff]  }
 0x617   :  { %v6268_v60 = vmax.f32 %v5952_v51, 0.0  ;;  %v5956_v62 = vadd.f32 %v5955_v58, %v3606_v45 }
 0x618   :  { %v6292_v63 = vmax.f32 %v5954_v57, 0.0 }
 0x619   :  { %v7348_v0 = vpack.c.bf16 %v6268_v60, %v6267_v56  ;;  %v6293_v1 = vmax.f32 %v5956_v62, 0.0  ;;  %6100 = vmatpush1.bf16.msra.mxu1 %v8520_v55  ;;  %v8571_v60 = vld [vmem:[%s11408_s5 + $0x5c8] ss:$100 sps:$4 sm:$0xff]   ;;  %v8576_v62 = vld [vmem:[%s11408_s5 + $0x694] ss:$100 sps:$4 sm:$0xff]  }
 0x61a   :  { %6101 = vmatprep.subr.bf16.mxu1 %v8525_v5 }
 0x61b   :  { %6464 = vst [vmem:[%s11415_s9 + $0x28] sm:$0xff] %v7348_v0  ;;  %v7361_v7 = vpack.c.bf16 %v6293_v1, %v6292_v63  ;;  %v8574_v0 = vld [vmem:[%s11408_s5 + $0x690] ss:$100 sps:$4 sm:$0xff]   ;;  %v8579_v1 = vld [vmem:[%s11408_s5 + $0x75c] ss:$100 sps:$4 sm:$0xff]  }
 0x61d   :  { %6477 = vst [vmem:[%s11415_s9 + $0x8c] sm:$0xff] %v7361_v7  ;;  %6102 = vmatpush1.bf16.msra.mxu1 %v8523_v3  ;;  %v8577_v3 = vld [vmem:[%s11408_s5 + $0x758] ss:$100 sps:$4 sm:$0xff]   ;;  %v8580_v7 = vld [vmem:[%s11408_s5 + $0x820] ss:$100 sps:$4 sm:$0xff]  }
 0x61e   :  { %6103 = vmatprep.subr.bf16.mxu1 %v8528_v18  ;;  %v8582_v18 = vld [vmem:[%s11408_s5 + $0x824] ss:$100 sps:$4 sm:$0xff]  }
 0x621   :  { %6104 = vmatpush1.bf16.msra.mxu1 %v8526_v10  ;;  %v8585_v10 = vld [vmem:[%s11408_s5 + $0x8ec] ss:$100 sps:$4 sm:$0xff]  }
 0x622   :  { %6105 = vmatprep.subr.bf16.mxu1 %v8531_v11  ;;  %v8583_v11 = vld [vmem:[%s11408_s5 + $0x8e8] ss:$100 sps:$4 sm:$0xff]  }
 0x625   :  { %6106 = vmatpush1.bf16.msra.mxu1 %v8529_v12  ;;  %v8588_v12 = vld [vmem:[%s11408_s5 + $0x9b4] ss:$100 sps:$4 sm:$0xff]  }
 0x626   :  { %6107 = vmatprep.subr.bf16.mxu1 %v8534_v13  ;;  %v8586_v13 = vld [vmem:[%s11408_s5 + $0x9b0] ss:$100 sps:$4 sm:$0xff]  }
 0x629   :  { %6108 = vmatpush1.bf16.msra.mxu1 %v8532_v14  ;;  %v8591_v14 = vld [vmem:[%s11408_s5 + $0xa7c] ss:$100 sps:$4 sm:$0xff]  }
 0x62a   :  { %6109 = vmatprep.subr.bf16.mxu1 %v8537_v15  ;;  %v8589_v15 = vld [vmem:[%s11408_s5 + $0xa78] ss:$100 sps:$4 sm:$0xff]  }
 0x62d   :  { %6110 = vmatpush1.bf16.msra.mxu1 %v8535_v16  ;;  %v8594_v16 = vld [vmem:[%s11408_s5 + $0xb44] ss:$100 sps:$4 sm:$0xff]  }
 0x62e   :  { %6111 = vmatprep.subr.bf16.mxu1 %v8540_v17  ;;  %v8592_v17 = vld [vmem:[%s11408_s5 + $0xb40] ss:$100 sps:$4 sm:$0xff]  }
 0x631   :  { %6112 = vmatpush1.bf16.msra.mxu1 %v8538_v19  ;;  %v8597_v19 = vld [vmem:[%s11408_s5 + $0xc0c] ss:$100 sps:$4 sm:$0xff]  }
 0x632   :  { %6113 = vmatprep.subr.bf16.mxu1 %v8543_v20  ;;  %v8595_v20 = vld [vmem:[%s11408_s5 + $0xc08] ss:$100 sps:$4 sm:$0xff]  }
 0x635   :  { %6114 = vmatpush1.bf16.msra.mxu1 %v8541_v21  ;;  %v8600_v21 = vld [vmem:[%s11408_s5 + $0x5c] ss:$100 sps:$4 sm:$0xff]  }
 0x636   :  { %6115 = vmatprep.subr.bf16.mxu1 %v8546_v22  ;;  %v8598_v22 = vld [vmem:[%s11408_s5 + $0x58] ss:$100 sps:$4 sm:$0xff]  }
 0x639   :  { %6116 = vmatpush1.bf16.msra.mxu1 %v8544_v23  ;;  %v8603_v23 = vld [vmem:[%s11408_s5 + $0x124] ss:$100 sps:$4 sm:$0xff]  }
 0x63a   :  { %6117 = vmatprep.subr.bf16.mxu1 %v8549_v24  ;;  %v8601_v24 = vld [vmem:[%s11408_s5 + $0x120] ss:$100 sps:$4 sm:$0xff]  }
 0x63d   :  { %6118 = vmatpush1.bf16.msra.mxu1 %v8547_v25  ;;  %v8606_v25 = vld [vmem:[%s11408_s5 + $0x1ec] ss:$100 sps:$4 sm:$0xff]  }
 0x63e   :  { %6130 = vmatprep.subr.bf16.mxu1 %v8552_v26  ;;  %v8604_v26 = vld [vmem:[%s11408_s5 + $0x1e8] ss:$100 sps:$4 sm:$0xff]  }
 0x640   :  { %6120 = vmatmul.mubr.bf16.vlgmr.msra.gmra.mrb[36].mxu1 %v10114_v32 }
 0x641   :  { %6131 = vmatpush1.bf16.msra.mxu1 %v8550_v27  ;;  %6162 = vmatprep.mubr.bf16.mxu1 %v10875_v41  ;;  %v8609_v27 = vld [vmem:[%s11408_s5 + $0x2b4] ss:$100 sps:$4 sm:$0xff]  }
 0x642   :  { %6132 = vmatprep.subr.bf16.mxu1 %v8555_v28  ;;  %v8607_v28 = vld [vmem:[%s11408_s5 + $0x2b0] ss:$100 sps:$4 sm:$0xff]  }
 0x645   :  { %6133 = vmatpush1.bf16.msra.mxu1 %v8553_v29  ;;  %v8612_v29 = vld [vmem:[%s11408_s5 + $0x37c] ss:$100 sps:$4 sm:$0xff]  }
 0x646   :  { %6134 = vmatprep.subr.bf16.mxu1 %v8558_v30  ;;  %v8610_v30 = vld [vmem:[%s11408_s5 + $0x378] ss:$100 sps:$4 sm:$0xff]  }
 0x649   :  { %6135 = vmatpush1.bf16.msra.mxu1 %v8556_v31  ;;  %v8615_v31 = vld [vmem:[%s11408_s5 + $0x444] ss:$100 sps:$4 sm:$0xff]  }
 0x64a   :  { %6136 = vmatprep.subr.bf16.mxu1 %v8561_v33  ;;  %v3618_v33 = vrot.slane %v10899_v48, %v10775_v52 }
 0x64d   :  { %6137 = vmatpush1.bf16.msra.mxu1 %v8559_v34  ;;  %v3622_v34 = vrot.slane %v10899_v48, %v10781_v54 }
 0x64e   :  { %6138 = vmatprep.subr.bf16.mxu1 %v8564_v35  ;;  %v8613_v35 = vld [vmem:[%s11408_s5 + $0x440] ss:$100 sps:$4 sm:$0xff]  }
 0x651   :  { %6139 = vmatpush1.bf16.msra.mxu1 %v8562_v36  ;;  %v8618_v36 = vld [vmem:[%s11408_s5 + $0x50c] ss:$100 sps:$4 sm:$0xff]  }
 0x652   :  { %6140 = vmatprep.subr.bf16.mxu1 %v8567_v37 }
 0x653   :  { %v5992_v43 = vpop.f32.mrb[24].mxu1 }
 0x654   :  { %v5993_v44 = vadd.f32 %v5992_v43, %v3610_v38  ;;  %v5994_v45 = vpop.f32.mrb[25].mxu1  ;;  %v8616_v43 = vld [vmem:[%s11408_s5 + $0x508] ss:$100 sps:$4 sm:$0xff]  }
 0x655   :  { %v5995_v46 = vadd.f32 %v5994_v45, %v3614_v39  ;;  %v5996_v47 = vpop.f32.mrb[26].mxu1  ;;  %6141 = vmatpush1.bf16.msra.mxu1 %v8565_v40 }
 0x656   :  { %v6269_v50 = vmax.f32 %v5993_v44, 0.0  ;;  %v5997_v2 = vadd.f32 %v5996_v47, %v3610_v38  ;;  %v5998_v51 = vpop.f32.mrb[27].mxu1  ;;  %6142 = vmatprep.subr.bf16.mxu1 %v8570_v42 }
 0x657   :  { %v6270_v55 = vmax.f32 %v5995_v46, 0.0  ;;  %v5999_v56 = vadd.f32 %v5998_v51, %v3614_v39  ;;  %v8621_v46 = vld [vmem:[%s11408_s5 + $0x5d4] ss:$100 sps:$4 sm:$0xff]  }
 0x658   :  { %v6294_v57 = vmax.f32 %v5997_v2, 0.0 }
 0x659   :  { %v7349_v58 = vpack.c.bf16 %v6270_v55, %v6269_v50  ;;  %v6295_v5 = vmax.f32 %v5999_v56, 0.0  ;;  %6143 = vmatpush1.bf16.msra.mxu1 %v8568_v49  ;;  %v8624_v55 = vld [vmem:[%s11408_s5 + $0x69c] ss:$100 sps:$4 sm:$0xff]  }
 0x65a   :  { %6144 = vmatprep.subr.bf16.mxu1 %v8573_v53  ;;  %v8619_v53 = vld [vmem:[%s11408_s5 + $0x5d0] ss:$100 sps:$4 sm:$0xff]  }
 0x65b   :  { %6465 = vst [vmem:[%s11415_s9 + $0x30] sm:$0xff] %v7349_v58  ;;  %v7362_v63 = vpack.c.bf16 %v6295_v5, %v6294_v57  ;;  %v8622_v57 = vld [vmem:[%s11408_s5 + $0x698] ss:$100 sps:$4 sm:$0xff]   ;;  %v8627_v58 = vld [vmem:[%s11408_s5 + $0x764] ss:$100 sps:$4 sm:$0xff]  }
 0x65c   :  { %v8625_v5 = vld [vmem:[%s11408_s5 + $0x760] ss:$100 sps:$4 sm:$0xff]  }
 0x65d   :  { %6478 = vst [vmem:[%s11415_s9 + $0x94] sm:$0xff] %v7362_v63  ;;  %6145 = vmatpush1.bf16.msra.mxu1 %v8571_v60  ;;  %v8630_v60 = vld [vmem:[%s11408_s5 + $0x82c] ss:$100 sps:$4 sm:$0xff]   ;;  %v8633_v63 = vld [vmem:[%s11408_s5 + $0x8f4] ss:$100 sps:$4 sm:$0xff]  }
 0x65e   :  { %6146 = vmatprep.subr.bf16.mxu1 %v8576_v62  ;;  %v8628_v62 = vld [vmem:[%s11408_s5 + $0x828] ss:$100 sps:$4 sm:$0xff]  }
 0x661   :  { %6147 = vmatpush1.bf16.msra.mxu1 %v8574_v0  ;;  %v8631_v0 = vld [vmem:[%s11408_s5 + $0x8f0] ss:$100 sps:$4 sm:$0xff]  }
 0x662   :  { %6148 = vmatprep.subr.bf16.mxu1 %v8579_v1  ;;  %v8636_v1 = vld [vmem:[%s11408_s5 + $0x9bc] ss:$100 sps:$4 sm:$0xff]  }
 0x665   :  { %6149 = vmatpush1.bf16.msra.mxu1 %v8577_v3  ;;  %v8634_v3 = vld [vmem:[%s11408_s5 + $0x9b8] ss:$100 sps:$4 sm:$0xff]  }
 0x666   :  { %6150 = vmatprep.subr.bf16.mxu1 %v8582_v18  ;;  %v8639_v18 = vld [vmem:[%s11408_s5 + $0xa84] ss:$100 sps:$4 sm:$0xff]  }
 0x669   :  { %6151 = vmatpush1.bf16.msra.mxu1 %v8580_v7  ;;  %v8637_v7 = vld [vmem:[%s11408_s5 + $0xa80] ss:$100 sps:$4 sm:$0xff]  }
 0x66a   :  { %6152 = vmatprep.subr.bf16.mxu1 %v8585_v10  ;;  %v8642_v10 = vld [vmem:[%s11408_s5 + $0xb4c] ss:$100 sps:$4 sm:$0xff]  }
 0x66d   :  { %6153 = vmatpush1.bf16.msra.mxu1 %v8583_v11  ;;  %v8640_v11 = vld [vmem:[%s11408_s5 + $0xb48] ss:$100 sps:$4 sm:$0xff]  }
 0x66e   :  { %6154 = vmatprep.subr.bf16.mxu1 %v8588_v12  ;;  %v8645_v12 = vld [vmem:[%s11408_s5 + $0xc14] ss:$100 sps:$4 sm:$0xff]  }
 0x671   :  { %6155 = vmatpush1.bf16.msra.mxu1 %v8586_v13  ;;  %v8643_v13 = vld [vmem:[%s11408_s5 + $0xc10] ss:$100 sps:$4 sm:$0xff]  }
 0x672   :  { %6156 = vmatprep.subr.bf16.mxu1 %v8591_v14  ;;  %v8646_v14 = vld [vmem:[%s11408_s5 + $0x6a0] ss:$100 sps:$4 sm:$0xff]  }
 0x675   :  { %6157 = vmatpush1.bf16.msra.mxu1 %v8589_v15  ;;  %v8647_v15 = vld [vmem:[%s11408_s5 + $0x60] ss:$100 sps:$4 sm:$0xff]  }
 0x676   :  { %6158 = vmatprep.subr.bf16.mxu1 %v8594_v16  ;;  %v8648_v16 = vld [vmem:[%s11408_s5 + $0x768] ss:$100 sps:$4 sm:$0xff]  }
 0x679   :  { %6159 = vmatpush1.bf16.msra.mxu1 %v8592_v17  ;;  %v8649_v17 = vld [vmem:[%s11408_s5 + $0x128] ss:$100 sps:$4 sm:$0xff]  }
 0x67a   :  { %6160 = vmatprep.subr.bf16.mxu1 %v8597_v19  ;;  %v8650_v19 = vld [vmem:[%s11408_s5 + $0x830] ss:$100 sps:$4 sm:$0xff]  }
 0x67d   :  { %6161 = vmatpush1.bf16.msra.mxu1 %v8595_v20  ;;  %v8651_v20 = vld [vmem:[%s11408_s5 + $0x1f0] ss:$100 sps:$4 sm:$0xff]  }
 0x67e   :  { %6173 = vmatprep.subr.bf16.mxu1 %v8600_v21  ;;  %v8652_v21 = vld [vmem:[%s11408_s5 + $0x8f8] ss:$100 sps:$4 sm:$0xff]  }
 0x680   :  { %6163 = vmatmul.mubr.bf16.vlgmr.msra.gmra.mrb[40].mxu1 %v10114_v32 }
 0x681   :  { %6174 = vmatpush1.bf16.msra.mxu1 %v8598_v22  ;;  %6205 = vmatprep.mubr.bf16.mxu1 %v10875_v41  ;;  %v8654_v22 = vld [vmem:[%s11408_s5 + $0x9c0] ss:$100 sps:$4 sm:$0xff]  }
 0x682   :  { %6175 = vmatprep.subr.bf16.mxu1 %v8603_v23  ;;  %v8655_v23 = vld [vmem:[%s11408_s5 + $0x380] ss:$100 sps:$4 sm:$0xff]  }
 0x685   :  { %6176 = vmatpush1.bf16.msra.mxu1 %v8601_v24  ;;  %v11336_v24 = vld [vmem:[%s11414_s6 + $0x10] sm:$0xff] }
 0x686   :  { %6177 = vmatprep.subr.bf16.mxu1 %v8606_v25  ;;  %v8656_v25 = vld [vmem:[%s11408_s5 + $0xa88] ss:$100 sps:$4 sm:$0xff]  }
 0x689   :  { %6178 = vmatpush1.bf16.msra.mxu1 %v8604_v26  ;;  %v3626_v26 = vrot.slane %v11336_v24, %v10077_v6  ;;  %v8659_v6 = vld [vmem:[%s11408_s5 + $0x510] ss:$100 sps:$4 sm:$0xff]  }
 0x68a   :  { %6179 = vmatprep.subr.bf16.mxu1 %v8609_v27  ;;  %v3630_v27 = vrot.slane %v11336_v24, %v10083_v8 }
 0x68d   :  { %6180 = vmatpush1.bf16.msra.mxu1 %v8607_v28  ;;  %v8657_v28 = vld [vmem:[%s11408_s5 + $0x448] ss:$100 sps:$4 sm:$0xff]  }
 0x68e   :  { %6181 = vmatprep.subr.bf16.mxu1 %v8612_v29  ;;  %v8658_v29 = vld [vmem:[%s11408_s5 + $0xb50] ss:$100 sps:$4 sm:$0xff]  }
 0x691   :  { %6182 = vmatpush1.bf16.msra.mxu1 %v8610_v30 }
 0x692   :  { %6183 = vmatprep.subr.bf16.mxu1 %v8615_v31 }
 0x693   :  { %v6035_v37 = vpop.f32.mrb[28].mxu1 }
 0x694   :  { %v6036_v38 = vadd.f32 %v6035_v37, %v3618_v33  ;;  %v6037_v39 = vpop.f32.mrb[29].mxu1 }
 0x695   :  { %v6038_v40 = vadd.f32 %v6037_v39, %v3622_v34  ;;  %v6039_v42 = vpop.f32.mrb[30].mxu1  ;;  %6184 = vmatpush1.bf16.msra.mxu1 %v8613_v35 }
 0x696   :  { %v6271_v48 = vmax.f32 %v6036_v38, 0.0  ;;  %v6040_v44 = vadd.f32 %v6039_v42, %v3618_v33  ;;  %v6041_v45 = vpop.f32.mrb[31].mxu1  ;;  %6185 = vmatprep.subr.bf16.mxu1 %v8618_v36  ;;  %v8660_v38 = vld [vmem:[%s11408_s5 + $0xc18] ss:$100 sps:$4 sm:$0xff]  }
 0x697   :  { %v6272_v47 = vmax.f32 %v6038_v40, 0.0  ;;  %v6042_v49 = vadd.f32 %v6041_v45, %v3622_v34 }
 0x698   :  { %v6296_v50 = vmax.f32 %v6040_v44, 0.0  ;;  %v8661_v44 = vld [vmem:[%s11408_s5 + $0x5d8] ss:$100 sps:$4 sm:$0xff]  }
 0x699   :  { %v7350_v2 = vpack.c.bf16 %v6272_v47, %v6271_v48  ;;  %v6297_v51 = vmax.f32 %v6042_v49, 0.0  ;;  %6186 = vmatpush1.bf16.msra.mxu1 %v8616_v43  ;;  %v3638_v47 = vrot.slane %v11336_v24, %v10553_v9  ;;  %v3646_v9 = vrot.slane %v11336_v24, %v10667_v61 }
 0x69a   :  { %6187 = vmatprep.subr.bf16.mxu1 %v8621_v46  ;;  %v3634_v46 = vrot.slane %v11336_v24, %v10547_v4  ;;  %v3642_v4 = vrot.slane %v11336_v24, %v10661_v59  ;;  %v3650_v61 = vrot.slane %v11336_v24, %v10775_v52 }
 0x69b   :  { %6466 = vst [vmem:[%s11415_s9 + $0x38] sm:$0xff] %v7350_v2  ;;  %v7363_v56 = vpack.c.bf16 %v6297_v51, %v6296_v50 }
 0x69d   :  { %6479 = vst [vmem:[%s11415_s9 + $0x9c] sm:$0xff] %v7363_v56  ;;  %6188 = vmatpush1.bf16.msra.mxu1 %v8619_v53 }
 0x69e   :  { %6189 = vmatprep.subr.bf16.mxu1 %v8624_v55 }
 0x6a1   :  { %6190 = vmatpush1.bf16.msra.mxu1 %v8622_v57 }
 0x6a2   :  { %6191 = vmatprep.subr.bf16.mxu1 %v8627_v58 }
 0x6a5   :  { %6192 = vmatpush1.bf16.msra.mxu1 %v8625_v5 }
 0x6a6   :  { %6193 = vmatprep.subr.bf16.mxu1 %v8630_v60 }
 0x6a9   :  { %6194 = vmatpush1.bf16.msra.mxu1 %v8628_v62 }
 0x6aa   :  { %6195 = vmatprep.subr.bf16.mxu1 %v8633_v63 }
 0x6ad   :  { %6196 = vmatpush1.bf16.msra.mxu1 %v8631_v0 }
 0x6ae   :  { %6197 = vmatprep.subr.bf16.mxu1 %v8636_v1 }
 0x6b1   :  { %6198 = vmatpush1.bf16.msra.mxu1 %v8634_v3 }
 0x6b2   :  { %6199 = vmatprep.subr.bf16.mxu1 %v8639_v18 }
 0x6b5   :  { %6200 = vmatpush1.bf16.msra.mxu1 %v8637_v7 }
 0x6b6   :  { %6201 = vmatprep.subr.bf16.mxu1 %v8642_v10 }
 0x6b9   :  { %6202 = vmatpush1.bf16.msra.mxu1 %v8640_v11 }
 0x6ba   :  { %6203 = vmatprep.subr.bf16.mxu1 %v8645_v12 }
 0x6bd   :  { %6204 = vmatpush1.bf16.msra.mxu1 %v8643_v13 }
 0x6be   :  { %7369 = vmatprep.subr.bf16.mxu1 %v8646_v14 }
 0x6c0   :  { %6206 = vmatmul.mubr.bf16.vlgmr.msra.gmra.mrb[44].mxu1 %v10114_v32 }
 0x6c1   :  { %7370 = vmatpush3.bf16.msra.mxu1 %v8647_v15  ;;  %6248 = vmatprep.mubr.bf16.mxu1 %v10875_v41  ;;  %v8653_v41 = vld [vmem:[%s11408_s5 + $0x2b8] ss:$100 sps:$4 sm:$0xff]  }
 0x6c2   :  { %7371 = vmatprep.subr.bf16.mxu1 %v8648_v16 }
 0x6c5   :  { %7372 = vmatpush3.bf16.msra.mxu1 %v8649_v17 }
 0x6c6   :  { %7373 = vmatprep.subr.bf16.mxu1 %v8650_v19  ;;  %v3654_v19 = vrot.slane %v11336_v24, %v10781_v54  ;;  %v6916_v24 = vld [vmem:[%s11414_s6 + $0x18] ss:$0 sm:$0xff] }
 0x6c9   :  { %7374 = vmatpush3.bf16.msra.mxu1 %v8651_v20 }
 0x6ca   :  { %7375 = vmatprep.subr.bf16.mxu1 %v8652_v21 }
 0x6cd   :  { %7376 = vmatpush3.bf16.msra.mxu1 %v8653_v41 }
 0x6ce   :  { %7377 = vmatprep.subr.bf16.mxu1 %v8654_v22 }
 0x6d1   :  { %7378 = vmatpush3.bf16.msra.mxu1 %v8655_v23 }
 0x6d2   :  { %7379 = vmatprep.subr.bf16.mxu1 %v8656_v25 }
 0x6d3   :  { %v6078_v30 = vpop.f32.mrb[32].mxu1 }
 0x6d4   :  { %v6079_v31 = vadd.f32 %v6078_v30, %v3626_v26  ;;  %v6080_v33 = vpop.f32.mrb[33].mxu1 }
 0x6d5   :  { %v6081_v34 = vadd.f32 %v6080_v33, %v3630_v27  ;;  %v6082_v35 = vpop.f32.mrb[34].mxu1  ;;  %7380 = vmatpush3.bf16.msra.mxu1 %v8657_v28 }
 0x6d6   :  { %v6273_v8 = vmax.f32 %v6079_v31, 0.0  ;;  %v6083_v36 = vadd.f32 %v6082_v35, %v3626_v26  ;;  %v6084_v37 = vpop.f32.mrb[35].mxu1  ;;  %7381 = vmatprep.subr.bf16.mxu1 %v8658_v29 }
 0x6d7   :  { %v6274_v39 = vmax.f32 %v6081_v34, 0.0  ;;  %v6085_v40 = vadd.f32 %v6084_v37, %v3630_v27 }
 0x6d8   :  { %v6298_v42 = vmax.f32 %v6083_v36, 0.0 }
 0x6d9   :  { %v7351_v43 = vpack.c.bf16 %v6274_v39, %v6273_v8  ;;  %v6299_v48 = vmax.f32 %v6085_v40, 0.0  ;;  %7382 = vmatpush3.bf16.msra.mxu1 %v8659_v6 }
 0x6da   :  { %7383 = vmatprep.subr.bf16.mxu1 %v8660_v38 }
 0x6db   :  { %6467 = vst [vmem:[%s11415_s9 + $0x40] sm:$0xff] %v7351_v43  ;;  %v7364_v45 = vpack.c.bf16 %v6299_v48, %v6298_v42 }
 0x6dd   :  { %6480 = vst [vmem:[%s11415_s9 + $0xa4] sm:$0xff] %v7364_v45  ;;  %7384 = vmatpush3.bf16.msra.mxu1 %v8661_v44 }
 0x6e0   :  { %6249 = vmatmul.mubr.bf16.vlgmr.msra.gmra.mrb[48].mxu1 %v10114_v32 }
 0x713   :  { %v6121_v49 = vpop.f32.mrb[36].mxu1 }
 0x714   :  { %v6122_v50 = vadd.f32 %v6121_v49, %v3634_v46  ;;  %v6123_v2 = vpop.f32.mrb[37].mxu1 }
 0x715   :  { %v6124_v51 = vadd.f32 %v6123_v2, %v3638_v47  ;;  %v6125_v53 = vpop.f32.mrb[38].mxu1 }
 0x716   :  { %v6275_v55 = vmax.f32 %v6122_v50, 0.0  ;;  %v6126_v56 = vadd.f32 %v6125_v53, %v3634_v46  ;;  %v6127_v57 = vpop.f32.mrb[39].mxu1 }
 0x717   :  { %v6276_v58 = vmax.f32 %v6124_v51, 0.0  ;;  %v6128_v5 = vadd.f32 %v6127_v57, %v3638_v47 }
 0x718   :  { %v6300_v60 = vmax.f32 %v6126_v56, 0.0 }
 0x719   :  { %v7352_v62 = vpack.c.bf16 %v6276_v58, %v6275_v55  ;;  %v6301_v63 = vmax.f32 %v6128_v5, 0.0 }
 0x71b   :  { %6468 = vst [vmem:[%s11415_s9 + $0x48] sm:$0xff] %v7352_v62  ;;  %v7365_v32 = vpack.c.bf16 %v6301_v63, %v6300_v60 }
 0x71d   :  { %6481 = vst [vmem:[%s11415_s9 + $0xac] sm:$0xff] %v7365_v32 }
 0x753   :  { %v6164_v0 = vpop.f32.mrb[40].mxu1 }
 0x754   :  { %v6165_v1 = vadd.f32 %v6164_v0, %v3642_v4  ;;  %v6166_v3 = vpop.f32.mrb[41].mxu1 }
 0x755   :  { %v6167_v18 = vadd.f32 %v6166_v3, %v3646_v9  ;;  %v6168_v7 = vpop.f32.mrb[42].mxu1 }
 0x756   :  { %v6277_v10 = vmax.f32 %v6165_v1, 0.0  ;;  %v6169_v11 = vadd.f32 %v6168_v7, %v3642_v4  ;;  %v6170_v12 = vpop.f32.mrb[43].mxu1 }
 0x757   :  { %v6278_v13 = vmax.f32 %v6167_v18, 0.0  ;;  %v6171_v14 = vadd.f32 %v6170_v12, %v3646_v9 }
 0x758   :  { %v6302_v15 = vmax.f32 %v6169_v11, 0.0 }
 0x759   :  { %v7353_v16 = vpack.c.bf16 %v6278_v13, %v6277_v10  ;;  %v6303_v17 = vmax.f32 %v6171_v14, 0.0 }
 0x75b   :  { %6469 = vst [vmem:[%s11415_s9 + $0x50] sm:$0xff] %v7353_v16  ;;  %v7366_v59 = vpack.c.bf16 %v6303_v17, %v6302_v15 }
 0x75d   :  { %6482 = vst [vmem:[%s11415_s9 + $0xb4] sm:$0xff] %v7366_v59 }
 0x793   :  { %v6207_v20 = vpop.f32.mrb[44].mxu1 }
 0x794   :  { %v6208_v21 = vadd.f32 %v6207_v20, %v3650_v61  ;;  %v6209_v41 = vpop.f32.mrb[45].mxu1 }
 0x795   :  { %v6210_v22 = vadd.f32 %v6209_v41, %v3654_v19  ;;  %v6211_v23 = vpop.f32.mrb[46].mxu1 }
 0x796   :  { %v6279_v25 = vmax.f32 %v6208_v21, 0.0  ;;  %v6212_v26 = vadd.f32 %v6211_v23, %v3650_v61  ;;  %v6213_v27 = vpop.f32.mrb[47].mxu1 }
 0x797   :  { %v6280_v28 = vmax.f32 %v6210_v22, 0.0  ;;  %v6214_v29 = vadd.f32 %v6213_v27, %v3654_v19 }
 0x798   :  { %v6304_v30 = vmax.f32 %v6212_v26, 0.0 }
 0x799   :  { %v7354_v31 = vpack.c.bf16 %v6280_v28, %v6279_v25  ;;  %v6305_v33 = vmax.f32 %v6214_v29, 0.0 }
 0x79b   :  { %6470 = vst [vmem:[%s11415_s9 + $0x58] sm:$0xff] %v7354_v31  ;;  %v7367_v52 = vpack.c.bf16 %v6305_v33, %v6304_v30 }
 0x79d   :  { %6483 = vst [vmem:[%s11415_s9 + $0xbc] sm:$0xff] %v7367_v52 }
 0x7b3   :  { %v7385_v54 = vpop.f32.mrb[48].mxu1 }
 0x7b4   :  { %v7386_v34 = vpop.f32.mrb[49].mxu1 }
 0x7b5   :  { %v7387_v35 = vadd.f32 %v7386_v34, %v7385_v54  ;;  %v7388_v6 = vpop.f32.mrb[50].mxu1 }
 0x7b6   :  { %v7389_v8 = vpop.f32.mrb[51].mxu1 }
 0x7b7   :  { %v6251_v36 = vadd.f32 %v7387_v35, %v6916_v24  ;;  %v7390_v37 = vadd.f32 %v7389_v8, %v7388_v6 }
 0x7b9   :  { %v6281_v38 = vmax.f32 %v6251_v36, 0.0  ;;  %v6254_v39 = vadd.f32 %v7390_v37, %v6916_v24 }
 0x7bb   :  { %v7355_v40 = vpack.c.bf16 %v6281_v38, %v6281_v38  ;;  %v6306_v42 = vmax.f32 %v6254_v39, 0.0 }
 0x7bd   :  { %6471 = vst [vmem:[%s11415_s9 + $0x60] sm:$0xf] %v7355_v40  ;;  %v7368_v43 = vpack.c.bf16 %v6306_v42, %v6306_v42 }
 0x7bf   :  { %6484 = vst [vmem:[%s11415_s9 + $0xc4] sm:$0xf] %v7368_v43 }

// kernel: cond_vae_forward.13
= control target key start
LH: loop header
LB: loop body
LE: loop exit
PB: predicated region body
PF: predicated region fallthrough
CT: control target
= control target key end

     0   :  { %s1616_s12 = smov 0   ;;  %s1861_s0 = inlined_call_operand.vmem [shape: bf16[1600,128], index: 0, kind: input, shape index: {}]   ;;  %s1862_s1 = inlined_call_operand.vmem [shape: bf16[128,128], index: 1, kind: input, shape index: {}]   ;;  %s1863_s2 = inlined_call_operand.vmem [shape: f32[1,128], index: 2, kind: input, shape index: {}]   ;;  %s1864_s3 = inlined_call_operand.vmem [shape: f32[1600,128], index: 3, kind: output, shape index: {}]  }
   0x1 LB: > { %s1085_s13 = sadd.s32 4294967295, %s1592_s12   ;;  %p1089_p0 = scmp.ge.s32.totalorder %s1592_s12, 1  ;;  %s1592_s12 = sphi %s1616_s12, %s13_s12  }
   0x2   : > { %p138_p1 = scmp.lt.s32.totalorder %s1592_s12, 5 }
   0x4   : > { %p139_p2 = pnand %p1089_p0, %p138_p1 }
   0x5   : > { %v1353_v0 = vld [vmem:[%s1862_s1] sm:$0xff] (!%p139_p2)   ;;  %v1594_v1 = vmov (!%p139_p2), 0.0   ;;  %v1354_v2 = vld [vmem:[%s1862_s1 + $0x8] sm:$0xff] (!%p139_p2)   ;;  %s162_s18 = smul.u32 (!%p139_p2), 50, %s1085_s13  ;;  %vm1595_vm0 = vmmov (!%p139_p2), 0   ;;  %v1355_v3 = vld [vmem:[%s1862_s1 + $0x10] sm:$0xff] (!%p139_p2)  }
   0x6   : > { %142 = sbr.rel (%p139_p2) target bundleno = 384 (0x180), region = 32  ;;  %1211 = vmatprep.subr.bf16.mxu0 (!%p139_p2), %v1594_v1  ;;  %1327 = vmatprep.subr.bf16.mxu1 (!%p139_p2), %v1594_v1  ;;  %v1356_v4 = vld [vmem:[%s1862_s1 + $0x18] sm:$0xff] (!%p139_p2)   ;;  %v1357_v5 = vld [vmem:[%s1862_s1 + $0x20] sm:$0xff] (!%p139_p2)   ;;  %v1358_v6 = vld [vmem:[%s1862_s1 + $0x28] sm:$0xff] (!%p139_p2)  }
   0x7   : > { %1212 = vmatpush3.bf16.msra.mxu0 (!%p139_p2), %v1353_v0  ;;  %1335 = vmatpush3.bf16.msra.mxu1 (!%p139_p2), %v1353_v0  ;;  %p163_p3 = scmp.lt.s32.totalorder (!%p139_p2), %s162_s18, 199  ;;  %v1359_v7 = vld [vmem:[%s1862_s1 + $0x30] sm:$0xff] (!%p139_p2)   ;;  %v1360_v8 = vld [vmem:[%s1862_s1 + $0x38] sm:$0xff] (!%p139_p2)   ;;  %v1750_v34 = vld [vmem:[%s1863_s2] ss:$0 sm:$0xff] (!%p139_p2) }
   0x8   : > { %1213 = vmatprep.subr.bf16.mxu0 (!%p139_p2), %v1594_v1  ;;  %1328 = vmatprep.subr.bf16.mxu1 (!%p139_p2), %v1594_v1 }
   0x9   : > { %1227 = vmatprep.mubr.msk.bf16.mxu0 (!%p139_p2), %vm1595_vm0, %v1594_v1  ;;  %1279 = vmatprep.mubr.msk.bf16.mxu1 (!%p139_p2), %vm1595_vm0, %v1594_v1 }
   0xb   : > { %1214 = vmatpush3.bf16.msra.mxu0 (!%p139_p2), %v1354_v2  ;;  %1336 = vmatpush3.bf16.msra.mxu1 (!%p139_p2), %v1354_v2 }
   0xc   : > { %1215 = vmatprep.subr.bf16.mxu0 (!%p139_p2), %v1594_v1  ;;  %1329 = vmatprep.subr.bf16.mxu1 (!%p139_p2), %v1594_v1 }
   0xd   : > { %s1866_s18 = smov (!%p163_p3, %s162_s18), 199 }
   0xe   : > { %s1090_s21 = sshll.u32 %s1866_s18, 2  ;;  %s1091_s10 = sshll.u32 %s1866_s18, 3 }
   0xf   : > { %s1649_s24 = scalar_lea.vmem %s1861_s0, %s1090_s21  ;;  %1216 = vmatpush3.bf16.msra.mxu0 %v1355_v3  ;;  %1337 = vmatpush3.bf16.msra.mxu1 %v1355_v3  ;;  %s1770_s14 = scalar_lea.vmem %s1864_s3, %s1091_s10 }
  0x10   : > { %1217 = vmatprep.subr.bf16.mxu0 %v1594_v1  ;;  %1330 = vmatprep.subr.bf16.mxu1 %v1594_v1  ;;  %v1361_v9 = vld [vmem:[%s1649_s24] sm:$0xff]   ;;  %v1362_v10 = vld [vmem:[%s1649_s24 + $0x68] sm:$0xff]   ;;  %v1364_v12 = vld [vmem:[%s1649_s24 + $0x70] sm:$0xff]  }
  0x11   : > { %v1363_v11 = vld [vmem:[%s1649_s24 + $0x8] sm:$0xff]   ;;  %v1365_v13 = vld [vmem:[%s1649_s24 + $0x10] sm:$0xff]   ;;  %v1366_v14 = vld [vmem:[%s1649_s24 + $0x78] sm:$0xff]  }
  0x12   : > { %v1367_v15 = vld [vmem:[%s1649_s24 + $0x18] sm:$0xff]   ;;  %v1368_v16 = vld [vmem:[%s1649_s24 + $0x80] sm:$0xff]   ;;  %v1370_v18 = vld [vmem:[%s1649_s24 + $0x88] sm:$0xff]  }
  0x13   : > { %1218 = vmatpush3.bf16.msra.mxu0 %v1356_v4  ;;  %1338 = vmatpush3.bf16.msra.mxu1 %v1356_v4  ;;  %v1369_v17 = vld [vmem:[%s1649_s24 + $0x20] sm:$0xff]   ;;  %v1371_v19 = vld [vmem:[%s1649_s24 + $0x28] sm:$0xff]   ;;  %v1372_v20 = vld [vmem:[%s1649_s24 + $0x90] sm:$0xff]  }
  0x14   : > { %1219 = vmatprep.subr.bf16.mxu0 %v1594_v1  ;;  %1331 = vmatprep.subr.bf16.mxu1 %v1594_v1  ;;  %v1373_v21 = vld [vmem:[%s1649_s24 + $0x30] sm:$0xff]   ;;  %v1374_v22 = vld [vmem:[%s1649_s24 + $0x98] sm:$0xff]   ;;  %v1376_v24 = vld [vmem:[%s1649_s24 + $0xa0] sm:$0xff]  }
  0x15   : > { %v1375_v23 = vld [vmem:[%s1649_s24 + $0x38] sm:$0xff]   ;;  %v1377_v25 = vld [vmem:[%s1649_s24 + $0x40] sm:$0xff]   ;;  %v1378_v26 = vld [vmem:[%s1649_s24 + $0xa8] sm:$0xff]  }
  0x16   : > { %v1379_v27 = vld [vmem:[%s1649_s24 + $0x48] sm:$0xff]   ;;  %v1380_v28 = vld [vmem:[%s1649_s24 + $0xb0] sm:$0xff]   ;;  %v1382_v30 = vld [vmem:[%s1649_s24 + $0xb8] sm:$0xff]  }
  0x17   : > { %1220 = vmatpush3.bf16.msra.mxu0 %v1357_v5  ;;  %1339 = vmatpush3.bf16.msra.mxu1 %v1357_v5  ;;  %v1381_v29 = vld [vmem:[%s1649_s24 + $0x50] sm:$0xff]   ;;  %v1383_v31 = vld [vmem:[%s1649_s24 + $0x58] sm:$0xff]   ;;  %v1384_v32 = vld [vmem:[%s1649_s24 + $0xc0] sm:$0xff]  }
  0x18   : > { %1221 = vmatprep.subr.bf16.mxu0 %v1594_v1  ;;  %1332 = vmatprep.subr.bf16.mxu1 %v1594_v1  ;;  %v1385_v33 = vld [vmem:[%s1649_s24 + $0x60] sm:$0xff]  }
  0x1b   : > { %1222 = vmatpush3.bf16.msra.mxu0 %v1358_v6  ;;  %1340 = vmatpush3.bf16.msra.mxu1 %v1358_v6 }
  0x1c   : > { %1223 = vmatprep.subr.bf16.mxu0 %v1594_v1  ;;  %1333 = vmatprep.subr.bf16.mxu1 %v1594_v1 }
  0x1f   : > { %1224 = vmatpush3.bf16.msra.mxu0 %v1359_v7  ;;  %1341 = vmatpush3.bf16.msra.mxu1 %v1359_v7 }
  0x20   : > { %1225 = vmatprep.subr.bf16.mxu0 %v1594_v1  ;;  %1334 = vmatprep.subr.bf16.mxu1 %v1594_v1 }
  0x23   : > { %1226 = vmatpush3.bf16.msra.mxu0 %v1360_v8  ;;  %1342 = vmatpush3.bf16.msra.mxu1 %v1360_v8 }
  0x26   : > { %1228 = vmatmul.mubr.bf16.vlgmr.msra.gmra.mrb[0].mxu0 %v1361_v9  ;;  %1280 = vmatmul.mubr.bf16.vlgmr.msra.gmra.mrb[0].mxu1 %v1362_v10 }
  0x27   : > { %1231 = vmatprep.mubr.msk.bf16.mxu0 %vm1595_vm0, %v1594_v1  ;;  %1283 = vmatprep.mubr.msk.bf16.mxu1 %vm1595_vm0, %v1594_v1 }
  0x2e   : > { %1232 = vmatmul.mubr.bf16.gmra.mrb[4].mxu0 %v1363_v11  ;;  %1284 = vmatmul.mubr.bf16.gmra.mrb[4].mxu1 %v1364_v12 }
  0x2f   : > { %1235 = vmatprep.mubr.msk.bf16.mxu0 %vm1595_vm0, %v1594_v1  ;;  %1287 = vmatprep.mubr.msk.bf16.mxu1 %vm1595_vm0, %v1594_v1 }
  0x36   : > { %1236 = vmatmul.mubr.bf16.gmra.mrb[8].mxu0 %v1365_v13  ;;  %1288 = vmatmul.mubr.bf16.gmra.mrb[8].mxu1 %v1366_v14 }
  0x37   : > { %1239 = vmatprep.mubr.msk.bf16.mxu0 %vm1595_vm0, %v1594_v1  ;;  %1291 = vmatprep.mubr.msk.bf16.mxu1 %vm1595_vm0, %v1594_v1 }
  0x3e   : > { %1240 = vmatmul.mubr.bf16.gmra.mrb[12].mxu0 %v1367_v15  ;;  %1292 = vmatmul.mubr.bf16.gmra.mrb[12].mxu1 %v1368_v16 }
  0x3f   : > { %1243 = vmatprep.mubr.msk.bf16.mxu0 %vm1595_vm0, %v1594_v1  ;;  %1295 = vmatprep.mubr.msk.bf16.mxu1 %vm1595_vm0, %v1594_v1 }
  0x46   : > { %1244 = vmatmul.mubr.bf16.gmra.mrb[16].mxu0 %v1369_v17  ;;  %1296 = vmatmul.mubr.bf16.gmra.mrb[16].mxu1 %v1370_v18 }
  0x47   : > { %1247 = vmatprep.mubr.msk.bf16.mxu0 %vm1595_vm0, %v1594_v1  ;;  %1299 = vmatprep.mubr.msk.bf16.mxu1 %vm1595_vm0, %v1594_v1 }
  0x4e   : > { %1248 = vmatmul.mubr.bf16.gmra.mrb[20].mxu0 %v1371_v19  ;;  %1300 = vmatmul.mubr.bf16.gmra.mrb[20].mxu1 %v1372_v20 }
  0x4f   : > { %1251 = vmatprep.mubr.msk.bf16.mxu0 %vm1595_vm0, %v1594_v1  ;;  %1303 = vmatprep.mubr.msk.bf16.mxu1 %vm1595_vm0, %v1594_v1 }
  0x56   : > { %1252 = vmatmul.mubr.bf16.gmra.mrb[24].mxu0 %v1373_v21  ;;  %1304 = vmatmul.mubr.bf16.gmra.mrb[24].mxu1 %v1374_v22 }
  0x57   : > { %1255 = vmatprep.mubr.msk.bf16.mxu0 %vm1595_vm0, %v1594_v1  ;;  %1307 = vmatprep.mubr.msk.bf16.mxu1 %vm1595_vm0, %v1594_v1 }
  0x5e   : > { %1256 = vmatmul.mubr.bf16.gmra.mrb[28].mxu0 %v1375_v23  ;;  %1308 = vmatmul.mubr.bf16.gmra.mrb[28].mxu1 %v1376_v24 }
  0x5f   : > { %1259 = vmatprep.mubr.msk.bf16.mxu0 %vm1595_vm0, %v1594_v1  ;;  %1311 = vmatprep.mubr.msk.bf16.mxu1 %vm1595_vm0, %v1594_v1 }
  0x66   : > { %1260 = vmatmul.mubr.bf16.gmra.mrb[32].mxu0 %v1377_v25  ;;  %1312 = vmatmul.mubr.bf16.gmra.mrb[32].mxu1 %v1378_v26 }
  0x67   : > { %1263 = vmatprep.mubr.msk.bf16.mxu0 %vm1595_vm0, %v1594_v1  ;;  %1315 = vmatprep.mubr.msk.bf16.mxu1 %vm1595_vm0, %v1594_v1 }
  0x6e   : > { %1264 = vmatmul.mubr.bf16.gmra.mrb[36].mxu0 %v1379_v27  ;;  %1316 = vmatmul.mubr.bf16.gmra.mrb[36].mxu1 %v1380_v28 }
  0x6f   : > { %1267 = vmatprep.mubr.msk.bf16.mxu0 %vm1595_vm0, %v1594_v1  ;;  %1319 = vmatprep.mubr.msk.bf16.mxu1 %vm1595_vm0, %v1594_v1 }
  0x76   : > { %1268 = vmatmul.mubr.bf16.gmra.mrb[40].mxu0 %v1381_v29  ;;  %1320 = vmatmul.mubr.bf16.gmra.mrb[40].mxu1 %v1382_v30 }
  0x77   : > { %1271 = vmatprep.mubr.msk.bf16.mxu0 %vm1595_vm0, %v1594_v1  ;;  %1323 = vmatprep.mubr.msk.bf16.mxu1 %vm1595_vm0, %v1594_v1 }
  0x7e   : > { %1272 = vmatmul.mubr.bf16.gmra.mrb[44].mxu0 %v1383_v31  ;;  %1324 = vmatmul.mubr.bf16.gmra.mrb[44].mxu1 %v1384_v32 }
  0x7f   : > { %1275 = vmatprep.mubr.msk.bf16.mxu0 %vm1595_vm0, %v1594_v1 }
  0x86   : > { %1276 = vmatmul.mubr.bf16.gmra.mrb[48].mxu0 %v1385_v33 }
  0xf9   : > { %v480_v35 = vpop.f32.mrb[0].mxu0  ;;  %v584_v36 = vpop.f32.mrb[0].mxu1 }
  0xfa   : > { %v481_v37 = vadd.f32 %v1750_v34, %v480_v35  ;;  %v1229_v38 = vpop.f32.mrb[1].mxu0  ;;  %v585_v39 = vadd.f32 %v1750_v34, %v584_v36  ;;  %v1281_v40 = vpop.f32.mrb[1].mxu1 }
  0xfb   : > { %v483_v41 = vpop.f32.mrb[2].mxu0  ;;  %v587_v42 = vpop.f32.mrb[2].mxu1 }
  0xfc   : > { %v1126_v43 = vmul.f32 -1.442695, %v481_v37  ;;  %v484_v44 = vadd.f32 %v1750_v34, %v483_v41  ;;  %v1230_v45 = vpop.f32.mrb[3].mxu0  ;;  %v1152_v46 = vmul.f32 -1.442695, %v585_v39  ;;  %v588_v47 = vadd.f32 %v1750_v34, %v587_v42  ;;  %v1282_v48 = vpop.f32.mrb[3].mxu1 }
  0xfe   : > { %1386 = vpow2.f32 %v1126_v43  ;;  %v1127_v49 = vmul.f32 -1.442695, %v484_v44  ;;  %v1153_v50 = vmul.f32 -1.442695, %v588_v47 }
  0xff   : > { %1388 = vpow2.f32 %v1152_v46 }
 0x100   : > { %1390 = vpow2.f32 %v1127_v49 }
 0x101   : > { %1392 = vpow2.f32 %v1153_v50  ;;  %v488_v51 = vpop.f32.mrb[4].mxu0  ;;  %v592_v52 = vpop.f32.mrb[4].mxu1 }
 0x102   : > { %v489_v53 = vadd.f32 %v1750_v34, %v488_v51  ;;  %v1233_v54 = vpop.f32.mrb[5].mxu0  ;;  %v593_v55 = vadd.f32 %v1750_v34, %v592_v52  ;;  %v1285_v56 = vpop.f32.mrb[5].mxu1 }
 0x103   : > { %v491_v57 = vpop.f32.mrb[6].mxu0  ;;  %v595_v58 = vpop.f32.mrb[6].mxu1 }
 0x104   : > { %v1128_v59 = vmul.f32 -1.442695, %v489_v53  ;;  %v492_v60 = vadd.f32 %v1750_v34, %v491_v57  ;;  %v1234_v61 = vpop.f32.mrb[7].mxu0  ;;  %v1154_v62 = vmul.f32 -1.442695, %v593_v55  ;;  %v596_v63 = vadd.f32 %v1750_v34, %v595_v58  ;;  %v1286_v0 = vpop.f32.mrb[7].mxu1 }
 0x106   : > { %1394 = vpow2.f32 %v1128_v59  ;;  %v1129_v1 = vmul.f32 -1.442695, %v492_v60  ;;  %v1155_v2 = vmul.f32 -1.442695, %v596_v63 }
 0x107   : > { %1396 = vpow2.f32 %v1154_v62 }
 0x108   : > { %v1387_v3 = vpop.eup %1386  ;;  %1398 = vpow2.f32 %v1129_v1 }
 0x109   : > { %v1389_v4 = vpop.eup %1388  ;;  %v829_v5 = vadd.f32 1.0, %v1387_v3  ;;  %1400 = vpow2.f32 %v1155_v2  ;;  %v496_v6 = vpop.f32.mrb[8].mxu0 }
 0x10a   : > { %v600_v7 = vpop.f32.mrb[8].mxu1  ;;  %v1391_v8 = vpop.eup %1390  ;;  %v855_v9 = vadd.f32 1.0, %v1389_v4  ;;  %v497_v10 = vadd.f32 %v1750_v34, %v496_v6 }
 0x10b   : > { %v1237_v11 = vpop.f32.mrb[9].mxu0  ;;  %v601_v12 = vadd.f32 %v1750_v34, %v600_v7  ;;  %v1289_v13 = vpop.f32.mrb[9].mxu1  ;;  %1402 = vrcp.f32 %v829_v5  ;;  %v830_v15 = vadd.f32 1.0, %v1391_v8 }
 0x10c   : > { %v1393_v14 = vpop.eup %1392  ;;  %v499_v16 = vpop.f32.mrb[10].mxu0  ;;  %1404 = vrcp.f32 %v855_v9  ;;  %v1130_v19 = vmul.f32 -1.442695, %v497_v10 }
 0x10d   : > { %v603_v17 = vpop.f32.mrb[10].mxu1  ;;  %v856_v18 = vadd.f32 1.0, %v1393_v14  ;;  %v500_v20 = vadd.f32 %v1750_v34, %v499_v16  ;;  %v1238_v21 = vpop.f32.mrb[11].mxu0  ;;  %1406 = vrcp.f32 %v830_v15  ;;  %v1156_v23 = vmul.f32 -1.442695, %v601_v12 }
 0x10e   : > { %v1290_v22 = vpop.f32.mrb[11].mxu1  ;;  %v604_v24 = vadd.f32 %v1750_v34, %v603_v17 }
 0x10f   : > { %1408 = vrcp.f32 %v856_v18  ;;  %v1131_v25 = vmul.f32 -1.442695, %v500_v20 }
 0x110   : > { %1410 = vpow2.f32 %v1130_v19  ;;  %v1157_v26 = vmul.f32 -1.442695, %v604_v24  ;;  %v1395_v27 = vpop.eup %1394 }
 0x111   : > { %1412 = vpow2.f32 %v1131_v25  ;;  %v1397_v28 = vpop.eup %1396  ;;  %v831_v29 = vadd.f32 1.0, %v1395_v27  ;;  %v504_v30 = vpop.f32.mrb[12].mxu0 }
 0x112   : > { %1414 = vpow2.f32 %v1156_v23  ;;  %v608_v31 = vpop.f32.mrb[12].mxu1  ;;  %v1399_v32 = vpop.eup %1398  ;;  %v857_v33 = vadd.f32 1.0, %v1397_v28  ;;  %v505_v35 = vadd.f32 %v1750_v34, %v504_v30 }
 0x113   : > { %1416 = vpow2.f32 %v1157_v26  ;;  %v1241_v36 = vpop.f32.mrb[13].mxu0  ;;  %v609_v37 = vadd.f32 %v1750_v34, %v608_v31  ;;  %v1293_v38 = vpop.f32.mrb[13].mxu1  ;;  %v832_v40 = vadd.f32 1.0, %v1399_v32 }
 0x114   : > { %v1401_v39 = vpop.eup %1400  ;;  %1418 = vrcp.f32 %v831_v29  ;;  %v507_v41 = vpop.f32.mrb[14].mxu0  ;;  %v1132_v44 = vmul.f32 -1.442695, %v505_v35 }
 0x115   : > { %v611_v42 = vpop.f32.mrb[14].mxu1  ;;  %1420 = vrcp.f32 %v857_v33  ;;  %v858_v43 = vadd.f32 1.0, %v1401_v39  ;;  %v508_v45 = vadd.f32 %v1750_v34, %v507_v41  ;;  %v1242_v46 = vpop.f32.mrb[15].mxu0  ;;  %v1158_v49 = vmul.f32 -1.442695, %v609_v37 }
 0x116   : > { %v1294_v47 = vpop.f32.mrb[15].mxu1  ;;  %v1403_v48 = vpop.eup %1402  ;;  %1422 = vrcp.f32 %v832_v40  ;;  %v612_v50 = vadd.f32 %v1750_v34, %v611_v42 }
 0x117   : > { %v1405_v51 = vpop.eup %1404  ;;  %979 = vst [vmem:[%s1770_s14] sm:$0xff] %v1403_v48  ;;  %1424 = vrcp.f32 %v858_v43  ;;  %v1133_v52 = vmul.f32 -1.442695, %v508_v45 }
 0x118   : > { %v1407_v53 = vpop.eup %1406  ;;  %1005 = vst [vmem:[%s1770_s14 + $0xd0] sm:$0xff] %v1405_v51  ;;  %1426 = vpow2.f32 %v1132_v44  ;;  %v1159_v54 = vmul.f32 -1.442695, %v612_v50 }
 0x119   : > { %v1409_v55 = vpop.eup %1408  ;;  %980 = vst [vmem:[%s1770_s14 + $0x8] sm:$0xff] %v1407_v53  ;;  %1428 = vpow2.f32 %v1133_v52  ;;  %v512_v57 = vpop.f32.mrb[16].mxu0 }
 0x11a   : > { %v1411_v56 = vpop.eup %1410  ;;  %1006 = vst [vmem:[%s1770_s14 + $0xd8] sm:$0xff] %v1409_v55  ;;  %1430 = vpow2.f32 %v1158_v49  ;;  %v616_v58 = vpop.f32.mrb[16].mxu1  ;;  %v513_v61 = vadd.f32 %v1750_v34, %v512_v57 }
 0x11b   : > { %v1413_v59 = vpop.eup %1412  ;;  %v833_v60 = vadd.f32 1.0, %v1411_v56  ;;  %1432 = vpow2.f32 %v1159_v54  ;;  %v1245_v62 = vpop.f32.mrb[17].mxu0  ;;  %v617_v63 = vadd.f32 %v1750_v34, %v616_v58 }
 0x11c   : > { %v1297_v0 = vpop.f32.mrb[17].mxu1  ;;  %v1415_v1 = vpop.eup %1414  ;;  %v834_v2 = vadd.f32 1.0, %v1413_v59  ;;  %v1134_v7 = vmul.f32 -1.442695, %v513_v61 }
 0x11d   : > { %v515_v3 = vpop.f32.mrb[18].mxu0  ;;  %v619_v4 = vpop.f32.mrb[18].mxu1  ;;  %1434 = vrcp.f32 %v833_v60  ;;  %v859_v6 = vadd.f32 1.0, %v1415_v1  ;;  %v1160_v16 = vmul.f32 -1.442695, %v617_v63 }
 0x11e   : > { %v1417_v5 = vpop.eup %1416  ;;  %v516_v8 = vadd.f32 %v1750_v34, %v515_v3  ;;  %v1246_v9 = vpop.f32.mrb[19].mxu0  ;;  %1436 = vrcp.f32 %v834_v2  ;;  %v620_v13 = vadd.f32 %v1750_v34, %v619_v4 }
 0x11f   : > { %v1298_v10 = vpop.f32.mrb[19].mxu1  ;;  %v1419_v11 = vpop.eup %1418  ;;  %v860_v12 = vadd.f32 1.0, %v1417_v5  ;;  %1438 = vrcp.f32 %v859_v6 }
 0x120   : > { %v1421_v14 = vpop.eup %1420  ;;  %981 = vst [vmem:[%s1770_s14 + $0x10] sm:$0xff] %v1419_v11  ;;  %v1135_v15 = vmul.f32 -1.442695, %v516_v8  ;;  %v1161_v18 = vmul.f32 -1.442695, %v620_v13 }
 0x121   : > { %v1423_v17 = vpop.eup %1422  ;;  %1007 = vst [vmem:[%s1770_s14 + $0xe0] sm:$0xff] %v1421_v14  ;;  %1440 = vrcp.f32 %v860_v12  ;;  %v520_v21 = vpop.f32.mrb[20].mxu0 }
 0x122   : > { %v1425_v19 = vpop.eup %1424  ;;  %982 = vst [vmem:[%s1770_s14 + $0x18] sm:$0xff] %v1423_v17  ;;  %1442 = vpow2.f32 %v1134_v7  ;;  %v624_v22 = vpop.f32.mrb[20].mxu1  ;;  %v521_v25 = vadd.f32 %v1750_v34, %v520_v21 }
 0x123   : > { %v1427_v20 = vpop.eup %1426  ;;  %1008 = vst [vmem:[%s1770_s14 + $0xe8] sm:$0xff] %v1425_v19  ;;  %1444 = vpow2.f32 %v1135_v15  ;;  %v1249_v26 = vpop.f32.mrb[21].mxu0  ;;  %v625_v27 = vadd.f32 %v1750_v34, %v624_v22 }
 0x124   : > { %v1429_v23 = vpop.eup %1428  ;;  %v835_v24 = vadd.f32 1.0, %v1427_v20  ;;  %1446 = vpow2.f32 %v1160_v16  ;;  %v1301_v28 = vpop.f32.mrb[21].mxu1  ;;  %v1136_v36 = vmul.f32 -1.442695, %v521_v25 }
 0x125   : > { %v1431_v29 = vpop.eup %1430  ;;  %v836_v30 = vadd.f32 1.0, %v1429_v23  ;;  %1448 = vpow2.f32 %v1161_v18  ;;  %v523_v31 = vpop.f32.mrb[22].mxu0  ;;  %v1162_v44 = vmul.f32 -1.442695, %v625_v27 }
 0x126   : > { %v627_v32 = vpop.f32.mrb[22].mxu1  ;;  %v1433_v33 = vpop.eup %1432  ;;  %1450 = vrcp.f32 %v835_v24  ;;  %v861_v35 = vadd.f32 1.0, %v1431_v29  ;;  %v524_v37 = vadd.f32 %v1750_v34, %v523_v31 }
 0x127   : > { %v1250_v38 = vpop.f32.mrb[23].mxu0  ;;  %v1302_v39 = vpop.f32.mrb[23].mxu1  ;;  %1452 = vrcp.f32 %v836_v30  ;;  %v862_v40 = vadd.f32 1.0, %v1433_v33  ;;  %v628_v41 = vadd.f32 %v1750_v34, %v627_v32 }
 0x128   : > { %v1435_v42 = vpop.eup %1434  ;;  %1454 = vrcp.f32 %v861_v35  ;;  %v1137_v43 = vmul.f32 -1.442695, %v524_v37 }
 0x129   : > { %v1437_v45 = vpop.eup %1436  ;;  %983 = vst [vmem:[%s1770_s14 + $0x20] sm:$0xff] %v1435_v42  ;;  %1456 = vrcp.f32 %v862_v40  ;;  %v1163_v46 = vmul.f32 -1.442695, %v628_v41  ;;  %v528_v49 = vpop.f32.mrb[24].mxu0 }
 0x12a   : > { %v1439_v47 = vpop.eup %1438  ;;  %984 = vst [vmem:[%s1770_s14 + $0x28] sm:$0xff] %v1437_v45  ;;  %1458 = vpow2.f32 %v1136_v36  ;;  %v632_v50 = vpop.f32.mrb[24].mxu1  ;;  %v529_v52 = vadd.f32 %v1750_v34, %v528_v49 }
 0x12b   : > { %v1441_v48 = vpop.eup %1440  ;;  %1009 = vst [vmem:[%s1770_s14 + $0xf0] sm:$0xff] %v1439_v47  ;;  %1460 = vpow2.f32 %v1137_v43  ;;  %v1253_v53 = vpop.f32.mrb[25].mxu0  ;;  %v633_v58 = vadd.f32 %v1750_v34, %v632_v50 }
 0x12c   : > { %v1443_v51 = vpop.eup %1442  ;;  %1010 = vst [vmem:[%s1770_s14 + $0xf8] sm:$0xff] %v1441_v48  ;;  %1462 = vpow2.f32 %v1162_v44  ;;  %v1305_v54 = vpop.f32.mrb[25].mxu1  ;;  %v1138_v2 = vmul.f32 -1.442695, %v529_v52 }
 0x12d   : > { %v1445_v55 = vpop.eup %1444  ;;  %v837_v56 = vadd.f32 1.0, %v1443_v51  ;;  %1464 = vpow2.f32 %v1163_v46  ;;  %v531_v57 = vpop.f32.mrb[26].mxu0  ;;  %v1164_v9 = vmul.f32 -1.442695, %v633_v58 }
 0x12e   : > { %v635_v59 = vpop.f32.mrb[26].mxu1  ;;  %v1447_v60 = vpop.eup %1446  ;;  %v838_v61 = vadd.f32 1.0, %v1445_v55  ;;  %v532_v62 = vadd.f32 %v1750_v34, %v531_v57 }
 0x12f   : > { %v1254_v63 = vpop.f32.mrb[27].mxu0  ;;  %v1449_v0 = vpop.eup %1448  ;;  %1466 = vrcp.f32 %v837_v56  ;;  %v863_v1 = vadd.f32 1.0, %v1447_v60  ;;  %v636_v3 = vadd.f32 %v1750_v34, %v635_v59 }
 0x130   : > { %v1306_v4 = vpop.f32.mrb[27].mxu1  ;;  %v1451_v5 = vpop.eup %1450  ;;  %1468 = vrcp.f32 %v838_v61  ;;  %v864_v6 = vadd.f32 1.0, %v1449_v0  ;;  %v1139_v7 = vmul.f32 -1.442695, %v532_v62 }
 0x131   : > { %v1453_v8 = vpop.eup %1452  ;;  %985 = vst [vmem:[%s1770_s14 + $0x30] sm:$0xff] %v1451_v5  ;;  %1470 = vrcp.f32 %v863_v1  ;;  %v1165_v11 = vmul.f32 -1.442695, %v636_v3  ;;  %v536_v13 = vpop.f32.mrb[28].mxu0 }
 0x132   : > { %v1455_v10 = vpop.eup %1454  ;;  %986 = vst [vmem:[%s1770_s14 + $0x38] sm:$0xff] %v1453_v8  ;;  %1472 = vrcp.f32 %v864_v6  ;;  %v640_v14 = vpop.f32.mrb[28].mxu1  ;;  %v537_v16 = vadd.f32 %v1750_v34, %v536_v13 }
 0x133   : > { %v1457_v12 = vpop.eup %1456  ;;  %1011 = vst [vmem:[%s1770_s14 + $0x100] sm:$0xff] %v1455_v10  ;;  %1474 = vpow2.f32 %v1138_v2  ;;  %v1257_v17 = vpop.f32.mrb[29].mxu0  ;;  %v641_v22 = vadd.f32 %v1750_v34, %v640_v14 }
 0x134   : > { %v1459_v15 = vpop.eup %1458  ;;  %1012 = vst [vmem:[%s1770_s14 + $0x108] sm:$0xff] %v1457_v12  ;;  %1476 = vpow2.f32 %v1139_v7  ;;  %v1309_v18 = vpop.f32.mrb[29].mxu1  ;;  %v1140_v31 = vmul.f32 -1.442695, %v537_v16 }
 0x135   : > { %v1461_v19 = vpop.eup %1460  ;;  %v839_v20 = vadd.f32 1.0, %v1459_v15  ;;  %1478 = vpow2.f32 %v1164_v9  ;;  %v539_v21 = vpop.f32.mrb[30].mxu0  ;;  %v1166_v37 = vmul.f32 -1.442695, %v641_v22 }
 0x136   : > { %v643_v23 = vpop.f32.mrb[30].mxu1  ;;  %v1463_v24 = vpop.eup %1462  ;;  %v840_v25 = vadd.f32 1.0, %v1461_v19  ;;  %1480 = vpow2.f32 %v1165_v11  ;;  %v540_v26 = vadd.f32 %v1750_v34, %v539_v21 }
 0x137   : > { %v1258_v27 = vpop.f32.mrb[31].mxu0  ;;  %v1310_v28 = vpop.f32.mrb[31].mxu1  ;;  %1482 = vrcp.f32 %v839_v20  ;;  %v865_v30 = vadd.f32 1.0, %v1463_v24  ;;  %v644_v32 = vadd.f32 %v1750_v34, %v643_v23 }
 0x138   : > { %v1465_v29 = vpop.eup %1464  ;;  %1484 = vrcp.f32 %v840_v25  ;;  %v1141_v35 = vmul.f32 -1.442695, %v540_v26 }
 0x139   : > { %v866_v33 = vadd.f32 1.0, %v1465_v29  ;;  %v1467_v36 = vpop.eup %1466  ;;  %1486 = vrcp.f32 %v865_v30  ;;  %v1167_v39 = vmul.f32 -1.442695, %v644_v32  ;;  %v544_v41 = vpop.f32.mrb[32].mxu0 }
 0x13a   : > { %v1469_v38 = vpop.eup %1468  ;;  %987 = vst [vmem:[%s1770_s14 + $0x40] sm:$0xff] %v1467_v36  ;;  %v648_v42 = vpop.f32.mrb[32].mxu1  ;;  %v545_v44 = vadd.f32 %v1750_v34, %v544_v41 }
 0x13b   : > { %1488 = vrcp.f32 %v866_v33  ;;  %v1471_v40 = vpop.eup %1470  ;;  %988 = vst [vmem:[%s1770_s14 + $0x48] sm:$0xff] %v1469_v38  ;;  %v1261_v45 = vpop.f32.mrb[33].mxu0  ;;  %v649_v54 = vadd.f32 %v1750_v34, %v648_v42 }
 0x13c   : > { %1490 = vpow2.f32 %v1140_v31  ;;  %v1473_v43 = vpop.eup %1472  ;;  %1013 = vst [vmem:[%s1770_s14 + $0x110] sm:$0xff] %v1471_v40  ;;  %v1313_v46 = vpop.f32.mrb[33].mxu1  ;;  %v1142_v61 = vmul.f32 -1.442695, %v545_v44 }
 0x13d   : > { %1492 = vpow2.f32 %v1141_v35  ;;  %v1475_v47 = vpop.eup %1474  ;;  %1014 = vst [vmem:[%s1770_s14 + $0x118] sm:$0xff] %v1473_v43  ;;  %v547_v48 = vpop.f32.mrb[34].mxu0  ;;  %v1168_v2 = vmul.f32 -1.442695, %v649_v54 }
 0x13e   : > { %1494 = vpow2.f32 %v1166_v37  ;;  %v651_v49 = vpop.f32.mrb[34].mxu1  ;;  %v1477_v50 = vpop.eup %1476  ;;  %v841_v51 = vadd.f32 1.0, %v1475_v47  ;;  %v548_v52 = vadd.f32 %v1750_v34, %v547_v48 }
 0x13f   : > { %1496 = vpow2.f32 %v1167_v39  ;;  %v1262_v53 = vpop.f32.mrb[35].mxu0  ;;  %v1314_v55 = vpop.f32.mrb[35].mxu1  ;;  %v842_v57 = vadd.f32 1.0, %v1477_v50  ;;  %v652_v58 = vadd.f32 %v1750_v34, %v651_v49 }
 0x140   : > { %v1479_v56 = vpop.eup %1478  ;;  %1498 = vrcp.f32 %v841_v51  ;;  %v1143_v0 = vmul.f32 -1.442695, %v548_v52 }
 0x141   : > { %v1481_v59 = vpop.eup %1480  ;;  %v867_v60 = vadd.f32 1.0, %v1479_v56  ;;  %1500 = vrcp.f32 %v842_v57  ;;  %v1169_v4 = vmul.f32 -1.442695, %v652_v58  ;;  %v552_v5 = vpop.f32.mrb[36].mxu0 }
 0x142   : > { %v1483_v62 = vpop.eup %1482  ;;  %v868_v63 = vadd.f32 1.0, %v1481_v59  ;;  %v656_v6 = vpop.f32.mrb[36].mxu1  ;;  %v553_v8 = vadd.f32 %v1750_v34, %v552_v5 }
 0x143   : > { %v1485_v1 = vpop.eup %1484  ;;  %989 = vst [vmem:[%s1770_s14 + $0x50] sm:$0xff] %v1483_v62  ;;  %1502 = vrcp.f32 %v867_v60  ;;  %v1265_v9 = vpop.f32.mrb[37].mxu0  ;;  %v657_v18 = vadd.f32 %v1750_v34, %v656_v6 }
 0x144   : > { %v1487_v3 = vpop.eup %1486  ;;  %990 = vst [vmem:[%s1770_s14 + $0x58] sm:$0xff] %v1485_v1  ;;  %1504 = vrcp.f32 %v868_v63  ;;  %v1317_v10 = vpop.f32.mrb[37].mxu1  ;;  %v1144_v25 = vmul.f32 -1.442695, %v553_v8 }
 0x145   : > { %v1489_v7 = vpop.eup %1488  ;;  %1015 = vst [vmem:[%s1770_s14 + $0x120] sm:$0xff] %v1487_v3  ;;  %1506 = vpow2.f32 %v1142_v61  ;;  %v555_v12 = vpop.f32.mrb[38].mxu0  ;;  %v1170_v29 = vmul.f32 -1.442695, %v657_v18 }
 0x146   : > { %v1491_v11 = vpop.eup %1490  ;;  %1016 = vst [vmem:[%s1770_s14 + $0x128] sm:$0xff] %v1489_v7  ;;  %1508 = vpow2.f32 %v1143_v0  ;;  %v659_v13 = vpop.f32.mrb[38].mxu1  ;;  %v556_v16 = vadd.f32 %v1750_v34, %v555_v12 }
 0x147   : > { %v1493_v14 = vpop.eup %1492  ;;  %v843_v15 = vadd.f32 1.0, %v1491_v11  ;;  %1510 = vpow2.f32 %v1168_v2  ;;  %v1266_v17 = vpop.f32.mrb[39].mxu0  ;;  %v660_v22 = vadd.f32 %v1750_v34, %v659_v13 }
 0x148   : > { %v1318_v19 = vpop.f32.mrb[39].mxu1  ;;  %v1495_v20 = vpop.eup %1494  ;;  %v844_v21 = vadd.f32 1.0, %v1493_v14  ;;  %1512 = vpow2.f32 %v1169_v4  ;;  %v1145_v27 = vmul.f32 -1.442695, %v556_v16 }
 0x149   : > { %v1497_v23 = vpop.eup %1496  ;;  %1514 = vrcp.f32 %v843_v15  ;;  %v869_v24 = vadd.f32 1.0, %v1495_v20  ;;  %v1171_v31 = vmul.f32 -1.442695, %v660_v22  ;;  %v560_v32 = vpop.f32.mrb[40].mxu0 }
 0x14a   : > { %1516 = vrcp.f32 %v844_v21  ;;  %v870_v26 = vadd.f32 1.0, %v1497_v23  ;;  %v1499_v28 = vpop.eup %1498  ;;  %v664_v33 = vpop.f32.mrb[40].mxu1  ;;  %v561_v36 = vadd.f32 %v1750_v34, %v560_v32 }
 0x14b   : > { %1518 = vrcp.f32 %v869_v24  ;;  %v1501_v30 = vpop.eup %1500  ;;  %991 = vst [vmem:[%s1770_s14 + $0x60] sm:$0xff] %v1499_v28  ;;  %v1269_v37 = vpop.f32.mrb[41].mxu0  ;;  %v665_v46 = vadd.f32 %v1750_v34, %v664_v33 }
 0x14c   : > { %1520 = vrcp.f32 %v870_v26  ;;  %992 = vst [vmem:[%s1770_s14 + $0x68] sm:$0xff] %v1501_v30  ;;  %v1321_v38 = vpop.f32.mrb[41].mxu1  ;;  %v563_v40 = vpop.f32.mrb[42].mxu0  ;;  %v1146_v43 = vmul.f32 -1.442695, %v561_v36 }
 0x14d   : > { %v1503_v35 = vpop.eup %1502  ;;  %1522 = vpow2.f32 %v1144_v25  ;;  %v667_v41 = vpop.f32.mrb[42].mxu1  ;;  %v564_v44 = vadd.f32 %v1750_v34, %v563_v40  ;;  %v1172_v58 = vmul.f32 -1.442695, %v665_v46 }
 0x14e   : > { %v1505_v39 = vpop.eup %1504  ;;  %1017 = vst [vmem:[%s1770_s14 + $0x130] sm:$0xff] %v1503_v35  ;;  %1524 = vpow2.f32 %v1145_v27  ;;  %v1270_v45 = vpop.f32.mrb[43].mxu0  ;;  %v668_v50 = vadd.f32 %v1750_v34, %v667_v41 }
 0x14f   : > { %v1507_v42 = vpop.eup %1506  ;;  %1018 = vst [vmem:[%s1770_s14 + $0x138] sm:$0xff] %v1505_v39  ;;  %1526 = vpow2.f32 %v1170_v29  ;;  %v1322_v47 = vpop.f32.mrb[43].mxu1  ;;  %v1147_v55 = vmul.f32 -1.442695, %v564_v44 }
 0x150   : > { %v1509_v48 = vpop.eup %1508  ;;  %v845_v49 = vadd.f32 1.0, %v1507_v42  ;;  %1528 = vpow2.f32 %v1171_v31  ;;  %v1173_v60 = vmul.f32 -1.442695, %v668_v50 }
 0x151   : > { %v1511_v51 = vpop.eup %1510  ;;  %v846_v52 = vadd.f32 1.0, %v1509_v48  ;;  %1530 = vpow2.f32 %v1146_v43  ;;  %v568_v61 = vpop.f32.mrb[44].mxu0 }
 0x152   : > { %v1513_v53 = vpop.eup %1512  ;;  %1532 = vrcp.f32 %v845_v49  ;;  %v871_v54 = vadd.f32 1.0, %v1511_v51  ;;  %v672_v62 = vpop.f32.mrb[44].mxu1  ;;  %v569_v0 = vadd.f32 %v1750_v34, %v568_v61 }
 0x153   : > { %v1515_v56 = vpop.eup %1514  ;;  %1534 = vrcp.f32 %v846_v52  ;;  %v872_v57 = vadd.f32 1.0, %v1513_v53  ;;  %v1273_v1 = vpop.f32.mrb[45].mxu0  ;;  %v673_v13 = vadd.f32 %v1750_v34, %v672_v62 }
 0x154   : > { %v1517_v59 = vpop.eup %1516  ;;  %993 = vst [vmem:[%s1770_s14 + $0x70] sm:$0xff] %v1515_v56  ;;  %1536 = vrcp.f32 %v871_v54  ;;  %v1325_v2 = vpop.f32.mrb[45].mxu1  ;;  %v1148_v7 = vmul.f32 -1.442695, %v569_v0 }
 0x155   : > { %v1519_v63 = vpop.eup %1518  ;;  %994 = vst [vmem:[%s1770_s14 + $0x78] sm:$0xff] %v1517_v59  ;;  %1538 = vrcp.f32 %v872_v57  ;;  %v571_v4 = vpop.f32.mrb[46].mxu0  ;;  %v1174_v24 = vmul.f32 -1.442695, %v673_v13 }
 0x156   : > { %v1521_v3 = vpop.eup %1520  ;;  %1019 = vst [vmem:[%s1770_s14 + $0x140] sm:$0xff] %v1519_v63  ;;  %1540 = vpow2.f32 %v1147_v55  ;;  %v675_v5 = vpop.f32.mrb[46].mxu1  ;;  %v572_v8 = vadd.f32 %v1750_v34, %v571_v4 }
 0x157   : > { %v1523_v6 = vpop.eup %1522  ;;  %1020 = vst [vmem:[%s1770_s14 + $0x148] sm:$0xff] %v1521_v3  ;;  %1542 = vpow2.f32 %v1172_v58  ;;  %v1274_v9 = vpop.f32.mrb[47].mxu0  ;;  %v676_v16 = vadd.f32 %v1750_v34, %v675_v5 }
 0x158   : > { %v1326_v10 = vpop.f32.mrb[47].mxu1  ;;  %v1525_v11 = vpop.eup %1524  ;;  %v847_v12 = vadd.f32 1.0, %v1523_v6  ;;  %1544 = vpow2.f32 %v1173_v60  ;;  %v1149_v21 = vmul.f32 -1.442695, %v572_v8 }
 0x159   : > { %v1527_v14 = vpop.eup %1526  ;;  %v848_v15 = vadd.f32 1.0, %v1525_v11  ;;  %1546 = vpow2.f32 %v1148_v7  ;;  %v576_v25 = vpop.f32.mrb[48].mxu0  ;;  %v1175_v27 = vmul.f32 -1.442695, %v676_v16 }
 0x15a   : > { %v1529_v17 = vpop.eup %1528  ;;  %1548 = vrcp.f32 %v847_v12  ;;  %v873_v18 = vadd.f32 1.0, %v1527_v14  ;;  %v577_v28 = vadd.f32 %v1750_v34, %v576_v25  ;;  %v1277_v29 = vpop.f32.mrb[49].mxu0 }
 0x15b   : > { %v1531_v19 = vpop.eup %1530  ;;  %1550 = vrcp.f32 %v848_v15  ;;  %v874_v20 = vadd.f32 1.0, %v1529_v17  ;;  %v579_v31 = vpop.f32.mrb[50].mxu0 }
 0x15c   : > { %v1533_v22 = vpop.eup %1532  ;;  %1552 = vrcp.f32 %v873_v18  ;;  %v849_v23 = vadd.f32 1.0, %v1531_v19  ;;  %v1150_v33 = vmul.f32 -1.442695, %v577_v28  ;;  %v580_v35 = vadd.f32 %v1750_v34, %v579_v31  ;;  %v1278_v36 = vpop.f32.mrb[51].mxu0 }
 0x15d   : > { %v1535_v26 = vpop.eup %1534  ;;  %995 = vst [vmem:[%s1770_s14 + $0x80] sm:$0xff] %v1533_v22  ;;  %1554 = vrcp.f32 %v874_v20 }
 0x15e   : > { %v1537_v30 = vpop.eup %1536  ;;  %996 = vst [vmem:[%s1770_s14 + $0x88] sm:$0xff] %v1535_v26  ;;  %1556 = vrcp.f32 %v849_v23  ;;  %v1151_v44 = vmul.f32 -1.442695, %v580_v35 }
 0x15f   : > { %v1539_v32 = vpop.eup %1538  ;;  %1021 = vst [vmem:[%s1770_s14 + $0x150] sm:$0xff] %v1537_v30  ;;  %1558 = vpow2.f32 %v1149_v21 }
 0x160   : > { %v1541_v37 = vpop.eup %1540  ;;  %1022 = vst [vmem:[%s1770_s14 + $0x158] sm:$0xff] %v1539_v32  ;;  %1560 = vpow2.f32 %v1174_v24 }
 0x161   : > { %v1543_v38 = vpop.eup %1542  ;;  %v850_v39 = vadd.f32 1.0, %v1541_v37  ;;  %1562 = vpow2.f32 %v1175_v27 }
 0x162   : > { %v1545_v40 = vpop.eup %1544  ;;  %v875_v41 = vadd.f32 1.0, %v1543_v38  ;;  %1564 = vpow2.f32 %v1150_v33 }
 0x163   : > { %v1547_v42 = vpop.eup %1546  ;;  %1566 = vrcp.f32 %v850_v39  ;;  %v876_v43 = vadd.f32 1.0, %v1545_v40 }
 0x164   : > { %v1549_v34 = vpop.eup %1548  ;;  %1568 = vrcp.f32 %v875_v41  ;;  %v851_v45 = vadd.f32 1.0, %v1547_v42 }
 0x165   : > { %v1551_v46 = vpop.eup %1550  ;;  %997 = vst [vmem:[%s1770_s14 + $0x90] sm:$0xff] %v1549_v34  ;;  %1570 = vrcp.f32 %v876_v43 }
 0x166   : > { %v1553_v47 = vpop.eup %1552  ;;  %998 = vst [vmem:[%s1770_s14 + $0x98] sm:$0xff] %v1551_v46  ;;  %1572 = vrcp.f32 %v851_v45 }
 0x167   : > { %v1555_v48 = vpop.eup %1554  ;;  %1023 = vst [vmem:[%s1770_s14 + $0x160] sm:$0xff] %v1553_v47  ;;  %1574 = vpow2.f32 %v1151_v44 }
 0x168   : > { %v1557_v49 = vpop.eup %1556  ;;  %1024 = vst [vmem:[%s1770_s14 + $0x168] sm:$0xff] %v1555_v48 }
 0x169   : > { %v1559_v50 = vpop.eup %1558  ;;  %999 = vst [vmem:[%s1770_s14 + $0xa0] sm:$0xff] %v1557_v49 }
 0x16a   : > { %v1561_v51 = vpop.eup %1560  ;;  %v852_v52 = vadd.f32 1.0, %v1559_v50 }
 0x16b   : > { %v1563_v53 = vpop.eup %1562  ;;  %v877_v54 = vadd.f32 1.0, %v1561_v51 }
 0x16c   : > { %v1565_v55 = vpop.eup %1564  ;;  %1576 = vrcp.f32 %v852_v52  ;;  %v878_v56 = vadd.f32 1.0, %v1563_v53 }
 0x16d   : > { %v1567_v57 = vpop.eup %1566  ;;  %1578 = vrcp.f32 %v877_v54  ;;  %v853_v58 = vadd.f32 1.0, %v1565_v55 }
 0x16e   : > { %v1569_v59 = vpop.eup %1568  ;;  %1000 = vst [vmem:[%s1770_s14 + $0xa8] sm:$0xff] %v1567_v57  ;;  %1580 = vrcp.f32 %v878_v56 }
 0x16f   : > { %v1571_v60 = vpop.eup %1570  ;;  %1025 = vst [vmem:[%s1770_s14 + $0x170] sm:$0xff] %v1569_v59  ;;  %1582 = vrcp.f32 %v853_v58 }
 0x170   : > { %v1573_v61 = vpop.eup %1572  ;;  %1026 = vst [vmem:[%s1770_s14 + $0x178] sm:$0xff] %v1571_v60 }
 0x171   : > { %v1575_v62 = vpop.eup %1574  ;;  %1001 = vst [vmem:[%s1770_s14 + $0xb0] sm:$0xff] %v1573_v61 }
 0x172   : > { %v854_v63 = vadd.f32 1.0, %v1575_v62 }
 0x174   : > { %1584 = vrcp.f32 %v854_v63 }
 0x176   : > { %v1577_v0 = vpop.eup %1576 }
 0x177   : > { %v1579_v1 = vpop.eup %1578  ;;  %1002 = vst [vmem:[%s1770_s14 + $0xb8] sm:$0xff] %v1577_v0 }
 0x178   : > { %v1581_v2 = vpop.eup %1580  ;;  %1027 = vst [vmem:[%s1770_s14 + $0x180] sm:$0xff] %v1579_v1 }
 0x179   : > { %v1583_v3 = vpop.eup %1582  ;;  %1028 = vst [vmem:[%s1770_s14 + $0x188] sm:$0xff] %v1581_v2 }
 0x17a   : > { %1003 = vst [vmem:[%s1770_s14 + $0xc0] sm:$0xff] %v1583_v3 }
 0x17e   : > { %v1585_v4 = vpop.eup %1584 }
 0x17f   : > { %1004 = vst [vmem:[%s1770_s14 + $0xc8] sm:$0xff] %v1585_v4 }
 0x180 PF: > { %s13_s12 = sadd.s32 1, %s1592_s12  }
 0x181   : > { %p10_p4 = scmp.ge.s32.totalorder %s13_s12, 6  }
 0x183   :  { %12 = sbr.rel (!%p10_p4) target bundleno = 1 (0x1), region = 62 }

</bundles_post_ra>
